<compile_context>
chip_gen: v5e
topology: v5e:2x2
jax: 0.10.0
libtpu: 0.0.40
codegen_flags: <defaults>
</compile_context>

<pallas_src>
import functools

import jax
import jax.numpy as jnp
from jax.experimental import pallas as pl
from jax.experimental.pallas import tpu as pltpu


def _widedeep_kernel(sigmoid_out,
                     idx_ref, dense_ref,
                     sp_w1_ref, sp_wide_ref,
                     w1d_ref, b1_ref, w2_ref, b2_ref, w3_ref, wdw_ref,
                     bias_ref, out_ref):
    """Fused wide + deep forward for one batch tile.

    idx_ref   : [TB, F]       int32 offset-adjusted sparse+cross indices (streamed)
    dense_ref : [TB, n_dense] bf16 dense features (streamed)
    sp_w1_ref : [V, H1]       pre-fused (embedding @ W1-slice) table (resident)
    sp_wide_ref:[V, 1]        concatenated wide 1-d embedding table (resident)
    w1d_ref   : [n_dense, H1] W1 rows for dense features
    b1/b2     : [1, H1]/[1, H2]
    w2        : [H1, H2]
    w3        : [H2, 1]
    wdw_ref   : [n_dense, 1]  wide dense linear weight
    bias_ref  : [1, 1] SMEM   fused scalar bias (wide_dense_b + b3)
    out_ref   : [TB, 1]
    """
    tb, n_feat = idx_ref.shape
    v_total = sp_w1_ref.shape[0]

    # ---- multi-hot encoding of the sparse+cross indices (VPU) ----
    idx = idx_ref[...]                                             # [TB, F] int32
    iota = jax.lax.broadcasted_iota(jnp.int32, (tb, v_total), 1)   # [TB, V]
    mh = jnp.zeros((tb, v_total), jnp.float32)
    for f in range(n_feat):                                        # static unroll, F small
        mh = mh + jnp.where(idx[:, f:f + 1] == iota, 1.0, 0.0)

    # ---- sparse/cross contributions via fused embedding->Linear tables (MXU) ----
    h1_sp = jnp.dot(mh, sp_w1_ref[...],
                    preferred_element_type=jnp.float32)            # [TB, H1]
    wide_sp = jnp.dot(mh, sp_wide_ref[...],
                      preferred_element_type=jnp.float32)          # [TB, 1]

    # ---- deep tower: (fused L1) -> ReLU -> Linear -> ReLU -> Linear(1) ----
    dense = dense_ref[...].astype(jnp.float32)                     # [TB, n_dense]
    h = h1_sp + jnp.dot(dense, w1d_ref[...],
                        preferred_element_type=jnp.float32) + b1_ref[...]
    h = jnp.maximum(h, 0.0)
    h = jnp.dot(h, w2_ref[...], preferred_element_type=jnp.float32) + b2_ref[...]
    h = jnp.maximum(h, 0.0)
    deep_out = jnp.dot(h, w3_ref[...],
                       preferred_element_type=jnp.float32)         # [TB, 1]

    # ---- wide tower + fused scalar bias (wide_dense_b + b3) ----
    wide_out = wide_sp + jnp.dot(dense, wdw_ref[...],
                                 preferred_element_type=jnp.float32)
    out = deep_out + wide_out + bias_ref[0, 0]
    if sigmoid_out:
        out = jax.nn.sigmoid(out)
    out_ref[...] = out


def widedeep_pallas(params, sparse_idx, cross_idx, dense_vals, dense_names,
                    sigmoid_out=False, block_b=512):
    """Wrapper: builds streamed index/dense tensors and pre-fused tables,
    then runs the batch-tiled Pallas kernel."""
    sc_idx = {**sparse_idx, **cross_idx}          # sparse + cross features
    feat_names = list(sc_idx.keys())
    n_feat = len(feat_names)
    n_dense = len(dense_names)
    embed_dim = params["deep_emb"][feat_names[0]].shape[1]
    h1 = params["w1"].shape[1]
    h2 = params["w2"].shape[1]

    # Per-feature offsets into the concatenated sparse+cross vocabulary.
    offsets, acc = [], 0
    for f in feat_names:
        offsets.append(acc)
        acc += params["deep_emb"][f].shape[0]
    v_total = acc

    # Streamed per-sample inputs: offset indices [B, F] int32, dense [B, n_dense] bf16.
    idx = jnp.stack([sc_idx[f].astype(jnp.int32) + offsets[i]
                     for i, f in enumerate(feat_names)], axis=-1)
    dense_x = jnp.stack([dense_vals[f] for f in dense_names],
                        axis=-1).astype(jnp.bfloat16)

    # Pre-fused tables (tiny; computed once, resident in VMEM across the grid):
    #   fused row (offset_f + v) = deep_emb[f][v] @ W1[f*D:(f+1)*D, :]
    sp_w1 = jnp.concatenate(
        [params["deep_emb"][f] @ params["w1"][i * embed_dim:(i + 1) * embed_dim, :]
         for i, f in enumerate(feat_names)], axis=0)               # [V, H1]
    sp_wide = jnp.concatenate([params["wide_emb"][f] for f in feat_names],
                              axis=0)                              # [V, 1]
    w1_dense = params["w1"][n_feat * embed_dim:, :]                # [n_dense, H1]
    bias_last = (params["b3"] + params["wide_dense_b"]).reshape(1, 1)

    B = idx.shape[0]
    tb = min(block_b, B)
    grid = (pl.cdiv(B, tb),)

    out = pl.pallas_call(
        functools.partial(_widedeep_kernel, sigmoid_out),
        out_shape=jax.ShapeDtypeStruct((B, 1), jnp.float32),
        grid=grid,
        in_specs=[
            pl.BlockSpec((tb, n_feat), lambda i: (i, 0)),       # idx (streamed)
            pl.BlockSpec((tb, n_dense), lambda i: (i, 0)),      # dense (streamed)
            pl.BlockSpec((v_total, h1), lambda i: (0, 0)),      # fused sparse->H1 table
            pl.BlockSpec((v_total, 1), lambda i: (0, 0)),       # wide 1-d emb table
            pl.BlockSpec((n_dense, h1), lambda i: (0, 0)),      # W1 dense rows
            pl.BlockSpec((1, h1), lambda i: (0, 0)),            # b1
            pl.BlockSpec((h1, h2), lambda i: (0, 0)),           # W2
            pl.BlockSpec((1, h2), lambda i: (0, 0)),            # b2
            pl.BlockSpec((h2, 1), lambda i: (0, 0)),            # W3
            pl.BlockSpec((n_dense, 1), lambda i: (0, 0)),       # wide dense W
            pl.BlockSpec(memory_space=pltpu.MemorySpace.SMEM),  # fused scalar bias
        ],
        out_specs=pl.BlockSpec((tb, 1), lambda i: (i, 0)),
        compiler_params=pltpu.CompilerParams(
            dimension_semantics=("parallel",)),                 # megacore on v7x
    )(idx, dense_x, sp_w1, sp_wide, w1_dense,
      params["b1"], params["w2"], params["b2"], params["w3"],
      params["wide_dense_w"], bias_last)
    return out[:, 0]                              # squeeze(1) -> [B]


def widedeep_ref(params, sparse_idx, cross_idx, dense_vals, dense_names,
                 sigmoid_out=False):
    """Pure-JAX reference (original module math, f32) for correctness."""
    sc_idx = {**sparse_idx, **cross_idx}
    feat_names = list(sc_idx.keys())
    wide_sp = sum(jnp.take(params["wide_emb"][f], sc_idx[f], axis=0)
                  for f in feat_names)
    deep_sp = jnp.concatenate(
        [jnp.take(params["deep_emb"][f], sc_idx[f], axis=0) for f in feat_names],
        axis=-1)
    dense_x = jnp.stack([dense_vals[f] for f in dense_names], axis=-1)
    deep_x = jnp.concatenate([deep_sp, dense_x], axis=-1)

    h = jnp.maximum(deep_x @ params["w1"] + params["b1"], 0.0)
    h = jnp.maximum(h @ params["w2"] + params["b2"], 0.0)
    deep_out = h @ params["w3"] + params["b3"]
    wide_out = dense_x @ params["wide_dense_w"] + params["wide_dense_b"] + wide_sp
    out = (wide_out + deep_out)[:, 0]
    if sigmoid_out:
        out = jax.nn.sigmoid(out)
    return out


if __name__ == "__main__":
    # ---- model config (consistent with the module's __init__) ----
    B = 2048                               # batch; tiled into 512-row blocks
    embed_dim = 8
    sparse_feat_and_nums = [("s0", 10), ("s1", 20), ("s2", 30)]
    cross_feat_and_nums = [("c0", 15), ("c1", 25)]
    dense_feat = ["d0", "d1", "d2", "d3"]
    deep_layers = [32, 16, 1]              # last hidden dim must be 1
    sigmoid_out = True
    assert deep_layers[-1] == 1

    sc_feats = sparse_feat_and_nums + cross_feat_and_nums
    deep_dim = len(sc_feats) * embed_dim + len(dense_feat)   # 5*8 + 4 = 44

    # ---- deterministic parameter init ----
    key = jax.random.PRNGKey(0)
    keys = iter(jax.random.split(key, 64))
    params = {
        "wide_emb": {f: 0.05 * jax.random.normal(next(keys), (n, 1), jnp.float32)
                     for f, n in sc_feats},
        "deep_emb": {f: 0.05 * jax.random.normal(next(keys), (n, embed_dim),
                                                 jnp.float32)
                     for f, n in sc_feats},
        "wide_dense_w": 0.05 * jax.random.normal(next(keys),
                                                 (len(dense_feat), 1), jnp.float32),
        "wide_dense_b": jnp.zeros((1, 1), jnp.float32),
        "w1": 0.05 * jax.random.normal(next(keys), (deep_dim, deep_layers[0]),
                                       jnp.float32),
        "b1": jnp.zeros((1, deep_layers[0]), jnp.float32),
        "w2": 0.05 * jax.random.normal(next(keys),
                                       (deep_layers[0], deep_layers[1]), jnp.float32),
        "b2": jnp.zeros((1, deep_layers[1]), jnp.float32),
        "w3": 0.05 * jax.random.normal(next(keys),
                                       (deep_layers[1], deep_layers[2]), jnp.float32),
        "b3": jnp.zeros((1, deep_layers[2]), jnp.float32),
    }

    # ---- deterministic example inputs (the module's `input` dict) ----
    sparse_idx = {f: jax.random.randint(next(keys), (B,), 0, n, jnp.int32)
                  for f, n in sparse_feat_and_nums}
    cross_idx = {f: jax.random.randint(next(keys), (B,), 0, n, jnp.int32)
                 for f, n in cross_feat_and_nums}
    dense_vals = {f: jax.random.normal(next(keys), (B,), jnp.float32)
                  for f in dense_feat}

    out = widedeep_pallas(params, sparse_idx, cross_idx, dense_vals,
                          dense_feat, sigmoid_out=sigmoid_out, block_b=512)
    out = jax.block_until_ready(out)

    ref = widedeep_ref(params, sparse_idx, cross_idx, dense_vals,
                       dense_feat, sigmoid_out=sigmoid_out)
    assert out.shape == (B,)
    # dense features are streamed as bf16 -> loosen tolerance slightly vs f32 ref
    assert jnp.allclose(out, ref, rtol=1e-2, atol=1e-2), (out[:8], ref[:8])

    print("KERNEL_OK")
</pallas_src>

<mosaic_0001>
module attributes {stable_mosaic.version = 11 : i64} {
  func.func @_widedeep_kernel(%arg0: i32, %arg1: memref<512x5xi32, #tpu.memory_space<vmem>>, %arg2: memref<512x4xbf16, #tpu.memory_space<vmem>>, %arg3: memref<100x32xf32, #tpu.memory_space<vmem>>, %arg4: memref<100x1xf32, #tpu.memory_space<vmem>>, %arg5: memref<4x32xf32, #tpu.memory_space<vmem>>, %arg6: memref<1x32xf32, #tpu.memory_space<vmem>>, %arg7: memref<32x16xf32, #tpu.memory_space<vmem>>, %arg8: memref<1x16xf32, #tpu.memory_space<vmem>>, %arg9: memref<16x1xf32, #tpu.memory_space<vmem>>, %arg10: memref<4x1xf32, #tpu.memory_space<vmem>>, %arg11: memref<1x1xf32, #tpu.memory_space<smem>>, %arg12: memref<512x1xf32, #tpu.memory_space<vmem>>) attributes {dimension_semantics = [#tpu.dimension_semantics<parallel>], iteration_bounds = array<i64: 4>, scalar_prefetch = 0 : i64, scratch_operands = 0 : i64, tpu.core_type = #tpu.core_type<tc>, window_params = [{transform_indices = @transform_0, window_bounds = array<i64: 512, 5>}, {transform_indices = @transform_1, window_bounds = array<i64: 512, 4>}, {pipeline_mode = #tpu.pipeline_mode<synchronous>, transform_indices = @transform_2, window_bounds = array<i64: 100, 32>}, {pipeline_mode = #tpu.pipeline_mode<synchronous>, transform_indices = @transform_3, window_bounds = array<i64: 100, 1>}, {pipeline_mode = #tpu.pipeline_mode<synchronous>, transform_indices = @transform_4, window_bounds = array<i64: 4, 32>}, {pipeline_mode = #tpu.pipeline_mode<synchronous>, transform_indices = @transform_5, window_bounds = array<i64: 1, 32>}, {pipeline_mode = #tpu.pipeline_mode<synchronous>, transform_indices = @transform_6, window_bounds = array<i64: 32, 16>}, {pipeline_mode = #tpu.pipeline_mode<synchronous>, transform_indices = @transform_7, window_bounds = array<i64: 1, 16>}, {pipeline_mode = #tpu.pipeline_mode<synchronous>, transform_indices = @transform_8, window_bounds = array<i64: 16, 1>}, {pipeline_mode = #tpu.pipeline_mode<synchronous>, transform_indices = @transform_9, window_bounds = array<i64: 4, 1>}, {transform_indices = @transform_10, window_bounds = array<i64: 1, 1>}, {transform_indices = @transform_11, window_bounds = array<i64: 512, 1>}]} {
    %c0 = arith.constant 0 : index
    %c0_0 = arith.constant 0 : index
    %0 = vector.load %arg1[%c0, %c0_0] : memref<512x5xi32, #tpu.memory_space<vmem>>, vector<512x5xi32>
    %1 = tpu.iota {dimensions = array<i32: 1>} : vector<512x100xi32>
    %cst = arith.constant 0.000000e+00 : f32
    %2 = vector.broadcast %cst : f32 to vector<512x100xf32>
    %3 = vector.extract_strided_slice %0 {offsets = [0, 0], sizes = [512, 1], strides = [1, 1]} : vector<512x5xi32> to vector<512x1xi32>
    %4 = vector.broadcast %3 : vector<512x1xi32> to vector<512x100xi32>
    %5 = arith.cmpi eq, %4, %1 : vector<512x100xi32>
    %cst_1 = arith.constant 1.000000e+00 : f32
    %cst_2 = arith.constant 0.000000e+00 : f32
    %6 = vector.broadcast %cst_1 : f32 to vector<512x100xf32>
    %7 = vector.broadcast %cst_2 : f32 to vector<512x100xf32>
    %8 = arith.select %5, %6, %7 : vector<512x100xi1>, vector<512x100xf32>
    %9 = arith.addf %2, %8 : vector<512x100xf32>
    %10 = vector.extract_strided_slice %0 {offsets = [0, 1], sizes = [512, 1], strides = [1, 1]} : vector<512x5xi32> to vector<512x1xi32>
    %11 = vector.broadcast %10 : vector<512x1xi32> to vector<512x100xi32>
    %12 = arith.cmpi eq, %11, %1 : vector<512x100xi32>
    %cst_3 = arith.constant 1.000000e+00 : f32
    %cst_4 = arith.constant 0.000000e+00 : f32
    %13 = vector.broadcast %cst_3 : f32 to vector<512x100xf32>
    %14 = vector.broadcast %cst_4 : f32 to vector<512x100xf32>
    %15 = arith.select %12, %13, %14 : vector<512x100xi1>, vector<512x100xf32>
    %16 = arith.addf %9, %15 : vector<512x100xf32>
    %17 = vector.extract_strided_slice %0 {offsets = [0, 2], sizes = [512, 1], strides = [1, 1]} : vector<512x5xi32> to vector<512x1xi32>
    %18 = vector.broadcast %17 : vector<512x1xi32> to vector<512x100xi32>
    %19 = arith.cmpi eq, %18, %1 : vector<512x100xi32>
    %cst_5 = arith.constant 1.000000e+00 : f32
    %cst_6 = arith.constant 0.000000e+00 : f32
    %20 = vector.broadcast %cst_5 : f32 to vector<512x100xf32>
    %21 = vector.broadcast %cst_6 : f32 to vector<512x100xf32>
    %22 = arith.select %19, %20, %21 : vector<512x100xi1>, vector<512x100xf32>
    %23 = arith.addf %16, %22 : vector<512x100xf32>
    %24 = vector.extract_strided_slice %0 {offsets = [0, 3], sizes = [512, 1], strides = [1, 1]} : vector<512x5xi32> to vector<512x1xi32>
    %25 = vector.broadcast %24 : vector<512x1xi32> to vector<512x100xi32>
    %26 = arith.cmpi eq, %25, %1 : vector<512x100xi32>
    %cst_7 = arith.constant 1.000000e+00 : f32
    %cst_8 = arith.constant 0.000000e+00 : f32
    %27 = vector.broadcast %cst_7 : f32 to vector<512x100xf32>
    %28 = vector.broadcast %cst_8 : f32 to vector<512x100xf32>
    %29 = arith.select %26, %27, %28 : vector<512x100xi1>, vector<512x100xf32>
    %30 = arith.addf %23, %29 : vector<512x100xf32>
    %31 = vector.extract_strided_slice %0 {offsets = [0, 4], sizes = [512, 1], strides = [1, 1]} : vector<512x5xi32> to vector<512x1xi32>
    %32 = vector.broadcast %31 : vector<512x1xi32> to vector<512x100xi32>
    %33 = arith.cmpi eq, %32, %1 : vector<512x100xi32>
    %cst_9 = arith.constant 1.000000e+00 : f32
    %cst_10 = arith.constant 0.000000e+00 : f32
    %34 = vector.broadcast %cst_9 : f32 to vector<512x100xf32>
    %35 = vector.broadcast %cst_10 : f32 to vector<512x100xf32>
    %36 = arith.select %33, %34, %35 : vector<512x100xi1>, vector<512x100xf32>
    %37 = arith.addf %30, %36 : vector<512x100xf32>
    %c0_11 = arith.constant 0 : index
    %c0_12 = arith.constant 0 : index
    %38 = vector.load %arg3[%c0_11, %c0_12] : memref<100x32xf32, #tpu.memory_space<vmem>>, vector<100x32xf32>
    %cst_13 = arith.constant dense<0.000000e+00> : vector<512x32xf32>
    %39 = tpu.matmul %37, %38, %cst_13 {dimension_numbers = #tpu.dot_dimension_numbers<[1], [0], [0], [1], [0, 0, 1, 1], [], []>} : vector<512x100xf32>, vector<100x32xf32>, vector<512x32xf32> -> vector<512x32xf32>
    %c0_14 = arith.constant 0 : index
    %c0_15 = arith.constant 0 : index
    %40 = vector.load %arg4[%c0_14, %c0_15] : memref<100x1xf32, #tpu.memory_space<vmem>>, vector<100x1xf32>
    %cst_16 = arith.constant dense<0.000000e+00> : vector<512x1xf32>
    %41 = tpu.matmul %37, %40, %cst_16 {dimension_numbers = #tpu.dot_dimension_numbers<[1], [0], [0], [1], [0, 0, 1, 1], [], []>} : vector<512x100xf32>, vector<100x1xf32>, vector<512x1xf32> -> vector<512x1xf32>
    %c0_17 = arith.constant 0 : index
    %c0_18 = arith.constant 0 : index
    %42 = vector.load %arg2[%c0_17, %c0_18] : memref<512x4xbf16, #tpu.memory_space<vmem>>, vector<512x4xbf16>
    %43 = arith.extf %42 : vector<512x4xbf16> to vector<512x4xf32>
    %c0_19 = arith.constant 0 : index
    %c0_20 = arith.constant 0 : index
    %44 = vector.load %arg5[%c0_19, %c0_20] : memref<4x32xf32, #tpu.memory_space<vmem>>, vector<4x32xf32>
    %cst_21 = arith.constant dense<0.000000e+00> : vector<512x32xf32>
    %45 = tpu.matmul %43, %44, %cst_21 {dimension_numbers = #tpu.dot_dimension_numbers<[1], [0], [0], [1], [0, 0, 1, 1], [], []>} : vector<512x4xf32>, vector<4x32xf32>, vector<512x32xf32> -> vector<512x32xf32>
    %46 = arith.addf %39, %45 : vector<512x32xf32>
    %c0_22 = arith.constant 0 : index
    %c0_23 = arith.constant 0 : index
    %47 = vector.load %arg6[%c0_22, %c0_23] : memref<1x32xf32, #tpu.memory_space<vmem>>, vector<1x32xf32>
    %48 = vector.broadcast %47 : vector<1x32xf32> to vector<512x32xf32>
    %49 = arith.addf %46, %48 : vector<512x32xf32>
    %cst_24 = arith.constant 0.000000e+00 : f32
    %50 = vector.broadcast %cst_24 : f32 to vector<512x32xf32>
    %51 = arith.maximumf %49, %50 : vector<512x32xf32>
    %c0_25 = arith.constant 0 : index
    %c0_26 = arith.constant 0 : index
    %52 = vector.load %arg7[%c0_25, %c0_26] : memref<32x16xf32, #tpu.memory_space<vmem>>, vector<32x16xf32>
    %cst_27 = arith.constant dense<0.000000e+00> : vector<512x16xf32>
    %53 = tpu.matmul %51, %52, %cst_27 {dimension_numbers = #tpu.dot_dimension_numbers<[1], [0], [0], [1], [0, 0, 1, 1], [], []>} : vector<512x32xf32>, vector<32x16xf32>, vector<512x16xf32> -> vector<512x16xf32>
    %c0_28 = arith.constant 0 : index
    %c0_29 = arith.constant 0 : index
    %54 = vector.load %arg8[%c0_28, %c0_29] : memref<1x16xf32, #tpu.memory_space<vmem>>, vector<1x16xf32>
    %55 = vector.broadcast %54 : vector<1x16xf32> to vector<512x16xf32>
    %56 = arith.addf %53, %55 : vector<512x16xf32>
    %cst_30 = arith.constant 0.000000e+00 : f32
    %57 = vector.broadcast %cst_30 : f32 to vector<512x16xf32>
    %58 = arith.maximumf %56, %57 : vector<512x16xf32>
    %c0_31 = arith.constant 0 : index
    %c0_32 = arith.constant 0 : index
    %59 = vector.load %arg9[%c0_31, %c0_32] : memref<16x1xf32, #tpu.memory_space<vmem>>, vector<16x1xf32>
    %cst_33 = arith.constant dense<0.000000e+00> : vector<512x1xf32>
    %60 = tpu.matmul %58, %59, %cst_33 {dimension_numbers = #tpu.dot_dimension_numbers<[1], [0], [0], [1], [0, 0, 1, 1], [], []>} : vector<512x16xf32>, vector<16x1xf32>, vector<512x1xf32> -> vector<512x1xf32>
    %c0_34 = arith.constant 0 : index
    %c0_35 = arith.constant 0 : index
    %61 = vector.load %arg10[%c0_34, %c0_35] : memref<4x1xf32, #tpu.memory_space<vmem>>, vector<4x1xf32>
    %cst_36 = arith.constant dense<0.000000e+00> : vector<512x1xf32>
    %62 = tpu.matmul %43, %61, %cst_36 {dimension_numbers = #tpu.dot_dimension_numbers<[1], [0], [0], [1], [0, 0, 1, 1], [], []>} : vector<512x4xf32>, vector<4x1xf32>, vector<512x1xf32> -> vector<512x1xf32>
    %63 = arith.addf %41, %62 : vector<512x1xf32>
    %64 = arith.addf %60, %63 : vector<512x1xf32>
    %c0_37 = arith.constant 0 : index
    %c0_38 = arith.constant 0 : index
    %65 = memref.load %arg11[%c0_37, %c0_38] : memref<1x1xf32, #tpu.memory_space<smem>>
    %66 = vector.broadcast %65 : f32 to vector<512x1xf32>
    %67 = arith.addf %64, %66 : vector<512x1xf32>
    %68 = arith.negf %67 : vector<512x1xf32>
    %69 = math.exp %68 : vector<512x1xf32>
    %cst_39 = arith.constant 1.000000e+00 : f32
    %70 = vector.broadcast %cst_39 : f32 to vector<512x1xf32>
    %71 = arith.addf %70, %69 : vector<512x1xf32>
    %72 = arith.divf %70, %71 : vector<512x1xf32>
    %c0_40 = arith.constant 0 : index
    %c0_41 = arith.constant 0 : index
    %73 = vector.load %arg12[%c0_40, %c0_41] : memref<512x1xf32, #tpu.memory_space<vmem>>, vector<512x1xf32>
    tpu.vector_store %arg12[%c0_40, %c0_41], %72 {strides = array<i32>} : memref<512x1xf32, #tpu.memory_space<vmem>>, vector<512x1xf32>,
    return
  }
  func.func @transform_0(%arg0: i32) -> (i32, i32) {
    %c0_i32 = arith.constant 0 : i32
    %c0_i32_0 = arith.constant 0 : i32
    return %arg0, %c0_i32 : i32, i32
  }
  func.func @transform_1(%arg0: i32) -> (i32, i32) {
    %c0_i32 = arith.constant 0 : i32
    %c0_i32_0 = arith.constant 0 : i32
    return %arg0, %c0_i32 : i32, i32
  }
  func.func @transform_2(%arg0: i32) -> (i32, i32) {
    %c0_i32 = arith.constant 0 : i32
    %c0_i32_0 = arith.constant 0 : i32
    %c0_i32_1 = arith.constant 0 : i32
    return %c0_i32, %c0_i32_0 : i32, i32
  }
  func.func @transform_3(%arg0: i32) -> (i32, i32) {
    %c0_i32 = arith.constant 0 : i32
    %c0_i32_0 = arith.constant 0 : i32
    %c0_i32_1 = arith.constant 0 : i32
    return %c0_i32, %c0_i32_0 : i32, i32
  }
  func.func @transform_4(%arg0: i32) -> (i32, i32) {
    %c0_i32 = arith.constant 0 : i32
    %c0_i32_0 = arith.constant 0 : i32
    %c0_i32_1 = arith.constant 0 : i32
    return %c0_i32, %c0_i32_0 : i32, i32
  }
  func.func @transform_5(%arg0: i32) -> (i32, i32) {
    %c0_i32 = arith.constant 0 : i32
    %c0_i32_0 = arith.constant 0 : i32
    %c0_i32_1 = arith.constant 0 : i32
    return %c0_i32, %c0_i32_0 : i32, i32
  }
  func.func @transform_6(%arg0: i32) -> (i32, i32) {
    %c0_i32 = arith.constant 0 : i32
    %c0_i32_0 = arith.constant 0 : i32
    %c0_i32_1 = arith.constant 0 : i32
    return %c0_i32, %c0_i32_0 : i32, i32
  }
  func.func @transform_7(%arg0: i32) -> (i32, i32) {
    %c0_i32 = arith.constant 0 : i32
    %c0_i32_0 = arith.constant 0 : i32
    %c0_i32_1 = arith.constant 0 : i32
    return %c0_i32, %c0_i32_0 : i32, i32
  }
  func.func @transform_8(%arg0: i32) -> (i32, i32) {
    %c0_i32 = arith.constant 0 : i32
    %c0_i32_0 = arith.constant 0 : i32
    %c0_i32_1 = arith.constant 0 : i32
    return %c0_i32, %c0_i32_0 : i32, i32
  }
  func.func @transform_9(%arg0: i32) -> (i32, i32) {
    %c0_i32 = arith.constant 0 : i32
    %c0_i32_0 = arith.constant 0 : i32
    %c0_i32_1 = arith.constant 0 : i32
    return %c0_i32, %c0_i32_0 : i32, i32
  }
  func.func @transform_10(%arg0: i32) -> (i32, i32) {
    %c0_i32 = arith.constant 0 : i32
    %c0_i32_0 = arith.constant 0 : i32
    %c0_i32_1 = arith.constant 0 : i32
    return %c0_i32, %c0_i32_0 : i32, i32
  }
  func.func @transform_11(%arg0: i32) -> (i32, i32) {
    %c0_i32 = arith.constant 0 : i32
    %c0_i32_0 = arith.constant 0 : i32
    return %arg0, %c0_i32 : i32, i32
  }
}

</mosaic_0001>

<bundles_post_ra>
// kernel: tpu_custom_call.1
= control target key start
LH: loop header
LB: loop body
LE: loop exit
PB: predicated region body
PF: predicated region fallthrough
CT: control target
= control target key end

     0   :  { %s7316_s19 = smov 0   ;;  %s12510_s0 = inlined_call_operand.vmem [shape: s32[2048,5], index: 0, kind: input, shape index: {}]   ;;  %s12511_s1 = inlined_call_operand.vmem [shape: bf16[2048,4], index: 1, kind: input, shape index: {}]   ;;  %s12512_s2 = inlined_call_operand.vmem [shape: f32[100,32], index: 2, kind: input, shape index: {}]   ;;  %s12513_s3 = inlined_call_operand.vmem [shape: f32[100,1], index: 3, kind: input, shape index: {}]   ;;  %s12514_s4 = inlined_call_operand.vmem [shape: f32[4,32], index: 4, kind: input, shape index: {}]   ;;  %s12515_s5 = inlined_call_operand.vmem [shape: f32[1,32], index: 5, kind: input, shape index: {}]   ;;  %s12516_s6 = inlined_call_operand.vmem [shape: f32[32,16], index: 6, kind: input, shape index: {}]   ;;  %s12517_s7 = inlined_call_operand.vmem [shape: f32[1,16], index: 7, kind: input, shape index: {}]   ;;  %s12518_s8 = inlined_call_operand.vmem [shape: f32[16,1], index: 8, kind: input, shape index: {}]   ;;  %s12519_s9 = inlined_call_operand.vmem [shape: f32[4,1], index: 9, kind: input, shape index: {}]   ;;  %s12520_s10 = inlined_call_operand.<no memory space> [shape: f32[1,1], index: 10, kind: input, shape index: {}]   ;;  %s12521_s11 = inlined_call_operand.vmem [shape: f32[2048,1], index: 11, kind: output, shape index: {}]  }
   0x1   :  { %16 = sst [smem:[#allocation2]] %s12520_s10 }
   0x2 LB: > { %s6215_s20 = sadd.s32 4294967295, %s7245_s19   ;;  %p6219_p0 = scmp.ge.s32.totalorder %s7245_s19, 1  ;;  %s7245_s19 = sphi %s7316_s19, %s22_s19  }
   0x3   : > { %p350_p1 = scmp.lt.s32.totalorder %s7245_s19, 5 }
   0x5   : > { %p351_p2 = pnand %p6219_p0, %p350_p1 }
   0x7   : > { %354 = sbr.rel (%p351_p2) target bundleno = 1545 (0x609), region = 64 }
   0xc   : > { %s6220_s21 = sshll.u32 %s6215_s20, 6  ;;  %v7247_v0 = vmov 0   ;;  %vm2747_vm0 = vcmask 1043456   ;;  %vm2554_vm1 = vcmask 31744   ;;  %vm2960_vm10 = vcmask 818176   ;;  %s4800_s29 = sld [smem:[#allocation2]] }
   0xd   : > { %6870 = vset.pattern.permute.xlu2 %v7247_v0  ;;  %6869 = vset.pattern.permute.xlu1 %v7247_v0  ;;  %p396_p3 = scmp.lt.s32.totalorder %s6220_s21, 255 }
   0xe   : > { %6868 = vset.pattern.permute.xlu0 %v7247_v0 }
   0xf   : > { %s13369_s21 = smov (!%p396_p3, %s6220_s21), 255 }
  0x10   : > { %s6221_s10 = sshll.u32 %s13369_s21, 3  ;;  %s6223_s25 = sshll.u32 %s13369_s21, 2 }
  0x11   : > { %s7332_s24 = scalar_lea.vmem %s12510_s0, %s6221_s10  ;;  %s7731_s28 = scalar_lea.vmem %s12511_s1, %s6223_s25 }
  0x12   : > { %v7335_v1 = vld [vmem:[%s7332_s24 + $0x20] sm:$0xff]  ;;  %v7338_v2 = vld [vmem:[%s7332_s24 + $0x10] sm:$0xff]  ;;  %v7347_v4 = vld [vmem:[%s7332_s24 + $0x28] sm:$0xff]  ;;  %s11031_s17 = scalar_lea.vmem %s12521_s11, %s6221_s10 }
  0x13   : > { %v7341_v3 = vld [vmem:[%s7332_s24] sm:$0xff]  ;;  %492 = vperm.xlu2 %6870, %v7335_v1   ;;  %486 = vperm.xlu1 %6869, %v7338_v2   ;;  %v7350_v5 = vld [vmem:[%s7332_s24 + $0x18] sm:$0xff]  ;;  %v7353_v6 = vld [vmem:[%s7332_s24 + $0x8] sm:$0xff] }
  0x14   : > { %480 = vperm.xlu0 %6868, %v7341_v3   ;;  %12653 = vst [vmem:[#allocation3_spill] sm:$0xff] %v7353_v6  ;;  %v7359_v7 = vld [vmem:[%s7332_s24 + $0x40] sm:$0xff]  ;;  %v7362_v8 = vld [vmem:[%s7332_s24 + $0x38] sm:$0xff]  ;;  %v7365_v9 = vld [vmem:[%s7332_s24 + $0x30] sm:$0xff] }
  0x15   : > { %v7371_v10 = vld [vmem:[%s7332_s24 + $0x58] sm:$0xff]  ;;  %v7374_v11 = vld [vmem:[%s7332_s24 + $0x50] sm:$0xff]  ;;  %v7377_v12 = vld [vmem:[%s7332_s24 + $0x48] sm:$0xff] }
  0x16   : > { %v7383_v13 = vld [vmem:[%s7332_s24 + $0x70] sm:$0xff]  ;;  %v7386_v14 = vld [vmem:[%s7332_s24 + $0x68] sm:$0xff]  ;;  %v7389_v15 = vld [vmem:[%s7332_s24 + $0x60] sm:$0xff] }
  0x17   : > { %v7395_v16 = vld [vmem:[%s7332_s24 + $0x88] sm:$0xff]  ;;  %v7398_v17 = vld [vmem:[%s7332_s24 + $0x80] sm:$0xff]  ;;  %v7401_v18 = vld [vmem:[%s7332_s24 + $0x78] sm:$0xff] }
  0x18   : > { %v7407_v19 = vld [vmem:[%s7332_s24 + $0xa0] sm:$0xff]  ;;  %v7410_v20 = vld [vmem:[%s7332_s24 + $0x98] sm:$0xff]  ;;  %v7413_v21 = vld [vmem:[%s7332_s24 + $0x90] sm:$0xff] }
  0x19   : > { %v7419_v22 = vld [vmem:[%s7332_s24 + $0xb8] sm:$0xff]  ;;  %v7422_v23 = vld [vmem:[%s7332_s24 + $0xb0] sm:$0xff]  ;;  %v7425_v24 = vld [vmem:[%s7332_s24 + $0xa8] sm:$0xff] }
  0x1a   : > { %v7431_v25 = vld [vmem:[%s7332_s24 + $0xd0] sm:$0xff]  ;;  %v7434_v26 = vld [vmem:[%s7332_s24 + $0xc8] sm:$0xff]  ;;  %v7437_v27 = vld [vmem:[%s7332_s24 + $0xc0] sm:$0xff] }
  0x1b   : > { %495 = vperm.xlu2 %6870, %v7347_v4   ;;  %489 = vperm.xlu1 %6869, %v7350_v5   ;;  %v7443_v28 = vld [vmem:[%s7332_s24 + $0xe8] sm:$0xff]  ;;  %v7446_v29 = vld [vmem:[%s7332_s24 + $0xe0] sm:$0xff]  ;;  %v7449_v30 = vld [vmem:[%s7332_s24 + $0xd8] sm:$0xff] }
  0x1c   : > { %483 = vperm.xlu0 %6868, %v7353_v6   ;;  %v7455_v31 = vld [vmem:[%s7332_s24 + $0x100] sm:$0xff]  ;;  %v7458_v32 = vld [vmem:[%s7332_s24 + $0xf8] sm:$0xff]  ;;  %v7461_v33 = vld [vmem:[%s7332_s24 + $0xf0] sm:$0xff] }
  0x1d   : > { %v7467_v34 = vld [vmem:[%s7332_s24 + $0x118] sm:$0xff]  ;;  %v7470_v35 = vld [vmem:[%s7332_s24 + $0x110] sm:$0xff]  ;;  %v7473_v36 = vld [vmem:[%s7332_s24 + $0x108] sm:$0xff] }
  0x1e   : > { %v7481_v38 = vld [vmem:[%s7332_s24 + $0x130] sm:$0xff]  ;;  %v7484_v39 = vld [vmem:[%s7332_s24 + $0x128] sm:$0xff]  ;;  %v7487_v40 = vld [vmem:[%s7332_s24 + $0x120] sm:$0xff] }
  0x1f   : > { %v7495_v42 = vld [vmem:[%s7332_s24 + $0x148] sm:$0xff]  ;;  %v7498_v43 = vld [vmem:[%s7332_s24 + $0x140] sm:$0xff]  ;;  %v7501_v44 = vld [vmem:[%s7332_s24 + $0x138] sm:$0xff] }
  0x20   : > { %v7509_v46 = vld [vmem:[%s7332_s24 + $0x160] sm:$0xff]  ;;  %v7512_v47 = vld [vmem:[%s7332_s24 + $0x158] sm:$0xff]  ;;  %v7515_v48 = vld [vmem:[%s7332_s24 + $0x150] sm:$0xff] }
  0x21   : > { %v7527_v52 = vld [vmem:[%s7332_s24 + $0x178] sm:$0xff]  ;;  %v7530_v53 = vld [vmem:[%s7332_s24 + $0x170] sm:$0xff]  ;;  %v7533_v54 = vld [vmem:[%s7332_s24 + $0x168] sm:$0xff] }
  0x22   : > { %v7545_v58 = vld [vmem:[%s7332_s24 + $0x190] sm:$0xff]  ;;  %v7548_v59 = vld [vmem:[%s7332_s24 + $0x188] sm:$0xff]  ;;  %v7551_v60 = vld [vmem:[%s7332_s24 + $0x180] sm:$0xff] }
  0x23   : > { %504 = vperm.xlu2 %6870, %v7359_v7   ;;  %501 = vperm.xlu1 %6869, %v7362_v8   ;;  %v7563_v0 = vld [vmem:[%s7332_s24 + $0x1a8] sm:$0xff] }
  0x24   : > { %498 = vperm.xlu0 %6868, %v7365_v9  }
  0x2b   : > { %513 = vperm.xlu2 %6870, %v7371_v10   ;;  %510 = vperm.xlu1 %6869, %v7374_v11  }
  0x2c   : > { %507 = vperm.xlu0 %6868, %v7377_v12  }
  0x33   : > { %522 = vperm.xlu2 %6870, %v7383_v13   ;;  %519 = vperm.xlu1 %6869, %v7386_v14  }
  0x34   : > { %516 = vperm.xlu0 %6868, %v7389_v15  }
  0x3b   : > { %531 = vperm.xlu2 %6870, %v7395_v16   ;;  %528 = vperm.xlu1 %6869, %v7398_v17  }
  0x3c   : > { %525 = vperm.xlu0 %6868, %v7401_v18  }
  0x43   : > { %540 = vperm.xlu2 %6870, %v7407_v19   ;;  %537 = vperm.xlu1 %6869, %v7410_v20  }
  0x44   : > { %534 = vperm.xlu0 %6868, %v7413_v21  }
  0x4b   : > { %549 = vperm.xlu2 %6870, %v7419_v22   ;;  %546 = vperm.xlu1 %6869, %v7422_v23  }
  0x4c   : > { %543 = vperm.xlu0 %6868, %v7425_v24  }
  0x53   : > { %558 = vperm.xlu2 %6870, %v7431_v25   ;;  %555 = vperm.xlu1 %6869, %v7434_v26  }
  0x54   : > { %552 = vperm.xlu0 %6868, %v7437_v27  }
  0x5b   : > { %567 = vperm.xlu2 %6870, %v7443_v28   ;;  %564 = vperm.xlu1 %6869, %v7446_v29  }
  0x5c   : > { %561 = vperm.xlu0 %6868, %v7449_v30  }
  0x63   : > { %576 = vperm.xlu2 %6870, %v7455_v31   ;;  %573 = vperm.xlu1 %6869, %v7458_v32  }
  0x64   : > { %570 = vperm.xlu0 %6868, %v7461_v33  }
  0x6b   : > { %585 = vperm.xlu2 %6870, %v7467_v34   ;;  %582 = vperm.xlu1 %6869, %v7470_v35  }
  0x6c   : > { %579 = vperm.xlu0 %6868, %v7473_v36  }
  0x6d   : > { %v7478_v37 = vpop.permute.xlu2 %492 }
  0x6e   : > { %12654 = vst [vmem:[#allocation4_spill] sm:$0xff] %v7478_v37  ;;  %v7587_v37 = vld [vmem:[%s7332_s24 + $0x1b0] sm:$0xff] }
  0x73   : > { %594 = vperm.xlu2 %6870, %v7481_v38   ;;  %591 = vperm.xlu1 %6869, %v7484_v39  }
  0x74   : > { %588 = vperm.xlu0 %6868, %v7487_v40  }
  0x75   : > { %v7492_v41 = vpop.permute.xlu2 %495 }
  0x76   : > { %12655 = vst [vmem:[#allocation5_spill] sm:$0xff] %v7492_v41  ;;  %v7584_v41 = vld [vmem:[%s7332_s24 + $0x1b8] sm:$0xff] }
  0x77   : > { %12670 = vst [vmem:[#allocation20_spill] sm:$0xff] %v7584_v41 }
  0x7b   : > { %603 = vperm.xlu2 %6870, %v7495_v42   ;;  %600 = vperm.xlu1 %6869, %v7498_v43  }
  0x7c   : > { %597 = vperm.xlu0 %6868, %v7501_v44  }
  0x7d   : > { %v7506_v45 = vpop.permute.xlu2 %504 }
  0x7e   : > { %12656 = vst [vmem:[#allocation6_spill] sm:$0xff] %v7506_v45 }
  0x83   : > { %612 = vperm.xlu2 %6870, %v7509_v46   ;;  %609 = vperm.xlu1 %6869, %v7512_v47  }
  0x84   : > { %606 = vperm.xlu0 %6868, %v7515_v48  }
  0x85   : > { %v7520_v49 = vpop.permute.xlu2 %513  ;;  %v7522_v50 = vpop.permute.xlu1 %486 }
  0x86   : > { %12657 = vst [vmem:[#allocation7_spill] sm:$0xff] %v7520_v49  ;;  %v7524_v51 = vpop.permute.xlu0 %480  ;;  %v7569_v49 = vld [vmem:[%s7332_s24 + $0x198] sm:$0xff] }
  0x87   : > { %12658 = vst [vmem:[#allocation8_spill] sm:$0xff] %v7522_v50  ;;  %v7602_v50 = vld [vmem:[%s7332_s24 + $0x1d0] sm:$0xff] }
  0x88   : > { %12659 = vst [vmem:[#allocation9_spill] sm:$0xff] %v7524_v51 }
  0x89   : > { %12675 = vst [vmem:[#allocation25_spill] sm:$0xff] %v7602_v50 }
  0x8b   : > { %621 = vperm.xlu2 %6870, %v7527_v52   ;;  %618 = vperm.xlu1 %6869, %v7530_v53  }
  0x8c   : > { %615 = vperm.xlu0 %6868, %v7533_v54  }
  0x8d   : > { %v7538_v55 = vpop.permute.xlu2 %522  ;;  %v7540_v56 = vpop.permute.xlu1 %489 }
  0x8e   : > { %12660 = vst [vmem:[#allocation10_spill] sm:$0xff] %v7538_v55  ;;  %v7542_v57 = vpop.permute.xlu0 %483  ;;  %v7566_v55 = vld [vmem:[%s7332_s24 + $0x1a0] sm:$0xff] }
  0x8f   : > { %12661 = vst [vmem:[#allocation11_spill] sm:$0xff] %v7540_v56  ;;  %v7599_v56 = vld [vmem:[%s7332_s24 + $0x1d8] sm:$0xff] }
  0x90   : > { %12662 = vst [vmem:[#allocation12_spill] sm:$0xff] %v7542_v57  ;;  %v7605_v57 = vld [vmem:[%s7332_s24 + $0x1c8] sm:$0xff] }
  0x91   : > { %12674 = vst [vmem:[#allocation24_spill] sm:$0xff] %v7599_v56 }
  0x93   : > { %630 = vperm.xlu2 %6870, %v7545_v58   ;;  %627 = vperm.xlu1 %6869, %v7548_v59  }
  0x94   : > { %624 = vperm.xlu0 %6868, %v7551_v60  }
  0x95   : > { %v7556_v61 = vpop.permute.xlu2 %531  ;;  %v7558_v62 = vpop.permute.xlu1 %501 }
  0x96   : > { %12663 = vst [vmem:[#allocation13_spill] sm:$0xff] %v7556_v61  ;;  %v7560_v63 = vpop.permute.xlu0 %498 }
  0x97   : > { %12664 = vst [vmem:[#allocation14_spill] sm:$0xff] %v7558_v62 }
  0x98   : > { %12665 = vst [vmem:[#allocation15_spill] sm:$0xff] %v7560_v63  ;;  %v7581_v63 = vld [vmem:[%s7332_s24 + $0x1c0] sm:$0xff] }
  0x99   : > { %12669 = vst [vmem:[#allocation19_spill] sm:$0xff] %v7581_v63 }
  0x9b   : > { %639 = vperm.xlu2 %6870, %v7563_v0   ;;  %636 = vperm.xlu1 %6869, %v7566_v55  }
  0x9c   : > { %633 = vperm.xlu0 %6868, %v7569_v49  }
  0x9d   : > { %v7574_v61 = vpop.permute.xlu2 %540  ;;  %v7576_v45 = vpop.permute.xlu1 %510 }
  0x9e   : > { %12666 = vst [vmem:[#allocation16_spill] sm:$0xff] %v7574_v61  ;;  %v7578_v62 = vpop.permute.xlu0 %507 }
  0x9f   : > { %12667 = vst [vmem:[#allocation17_spill] sm:$0xff] %v7576_v45 }
  0xa0   : > { %12668 = vst [vmem:[#allocation18_spill] sm:$0xff] %v7578_v62 }
  0xa3   : > { %648 = vperm.xlu2 %6870, %v7581_v63   ;;  %645 = vperm.xlu1 %6869, %v7584_v41   ;;  %v7620_v63 = vld [vmem:[%s7332_s24 + $0x1e8] sm:$0xff]  ;;  %v7623_v41 = vld [vmem:[%s7332_s24 + $0x1e0] sm:$0xff] }
  0xa4   : > { %642 = vperm.xlu0 %6868, %v7587_v37   ;;  %12680 = vst [vmem:[#allocation30_spill] sm:$0xff] %v7620_v63 }
  0xa5   : > { %v7592_v61 = vpop.permute.xlu2 %549  ;;  %v7594_v45 = vpop.permute.xlu1 %519 }
  0xa6   : > { %12671 = vst [vmem:[#allocation21_spill] sm:$0xff] %v7592_v61  ;;  %v7596_v62 = vpop.permute.xlu0 %516 }
  0xa7   : > { %12672 = vst [vmem:[#allocation22_spill] sm:$0xff] %v7594_v45 }
  0xa8   : > { %12673 = vst [vmem:[#allocation23_spill] sm:$0xff] %v7596_v62  ;;  %v7617_v62 = vld [vmem:[%s7332_s24 + $0x1f0] sm:$0xff] }
  0xa9   : > { %12679 = vst [vmem:[#allocation29_spill] sm:$0xff] %v7617_v62 }
  0xab   : > { %657 = vperm.xlu2 %6870, %v7599_v56   ;;  %654 = vperm.xlu1 %6869, %v7602_v50  }
  0xac   : > { %651 = vperm.xlu0 %6868, %v7605_v57  }
  0xad   : > { %v7610_v51 = vpop.permute.xlu2 %558  ;;  %v7612_v61 = vpop.permute.xlu1 %528 }
  0xae   : > { %12676 = vst [vmem:[#allocation26_spill] sm:$0xff] %v7610_v51  ;;  %v7614_v45 = vpop.permute.xlu0 %525 }
  0xaf   : > { %12677 = vst [vmem:[#allocation27_spill] sm:$0xff] %v7612_v61  ;;  %v7635_v61 = vld [vmem:[%s7332_s24 + $0x1f8] sm:$0xff] }
  0xb0   : > { %12678 = vst [vmem:[#allocation28_spill] sm:$0xff] %v7614_v45  ;;  %v7248_v45 = vmov 1  }
  0xb3   : > { %666 = vperm.xlu2 %6870, %v7617_v62   ;;  %663 = vperm.xlu1 %6869, %v7620_v63  }
  0xb4   : > { %660 = vperm.xlu0 %6868, %v7623_v41  }
  0xb5   : > { %v7628_v56 = vpop.permute.xlu2 %567  ;;  %v7630_v50 = vpop.permute.xlu1 %537 }
  0xb6   : > { %12681 = vst [vmem:[#allocation31_spill] sm:$0xff] %v7628_v56  ;;  %v7632_v51 = vpop.permute.xlu0 %534 }
  0xb7   : > { %12682 = vst [vmem:[#allocation32_spill] sm:$0xff] %v7630_v50 }
  0xb8   : > { %12683 = vst [vmem:[#allocation33_spill] sm:$0xff] %v7632_v51 }
  0xbb   : > { %6872 = vset.pattern.permute.xlu2 %v7248_v45  ;;  %6871 = vset.pattern.permute.xlu1 %v7248_v45 }
  0xbc   : > { %669 = vperm.xlu0 %6868, %v7635_v61   ;;  %867 = vperm.xlu2 %6872, %v7353_v6  }
  0xbd   : > { %864 = vperm.xlu1 %6871, %v7341_v3   ;;  %v7640_v62 = vpop.permute.xlu2 %576  ;;  %v7642_v63 = vpop.permute.xlu1 %546 }
  0xbe   : > { %12684 = vst [vmem:[#allocation34_spill] sm:$0xff] %v7640_v62  ;;  %v7644_v56 = vpop.permute.xlu0 %543 }
  0xbf   : > { %12685 = vst [vmem:[#allocation35_spill] sm:$0xff] %v7642_v63 }
  0xc0   : > { %12686 = vst [vmem:[#allocation36_spill] sm:$0xff] %v7644_v56 }
  0xc4   : > { %6873 = vset.pattern.permute.xlu0 %v7248_v45  ;;  %876 = vperm.xlu2 %6872, %v7335_v1  }
  0xc5   : > { %873 = vperm.xlu1 %6871, %v7350_v5   ;;  %870 = vperm.xlu0 %6873, %v7338_v2   ;;  %v7649_v50 = vpop.permute.xlu2 %585  ;;  %v7651_v51 = vpop.permute.xlu1 %555 }
  0xc6   : > { %12687 = vst [vmem:[#allocation37_spill] sm:$0xff] %v7649_v50  ;;  %v7653_v6 = vpop.permute.xlu0 %552 }
  0xc7   : > { %12688 = vst [vmem:[#allocation38_spill] sm:$0xff] %v7651_v51 }
  0xc8   : > { %12689 = vst [vmem:[#allocation39_spill] sm:$0xff] %v7653_v6 }
  0xcc   : > { %882 = vperm.xlu2 %6872, %v7365_v9  }
  0xcd   : > { %879 = vperm.xlu1 %6871, %v7347_v4   ;;  %885 = vperm.xlu0 %6873, %v7362_v8   ;;  %v7658_v62 = vpop.permute.xlu2 %594  ;;  %v7660_v45 = vpop.permute.xlu1 %564 }
  0xce   : > { %12690 = vst [vmem:[#allocation40_spill] sm:$0xff] %v7658_v62  ;;  %v7662_v63 = vpop.permute.xlu0 %561 }
  0xcf   : > { %12691 = vst [vmem:[#allocation41_spill] sm:$0xff] %v7660_v45 }
  0xd0   : > { %12692 = vst [vmem:[#allocation42_spill] sm:$0xff] %v7662_v63 }
  0xd4   : > { %891 = vperm.xlu2 %6872, %v7377_v12  }
  0xd5   : > { %888 = vperm.xlu1 %6871, %v7359_v7   ;;  %894 = vperm.xlu0 %6873, %v7374_v11   ;;  %v7667_v50 = vpop.permute.xlu2 %603  ;;  %v7669_v51 = vpop.permute.xlu1 %573 }
  0xd6   : > { %12693 = vst [vmem:[#allocation43_spill] sm:$0xff] %v7667_v50  ;;  %v7671_v6 = vpop.permute.xlu0 %570 }
  0xd7   : > { %12694 = vst [vmem:[#allocation44_spill] sm:$0xff] %v7669_v51 }
  0xd8   : > { %12695 = vst [vmem:[#allocation45_spill] sm:$0xff] %v7671_v6 }
  0xdc   : > { %900 = vperm.xlu2 %6872, %v7389_v15  }
  0xdd   : > { %897 = vperm.xlu1 %6871, %v7371_v10   ;;  %903 = vperm.xlu0 %6873, %v7386_v14   ;;  %v7676_v62 = vpop.permute.xlu2 %612  ;;  %v7678_v45 = vpop.permute.xlu1 %582 }
  0xde   : > { %12696 = vst [vmem:[#allocation46_spill] sm:$0xff] %v7676_v62  ;;  %v7680_v63 = vpop.permute.xlu0 %579 }
  0xdf   : > { %12697 = vst [vmem:[#allocation47_spill] sm:$0xff] %v7678_v45 }
  0xe0   : > { %12698 = vst [vmem:[#allocation48_spill] sm:$0xff] %v7680_v63 }
  0xe4   : > { %909 = vperm.xlu2 %6872, %v7401_v18  }
  0xe5   : > { %906 = vperm.xlu1 %6871, %v7383_v13   ;;  %912 = vperm.xlu0 %6873, %v7398_v17   ;;  %v7685_v50 = vpop.permute.xlu2 %621  ;;  %v7687_v51 = vpop.permute.xlu1 %591 }
  0xe6   : > { %12699 = vst [vmem:[#allocation49_spill] sm:$0xff] %v7685_v50  ;;  %v7689_v6 = vpop.permute.xlu0 %588 }
  0xe7   : > { %12700 = vst [vmem:[#allocation50_spill] sm:$0xff] %v7687_v51 }
  0xe8   : > { %12701 = vst [vmem:[#allocation51_spill] sm:$0xff] %v7689_v6 }
  0xec   : > { %918 = vperm.xlu2 %6872, %v7413_v21  }
  0xed   : > { %915 = vperm.xlu1 %6871, %v7395_v16   ;;  %921 = vperm.xlu0 %6873, %v7410_v20   ;;  %v7694_v62 = vpop.permute.xlu2 %630  ;;  %v7696_v45 = vpop.permute.xlu1 %600 }
  0xee   : > { %12702 = vst [vmem:[#allocation52_spill] sm:$0xff] %v7694_v62  ;;  %v7698_v63 = vpop.permute.xlu0 %597 }
  0xef   : > { %12703 = vst [vmem:[#allocation53_spill] sm:$0xff] %v7696_v45 }
  0xf0   : > { %12704 = vst [vmem:[#allocation54_spill] sm:$0xff] %v7698_v63 }
  0xf4   : > { %927 = vperm.xlu2 %6872, %v7425_v24  }
  0xf5   : > { %924 = vperm.xlu1 %6871, %v7407_v19   ;;  %930 = vperm.xlu0 %6873, %v7422_v23   ;;  %v7703_v50 = vpop.permute.xlu2 %639  ;;  %v7705_v51 = vpop.permute.xlu1 %609 }
  0xf6   : > { %12705 = vst [vmem:[#allocation55_spill] sm:$0xff] %v7703_v50  ;;  %v7707_v6 = vpop.permute.xlu0 %606 }
  0xf7   : > { %12706 = vst [vmem:[#allocation56_spill] sm:$0xff] %v7705_v51 }
  0xf8   : > { %12707 = vst [vmem:[#allocation57_spill] sm:$0xff] %v7707_v6 }
  0xfc   : > { %936 = vperm.xlu2 %6872, %v7437_v27  }
  0xfd   : > { %933 = vperm.xlu1 %6871, %v7419_v22   ;;  %939 = vperm.xlu0 %6873, %v7434_v26   ;;  %v7712_v62 = vpop.permute.xlu2 %648  ;;  %v7714_v45 = vpop.permute.xlu1 %618 }
  0xfe   : > { %12708 = vst [vmem:[#allocation58_spill] sm:$0xff] %v7712_v62  ;;  %v7716_v63 = vpop.permute.xlu0 %615  ;;  %v2553_v62 = vld [vmem:[%s12514_s4] sm:$0xf] }
  0xff   : > { %12709 = vst [vmem:[#allocation59_spill] sm:$0xff] %v7714_v45  ;;  %6226 = vmatpush.msk.msra.mxu0 %vm2747_vm0, %v2553_v62  ;;  %6839 = vmatpush.msk.msra.mxu2 %vm2747_vm0, %v2553_v62 }
 0x100   : > { %12710 = vst [vmem:[#allocation60_spill] sm:$0xff] %v7716_v63 }
 0x104   : > { %945 = vperm.xlu2 %6872, %v7449_v30  }
 0x105   : > { %942 = vperm.xlu1 %6871, %v7431_v25   ;;  %948 = vperm.xlu0 %6873, %v7446_v29   ;;  %v7721_v50 = vpop.permute.xlu2 %657  ;;  %v7723_v51 = vpop.permute.xlu1 %627 }
 0x106   : > { %12711 = vst [vmem:[#allocation61_spill] sm:$0xff] %v7721_v50  ;;  %v7726_v6 = vpop.permute.xlu0 %624  ;;  %v7739_v50 = vld [vmem:[%s7731_s28] sm:$0xff]  }
 0x107   : > { %12712 = vst [vmem:[#allocation62_spill] sm:$0xff] %v7723_v51  ;;  %v12532_v51 = vunpack.c.l.bf16 %v7739_v50 }
 0x108   : > { %12713 = vst [vmem:[#allocation63_spill] sm:$0xff] %v7726_v6 }
 0x109   : > { %12714 = vst [vmem:[#allocation64_spill] sm:$0xff] %v7739_v50  ;;  %6227 = vmatmul.msk.f32.vlgmr.msra.gmra.mxu0 %vm2554_vm1, %v12532_v51 }
 0x10c   : > { %954 = vperm.xlu2 %6872, %v7461_v33   ;;  %v12533_v33 = vunpack.c.h.bf16 %v7739_v50  ;;  %v7797_v50 = vld [vmem:[%s7731_s28 + $0x10] sm:$0xff]  }
 0x10d   : > { %951 = vperm.xlu1 %6871, %v7443_v28   ;;  %957 = vperm.xlu0 %6873, %v7458_v32   ;;  %v7745_v6 = vpop.permute.xlu2 %666  ;;  %v7747_v45 = vpop.permute.xlu1 %636  ;;  %12725 = vst [vmem:[#allocation75_spill] sm:$0xff] %v7797_v50 }
 0x10e   : > { %12715 = vst [vmem:[#allocation65_spill] sm:$0xff] %v7745_v6  ;;  %v7749_v63 = vpop.permute.xlu0 %633  ;;  %v7768_v6 = vld [vmem:[%s7731_s28 + $0x8] sm:$0xff]  }
 0x10f   : > { %12716 = vst [vmem:[#allocation66_spill] sm:$0xff] %v7747_v45 }
 0x110   : > { %12717 = vst [vmem:[#allocation67_spill] sm:$0xff] %v7749_v63 }
 0x111   : > { %6228 = vmatmul.msk.f32.gmra.mxu0 %vm2554_vm1, %v12533_v33  ;;  %12720 = vst [vmem:[#allocation70_spill] sm:$0xff] %v7768_v6 }
 0x114   : > { %963 = vperm.xlu2 %6872, %v7473_v36   ;;  %v12537_v36 = vunpack.c.l.bf16 %v7768_v6 }
 0x115   : > { %960 = vperm.xlu1 %6871, %v7455_v31   ;;  %966 = vperm.xlu0 %6873, %v7470_v35   ;;  %v7758_v28 = vpop.permute.xlu1 %645 }
 0x116   : > { %12718 = vst [vmem:[#allocation68_spill] sm:$0xff] %v7758_v28  ;;  %v7760_v32 = vpop.permute.xlu0 %642  ;;  %v7762_v62 = vpop.permute.xlu2 %867 }
 0x117   : > { %12719 = vst [vmem:[#allocation69_spill] sm:$0xff] %v7760_v32  ;;  %v7914_v32 = vld [vmem:[%s7731_s28 + $0x30] sm:$0xff]  }
 0x118   : > { %12747 = vst [vmem:[#allocation85_spill] sm:$0xff] %v7914_v32  ;;  %v12562_v63 = vunpack.c.h.bf16 %v7914_v32 }
 0x119   : > { %6229 = vmatmul.msk.f32.gmra.mxu0 %vm2554_vm1, %v12537_v36 }
 0x11c   : > { %972 = vperm.xlu2 %6872, %v7487_v40   ;;  %v12536_v40 = vunpack.c.h.bf16 %v7768_v6 }
 0x11d   : > { %969 = vperm.xlu1 %6871, %v7467_v34   ;;  %975 = vperm.xlu0 %6873, %v7484_v39   ;;  %v7774_v31 = vpop.permute.xlu1 %654 }
 0x11e   : > { %12721 = vst [vmem:[#allocation71_spill] sm:$0xff] %v7774_v31  ;;  %v7776_v35 = vpop.permute.xlu0 %651  ;;  %v7778_v51 = vpop.permute.xlu2 %876 }
 0x11f   : > { %12722 = vst [vmem:[#allocation72_spill] sm:$0xff] %v7776_v35 }
 0x121   : > { %6230 = vmatmul.msk.f32.gmra.mxu0 %vm2554_vm1, %v12536_v40 }
 0x124   : > { %981 = vperm.xlu2 %6872, %v7501_v44   ;;  %v12538_v44 = vunpack.c.l.bf16 %v7797_v50 }
 0x125   : > { %978 = vperm.xlu1 %6871, %v7481_v38   ;;  %984 = vperm.xlu0 %6873, %v7498_v43   ;;  %v7787_v34 = vpop.permute.xlu1 %663 }
 0x126   : > { %12723 = vst [vmem:[#allocation73_spill] sm:$0xff] %v7787_v34  ;;  %v7789_v39 = vpop.permute.xlu0 %660  ;;  %v7791_v33 = vpop.permute.xlu2 %882  ;;  %v12734_v34 = vld [vmem:[#allocation25_spill] sm:$0xff] }
 0x127   : > { %12724 = vst [vmem:[#allocation74_spill] sm:$0xff] %v7789_v39  ;;  %v7884_v39 = vld [vmem:[%s7731_s28 + $0x28] sm:$0xff]  }
 0x128   : > { %12737 = vst [vmem:[#allocation81_spill] sm:$0xff] %v7884_v39  ;;  %v12552_v31 = vunpack.c.l.bf16 %v7884_v39  ;;  %v12553_v35 = vunpack.c.h.bf16 %v7884_v39 }
 0x129   : > { %6231 = vmatmul.msk.f32.gmra.mxu0 %vm2554_vm1, %v12538_v44  ;;  %v7826_v44 = vld [vmem:[%s7731_s28 + $0x18] sm:$0xff]  }
 0x12a   : > { %12727 = vst [vmem:[#allocation77_spill] sm:$0xff] %v7826_v44 }
 0x12c   : > { %990 = vperm.xlu2 %6872, %v7515_v48   ;;  %v12539_v48 = vunpack.c.h.bf16 %v7797_v50  ;;  %v7855_v50 = vld [vmem:[%s7731_s28 + $0x20] sm:$0xff]  }
 0x12d   : > { %987 = vperm.xlu1 %6871, %v7495_v42   ;;  %993 = vperm.xlu0 %6873, %v7512_v47   ;;  %12730 = vst [vmem:[#allocation80_spill] sm:$0xff] %v7855_v50  ;;  %v12549_v6 = vunpack.c.h.bf16 %v7855_v50 }
 0x12e   : > { %v7803_v38 = vpop.permute.xlu0 %669  ;;  %v7805_v43 = vpop.permute.xlu2 %891 }
 0x12f   : > { %12726 = vst [vmem:[#allocation76_spill] sm:$0xff] %v7803_v38  ;;  %v7810_v40 = vpop.permute.xlu1 %864 }
 0x131   : > { %6232 = vmatmul.msk.f32.gmra.mxu0 %vm2554_vm1, %v12539_v48 }
 0x134   : > { %999 = vperm.xlu2 %6872, %v7533_v54   ;;  %v12540_v54 = vunpack.c.l.bf16 %v7826_v44 }
 0x135   : > { %996 = vperm.xlu1 %6871, %v7509_v46   ;;  %1002 = vperm.xlu0 %6873, %v7530_v53  }
 0x136   : > { %v7816_v42 = vpop.permute.xlu2 %900 }
 0x137   : > { %v7821_v47 = vpop.permute.xlu1 %873  ;;  %v7823_v36 = vpop.permute.xlu0 %870 }
 0x139   : > { %6233 = vmatmul.msk.f32.gmra.mxu0 %vm2554_vm1, %v12540_v54 }
 0x13c   : > { %1008 = vperm.xlu2 %6872, %v7551_v60   ;;  %v12543_v60 = vunpack.c.h.bf16 %v7826_v44 }
 0x13d   : > { %1005 = vperm.xlu1 %6871, %v7527_v52   ;;  %1011 = vperm.xlu0 %6873, %v7548_v59  }
 0x13e   : > { %v7832_v46 = vpop.permute.xlu2 %909 }
 0x13f   : > { %12728 = vst [vmem:[#allocation78_spill] sm:$0xff] %v7832_v46  ;;  %v7837_v53 = vpop.permute.xlu1 %879  ;;  %v7839_v48 = vpop.permute.xlu0 %885 }
 0x141   : > { %6234 = vmatmul.msk.f32.gmra.mxu0 %vm2554_vm1, %v12543_v60 }
 0x144   : > { %1017 = vperm.xlu2 %6872, %v7569_v49   ;;  %v12548_v49 = vunpack.c.l.bf16 %v7855_v50 }
 0x145   : > { %1014 = vperm.xlu1 %6871, %v7545_v58   ;;  %1020 = vperm.xlu0 %6873, %v7566_v55   ;;  %v12731_v55 = vld [vmem:[#allocation20_spill] sm:$0xff] }
 0x146   : > { %v7845_v52 = vpop.permute.xlu2 %918 }
 0x147   : > { %12729 = vst [vmem:[#allocation79_spill] sm:$0xff] %v7845_v52  ;;  %v7850_v59 = vpop.permute.xlu1 %888  ;;  %v7852_v54 = vpop.permute.xlu0 %894 }
 0x149   : > { %6235 = vmatmul.msk.f32.gmra.mxu0 %vm2554_vm1, %v12548_v49 }
 0x14c   : > { %1026 = vperm.xlu2 %6872, %v7587_v37   ;;  %v12733_v37 = vld [vmem:[#allocation19_spill] sm:$0xff] }
 0x14d   : > { %1023 = vperm.xlu1 %6871, %v7563_v0   ;;  %1029 = vperm.xlu0 %6873, %v12731_v55  }
 0x14e   : > { %v7861_v58 = vpop.permute.xlu2 %927 }
 0x14f   : > { %12732 = vst [vmem:[#allocation20_spill] sm:$0xff] %v7861_v58  ;;  %v7866_v60 = vpop.permute.xlu1 %897  ;;  %v7868_v44 = vpop.permute.xlu0 %903  ;;  %v7181_v58 = vld [vmem:[%s7332_s24 + $0x58] sm:$0xff] }
 0x151   : > { %6236 = vmatmul.msk.f32.gmra.mxu0 %vm2554_vm1, %v12549_v6 }
 0x154   : > { %1035 = vperm.xlu2 %6872, %v7605_v57   ;;  %v12738_v57 = vld [vmem:[#allocation24_spill] sm:$0xff] }
 0x155   : > { %1032 = vperm.xlu1 %6871, %v12733_v37   ;;  %1038 = vperm.xlu0 %6873, %v12734_v34   ;;  %v12739_v37 = vld [vmem:[#allocation30_spill] sm:$0xff] }
 0x156   : > { %v7874_v0 = vpop.permute.xlu2 %936 }
 0x157   : > { %12735 = vst [vmem:[#allocation19_spill] sm:$0xff] %v7874_v0  ;;  %v7879_v55 = vpop.permute.xlu1 %906  ;;  %v7881_v49 = vpop.permute.xlu0 %912 }
 0x158   : > { %12736 = vst [vmem:[#allocation25_spill] sm:$0xff] %v7881_v49 }
 0x159   : > { %6237 = vmatmul.msk.f32.gmra.mxu0 %vm2554_vm1, %v12552_v31 }
 0x15c   : > { %1044 = vperm.xlu2 %6872, %v7623_v41   ;;  %v12743_v41 = vld [vmem:[#allocation29_spill] sm:$0xff] }
 0x15d   : > { %1041 = vperm.xlu1 %6871, %v12738_v57   ;;  %1047 = vperm.xlu0 %6873, %v12739_v37   ;;  %v12557_v57 = vmov 2  }
 0x15e   : > { %v7890_v34 = vpop.permute.xlu2 %945 }
 0x15f   : > { %12740 = vst [vmem:[#allocation24_spill] sm:$0xff] %v7890_v34  ;;  %v7895_v6 = vpop.permute.xlu1 %915  ;;  %v7897_v50 = vpop.permute.xlu0 %921  ;;  %v7945_v34 = vld [vmem:[%s7731_s28 + $0x38] sm:$0xff]  }
 0x160   : > { %12741 = vst [vmem:[#allocation30_spill] sm:$0xff] %v7895_v6  ;;  %v2412_v6 = vld [vmem:[%s12513_s3] sm:$0xff] }
 0x161   : > { %12742 = vst [vmem:[#allocation82_spill] sm:$0xff] %v7897_v50  ;;  %6238 = vmatmul.msk.f32.gmra.mxu0 %vm2554_vm1, %v12553_v35 }
 0x162   : > { %12755 = vst [vmem:[#allocation91_spill] sm:$0xff] %v7945_v34 }
 0x164   : > { %1053 = vperm.xlu2 %6872, %v7635_v61   ;;  %v12560_v61 = vunpack.c.l.bf16 %v7914_v32 }
 0x165   : > { %1050 = vperm.xlu1 %6871, %v12743_v41   ;;  %6874 = vset.pattern.permute.xlu0 %v12557_v57  ;;  %v12748_v41 = vld [vmem:[#allocation3_spill] sm:$0xff] }
 0x166   : > { %1248 = vperm.xlu0 %6874, %v7341_v3   ;;  %v7904_v37 = vpop.permute.xlu2 %954 }
 0x167   : > { %12744 = vst [vmem:[#allocation29_spill] sm:$0xff] %v7904_v37  ;;  %v7909_v31 = vpop.permute.xlu1 %924  ;;  %v7911_v28 = vpop.permute.xlu0 %930 }
 0x168   : > { %12745 = vst [vmem:[#allocation83_spill] sm:$0xff] %v7909_v31  ;;  %v8367_v31 = vld [vmem:[%s7731_s28 + $0xc0] sm:$0xff]  }
 0x169   : > { %12746 = vst [vmem:[#allocation84_spill] sm:$0xff] %v7911_v28  ;;  %6239 = vmatmul.msk.f32.gmra.mxu0 %vm2554_vm1, %v12560_v61  ;;  %v12566_v61 = vunpack.c.l.bf16 %v7945_v34  ;;  %v2424_v28 = vld [vmem:[%s12513_s3 + $0x60] sm:$0xf] }
 0x16a   : > { %6485 = vmatpush.msk.msrb.mxu0 %vm2747_vm0, %v2424_v28  ;;  %v2421_v28 = vld [vmem:[%s12513_s3 + $0x48] sm:$0xff]  ;;  %12819 = vst [vmem:[#allocation152_spill] sm:$0xff] %v8367_v31 }
 0x16c   : > { %6876 = vset.pattern.permute.xlu2 %v12557_v57 }
 0x16d   : > { %6875 = vset.pattern.permute.xlu1 %v12557_v57  ;;  %1254 = vperm.xlu2 %6876, %v7338_v2  }
 0x16e   : > { %1251 = vperm.xlu1 %6875, %v12748_v41   ;;  %1263 = vperm.xlu0 %6874, %v7347_v4   ;;  %v7922_v35 = vpop.permute.xlu2 %963 }
 0x16f   : > { %12749 = vst [vmem:[#allocation3_spill] sm:$0xff] %v7922_v35  ;;  %v7924_v39 = vpop.permute.xlu1 %933  ;;  %v7926_v45 = vpop.permute.xlu0 %939 }
 0x170   : > { %12750 = vst [vmem:[#allocation86_spill] sm:$0xff] %v7924_v39  ;;  %v2406_v39 = vld [vmem:[%s12512_s2 + $0x38] sm:$0xff] }
 0x171   : > { %12751 = vst [vmem:[#allocation87_spill] sm:$0xff] %v7926_v45  ;;  %6240 = vmatmul.msk.f32.gmra.mxu0 %vm2554_vm1, %v12562_v63  ;;  %v12569_v63 = vunpack.c.h.bf16 %v7945_v34 }
 0x175   : > { %1260 = vperm.xlu2 %6876, %v7335_v1  }
 0x176   : > { %1257 = vperm.xlu1 %6875, %v7350_v5   ;;  %1272 = vperm.xlu0 %6874, %v7359_v7   ;;  %v7935_v57 = vpop.permute.xlu2 %972 }
 0x177   : > { %12752 = vst [vmem:[#allocation88_spill] sm:$0xff] %v7935_v57  ;;  %v7937_v37 = vpop.permute.xlu1 %942  ;;  %v7939_v35 = vpop.permute.xlu0 %948 }
 0x178   : > { %12753 = vst [vmem:[#allocation89_spill] sm:$0xff] %v7937_v37 }
 0x179   : > { %12754 = vst [vmem:[#allocation90_spill] sm:$0xff] %v7939_v35  ;;  %6241 = vmatmul.msk.f32.gmra.mxu0 %vm2554_vm1, %v12566_v61  ;;  %v7974_v61 = vld [vmem:[%s7731_s28 + $0x40] sm:$0xff]  }
 0x17a   : > { %12762 = vst [vmem:[#allocation98_spill] sm:$0xff] %v7974_v61 }
 0x17d   : > { %1269 = vperm.xlu2 %6876, %v7362_v8  }
 0x17e   : > { %1266 = vperm.xlu1 %6875, %v7365_v9   ;;  %1281 = vperm.xlu0 %6874, %v7371_v10   ;;  %v7951_v7 = vpop.permute.xlu2 %981 }
 0x17f   : > { %12756 = vst [vmem:[#allocation92_spill] sm:$0xff] %v7951_v7  ;;  %v7953_v57 = vpop.permute.xlu1 %951  ;;  %v7955_v35 = vpop.permute.xlu0 %957 }
 0x180   : > { %12757 = vst [vmem:[#allocation93_spill] sm:$0xff] %v7953_v57  ;;  %v12574_v57 = vunpack.c.l.bf16 %v7974_v61 }
 0x181   : > { %12758 = vst [vmem:[#allocation94_spill] sm:$0xff] %v7955_v35  ;;  %6242 = vmatmul.msk.f32.gmra.mxu0 %vm2554_vm1, %v12569_v63 }
 0x185   : > { %1278 = vperm.xlu2 %6876, %v7374_v11  }
 0x186   : > { %1275 = vperm.xlu1 %6875, %v7377_v12   ;;  %1290 = vperm.xlu0 %6874, %v7383_v13   ;;  %v7964_v10 = vpop.permute.xlu2 %990  ;;  %v7976_v35 = vpop.f32.mrf.mxu0  ;;  %v7980_v12 = vld [vmem:[%s7731_s28 + $0x80] sm:$0xff]  }
 0x187   : > { %12759 = vst [vmem:[#allocation95_spill] sm:$0xff] %v7964_v10  ;;  %v7966_v32 = vpop.permute.xlu1 %960  ;;  %v7968_v7 = vpop.permute.xlu0 %966  ;;  %v12576_v13 = vunpack.c.h.bf16 %v7980_v12 }
 0x188   : > { %12760 = vst [vmem:[#allocation96_spill] sm:$0xff] %v7966_v32 }
 0x189   : > { %12761 = vst [vmem:[#allocation97_spill] sm:$0xff] %v7968_v7  ;;  %6243 = vmatmul.msk.f32.gmra.mxu0 %vm2554_vm1, %v12574_v57  ;;  %6260 = vmatmul.msk.f32.vlgmr.msra.gmra.mxu2 %vm2554_vm1, %v12576_v13  ;;  %v12578_v7 = vunpack.c.h.bf16 %v7974_v61  ;;  %v2411_v13 = vld [vmem:[%s12512_s2 + $0x60] sm:$0xf] }
 0x18a   : > { %12763 = vst [vmem:[#allocation99_spill] sm:$0xff] %v7976_v35  ;;  %6840 = vmatpush.msk.msrb.mxu2 %vm2747_vm0, %v2411_v13  ;;  %6291 = vmatpush.msk.msra.mxu1 %vm2747_vm0, %v2411_v13 }
 0x18d   : > { %1287 = vperm.xlu2 %6876, %v7386_v14  }
 0x18e   : > { %1284 = vperm.xlu1 %6875, %v7389_v15   ;;  %1299 = vperm.xlu0 %6874, %v7395_v16   ;;  %v7986_v34 = vpop.permute.xlu2 %999  ;;  %v7998_v14 = vpop.f32.mrf.mxu0  ;;  %v8002_v16 = vld [vmem:[%s7731_s28 + $0x88] sm:$0xff]  }
 0x18f   : > { %12764 = vst [vmem:[#allocation100_spill] sm:$0xff] %v7986_v34  ;;  %v7988_v63 = vpop.permute.xlu1 %969  ;;  %v7990_v10 = vpop.permute.xlu0 %975  ;;  %v12579_v34 = vunpack.c.l.bf16 %v8002_v16 }
 0x190   : > { %12765 = vst [vmem:[#allocation101_spill] sm:$0xff] %v7988_v63 }
 0x191   : > { %12766 = vst [vmem:[#allocation102_spill] sm:$0xff] %v7990_v10  ;;  %6244 = vmatmul.msk.f32.gmra.mxu0 %vm2554_vm1, %v12578_v7  ;;  %6261 = vmatmul.msk.f32.gmra.mxu2 %vm2554_vm1, %v12579_v34  ;;  %v12585_v7 = vunpack.c.h.bf16 %v8002_v16 }
 0x192   : > { %12767 = vst [vmem:[#allocation103_spill] sm:$0xff] %v7998_v14 }
 0x195   : > { %1296 = vperm.xlu2 %6876, %v7398_v17  }
 0x196   : > { %1293 = vperm.xlu1 %6875, %v7401_v18   ;;  %1308 = vperm.xlu0 %6874, %v7407_v19   ;;  %v8008_v10 = vpop.permute.xlu2 %1008  ;;  %v8024_v19 = vld [vmem:[%s7731_s28 + $0x48] sm:$0xff]  }
 0x197   : > { %12768 = vst [vmem:[#allocation104_spill] sm:$0xff] %v8008_v10  ;;  %v8010_v57 = vpop.permute.xlu1 %978  ;;  %v8012_v63 = vpop.permute.xlu0 %984 }
 0x198   : > { %12769 = vst [vmem:[#allocation105_spill] sm:$0xff] %v8010_v57  ;;  %v8027_v10 = vpop.f32.mrf.mxu0 }
 0x199   : > { %12770 = vst [vmem:[#allocation106_spill] sm:$0xff] %v8012_v63  ;;  %v12583_v63 = vunpack.c.l.bf16 %v8024_v19  ;;  %6262 = vmatmul.msk.f32.gmra.mxu2 %vm2554_vm1, %v12585_v7 }
 0x19a   : > { %12771 = vst [vmem:[#allocation107_spill] sm:$0xff] %v8024_v19 }
 0x19b   : > { %12772 = vst [vmem:[#allocation108_spill] sm:$0xff] %v8027_v10  ;;  %6245 = vmatmul.msk.f32.gmra.mxu0 %vm2554_vm1, %v12583_v63  ;;  %v2419_v10 = vld [vmem:[%s12513_s3 + $0x38] sm:$0xff] }
 0x19d   : > { %1305 = vperm.xlu2 %6876, %v7410_v20   ;;  %v8048_v20 = vld [vmem:[%s7731_s28 + $0x90] sm:$0xff]  }
 0x19e   : > { %1302 = vperm.xlu1 %6875, %v7413_v21   ;;  %1317 = vperm.xlu0 %6874, %v7419_v22   ;;  %v8035_v34 = vpop.permute.xlu2 %1017  ;;  %v12588_v22 = vunpack.c.h.bf16 %v8024_v19  ;;  %v12589_v13 = vunpack.c.l.bf16 %v8048_v20  ;;  %v12595_v19 = vunpack.c.h.bf16 %v8048_v20 }
 0x19f   : > { %12773 = vst [vmem:[#allocation109_spill] sm:$0xff] %v8035_v34  ;;  %v8037_v61 = vpop.permute.xlu1 %987  ;;  %v8039_v57 = vpop.permute.xlu0 %993 }
 0x1a0   : > { %12774 = vst [vmem:[#allocation110_spill] sm:$0xff] %v8037_v61  ;;  %v8050_v21 = vpop.f32.mrf.mxu0 }
 0x1a1   : > { %12775 = vst [vmem:[#allocation111_spill] sm:$0xff] %v8039_v57  ;;  %6263 = vmatmul.msk.f32.gmra.mxu2 %vm2554_vm1, %v12589_v13 }
 0x1a2   : > { %12776 = vst [vmem:[#allocation112_spill] sm:$0xff] %v8050_v21 }
 0x1a3   : > { %6246 = vmatmul.msk.f32.gmra.mxu0 %vm2554_vm1, %v12588_v22  ;;  %v12592_v22 = vmov 3  }
 0x1a5   : > { %1314 = vperm.xlu2 %6876, %v7422_v23   ;;  %v8072_v23 = vld [vmem:[%s7731_s28 + $0x50] sm:$0xff]  }
 0x1a6   : > { %1311 = vperm.xlu1 %6875, %v7425_v24   ;;  %1326 = vperm.xlu0 %6874, %v7431_v25   ;;  %v8057_v34 = vpop.permute.xlu2 %1026  ;;  %12781 = vst [vmem:[#allocation117_spill] sm:$0xff] %v8072_v23  ;;  %v2410_v24 = vld [vmem:[%s12512_s2 + $0x58] sm:$0xff]  ;;  %v12594_v25 = vunpack.c.l.bf16 %v8072_v23 }
 0x1a7   : > { %12777 = vst [vmem:[#allocation113_spill] sm:$0xff] %v8057_v34  ;;  %v8059_v63 = vpop.permute.xlu1 %996  ;;  %v8061_v57 = vpop.permute.xlu0 %1002  ;;  %6841 = vmatpush.msrb.mxu2 %v2410_v24  ;;  %3160 = vmatpush.msra.mxu1 %v2410_v24  ;;  %v8099_v24 = vld [vmem:[%s7731_s28 + $0x98] sm:$0xff]  }
 0x1a8   : > { %12778 = vst [vmem:[#allocation114_spill] sm:$0xff] %v8059_v63  ;;  %v8069_v7 = vpop.f32.mrf.mxu0 }
 0x1a9   : > { %12779 = vst [vmem:[#allocation115_spill] sm:$0xff] %v8061_v57  ;;  %6264 = vmatmul.msk.f32.gmra.mxu2 %vm2554_vm1, %v12595_v19 }
 0x1aa   : > { %12780 = vst [vmem:[#allocation116_spill] sm:$0xff] %v8069_v7  ;;  %v8326_v7 = vld [vmem:[%s7731_s28 + $0x78] sm:$0xff]  }
 0x1ab   : > { %6247 = vmatmul.msk.f32.gmra.mxu0 %vm2554_vm1, %v12594_v25  ;;  %12814 = vst [vmem:[#allocation148_spill] sm:$0xff] %v8326_v7  ;;  %v12823_v14 = vunpack.c.h.bf16 %v8326_v7  ;;  %v12835_v49 = vunpack.c.h.bf16 %v8326_v7 }
 0x1ad   : > { %1323 = vperm.xlu2 %6876, %v7434_v26  }
 0x1ae   : > { %1320 = vperm.xlu1 %6875, %v7437_v27   ;;  %6877 = vset.pattern.permute.xlu0 %v12592_v22  ;;  %v8082_v13 = vpop.permute.xlu2 %1035  ;;  %v12600_v27 = vunpack.c.h.bf16 %v8072_v23  ;;  %v12601_v22 = vunpack.c.l.bf16 %v8099_v24  ;;  %v12792_v23 = vmov 4  }
 0x1af   : > { %12782 = vst [vmem:[#allocation118_spill] sm:$0xff] %v8082_v13  ;;  %v8084_v34 = vpop.permute.xlu1 %1005  ;;  %1632 = vperm.xlu0 %6877, %v7341_v3   ;;  %v8087_v57 = vpop.permute.xlu0 %1011 }
 0x1b0   : > { %12783 = vst [vmem:[#allocation119_spill] sm:$0xff] %v8084_v34  ;;  %v8095_v26 = vpop.f32.mrf.mxu0 }
 0x1b1   : > { %12784 = vst [vmem:[#allocation120_spill] sm:$0xff] %v8087_v57  ;;  %v12596_v57 = vmov 4   ;;  %6265 = vmatmul.msk.f32.gmra.mxu2 %vm2554_vm1, %v12601_v22 }
 0x1b2   : > { %12785 = vst [vmem:[#allocation121_spill] sm:$0xff] %v8095_v26 }
 0x1b3   : > { %6248 = vmatmul.msk.f32.gmra.mxu0 %vm2554_vm1, %v12600_v27 }
 0x1b5   : > { %1332 = vperm.xlu2 %6876, %v7446_v29  }
 0x1b6   : > { %1329 = vperm.xlu1 %6875, %v7449_v30   ;;  %v8104_v13 = vpop.permute.xlu2 %1044  ;;  %v8121_v30 = vld [vmem:[%s7731_s28 + $0x58] sm:$0xff]  }
 0x1b7   : > { %12786 = vst [vmem:[#allocation122_spill] sm:$0xff] %v8104_v13  ;;  %v8106_v25 = vpop.permute.xlu1 %1014  ;;  %6880 = vset.pattern.permute.xlu0 %v12596_v57  ;;  %v8109_v19 = vpop.permute.xlu0 %1020  ;;  %v12603_v13 = vunpack.c.l.bf16 %v8121_v30  ;;  %v12604_v57 = vunpack.c.h.bf16 %v8099_v24 }
 0x1b8   : > { %12787 = vst [vmem:[#allocation123_spill] sm:$0xff] %v8106_v25  ;;  %2022 = vperm.xlu0 %6880, %v7338_v2   ;;  %v8118_v29 = vpop.f32.mrf.mxu0  ;;  %v12791_v25 = vmov 3  }
 0x1b9   : > { %12788 = vst [vmem:[#allocation124_spill] sm:$0xff] %v8109_v19  ;;  %6266 = vmatmul.msk.f32.gmra.mxu2 %vm2554_vm1, %v12604_v57 }
 0x1ba   : > { %12789 = vst [vmem:[#allocation125_spill] sm:$0xff] %v8118_v29 }
 0x1bb   : > { %12790 = vst [vmem:[#allocation126_spill] sm:$0xff] %v8121_v30  ;;  %6249 = vmatmul.msk.f32.gmra.mxu0 %vm2554_vm1, %v12603_v13 }
 0x1bd   : > { %6879 = vset.pattern.permute.xlu2 %v12791_v25 }
 0x1be   : > { %6878 = vset.pattern.permute.xlu1 %v12792_v23  ;;  %1635 = vperm.xlu2 %6879, %v12748_v41   ;;  %v8128_v27 = vpop.permute.xlu2 %1053 }
 0x1bf   : > { %12793 = vst [vmem:[#allocation127_spill] sm:$0xff] %v8128_v27  ;;  %2016 = vperm.xlu1 %6878, %v7341_v3   ;;  %v8131_v22 = vpop.permute.xlu1 %1023  ;;  %v8133_v19 = vpop.permute.xlu0 %1029  ;;  %v2409_v3 = vld [vmem:[%s12512_s2 + $0x50] sm:$0xff]  ;;  %v12849_v27 = vld [vmem:[#allocation12_spill] sm:$0xff] }
 0x1c0   : > { %12794 = vst [vmem:[#allocation128_spill] sm:$0xff] %v8131_v22  ;;  %6883 = vset.pattern.permute.xlu0 %v12791_v25  ;;  %v8146_v34 = vpop.f32.mrf.mxu0  ;;  %6842 = vmatpush.msrb.mxu2 %v2409_v3  ;;  %v8150_v22 = vld [vmem:[%s7731_s28 + $0xa0] sm:$0xff]  }
 0x1c1   : > { %12795 = vst [vmem:[#allocation129_spill] sm:$0xff] %v8133_v19  ;;  %1647 = vperm.xlu0 %6883, %v7347_v4   ;;  %v12609_v19 = vunpack.c.h.bf16 %v8121_v30  ;;  %3161 = vmatpush.msra.mxu1 %v2409_v3  ;;  %v12610_v13 = vunpack.c.l.bf16 %v8150_v22  ;;  %v12614_v30 = vunpack.c.h.bf16 %v8150_v22 }
 0x1c2   : > { %12796 = vst [vmem:[#allocation130_spill] sm:$0xff] %v8146_v34  ;;  %v8299_v34 = vld [vmem:[%s7332_s24 + $0x88] sm:$0xff] }
 0x1c3   : > { %6250 = vmatmul.msk.f32.gmra.mxu0 %vm2554_vm1, %v12609_v19  ;;  %6267 = vmatmul.msk.f32.gmra.mxu2 %vm2554_vm1, %v12610_v13 }
 0x1c6   : > { %1638 = vperm.xlu2 %6879, %v7338_v2  }
 0x1c7   : > { %2019 = vperm.xlu1 %6878, %v12748_v41   ;;  %v8155_v57 = vpop.permute.xlu1 %1032  ;;  %v8157_v63 = vpop.permute.xlu0 %1038  ;;  %v8172_v41 = vld [vmem:[%s7731_s28 + $0x60] sm:$0xff]  }
 0x1c8   : > { %12797 = vst [vmem:[#allocation131_spill] sm:$0xff] %v8155_v57  ;;  %v8162_v61 = vpop.permute.xlu2 %1254  ;;  %v8169_v2 = vpop.f32.mrf.mxu0  ;;  %v12613_v3 = vunpack.c.l.bf16 %v8172_v41 }
 0x1c9   : > { %12798 = vst [vmem:[#allocation132_spill] sm:$0xff] %v8157_v63  ;;  %6886 = vset.pattern.permute.xlu0 %v12792_v23  ;;  %v8201_v63 = vld [vmem:[%s7731_s28 + $0xa8] sm:$0xff]  }
 0x1ca   : > { %2037 = vperm.xlu0 %6886, %v7362_v8   ;;  %12799 = vst [vmem:[#allocation133_spill] sm:$0xff] %v8169_v2  ;;  %v12620_v32 = vunpack.c.h.bf16 %v8201_v63  ;;  %v7176_v2 = vld [vmem:[%s7332_s24 + $0x30] sm:$0xff] }
 0x1cb   : > { %12800 = vst [vmem:[#allocation134_spill] sm:$0xff] %v8172_v41  ;;  %6251 = vmatmul.msk.f32.gmra.mxu0 %vm2554_vm1, %v12613_v3  ;;  %6268 = vmatmul.msk.f32.gmra.mxu2 %vm2554_vm1, %v12614_v30  ;;  %v12616_v3 = vunpack.c.l.bf16 %v8201_v63 }
 0x1ce   : > { %6882 = vset.pattern.permute.xlu2 %v12792_v23 }
 0x1cf   : > { %6881 = vset.pattern.permute.xlu1 %v12791_v25  ;;  %v8178_v19 = vpop.permute.xlu1 %1041  ;;  %v8180_v13 = vpop.permute.xlu0 %1047  ;;  %2025 = vperm.xlu2 %6882, %v7350_v5  }
 0x1d0   : > { %12801 = vst [vmem:[#allocation135_spill] sm:$0xff] %v8178_v19  ;;  %v8183_v8 = vpop.permute.xlu2 %1260  ;;  %1641 = vperm.xlu1 %6881, %v7350_v5   ;;  %v8194_v19 = vpop.f32.mrf.mxu0  ;;  %v12615_v5 = vunpack.c.h.bf16 %v8172_v41 }
 0x1d1   : > { %12802 = vst [vmem:[#allocation136_spill] sm:$0xff] %v8180_v13  ;;  %v2408_v13 = vld [vmem:[%s12512_s2 + $0x48] sm:$0xff] }
 0x1d2   : > { %6889 = vset.pattern.permute.xlu0 %v12791_v25  ;;  %12803 = vst [vmem:[#allocation137_spill] sm:$0xff] %v8194_v19  ;;  %6843 = vmatpush.msrb.mxu2 %v2408_v13 }
 0x1d3   : > { %1662 = vperm.xlu0 %6889, %v7374_v11   ;;  %3162 = vmatpush.msra.mxu1 %v2408_v13 }
 0x1d4   : > { %6252 = vmatmul.msk.f32.gmra.mxu0 %vm2554_vm1, %v12615_v5  ;;  %6269 = vmatmul.msk.f32.gmra.mxu2 %vm2554_vm1, %v12616_v3 }
 0x1d7   : > { %v8204_v30 = vpop.permute.xlu1 %1050  ;;  %2028 = vperm.xlu2 %6882, %v7335_v1  }
 0x1d8   : > { %12804 = vst [vmem:[#allocation138_spill] sm:$0xff] %v8204_v30  ;;  %v8207_v11 = vpop.permute.xlu2 %1269  ;;  %1644 = vperm.xlu1 %6881, %v7335_v1   ;;  %v8210_v57 = vpop.permute.xlu0 %1248  ;;  %v8223_v30 = vld [vmem:[%s7731_s28 + $0x68] sm:$0xff]  }
 0x1d9   : > { %v8220_v13 = vpop.f32.mrf.mxu0  ;;  %12806 = vst [vmem:[#allocation140_spill] sm:$0xff] %v8223_v30  ;;  %v12619_v1 = vunpack.c.l.bf16 %v8223_v30 }
 0x1da   : > { %12805 = vst [vmem:[#allocation139_spill] sm:$0xff] %v8220_v13  ;;  %v8247_v13 = vld [vmem:[%s7731_s28 + $0xb0] sm:$0xff]  }
 0x1db   : > { %6892 = vset.pattern.permute.xlu0 %v12792_v23 }
 0x1dc   : > { %2052 = vperm.xlu0 %6892, %v7389_v15   ;;  %6253 = vmatmul.msk.f32.gmra.mxu0 %vm2554_vm1, %v12619_v1  ;;  %v12624_v1 = vunpack.c.l.bf16 %v8247_v13 }
 0x1dd   : > { %6270 = vmatmul.msk.f32.gmra.mxu2 %vm2554_vm1, %v12620_v32 }
 0x1df   : > { %6885 = vset.pattern.permute.xlu2 %v12791_v25 }
 0x1e0   : > { %v8228_v5 = vpop.permute.xlu2 %1278  ;;  %6884 = vset.pattern.permute.xlu1 %v12792_v23  ;;  %v8231_v3 = vpop.permute.xlu1 %1251  ;;  %1650 = vperm.xlu2 %6885, %v7365_v9   ;;  %v2407_v9 = vld [vmem:[%s12512_s2 + $0x40] sm:$0xff] }
 0x1e1   : > { %v8234_v15 = vpop.permute.xlu0 %1263  ;;  %2031 = vperm.xlu1 %6884, %v7347_v4   ;;  %v8244_v41 = vpop.f32.mrf.mxu0  ;;  %v12623_v4 = vunpack.c.h.bf16 %v8223_v30  ;;  %6844 = vmatpush.msrb.mxu2 %v2407_v9 }
 0x1e2   : > { %12807 = vst [vmem:[#allocation141_spill] sm:$0xff] %v8244_v41  ;;  %3163 = vmatpush.msra.mxu1 %v2407_v9  ;;  %v7175_v41 = vld [vmem:[%s7332_s24 + $0x38] sm:$0xff]  ;;  %v8272_v9 = vld [vmem:[%s7731_s28 + $0x70] sm:$0xff]  }
 0x1e3   : > { %12809 = vst [vmem:[#allocation143_spill] sm:$0xff] %v8272_v9  ;;  %6845 = vmatpush.msrb.mxu2 %v2406_v39 }
 0x1e4   : > { %6895 = vset.pattern.permute.xlu0 %v12791_v25  ;;  %6254 = vmatmul.msk.f32.gmra.mxu0 %vm2554_vm1, %v12623_v4 }
 0x1e5   : > { %1677 = vperm.xlu0 %6895, %v7401_v18   ;;  %6271 = vmatmul.msk.f32.gmra.mxu2 %vm2554_vm1, %v12624_v1  ;;  %v7177_v1 = vld [vmem:[%s7332_s24 + $0x40] sm:$0xff] }
 0x1e6   : > { %3164 = vmatpush.msra.mxu1 %v2406_v39  ;;  %v2422_v39 = vld [vmem:[%s12513_s3 + $0x50] sm:$0xff] }
 0x1e8   : > { %v8255_v32 = vpop.permute.xlu2 %1287  ;;  %v8257_v19 = vpop.permute.xlu1 %1257  ;;  %1653 = vperm.xlu2 %6885, %v7175_v41   ;;  %v12625_v41 = vunpack.c.l.bf16 %v8272_v9 }
 0x1e9   : > { %v8260_v37 = vpop.permute.xlu0 %1272  ;;  %2034 = vperm.xlu1 %6884, %v7176_v2   ;;  %v8269_v18 = vpop.f32.mrf.mxu0  ;;  %v12626_v2 = vunpack.c.h.bf16 %v8247_v13 }
 0x1ea   : > { %12808 = vst [vmem:[#allocation142_spill] sm:$0xff] %v8269_v18  ;;  %v8295_v18 = vld [vmem:[%s7731_s28 + $0xb8] sm:$0xff]  }
 0x1eb   : > { %v12628_v0 = vunpack.c.l.bf16 %v8295_v18 }
 0x1ec   : > { %6255 = vmatmul.msk.f32.gmra.mxu0 %vm2554_vm1, %v12625_v41 }
 0x1ed   : > { %1680 = vperm.xlu0 %6895, %v7398_v17   ;;  %6272 = vmatmul.msk.f32.gmra.mxu2 %vm2554_vm1, %v12626_v2 }
 0x1f0   : > { %v8277_v45 = vpop.permute.xlu2 %1296  ;;  %v8279_v30 = vpop.permute.xlu1 %1266  ;;  %6888 = vset.pattern.permute.xlu2 %v12792_v23 }
 0x1f1   : > { %12810 = vst [vmem:[#allocation144_spill] sm:$0xff] %v8277_v45  ;;  %v8282_v4 = vpop.permute.xlu0 %1281  ;;  %6887 = vset.pattern.permute.xlu1 %v12791_v25  ;;  %2040 = vperm.xlu2 %6888, %v7177_v1   ;;  %v8292_v17 = vpop.f32.mrf.mxu0 }
 0x1f2   : > { %1656 = vperm.xlu1 %6887, %v7177_v1   ;;  %12811 = vst [vmem:[#allocation145_spill] sm:$0xff] %v8292_v17  ;;  %v12627_v1 = vunpack.c.h.bf16 %v8272_v9  ;;  %v7179_v17 = vld [vmem:[%s7332_s24 + $0x48] sm:$0xff] }
 0x1f4   : > { %6256 = vmatmul.msk.f32.gmra.mxu0 %vm2554_vm1, %v12627_v1  ;;  %v8334_v1 = vld [vmem:[%s7332_s24 + $0xa0] sm:$0xff] }
 0x1f5   : > { %6900 = vset.pattern.permute.xlu0 %v12792_v23  ;;  %6273 = vmatmul.msk.f32.gmra.mxu2 %vm2554_vm1, %v12628_v0  ;;  %v12632_v0 = vunpack.c.l.bf16 %v8326_v7 }
 0x1f6   : > { %2067 = vperm.xlu0 %6900, %v8299_v34  }
 0x1f8   : > { %v8304_v41 = vpop.permute.xlu2 %1305  ;;  %v8306_v29 = vpop.permute.xlu1 %1275 }
 0x1f9   : > { %12812 = vst [vmem:[#allocation146_spill] sm:$0xff] %v8304_v41  ;;  %v8308_v2 = vpop.permute.xlu0 %1290  ;;  %2043 = vperm.xlu2 %6888, %v7179_v17   ;;  %v8320_v26 = vpop.f32.mrf.mxu0  ;;  %v12633_v41 = vunpack.c.l.bf16 %v8367_v31 }
 0x1fa   : > { %1659 = vperm.xlu1 %6887, %v7179_v17   ;;  %12813 = vst [vmem:[#allocation147_spill] sm:$0xff] %v8320_v26  ;;  %v2423_v17 = vld [vmem:[%s12513_s3 + $0x58] sm:$0xff] }
 0x1fb   : > { %4193 = vmatpush.msrb.mxu0 %v2423_v17  ;;  %v7182_v17 = vld [vmem:[%s7332_s24 + $0x50] sm:$0xff] }
 0x1fc   : > { %6257 = vmatmul.msk.f32.gmra.mxu0 %vm2554_vm1, %v12632_v0  ;;  %v7184_v0 = vld [vmem:[%s7332_s24 + $0x60] sm:$0xff] }
 0x1fd   : > { %4194 = vmatpush.msrb.mxu0 %v2422_v39 }
 0x1fe   : > { %6903 = vset.pattern.permute.xlu0 %v12791_v25 }
 0x1ff   : > { %1692 = vperm.xlu0 %6903, %v8334_v1   ;;  %4195 = vmatpush.msrb.mxu0 %v2421_v28  ;;  %v2405_v28 = vld [vmem:[%s12512_s2 + $0x30] sm:$0xff] }
 0x200   : > { %v8338_v9 = vpop.permute.xlu2 %1314  ;;  %v8340_v26 = vpop.permute.xlu1 %1284  ;;  %3165 = vmatpush.msra.mxu1 %v2405_v28  ;;  %6846 = vmatpush.msrb.mxu2 %v2405_v28 }
 0x201   : > { %12815 = vst [vmem:[#allocation149_spill] sm:$0xff] %v8338_v9  ;;  %v8343_v56 = vpop.permute.xlu0 %1299  ;;  %6891 = vset.pattern.permute.xlu2 %v12791_v25  ;;  %v12817_v9 = vunpack.c.h.bf16 %v8295_v18  ;;  %v8361_v21 = vpop.f32.mrf.mxu0 }
 0x202   : > { %12816 = vst [vmem:[#allocation150_spill] sm:$0xff] %v8343_v56  ;;  %6890 = vset.pattern.permute.xlu1 %v12792_v23  ;;  %1665 = vperm.xlu2 %6891, %v7181_v58   ;;  %v12831_v56 = vunpack.c.h.bf16 %v8367_v31 }
 0x203   : > { %2046 = vperm.xlu1 %6890, %v7182_v17   ;;  %6274 = vmatmul.msk.f32.gmra.mxu2 %vm2554_vm1, %v12817_v9  ;;  %12818 = vst [vmem:[#allocation151_spill] sm:$0xff] %v8361_v21  ;;  %v2420_v17 = vld [vmem:[%s12513_s3 + $0x40] sm:$0xff]  ;;  %v8379_v21 = vld [vmem:[%s7332_s24 + $0xb0] sm:$0xff] }
 0x204   : > { %4196 = vmatpush.msrb.mxu0 %v2420_v17  ;;  %v2404_v17 = vld [vmem:[%s12512_s2 + $0x28] sm:$0xff] }
 0x205   : > { %6258 = vmatmul.msk.f32.gmra.mxu0 %vm2554_vm1, %v12823_v14  ;;  %3166 = vmatpush.msra.mxu1 %v2404_v17  ;;  %v2416_v14 = vld [vmem:[%s12513_s3 + $0x20] sm:$0xff] }
 0x206   : > { %4197 = vmatpush.msrb.mxu0 %v2419_v10  ;;  %v2403_v10 = vld [vmem:[%s12512_s2 + $0x20] sm:$0xff]  ;;  %6847 = vmatpush.msrb.mxu2 %v2404_v17  ;;  %v2415_v17 = vld [vmem:[%s12513_s3 + $0x18] sm:$0xff] }
 0x207   : > { %6906 = vset.pattern.permute.xlu0 %v12792_v23  ;;  %3167 = vmatpush.msra.mxu1 %v2403_v10 }
 0x208   : > { %v8374_v9 = vpop.permute.xlu2 %1323  ;;  %v8376_v39 = vpop.permute.xlu1 %1293  ;;  %2082 = vperm.xlu0 %6906, %v8379_v21   ;;  %6848 = vmatpush.msrb.mxu2 %v2403_v10 }
 0x209   : > { %12820 = vst [vmem:[#allocation153_spill] sm:$0xff] %v8374_v9  ;;  %v2418_v9 = vld [vmem:[%s12513_s3 + $0x30] sm:$0xff]  ;;  %v8390_v50 = vpop.permute.xlu0 %1308 }
 0x20a   : > { %12821 = vst [vmem:[#allocation154_spill] sm:$0xff] %v8376_v39  ;;  %1668 = vperm.xlu2 %6891, %v7184_v0   ;;  %v8401_v0 = vpop.f32.mrf.mxu0  ;;  %4198 = vmatpush.msrb.mxu0 %v2418_v9  ;;  %v12847_v39 = vunpack.c.h.bf16 %v7980_v12 }
 0x20b   : > { %12822 = vst [vmem:[#allocation155_spill] sm:$0xff] %v8390_v50  ;;  %2049 = vperm.xlu1 %6890, %v7181_v58   ;;  %6275 = vmatmul.msk.f32.gmra.mxu2 %vm2554_vm1, %v12633_v41  ;;  %v2417_v58 = vld [vmem:[%s12513_s3 + $0x28] sm:$0xff]  ;;  %v2402_v41 = vld [vmem:[%s12512_s2 + $0x18] sm:$0xff] }
 0x20c   : > { %12824 = vst [vmem:[#allocation156_spill] sm:$0xff] %v8401_v0  ;;  %4199 = vmatpush.msrb.mxu0 %v2417_v58  ;;  %v8422_v50 = vld [vmem:[%s7332_s24 + $0xc8] sm:$0xff]  ;;  %3168 = vmatpush.msra.mxu1 %v2402_v41  ;;  %v2414_v58 = vld [vmem:[%s12513_s3 + $0x10] sm:$0xff] }
 0x20d   : > { %v7186_v0 = vld [vmem:[%s7332_s24 + $0x68] sm:$0xff]  ;;  %6849 = vmatpush.msrb.mxu2 %v2402_v41  ;;  %v12841_v41 = vmov 2  }
 0x20e   : > { %4200 = vmatpush.msrb.mxu0 %v2416_v14  ;;  %v12828_v14 = vunpack.c.l.bf16 %v7980_v12 }
 0x210   : > { %v8416_v9 = vpop.permute.xlu2 %1332  ;;  %v8418_v28 = vpop.permute.xlu1 %1302  ;;  %6909 = vset.pattern.permute.xlu0 %v12791_v25  ;;  %6259 = vmatmul.msk.f32.gmra.mxu0 %vm2554_vm1, %v12828_v14  ;;  %v2413_v14 = vld [vmem:[%s12513_s3 + $0x8] sm:$0xff] }
 0x211   : > { %12825 = vst [vmem:[#allocation157_spill] sm:$0xff] %v8416_v9  ;;  %1707 = vperm.xlu0 %6909, %v8422_v50   ;;  %v2401_v9 = vld [vmem:[%s12512_s2 + $0x10] sm:$0xff]  ;;  %v8445_v35 = vpop.permute.xlu0 %1317  ;;  %4201 = vmatpush.msrb.mxu0 %v2415_v17  ;;  %v3973_v17 = vld [vmem:[%s12519_s9] sm:$0xf] }
 0x212   : > { %12826 = vst [vmem:[#allocation158_spill] sm:$0xff] %v8418_v28  ;;  %6894 = vset.pattern.permute.xlu2 %v12792_v23  ;;  %v8435_v28 = vpop.f32.mrf.mxu2  ;;  %v8443_v52 = vpop.f32.mrf.mxu0  ;;  %3169 = vmatpush.msra.mxu1 %v2401_v9 }
 0x213   : > { %6893 = vset.pattern.permute.xlu1 %v12791_v25  ;;  %2055 = vperm.xlu2 %6894, %v7186_v0   ;;  %12827 = vst [vmem:[#allocation159_spill] sm:$0xff] %v8435_v28  ;;  %v8457_v28 = vld [vmem:[%s7731_s28 + $0xc8] sm:$0xff]  }
 0x214   : > { %1671 = vperm.xlu1 %6893, %v7186_v0   ;;  %12829 = vst [vmem:[#allocation160_spill] sm:$0xff] %v8443_v52  ;;  %6276 = vmatmul.msk.f32.gmra.mxu2 %vm2554_vm1, %v12831_v56  ;;  %v2400_v0 = vld [vmem:[%s12512_s2 + $0x8] sm:$0xff]  ;;  %v2399_v56 = vld [vmem:[%s12512_s2] sm:$0xff]  ;;  %v12837_v31 = vunpack.c.l.bf16 %v8457_v28  ;;  %v12640_v7 = vunpack.c.h.bf16 %v8457_v28 }
 0x215   : > { %12830 = vst [vmem:[#allocation161_spill] sm:$0xff] %v8445_v35  ;;  %4202 = vmatpush.msrb.mxu0 %v2414_v58  ;;  %3170 = vmatpush.msra.mxu1 %v2400_v0  ;;  %v8476_v58 = vld [vmem:[%s7332_s24 + $0xd8] sm:$0xff] }
 0x216   : > { %12832 = vst [vmem:[#allocation162_spill] sm:$0xff] %v8457_v28  ;;  %6853 = vmatpush.msk.msra.mxu3 %vm2747_vm0, %v3973_v17  ;;  %6850 = vmatpush.msrb.mxu2 %v2401_v9  ;;  %v7191_v9 = vld [vmem:[%s7332_s24 + $0x1f8] sm:$0xff]  ;;  %v12845_v28 = vld [vmem:[#allocation9_spill] sm:$0xff] }
 0x217   : > { %4203 = vmatpush.msrb.mxu0 %v2413_v14  ;;  %3171 = vmatpush.msra.mxu1 %v2399_v56  ;;  %v3972_v14 = vld [vmem:[%s12518_s8 + $0x8] sm:$0xff] }
 0x218   : > { %v8465_v52 = vpop.permute.xlu1 %1311  ;;  %v8467_v35 = vpop.permute.xlu2 %1635  ;;  %6452 = vmatmul.msk.f32.vlgmr.msra.gmra.mxu3 %vm2554_vm1, %v12835_v49  ;;  %6851 = vmatpush.msrb.mxu2 %v2400_v0 }
 0x219   : > { %12833 = vst [vmem:[#allocation163_spill] sm:$0xff] %v8465_v52  ;;  %6912 = vset.pattern.permute.xlu0 %v12792_v23  ;;  %v7188_v52 = vld [vmem:[%s7332_s24 + $0x70] sm:$0xff]  ;;  %4204 = vmatpush.msrb.mxu0 %v2412_v6  ;;  %v8494_v6 = vpop.permute.xlu0 %1326 }
 0x21a   : > { %2097 = vperm.xlu0 %6912, %v8476_v58   ;;  %v8480_v45 = vpop.f32.mrf.mxu2  ;;  %v8488_v10 = vpop.f32.mrf.mxu0  ;;  %4605 = vmatpush.msrb.mxu3 %v3972_v14  ;;  %12838 = vst [vmem:[#allocation166_spill] sm:$0xff] %v8494_v6  ;;  %v12842_v14 = vunpack.c.l.bf16 %v7980_v12 }
 0x21b   : > { %2058 = vperm.xlu2 %6894, %v7188_v52   ;;  %12834 = vst [vmem:[#allocation164_spill] sm:$0xff] %v8480_v45  ;;  %6420 = vmatpush.msk.msrb.mxu1 %vm2747_vm0, %v3973_v17  ;;  %v477_v45 = vlaneseq }
 0x21c   : > { %1674 = vperm.xlu1 %6893, %v7188_v52   ;;  %12836 = vst [vmem:[#allocation165_spill] sm:$0xff] %v8488_v10  ;;  %6277 = vmatmul.msk.f32.gmra.mxu2 %vm2554_vm1, %v12837_v31  ;;  %v8502_v10 = vld [vmem:[%s7332_s24 + $0xe8] sm:$0xff]  ;;  %v7190_v31 = vld [vmem:[%s7332_s24 + $0x78] sm:$0xff] }
 0x21d   : > { %v8516_v6 = vand.u32 127, %v477_v45  ;;  %6852 = vmatpush.msrb.mxu2 %v2399_v56  ;;  %v8535_v45 = vld [vmem:[%s7332_s24 + $0xf0] sm:$0xff]  ;;  %v12651_v56 = vmov 0.0  }
 0x21f   : > { %vm1055_vm2 = vcmp.eq.s32.totalorder %v7810_v40, %v8516_v6  ;;  %vm671_vm3 = vcmp.eq.s32.totalorder %v12845_v28, %v8516_v6  ;;  %vm1439_vm4 = vcmp.eq.s32.totalorder %v8210_v57, %v8516_v6  ;;  %vm1056_vm6 = vcmp.eq.s32.totalorder %v7762_v62, %v8516_v6 }
 0x220   : > { %v8496_v52 = vpop.permute.xlu1 %1320  ;;  %v8498_v49 = vpop.permute.xlu2 %1638  ;;  %6453 = vmatmul.msk.f32.gmra.mxu3 %vm2554_vm1, %v12842_v14  ;;  %v1119_v40 = vsel %vm1055_vm2, 1.0, %v12651_v56  ;;  %v735_v28 = vsel %vm671_vm3, 1.0, %v12651_v56  ;;  %v1503_v57 = vsel %vm1439_vm4, 1.0, %v12651_v56  ;;  %vm672_vm7 = vcmp.eq.s32.totalorder %v12849_v27, %v8516_v6 }
 0x221   : > { %12839 = vst [vmem:[#allocation167_spill] sm:$0xff] %v8496_v52  ;;  %v1633_v52 = vpop.permute.xlu0 %1632  ;;  %vm1440_vm8 = vcmp.eq.s32.totalorder %v8231_v3, %v8516_v6  ;;  %v1120_v62 = vsel %vm1056_vm6, 1.0, %v12651_v56  ;;  %vm1824_vm11 = vcmp.eq.s32.totalorder %v8467_v35, %v8516_v6  ;;  %v12851_v3 = vunpack.c.l.bf16 %v8002_v16  ;;  %v8587_v35 = vld [vmem:[%s7731_s28 + $0xd8] sm:$0xff]  }
 0x222   : > { %2103 = vperm.xlu0 %6912, %v8502_v10   ;;  %v8506_v17 = vpop.f32.mrf.mxu2  ;;  %v8518_v0 = vpop.f32.mrf.mxu0  ;;  %vm1823_vm5 = vcmp.eq.s32.totalorder %v1633_v52, %v8516_v6  ;;  %vm1057_vm12 = vcmp.eq.s32.totalorder %v7823_v36, %v8516_v6  ;;  %vm1441_vm14 = vcmp.eq.s32.totalorder %v8162_v61, %v8516_v6  ;;  %vm1825_vm0 = vcmp.eq.s32.totalorder %v8498_v49, %v8516_v6  ;;  %v12856_v61 = vld [vmem:[#allocation11_spill] sm:$0xff] }
 0x223   : > { %2061 = vperm.xlu2 %6894, %v7190_v31   ;;  %12840 = vst [vmem:[#allocation168_spill] sm:$0xff] %v8506_v17  ;;  %v8521_v31 = vld [vmem:[%s7731_s28 + $0xd0] sm:$0xff]   ;;  %v12855_v49 = vunpack.c.l.bf16 %v8587_v35  ;;  %vm1058_vm2 = vcmp.eq.s32.totalorder %v7821_v47, %v8516_v6  ;;  %vm674_vm4 = vcmp.eq.s32.totalorder %v12856_v61, %v8516_v6 }
 0x224   : > { %6896 = vset.pattern.permute.xlu1 %v12841_v41  ;;  %6278 = vmatmul.msk.f32.gmra.mxu2 %vm2554_vm1, %v12640_v7  ;;  %12843 = vst [vmem:[#allocation169_spill] sm:$0xff] %v8518_v0  ;;  %v12848_v0 = vunpack.c.l.bf16 %v8521_v31  ;;  %v12642_v38 = vunpack.c.h.bf16 %v8521_v31  ;;  %v1122_v47 = vsel %vm1058_vm2, 1.0, %v12651_v56 }
 0x225   : > { %1437 = vperm.xlu1 %6896, %v7191_v9  }
 0x228   : > { %v8525_v17 = vpop.permute.xlu1 %1329  ;;  %6454 = vmatmul.msk.f32.gmra.mxu3 %vm2554_vm1, %v12847_v39 }
 0x229   : > { %12844 = vst [vmem:[#allocation170_spill] sm:$0xff] %v8525_v17  ;;  %v8527_v14 = vpop.permute.xlu2 %2025  ;;  %v1183_v17 = vadd.f32 %v1119_v40, %v735_v28  ;;  %v736_v40 = vsel %vm672_vm7, 1.0, %v12651_v56  ;;  %v1504_v28 = vsel %vm1440_vm8, 1.0, %v12651_v56  ;;  %vm1059_vm7 = vcmp.eq.s32.totalorder %v7778_v51, %v8516_v6 }
 0x22a   : > { %2106 = vperm.xlu0 %6912, %v8535_v45   ;;  %v8539_v7 = vpop.f32.mrf.mxu2  ;;  %v8554_v39 = vpop.f32.mrf.mxu0  ;;  %vm2210_vm8 = vcmp.eq.s32.totalorder %v8527_v14, %v8516_v6  ;;  %v1123_v51 = vsel %vm1059_vm7, 1.0, %v12651_v56 }
 0x22b   : > { %2205 = vperm.xlu2 %6894, %v7191_v9   ;;  %12846 = vst [vmem:[#allocation9_spill] sm:$0xff] %v8539_v7  ;;  %v1887_v7 = vsel %vm1823_vm5, 1.0, %v12651_v56  ;;  %v1567_v12 = vadd.f32 %v1503_v57, %v1183_v17  ;;  %v1184_v57 = vadd.f32 %v1120_v62, %v736_v40  ;;  %v2023_v40 = vpop.permute.xlu0 %2022  ;;  %v1505_v62 = vsel %vm1441_vm14, 1.0, %v12651_v56 }
 0x22c   : > { %6279 = vmatmul.msk.f32.gmra.mxu2 %vm2554_vm1, %v12848_v0  ;;  %v8565_v0 = vld [vmem:[%s7332_s24 + $0xf8] sm:$0xff]  ;;  %vm2209_vm3 = vcmp.eq.s32.totalorder %v2023_v40, %v8516_v6  ;;  %vm1442_vm5 = vcmp.eq.s32.totalorder %v8257_v19, %v8516_v6 }
 0x22d   : > { %6897 = vset.pattern.permute.xlu1 %v12791_v25  ;;  %v2273_v40 = vsel %vm2209_vm3, 1.0, %v12651_v56 }
 0x22e   : > { %1821 = vperm.xlu1 %6897, %v7191_v9   ;;  %v1951_v9 = vadd.f32 %v1887_v7, %v1567_v12  ;;  %v7194_v12 = vld [vmem:[%s7332_s24 + $0x80] sm:$0xff] }
 0x230   : > { %6455 = vmatmul.msk.f32.gmra.mxu3 %vm2554_vm1, %v12851_v3 }
 0x231   : > { %v2017_v52 = vpop.permute.xlu1 %2016  ;;  %v8556_v46 = vpop.permute.xlu2 %2028 }
 0x232   : > { %vm2207_vm9 = vcmp.eq.s32.totalorder %v2017_v52, %v8516_v6  ;;  %2109 = vperm.xlu0 %6912, %v8565_v0   ;;  %v8571_v27 = vpop.f32.mrf.mxu2  ;;  %v1568_v52 = vadd.f32 %v1504_v28, %v1184_v57  ;;  %v1121_v28 = vsel %vm1057_vm12, 1.0, %v12651_v56  ;;  %vm2211_vm14 = vcmp.eq.s32.totalorder %v8556_v46, %v8516_v6 }
 0x233   : > { %v2271_v17 = vsel %vm2207_vm9, 1.0, %v12651_v56  ;;  %6899 = vset.pattern.permute.xlu2 %v12791_v25  ;;  %12850 = vst [vmem:[#allocation12_spill] sm:$0xff] %v8571_v27  ;;  %v12859_v27 = vunpack.c.h.bf16 %v8587_v35 }
 0x234   : > { %v2335_v7 = vadd.f32 %v2271_v17, %v1951_v9  ;;  %1683 = vperm.xlu2 %6899, %v8299_v34   ;;  %6280 = vmatmul.msk.f32.gmra.mxu2 %vm2554_vm1, %v12642_v38  ;;  %v1888_v34 = vsel %vm1824_vm11, 1.0, %v12651_v56  ;;  %v12852_v17 = vld [vmem:[#allocation8_spill] sm:$0xff]  ;;  %vm1443_vm11 = vcmp.eq.s32.totalorder %v8183_v8, %v8516_v6 }
 0x235   : > { %vm673_vm13 = vcmp.eq.s32.totalorder %v12852_v17, %v8516_v6  ;;  %v1952_v3 = vadd.f32 %v1888_v34, %v1568_v52  ;;  %v12854_v52 = vunpack.c.h.bf16 %v8002_v16  ;;  %v1889_v17 = vsel %vm1825_vm0, 1.0, %v12651_v56 }
 0x236   : > { %6898 = vset.pattern.permute.xlu1 %v12792_v23  ;;  %6292 = vmatmul.msk.f32.vlgmr.msra.gmra.mxu1 %vm2960_vm10, %v2335_v7  ;;  %vm1444_vm0 = vcmp.eq.s32.totalorder %v8234_v15, %v8516_v6 }
 0x237   : > { %6486 = vmatmul.msk.f32.vlgmr.msrb.gmra.mxu0 %vm2960_vm10, %v2335_v7  ;;  %2064 = vperm.xlu1 %6898, %v7194_v12   ;;  %v8601_v7 = vld [vmem:[%s7332_s24 + $0x100] sm:$0xff]  ;;  %v8608_v12 = vpop.f32.mrf.mxu0 }
 0x238   : > { %6456 = vmatmul.msk.f32.gmra.mxu3 %vm2554_vm1, %v12854_v52 }
 0x239   : > { %v2020_v9 = vpop.permute.xlu1 %2019 }
 0x23a   : > { %vm2208_vm15 = vcmp.eq.s32.totalorder %v2020_v9, %v8516_v6  ;;  %2112 = vperm.xlu0 %6912, %v8601_v7   ;;  %v8604_v36 = vpop.permute.xlu2 %1650  ;;  %v8610_v38 = vpop.f32.mrf.mxu2  ;;  %v737_v9 = vsel %vm673_vm13, 1.0, %v12651_v56  ;;  %vm1060_vm13 = vcmp.eq.s32.totalorder %v7837_v53, %v8516_v6  ;;  %v2275_v53 = vsel %vm2211_vm14, 1.0, %v12651_v56 }
 0x23b   : > { %v2272_v57 = vsel %vm2208_vm15, 1.0, %v12651_v56  ;;  %12853 = vst [vmem:[#allocation8_spill] sm:$0xff] %v8610_v38  ;;  %v7196_v38 = vld [vmem:[%s7332_s24 + $0x90] sm:$0xff]  ;;  %v1185_v16 = vadd.f32 %v1121_v28, %v737_v9  ;;  %v738_v9 = vsel %vm674_vm4, 1.0, %v12651_v56  ;;  %v1124_v46 = vsel %vm1060_vm13, 1.0, %v12651_v56 }
 0x23c   : > { %v2336_v34 = vadd.f32 %v2272_v57, %v1952_v3  ;;  %6902 = vset.pattern.permute.xlu2 %v12792_v23  ;;  %6281 = vmatmul.msk.f32.gmra.mxu2 %vm2554_vm1, %v12855_v49  ;;  %v1186_v49 = vadd.f32 %v1122_v47, %v738_v9  ;;  %vm1061_vm4 = vcmp.eq.s32.totalorder %v7791_v33, %v8516_v6 }
 0x23d   : > { %2070 = vperm.xlu2 %6902, %v7196_v38   ;;  %v1569_v3 = vadd.f32 %v1505_v62, %v1185_v16  ;;  %v1506_v62 = vsel %vm1442_vm5, 1.0, %v12651_v56  ;;  %v1125_v33 = vsel %vm1061_vm4, 1.0, %v12651_v56  ;;  %vm1829_vm7 = vcmp.eq.s32.totalorder %v8604_v36, %v8516_v6  ;;  %v7203_v36 = vld [vmem:[%s7332_s24 + $0xb8] sm:$0xff] }
 0x23e   : > { %6293 = vmatmul.msk.f32.gmra.mxu1 %vm2960_vm10, %v2336_v34  ;;  %v1570_v47 = vadd.f32 %v1506_v62, %v1186_v49  ;;  %v8682_v62 = vld [vmem:[%s7332_s24 + $0x110] sm:$0xff]  ;;  %vm1063_vm14 = vcmp.eq.s32.totalorder %v7850_v59, %v8516_v6  ;;  %vm1064_vm4 = vcmp.eq.s32.totalorder %v7805_v43, %v8516_v6 }
 0x23f   : > { %6487 = vmatmul.msk.f32.gmra.mxu0 %vm2960_vm10, %v2336_v34  ;;  %6901 = vset.pattern.permute.xlu1 %v12791_v25  ;;  %v1953_v57 = vadd.f32 %v1889_v17, %v1569_v3  ;;  %v8645_v34 = vld [vmem:[%s7332_s24 + $0x108] sm:$0xff]  ;;  %v12858_v17 = vunpack.c.l.bf16 %v8048_v20  ;;  %v7198_v3 = vld [vmem:[%s7332_s24 + $0x98] sm:$0xff]  ;;  %v8660_v28 = vpop.f32.mrf.mxu0  ;;  %v1127_v59 = vsel %vm1063_vm14, 1.0, %v12651_v56 }
 0x240   : > { %1686 = vperm.xlu1 %6901, %v7196_v38  }
 0x241   : > { %v2337_v16 = vadd.f32 %v2273_v40, %v1953_v57  ;;  %6457 = vmatmul.msk.f32.gmra.mxu3 %vm2554_vm1, %v12858_v17  ;;  %v8671_v40 = vld [vmem:[%s7731_s28 + $0xe0] sm:$0xff]   ;;  %v12860_v57 = vld [vmem:[#allocation4_spill] sm:$0xff] }
 0x242   : > { %v1642_v52 = vpop.permute.xlu1 %1641  ;;  %2115 = vperm.xlu0 %6912, %v8645_v34   ;;  %v8651_v38 = vpop.permute.xlu2 %1653  ;;  %vm675_vm9 = vcmp.eq.s32.totalorder %v12860_v57, %v8516_v6  ;;  %v12645_v14 = vunpack.c.l.bf16 %v8671_v40 }
 0x243   : > { %vm1826_vm6 = vcmp.eq.s32.totalorder %v1642_v52, %v8516_v6  ;;  %v8653_v19 = vpop.f32.mrf.mxu2  ;;  %v2274_v52 = vsel %vm2210_vm8, 1.0, %v12651_v56  ;;  %v739_v49 = vsel %vm675_vm9, 1.0, %v12651_v56  ;;  %vm1062_vm8 = vcmp.eq.s32.totalorder %v7839_v48, %v8516_v6 }
 0x244   : > { %12857 = vst [vmem:[#allocation11_spill] sm:$0xff] %v8653_v19  ;;  %v1890_v61 = vsel %vm1826_vm6, 1.0, %v12651_v56  ;;  %6282 = vmatmul.msk.f32.gmra.mxu2 %vm2554_vm1, %v12859_v27  ;;  %v7200_v19 = vld [vmem:[%s7332_s24 + $0xa8] sm:$0xff]  ;;  %vm1445_vm6 = vcmp.eq.s32.totalorder %v8279_v30, %v8516_v6  ;;  %vm1830_vm13 = vcmp.eq.s32.totalorder %v8651_v38, %v8516_v6  ;;  %v12869_v38 = vunpack.c.l.bf16 %v8150_v22 }
 0x245   : > { %2073 = vperm.xlu2 %6902, %v7198_v3   ;;  %v1954_v27 = vadd.f32 %v1890_v61, %v1570_v47  ;;  %v1187_v61 = vadd.f32 %v1123_v51, %v739_v49  ;;  %v12861_v47 = vunpack.c.h.bf16 %v8048_v20  ;;  %v1648_v51 = vpop.permute.xlu0 %1647  ;;  %v12862_v49 = vld [vmem:[#allocation5_spill] sm:$0xff] }
 0x246   : > { %6294 = vmatmul.msk.f32.gmra.mxu1 %vm2960_vm10, %v2337_v16  ;;  %vm676_vm15 = vcmp.eq.s32.totalorder %v12862_v49, %v8516_v6  ;;  %vm1828_vm2 = vcmp.eq.s32.totalorder %v1648_v51, %v8516_v6 }
 0x247   : > { %6488 = vmatmul.msk.f32.gmra.mxu0 %vm2960_vm10, %v2337_v16  ;;  %v1507_v16 = vsel %vm1443_vm11, 1.0, %v12651_v56  ;;  %v740_v15 = vsel %vm676_vm15, 1.0, %v12651_v56  ;;  %v1892_v51 = vsel %vm1828_vm2, 1.0, %v12651_v56  ;;  %vm1447_vm2 = vcmp.eq.s32.totalorder %v8260_v37, %v8516_v6 }
 0x248   : > { %1689 = vperm.xlu1 %6901, %v7198_v3   ;;  %v2338_v3 = vadd.f32 %v2274_v52, %v1954_v27  ;;  %v8703_v27 = vpop.f32.mrf.mxu0  ;;  %v12643_v52 = vunpack.c.h.bf16 %v8671_v40  ;;  %v1188_v49 = vadd.f32 %v1124_v46, %v740_v15  ;;  %v12865_v15 = vld [vmem:[#allocation15_spill] sm:$0xff] }
 0x249   : > { %6458 = vmatmul.msk.f32.gmra.mxu3 %vm2554_vm1, %v12861_v47  ;;  %vm677_vm5 = vcmp.eq.s32.totalorder %v12865_v15, %v8516_v6  ;;  %v12867_v15 = vunpack.c.h.bf16 %v8099_v24 }
 0x24a   : > { %v1645_v9 = vpop.permute.xlu1 %1644  ;;  %2118 = vperm.xlu0 %6912, %v8682_v62   ;;  %v741_v30 = vsel %vm677_vm5, 1.0, %v12651_v56 }
 0x24b   : > { %vm1827_vm12 = vcmp.eq.s32.totalorder %v1645_v9, %v8516_v6  ;;  %v8688_v8 = vpop.permute.xlu2 %2040  ;;  %v8690_v17 = vpop.f32.mrf.mxu2  ;;  %v1571_v9 = vadd.f32 %v1507_v16, %v1187_v61  ;;  %v8717_v16 = vld [vmem:[%s7332_s24 + $0x118] sm:$0xff] }
 0x24c   : > { %v1891_v57 = vsel %vm1827_vm12, 1.0, %v12651_v56  ;;  %6283 = vmatmul.msk.f32.gmra.mxu2 %vm2554_vm1, %v12645_v14  ;;  %vm1446_vm12 = vcmp.eq.s32.totalorder %v8207_v11, %v8516_v6  ;;  %vm2215_vm5 = vcmp.eq.s32.totalorder %v8688_v8, %v8516_v6 }
 0x24d   : > { %6905 = vset.pattern.permute.xlu2 %v12791_v25  ;;  %v1955_v20 = vadd.f32 %v1891_v57, %v1571_v9  ;;  %v12864_v57 = vunpack.c.l.bf16 %v8099_v24  ;;  %v1508_v9 = vsel %vm1444_vm0, 1.0, %v12651_v56  ;;  %v1893_v24 = vsel %vm1829_vm7, 1.0, %v12651_v56 }
 0x24e   : > { %6295 = vmatmul.msk.f32.gmra.mxu1 %vm2960_vm10, %v2338_v3  ;;  %1695 = vperm.xlu2 %6905, %v7200_v19   ;;  %vm1448_vm7 = vcmp.eq.s32.totalorder %v8306_v29, %v8516_v6  ;;  %v2279_v8 = vsel %vm2215_vm5, 1.0, %v12651_v56  ;;  %vm1067_vm5 = vcmp.eq.s32.totalorder %v7816_v42, %v8516_v6 }
 0x24f   : > { %6489 = vmatmul.msk.f32.gmra.mxu0 %vm2960_vm10, %v2338_v3 }
 0x250   : > { %6904 = vset.pattern.permute.xlu1 %v12792_v23  ;;  %v8746_v46 = vpop.f32.mrf.mxu0 }
 0x251   : > { %2076 = vperm.xlu1 %6904, %v8334_v1   ;;  %v2339_v1 = vadd.f32 %v2275_v53, %v1955_v20  ;;  %6459 = vmatmul.msk.f32.gmra.mxu3 %vm2554_vm1, %v12864_v57  ;;  %v8739_v20 = vld [vmem:[%s7731_s28 + $0xe8] sm:$0xff]   ;;  %v1572_v53 = vadd.f32 %v1508_v9, %v1188_v49 }
 0x252   : > { %2121 = vperm.xlu0 %6912, %v8717_v16  }
 0x253   : > { %v2032_v61 = vpop.permute.xlu1 %2031  ;;  %v8722_v3 = vpop.permute.xlu2 %2043 }
 0x254   : > { %v8725_v47 = vpop.f32.mrf.mxu2  ;;  %6284 = vmatmul.msk.f32.gmra.mxu2 %vm2554_vm1, %v12643_v52  ;;  %vm2212_vm3 = vcmp.eq.s32.totalorder %v2032_v61, %v8516_v6  ;;  %v12644_v61 = vunpack.c.l.bf16 %v8739_v20  ;;  %v8754_v52 = vld [vmem:[%s7332_s24 + $0x120] sm:$0xff] }
 0x255   : > { %12863 = vst [vmem:[#allocation4_spill] sm:$0xff] %v8725_v47  ;;  %v2276_v57 = vsel %vm2212_vm3, 1.0, %v12651_v56  ;;  %v13001_v47 = vmov 0.0  }
 0x256   : > { %6296 = vmatmul.msk.f32.gmra.mxu1 %vm2960_vm10, %v2339_v1  ;;  %1698 = vperm.xlu2 %6905, %v8379_v21   ;;  %v1956_v21 = vadd.f32 %v1892_v51, %v1572_v53  ;;  %v1509_v51 = vsel %vm1445_vm6, 1.0, %v12651_v56  ;;  %v1189_v53 = vadd.f32 %v1125_v33, %v741_v30  ;;  %v1510_v30 = vsel %vm1446_vm12, 1.0, %v12651_v56 }
 0x257   : > { %6490 = vmatmul.msk.f32.gmra.mxu0 %vm2960_vm10, %v2339_v1 }
 0x258   : > { %v1573_v48 = vadd.f32 %v1509_v51, %v1189_v53  ;;  %v8796_v51 = vpop.f32.mrf.mxu0 }
 0x259   : > { %2079 = vperm.xlu1 %6904, %v7200_v19   ;;  %v2340_v19 = vadd.f32 %v2276_v57, %v1956_v21  ;;  %6460 = vmatmul.msk.f32.gmra.mxu3 %vm2554_vm1, %v12867_v15  ;;  %v12868_v57 = vld [vmem:[#allocation14_spill] sm:$0xff]  ;;  %v1126_v21 = vsel %vm1062_vm8, 1.0, %v12651_v56 }
 0x25a   : > { %2124 = vperm.xlu0 %6912, %v8754_v52   ;;  %vm678_vm11 = vcmp.eq.s32.totalorder %v12868_v57, %v8516_v6  ;;  %v1957_v15 = vadd.f32 %v1893_v24, %v1573_v48  ;;  %v1894_v48 = vsel %vm1830_vm13, 1.0, %v12651_v56  ;;  %vm1449_vm13 = vcmp.eq.s32.totalorder %v8228_v5, %v8516_v6 }
 0x25b   : > { %v2035_v1 = vpop.permute.xlu1 %2034  ;;  %v742_v11 = vsel %vm678_vm11, 1.0, %v12651_v56  ;;  %vm1065_vm11 = vcmp.eq.s32.totalorder %v7852_v54, %v8516_v6 }
 0x25c   : > { %v8760_v9 = vpop.permute.xlu2 %1665  ;;  %v8762_v49 = vpop.f32.mrf.mxu2  ;;  %6285 = vmatmul.msk.f32.gmra.mxu2 %vm2554_vm1, %v12644_v61  ;;  %vm2213_vm9 = vcmp.eq.s32.totalorder %v2035_v1, %v8516_v6  ;;  %v12646_v1 = vunpack.c.h.bf16 %v8739_v20  ;;  %v1190_v53 = vadd.f32 %v1126_v21, %v742_v11  ;;  %v12871_v11 = vld [vmem:[#allocation6_spill] sm:$0xff]  ;;  %v1129_v54 = vsel %vm1065_vm11, 1.0, %v12651_v56 }
 0x25d   : > { %12866 = vst [vmem:[#allocation5_spill] sm:$0xff] %v8762_v49  ;;  %v2277_v33 = vsel %vm2213_vm9, 1.0, %v12651_v56  ;;  %vm679_vm0 = vcmp.eq.s32.totalorder %v12871_v11, %v8516_v6  ;;  %v1511_v11 = vsel %vm1447_vm2, 1.0, %v12651_v56  ;;  %vm2216_vm9 = vcmp.eq.s32.totalorder %v8722_v3, %v8516_v6 }
 0x25e   : > { %6297 = vmatmul.msk.f32.gmra.mxu1 %vm2960_vm10, %v2340_v19  ;;  %6908 = vset.pattern.permute.xlu2 %v12792_v23  ;;  %v2341_v57 = vadd.f32 %v2277_v33, %v1957_v15  ;;  %v1574_v21 = vadd.f32 %v1510_v30, %v1190_v53  ;;  %v8814_v33 = vld [vmem:[%s7731_s28 + $0xf0] sm:$0xff]   ;;  %v7205_v15 = vld [vmem:[%s7332_s24 + $0xc0] sm:$0xff]  ;;  %vm1068_vm11 = vcmp.eq.s32.totalorder %v7868_v44, %v8516_v6 }
 0x25f   : > { %6491 = vmatmul.msk.f32.gmra.mxu0 %vm2960_vm10, %v2340_v19  ;;  %2085 = vperm.xlu2 %6908, %v7203_v36   ;;  %v8791_v19 = vld [vmem:[%s7332_s24 + $0x128] sm:$0xff] }
 0x261   : > { %6907 = vset.pattern.permute.xlu1 %v12791_v25  ;;  %6461 = vmatmul.msk.f32.gmra.mxu3 %vm2554_vm1, %v12869_v38  ;;  %v1958_v38 = vadd.f32 %v1894_v48, %v1574_v21  ;;  %v12872_v21 = vunpack.c.h.bf16 %v8150_v22  ;;  %v8848_v22 = vpop.f32.mrf.mxu0 }
 0x262   : > { %1701 = vperm.xlu1 %6907, %v7203_v36   ;;  %2127 = vperm.xlu0 %6912, %v8791_v19   ;;  %v2038_v36 = vpop.permute.xlu0 %2037 }
 0x263   : > { %vm2214_vm15 = vcmp.eq.s32.totalorder %v2038_v36, %v8516_v6  ;;  %v8827_v36 = vld [vmem:[%s7332_s24 + $0x130] sm:$0xff] }
 0x264   : > { %v1657_v61 = vpop.permute.xlu1 %1656  ;;  %v8798_v24 = vpop.permute.xlu2 %1668  ;;  %6286 = vmatmul.msk.f32.gmra.mxu2 %vm2554_vm1, %v12646_v1  ;;  %v2278_v30 = vsel %vm2214_vm15, 1.0, %v12651_v56 }
 0x265   : > { %v8807_v14 = vpop.f32.mrf.mxu2  ;;  %vm1831_vm3 = vcmp.eq.s32.totalorder %v1657_v61, %v8516_v6  ;;  %v2342_v48 = vadd.f32 %v2278_v30, %v1958_v38  ;;  %v12875_v38 = vld [vmem:[#allocation18_spill] sm:$0xff]  ;;  %v1128_v30 = vsel %vm1064_vm4, 1.0, %v12651_v56  ;;  %vm1834_vm4 = vcmp.eq.s32.totalorder %v8760_v9, %v8516_v6 }
 0x266   : > { %12870 = vst [vmem:[#allocation15_spill] sm:$0xff] %v8807_v14  ;;  %6298 = vmatmul.msk.f32.gmra.mxu1 %vm2960_vm10, %v2341_v57  ;;  %v1895_v53 = vsel %vm1831_vm3, 1.0, %v12651_v56  ;;  %vm680_vm6 = vcmp.eq.s32.totalorder %v12875_v38, %v8516_v6  ;;  %vm1450_vm3 = vcmp.eq.s32.totalorder %v8282_v4, %v8516_v6 }
 0x267   : > { %6492 = vmatmul.msk.f32.gmra.mxu0 %vm2960_vm10, %v2341_v57  ;;  %2088 = vperm.xlu2 %6908, %v7205_v15   ;;  %v743_v57 = vsel %vm679_vm0, 1.0, %v12651_v56  ;;  %v744_v29 = vsel %vm680_vm6, 1.0, %v12651_v56  ;;  %vm1066_vm0 = vcmp.eq.s32.totalorder %v7866_v60, %v8516_v6  ;;  %v8931_v60 = vld [vmem:[%s7332_s24 + $0x148] sm:$0xff] }
 0x268   : > { %v1191_v1 = vadd.f32 %v1127_v59, %v743_v57  ;;  %v12649_v57 = vunpack.c.h.bf16 %v8814_v33 }
 0x269   : > { %6462 = vmatmul.msk.f32.gmra.mxu3 %vm2554_vm1, %v12872_v21 }
 0x26a   : > { %1704 = vperm.xlu1 %6907, %v7205_v15   ;;  %2130 = vperm.xlu0 %6912, %v8827_v36   ;;  %v12873_v15 = vunpack.c.l.bf16 %v8814_v33  ;;  %v1575_v59 = vadd.f32 %v1511_v11, %v1191_v1  ;;  %v7207_v1 = vld [vmem:[%s7332_s24 + $0xd0] sm:$0xff]  ;;  %v8863_v11 = vld [vmem:[%s7332_s24 + $0x138] sm:$0xff] }
 0x26c   : > { %v1660_v37 = vpop.permute.xlu1 %1659  ;;  %6287 = vmatmul.msk.f32.gmra.mxu2 %vm2554_vm1, %v12873_v15  ;;  %v1959_v43 = vadd.f32 %v1895_v53, %v1575_v59  ;;  %v1512_v53 = vsel %vm1448_vm7, 1.0, %v12651_v56  ;;  %v12876_v15 = vunpack.c.l.bf16 %v8201_v63 }
 0x26d   : > { %v8836_v61 = vpop.permute.xlu2 %2055  ;;  %v8841_v14 = vpop.f32.mrf.mxu2  ;;  %vm1832_vm8 = vcmp.eq.s32.totalorder %v1660_v37, %v8516_v6 }
 0x26e   : > { %12874 = vst [vmem:[#allocation14_spill] sm:$0xff] %v8841_v14  ;;  %6299 = vmatmul.msk.f32.gmra.mxu1 %vm2960_vm10, %v2342_v48  ;;  %v2343_v21 = vadd.f32 %v2279_v8, %v1959_v43  ;;  %v1896_v37 = vsel %vm1832_vm8, 1.0, %v12651_v56  ;;  %v8884_v43 = vld [vmem:[%s7731_s28 + $0xf8] sm:$0xff]   ;;  %v8890_v8 = vpop.f32.mrf.mxu0  ;;  %vm1451_vm8 = vcmp.eq.s32.totalorder %v8340_v26, %v8516_v6 }
 0x26f   : > { %6493 = vmatmul.msk.f32.gmra.mxu0 %vm2960_vm10, %v2342_v48  ;;  %6911 = vset.pattern.permute.xlu2 %v12791_v25  ;;  %v1192_v48 = vadd.f32 %v1128_v30, %v744_v29  ;;  %v1663_v29 = vpop.permute.xlu0 %1662  ;;  %v12648_v3 = vunpack.c.l.bf16 %v8884_v43 }
 0x270   : > { %1710 = vperm.xlu2 %6911, %v7207_v1   ;;  %vm1833_vm14 = vcmp.eq.s32.totalorder %v1663_v29, %v8516_v6 }
 0x271   : > { %6463 = vmatmul.msk.f32.gmra.mxu3 %vm2554_vm1, %v12876_v15  ;;  %v1576_v14 = vadd.f32 %v1512_v53, %v1192_v48  ;;  %v2280_v53 = vsel %vm2216_vm9, 1.0, %v12651_v56  ;;  %v12878_v48 = vld [vmem:[#allocation17_spill] sm:$0xff]  ;;  %vm1835_vm9 = vcmp.eq.s32.totalorder %v8798_v24, %v8516_v6  ;;  %v12885_v24 = vunpack.c.h.bf16 %v8247_v13 }
 0x272   : > { %6910 = vset.pattern.permute.xlu1 %v12792_v23  ;;  %2133 = vperm.xlu0 %6912, %v8863_v11   ;;  %vm681_vm12 = vcmp.eq.s32.totalorder %v12878_v48, %v8516_v6 }
 0x273   : > { %2091 = vperm.xlu1 %6910, %v8422_v50   ;;  %v1960_v30 = vadd.f32 %v1896_v37, %v1576_v14  ;;  %v12879_v14 = vunpack.c.h.bf16 %v8201_v63  ;;  %v745_v15 = vsel %vm681_vm12, 1.0, %v12651_v56  ;;  %v1513_v37 = vsel %vm1449_vm13, 1.0, %v12651_v56 }
 0x274   : > { %6288 = vmatmul.msk.f32.gmra.mxu2 %vm2554_vm1, %v12649_v57  ;;  %v1897_v63 = vsel %vm1833_vm14, 1.0, %v12651_v56  ;;  %vm1452_vm14 = vcmp.eq.s32.totalorder %v8255_v32, %v8516_v6  ;;  %v3500_v32 = vld [vmem:[%s12516_s6 + $0x18] sm:$0xff] }
 0x275   : > { %v2047_v59 = vpop.permute.xlu1 %2046  ;;  %v8873_v38 = vpop.permute.xlu2 %2058  ;;  %3710 = vmatpush.msra.mxu2 %v3500_v32  ;;  %v12890_v32 = vld [vmem:[#allocation127_spill] sm:$0xff] }
 0x276   : > { %6300 = vmatmul.msk.f32.gmra.mxu1 %vm2960_vm10, %v2343_v21  ;;  %v8881_v50 = vpop.f32.mrf.mxu2  ;;  %vm2217_vm15 = vcmp.eq.s32.totalorder %v2047_v59, %v8516_v6  ;;  %v12647_v59 = vunpack.c.h.bf16 %v8884_v43 }
 0x277   : > { %12877 = vst [vmem:[#allocation6_spill] sm:$0xff] %v8881_v50  ;;  %6494 = vmatmul.msk.f32.gmra.mxu0 %vm2960_vm10, %v2343_v21  ;;  %v8899_v21 = vld [vmem:[%s7332_s24 + $0x140] sm:$0xff]  ;;  %v12924_v50 = vld [vmem:[#allocation82_spill] sm:$0xff] }
 0x278   : > { %1713 = vperm.xlu2 %6911, %v8476_v58   ;;  %v2344_v58 = vadd.f32 %v2280_v53, %v1960_v30  ;;  %v2053_v53 = vpop.permute.xlu0 %2052 }
 0x279   : > { %6464 = vmatmul.msk.f32.gmra.mxu3 %vm2554_vm1, %v12879_v14  ;;  %v7210_v14 = vld [vmem:[%s7332_s24 + $0xe0] sm:$0xff]  ;;  %vm2219_vm12 = vcmp.eq.s32.totalorder %v2053_v53, %v8516_v6  ;;  %v8999_v53 = vld [vmem:[%s7332_s24 + $0x158] sm:$0xff] }
 0x27a   : > { %2136 = vperm.xlu0 %6912, %v8899_v21   ;;  %v2283_v44 = vsel %vm2219_vm12, 1.0, %v12651_v56 }
 0x27b   : > { %2094 = vperm.xlu1 %6910, %v7207_v1   ;;  %v1193_v1 = vadd.f32 %v1129_v54, %v745_v15  ;;  %v2281_v54 = vsel %vm2217_vm15, 1.0, %v12651_v56  ;;  %v12881_v15 = vld [vmem:[#allocation7_spill] sm:$0xff] }
 0x27c   : > { %6289 = vmatmul.msk.f32.gmra.mxu2 %vm2554_vm1, %v12648_v3  ;;  %vm682_vm2 = vcmp.eq.s32.totalorder %v12881_v15, %v8516_v6  ;;  %v12882_v15 = vunpack.c.l.bf16 %v8247_v13  ;;  %v12886_v13 = vld [vmem:[#allocation22_spill] sm:$0xff] }
 0x27d   : > { %v2050_v5 = vpop.permute.xlu1 %2049  ;;  %v8909_v48 = vpop.permute.xlu2 %2061  ;;  %v1577_v30 = vadd.f32 %v1513_v37, %v1193_v1  ;;  %v1130_v37 = vsel %vm1066_vm0, 1.0, %v12651_v56  ;;  %v746_v4 = vsel %vm682_vm2, 1.0, %v12651_v56  ;;  %vm684_vm13 = vcmp.eq.s32.totalorder %v12886_v13, %v8516_v6 }
 0x27e   : > { %6301 = vmatmul.msk.f32.gmra.mxu1 %vm2960_vm10, %v2344_v58  ;;  %v8921_v29 = vpop.f32.mrf.mxu2  ;;  %v1194_v9 = vadd.f32 %v1130_v37, %v746_v4  ;;  %vm2218_vm6 = vcmp.eq.s32.totalorder %v2050_v5, %v8516_v6  ;;  %v8966_v37 = vld [vmem:[%s7332_s24 + $0x150] sm:$0xff]  ;;  %v1515_v4 = vsel %vm1451_vm8, 1.0, %v12651_v56  ;;  %vm1069_vm0 = vcmp.eq.s32.totalorder %v7879_v55, %v8516_v6  ;;  %v12889_v55 = vld [vmem:[#allocation10_spill] sm:$0xff] }
 0x27f   : > { %6495 = vmatmul.msk.f32.gmra.mxu0 %vm2960_vm10, %v2344_v58  ;;  %12880 = vst [vmem:[#allocation18_spill] sm:$0xff] %v8921_v29  ;;  %v1961_v58 = vadd.f32 %v1897_v63, %v1577_v30  ;;  %v1514_v63 = vsel %vm1450_vm3, 1.0, %v12651_v56  ;;  %v2282_v42 = vsel %vm2218_vm6, 1.0, %v12651_v56  ;;  %vm2220_vm2 = vcmp.eq.s32.totalorder %v8836_v61, %v8516_v6 }
 0x280   : > { %6914 = vset.pattern.permute.xlu2 %v12792_v23  ;;  %v8934_v23 = vpop.f32.mrf.mxu0  ;;  %vm685_vm3 = vcmp.eq.s32.totalorder %v12889_v55, %v8516_v6 }
 0x281   : > { %2100 = vperm.xlu2 %6914, %v7210_v14   ;;  %v2345_v1 = vadd.f32 %v2281_v54, %v1961_v58  ;;  %6465 = vmatmul.msk.f32.gmra.mxu3 %vm2554_vm1, %v12882_v15  ;;  %v12883_v58 = vld [vmem:[#allocation23_spill] sm:$0xff]  ;;  %v1578_v15 = vadd.f32 %v1514_v63, %v1194_v9  ;;  %v8974_v63 = vpop.permute.xlu0 %1677 }
 0x282   : > { %2139 = vperm.xlu0 %6912, %v8931_v60   ;;  %vm683_vm7 = vcmp.eq.s32.totalorder %v12883_v58, %v8516_v6  ;;  %v1899_v58 = vsel %vm1835_vm9, 1.0, %v12651_v56  ;;  %vm2221_vm9 = vcmp.eq.s32.totalorder %v8873_v38, %v8516_v6 }
 0x283   : > { %6913 = vset.pattern.permute.xlu1 %v12791_v25  ;;  %v747_v26 = vsel %vm683_vm7, 1.0, %v12651_v56 }
 0x284   : > { %1716 = vperm.xlu1 %6913, %v7210_v14   ;;  %6290 = vmatmul.msk.f32.gmra.mxu2 %vm2554_vm1, %v12647_v59  ;;  %v1898_v14 = vsel %vm1834_vm4, 1.0, %v12651_v56  ;;  %v1131_v59 = vsel %vm1067_vm5, 1.0, %v12651_v56  ;;  %vm1453_vm4 = vcmp.eq.s32.totalorder %v8308_v2, %v8516_v6  ;;  %vm1118_vm5 = vcmp.eq.s32.totalorder %v12890_v32, %v8516_v6 }
 0x285   : > { %v8945_v30 = vpop.permute.xlu2 %2205  ;;  %v1962_v5 = vadd.f32 %v1898_v14, %v1578_v15  ;;  %v1195_v9 = vadd.f32 %v1131_v59, %v747_v26  ;;  %v1516_v26 = vsel %vm1452_vm14, 1.0, %v12651_v56  ;;  %v749_v2 = vsel %vm685_vm3, 1.0, %v12651_v56 }
 0x286   : > { %v1672_v54 = vpop.permute.xlu1 %1671  ;;  %6302 = vmatmul.msk.f32.gmra.mxu1 %vm2960_vm10, %v2345_v1  ;;  %vm2270_vm12 = vcmp.eq.s32.totalorder %v8945_v30, %v8516_v6 }
 0x287   : > { %6496 = vmatmul.msk.f32.gmra.mxu0 %vm2960_vm10, %v2345_v1  ;;  %v8970_v1 = vpop.f32.mrf.mxu2  ;;  %v1579_v15 = vadd.f32 %v1515_v4, %v1195_v9  ;;  %vm1836_vm15 = vcmp.eq.s32.totalorder %v1672_v54, %v8516_v6  ;;  %v12888_v54 = vunpack.c.l.bf16 %v8295_v18 }
 0x288   : > { %12884 = vst [vmem:[#allocation17_spill] sm:$0xff] %v8970_v1  ;;  %v8977_v14 = vpop.f32.mrf.mxu0 }
 0x289   : > { %6916 = vset.pattern.permute.xlu2 %v12791_v25  ;;  %v2346_v25 = vadd.f32 %v2282_v42, %v1962_v5  ;;  %6466 = vmatmul.msk.f32.gmra.mxu3 %vm2554_vm1, %v12885_v24  ;;  %v1132_v42 = vsel %vm1068_vm11, 1.0, %v12651_v56  ;;  %v748_v5 = vsel %vm684_vm13, 1.0, %v12651_v56  ;;  %v9013_v24 = vpop.permute.xlu0 %1680 }
 0x28a   : > { %2142 = vperm.xlu0 %6912, %v8966_v37   ;;  %1719 = vperm.xlu2 %6916, %v8502_v10   ;;  %v1196_v4 = vadd.f32 %v1132_v42, %v748_v5  ;;  %v3497_v5 = vld [vmem:[%s12516_s6] sm:$0xff] }
 0x28c   : > { %6915 = vset.pattern.permute.xlu1 %v12841_v41  ;;  %v1580_v13 = vadd.f32 %v1516_v26, %v1196_v4  ;;  %v1133_v26 = vsel %vm1069_vm0, 1.0, %v12651_v56  ;;  %v2284_v4 = vsel %vm2220_vm2, 1.0, %v12651_v56  ;;  %vm1838_vm0 = vcmp.eq.s32.totalorder %v8974_v63, %v8516_v6 }
 0x28d   : > { %1335 = vperm.xlu1 %6915, %v8502_v10   ;;  %v1963_v10 = vadd.f32 %v1899_v58, %v1579_v15  ;;  %v1900_v58 = vsel %vm1836_vm15, 1.0, %v12651_v56  ;;  %v3499_v15 = vld [vmem:[%s12516_s6 + $0x10] sm:$0xff]  ;;  %vm2222_vm2 = vcmp.eq.s32.totalorder %v8909_v48, %v8516_v6  ;;  %v1902_v63 = vsel %vm1838_vm0, 1.0, %v12651_v56 }
 0x28e   : > { %v1675_v59 = vpop.permute.xlu1 %1674  ;;  %6303 = vmatmul.msk.f32.gmra.mxu1 %vm2960_vm10, %v2346_v25  ;;  %v8989_v41 = vpop.permute.xlu2 %1683  ;;  %3711 = vmatpush.msra.mxu2 %v3499_v15  ;;  %v1964_v61 = vadd.f32 %v1900_v58, %v1580_v13  ;;  %v1517_v58 = vsel %vm1453_vm4, 1.0, %v12651_v56  ;;  %v1197_v15 = vadd.f32 %v1133_v26, %v749_v2  ;;  %v1182_v13 = vsel %vm1118_vm5, 1.0, %v12651_v56 }
 0x28f   : > { %6497 = vmatmul.msk.f32.gmra.mxu0 %vm2960_vm10, %v2346_v25  ;;  %v2347_v9 = vadd.f32 %v2283_v44, %v1963_v10  ;;  %v9008_v25 = vpop.f32.mrf.mxu2  ;;  %v3498_v44 = vld [vmem:[%s12516_s6 + $0x8] sm:$0xff]  ;;  %vm1837_vm6 = vcmp.eq.s32.totalorder %v1675_v59, %v8516_v6 }
 0x290   : > { %12887 = vst [vmem:[#allocation7_spill] sm:$0xff] %v9008_v25  ;;  %v9025_v10 = vpop.f32.mrf.mxu0  ;;  %3712 = vmatpush.msra.mxu2 %v3498_v44  ;;  %v2348_v59 = vadd.f32 %v2284_v4, %v1964_v61  ;;  %v12892_v44 = vunpack.c.h.bf16 %v8295_v18  ;;  %v1901_v32 = vsel %vm1837_vm6, 1.0, %v12651_v56  ;;  %v1581_v3 = vadd.f32 %v1517_v58, %v1197_v15  ;;  %v3971_v58 = vld [vmem:[%s12518_s8] sm:$0xff]  ;;  %v12914_v25 = vld [vmem:[#allocation162_spill] sm:$0xff] }
 0x291   : > { %6467 = vmatmul.msk.f32.gmra.mxu3 %vm2554_vm1, %v12888_v54  ;;  %v12891_v54 = vld [vmem:[#allocation76_spill] sm:$0xff]  ;;  %v9059_v55 = vpop.permute.xlu0 %2067  ;;  %v2285_v15 = vsel %vm2221_vm9, 1.0, %v12651_v56  ;;  %vm1839_vm6 = vcmp.eq.s32.totalorder %v9013_v24, %v8516_v6 }
 0x292   : > { %2145 = vperm.xlu0 %6912, %v8999_v53   ;;  %1722 = vperm.xlu2 %6916, %v8535_v45   ;;  %vm734_vm7 = vcmp.eq.s32.totalorder %v12891_v54, %v8516_v6  ;;  %v1965_v4 = vadd.f32 %v1901_v32, %v1581_v3  ;;  %v12897_v3 = vld [vmem:[#allocation154_spill] sm:$0xff]  ;;  %v9092_v32 = vld [vmem:[%s7332_s24 + $0x168] sm:$0xff]  ;;  %v1903_v24 = vsel %vm1839_vm6, 1.0, %v12651_v56 }
 0x293   : > { %3713 = vmatpush.msra.mxu2 %v3497_v5  ;;  %v798_v54 = vsel %vm734_vm7, 1.0, %v12651_v56  ;;  %4606 = vmatpush.msrb.mxu3 %v3971_v58  ;;  %vm1454_vm15 = vcmp.eq.s32.totalorder %v12897_v3, %v8516_v6 }
 0x294   : > { %v1246_v18 = vadd.f32 %v1182_v13, %v798_v54  ;;  %v1518_v3 = vsel %vm1454_vm15, 1.0, %v12651_v56  ;;  %vm3505_vm15 = vcmask 261120  }
 0x295   : > { %1338 = vperm.xlu1 %6915, %v8535_v45  }
 0x296   : > { %6304 = vmatmul.msk.f32.gmra.mxu1 %vm2960_vm10, %v2347_v9 }
 0x297   : > { %6498 = vmatmul.msk.f32.gmra.mxu0 %vm2960_vm10, %v2347_v9  ;;  %v1438_v45 = vpop.permute.xlu1 %1437  ;;  %v9028_v42 = vpop.permute.xlu2 %2070  ;;  %v9046_v9 = vld [vmem:[%s7332_s24 + $0x160] sm:$0xff] }
 0x298   : > { %vm1502_vm8 = vcmp.eq.s32.totalorder %v1438_v45, %v8516_v6  ;;  %v9068_v61 = vpop.f32.mrf.mxu2  ;;  %v9077_v38 = vpop.f32.mrf.mxu0 }
 0x299   : > { %6468 = vmatmul.msk.f32.gmra.mxu3 %vm2554_vm1, %v12892_v44  ;;  %v1566_v45 = vsel %vm1502_vm8, 1.0, %v12651_v56  ;;  %12893 = vst [vmem:[#allocation23_spill] sm:$0xff] %v9068_v61 }
 0x29a   : > { %2148 = vperm.xlu0 %6912, %v9046_v9   ;;  %1725 = vperm.xlu2 %6916, %v8565_v0   ;;  %v1630_v13 = vadd.f32 %v1566_v45, %v1246_v18  ;;  %v2334_v45 = vsel %vm2270_vm12, 1.0, %v12651_v56  ;;  %v2349_v18 = vadd.f32 %v2285_v15, %v1965_v4  ;;  %v9115_v4 = vpop.permute.xlu0 %1692  ;;  %vm1840_vm12 = vcmp.eq.s32.totalorder %v8989_v41, %v8516_v6 }
 0x29b   : > { %v9073_v26 = vpop.f32.mrf.mxu3  ;;  %v1904_v1 = vsel %vm1840_vm12, 1.0, %v12651_v56 }
 0x29c   : > { %12894 = vst [vmem:[#allocation22_spill] sm:$0xff] %v9073_v26  ;;  %v12912_v26 = vld [vmem:[#allocation99_spill] sm:$0xff] }
 0x29d   : > { %1341 = vperm.xlu1 %6915, %v8565_v0   ;;  %v12895_v0 = vld [vmem:[#allocation78_spill] sm:$0xff] }
 0x29e   : > { %6305 = vmatmul.msk.f32.gmra.mxu1 %vm2960_vm10, %v2348_v59  ;;  %vm1070_vm11 = vcmp.eq.s32.totalorder %v12895_v0, %v8516_v6 }
 0x29f   : > { %6499 = vmatmul.msk.f32.gmra.mxu0 %vm2960_vm10, %v2348_v59  ;;  %v9071_v5 = vpop.permute.xlu2 %2073  ;;  %v12896_v59 = vld [vmem:[#allocation28_spill] sm:$0xff]  ;;  %v1134_v30 = vsel %vm1070_vm11, 1.0, %v12651_v56 }
 0x2a0   : > { %v1822_v2 = vpop.permute.xlu1 %1821  ;;  %vm686_vm14 = vcmp.eq.s32.totalorder %v12896_v59, %v8516_v6  ;;  %v9126_v48 = vpop.f32.mrf.mxu2 }
 0x2a1   : > { %vm1886_vm13 = vcmp.eq.s32.totalorder %v1822_v2, %v8516_v6  ;;  %v12898_v2 = vld [vmem:[#allocation152_spill] sm:$0xff]  ;;  %v750_v59 = vsel %vm686_vm14, 1.0, %v12651_v56  ;;  %12903 = vst [vmem:[#allocation76_spill] sm:$0xff] %v9126_v48  ;;  %vm2224_vm14 = vcmp.eq.s32.totalorder %v9059_v55, %v8516_v6 }
 0x2a2   : > { %v1950_v44 = vsel %vm1886_vm13, 1.0, %v12651_v56  ;;  %2151 = vperm.xlu0 %6912, %v9092_v32   ;;  %1728 = vperm.xlu2 %6916, %v8601_v7   ;;  %v12899_v58 = vunpack.c.l.bf16 %v12898_v2  ;;  %v1198_v0 = vadd.f32 %v1134_v30, %v750_v59  ;;  %v2286_v30 = vsel %vm2222_vm2, 1.0, %v12651_v56  ;;  %v9134_v59 = vld [vmem:[%s7332_s24 + $0x170] sm:$0xff] }
 0x2a3   : > { %v2014_v54 = vadd.f32 %v1950_v44, %v1630_v13  ;;  %v9120_v15 = vpop.f32.mrf.mxu3 }
 0x2a4   : > { %6469 = vmatmul.msk.f32.gmra.mxu3 %vm2554_vm1, %v12899_v58  ;;  %12901 = vst [vmem:[#allocation127_spill] sm:$0xff] %v9120_v15  ;;  %v1582_v13 = vadd.f32 %v1518_v3, %v1198_v0  ;;  %v12907_v15 = vld [vmem:[#allocation30_spill] sm:$0xff] }
 0x2a5   : > { %v9108_v57 = vadd.f32 %v2334_v45, %v2014_v54  ;;  %1344 = vperm.xlu1 %6915, %v8601_v7   ;;  %v12902_v7 = vld [vmem:[#allocation25_spill] sm:$0xff]  ;;  %v12904_v45 = vld [vmem:[#allocation27_spill] sm:$0xff]  ;;  %vm1072_vm7 = vcmp.eq.s32.totalorder %v12907_v15, %v8516_v6 }
 0x2a6   : > { %6306 = vmatmul.msk.f32.gmra.mxu1 %vm2960_vm10, %v2349_v18  ;;  %vm1071_vm3 = vcmp.eq.s32.totalorder %v12902_v7, %v8516_v6  ;;  %vm687_vm4 = vcmp.eq.s32.totalorder %v12904_v45, %v8516_v6  ;;  %v1966_v58 = vadd.f32 %v1902_v63, %v1582_v13  ;;  %v9137_v7 = vpop.f32.mrf.mxu0  ;;  %v12906_v45 = vunpack.c.h.bf16 %v12898_v2 }
 0x2a7   : > { %12900 = vst [vmem:[#allocation10_spill] sm:$0xff] %v9108_v57  ;;  %6500 = vmatmul.msk.f32.gmra.mxu0 %vm2960_vm10, %v2349_v18  ;;  %6355 = vmatmul.msk.f32.vlgmr.msrb.gmra.mxu2 %vm2960_vm10, %v9108_v57  ;;  %v12905_v18 = vld [vmem:[#allocation144_spill] sm:$0xff]  ;;  %v1135_v3 = vsel %vm1071_vm3, 1.0, %v12651_v56  ;;  %v751_v63 = vsel %vm687_vm4, 1.0, %v12651_v56  ;;  %v1136_v15 = vsel %vm1072_vm7, 1.0, %v12651_v56  ;;  %v12915_v57 = vunpack.c.l.bf16 %v12914_v25 }
 0x2a8   : > { %v9124_v44 = vpop.permute.xlu2 %1695  ;;  %vm1455_vm5 = vcmp.eq.s32.totalorder %v12905_v18, %v8516_v6  ;;  %v2350_v0 = vadd.f32 %v2286_v30, %v1966_v58  ;;  %v1199_v18 = vadd.f32 %v1135_v3, %v751_v63  ;;  %v12909_v30 = vld [vmem:[#allocation13_spill] sm:$0xff]  ;;  %v9161_v3 = vpop.permute.xlu0 %2082  ;;  %vm1074_vm4 = vcmp.eq.s32.totalorder %v12924_v50, %v8516_v6 }
 0x2a9   : > { %v2065_v54 = vpop.permute.xlu1 %2064  ;;  %v1519_v13 = vsel %vm1455_vm5, 1.0, %v12651_v56  ;;  %vm688_vm9 = vcmp.eq.s32.totalorder %v12909_v30, %v8516_v6  ;;  %vm2225_vm5 = vcmp.eq.s32.totalorder %v9028_v42, %v8516_v6 }
 0x2aa   : > { %2154 = vperm.xlu0 %6912, %v9134_v59   ;;  %1731 = vperm.xlu2 %6916, %v8645_v34   ;;  %vm2223_vm8 = vcmp.eq.s32.totalorder %v2065_v54, %v8516_v6  ;;  %v1583_v58 = vadd.f32 %v1519_v13, %v1199_v18  ;;  %v9177_v13 = vld [vmem:[%s12515_s5] ss:$0 sm:$0xff]  ;;  %v9179_v18 = vpop.f32.mrf.mxu2  ;;  %v752_v30 = vsel %vm688_vm9, 1.0, %v12651_v56  ;;  %v2289_v42 = vsel %vm2225_vm5, 1.0, %v12651_v56 }
 0x2ab   : > { %v9155_v2 = vpop.f32.mrf.mxu3  ;;  %v2287_v54 = vsel %vm2223_vm8, 1.0, %v12651_v56  ;;  %12911 = vst [vmem:[#allocation28_spill] sm:$0xff] %v9179_v18  ;;  %v1200_v41 = vadd.f32 %v1136_v15, %v752_v30  ;;  %v12916_v18 = vld [vmem:[#allocation79_spill] sm:$0xff]  ;;  %v12918_v15 = vld [vmem:[#allocation33_spill] sm:$0xff]  ;;  %vm2226_vm9 = vcmp.eq.s32.totalorder %v9071_v5, %v8516_v6  ;;  %vm1844_vm5 = vcmp.eq.s32.totalorder %v9124_v44, %v8516_v6 }
 0x2ac   : > { %6470 = vmatmul.msk.f32.gmra.mxu3 %vm2554_vm1, %v12906_v45  ;;  %12908 = vst [vmem:[#allocation78_spill] sm:$0xff] %v9155_v2  ;;  %v1967_v63 = vadd.f32 %v1903_v24, %v1583_v58  ;;  %v9170_v2 = vld [vmem:[%s7332_s24 + $0x178] sm:$0xff]  ;;  %vm1073_vm13 = vcmp.eq.s32.totalorder %v12916_v18, %v8516_v6  ;;  %vm689_vm0 = vcmp.eq.s32.totalorder %v12918_v15, %v8516_v6  ;;  %v2288_v18 = vsel %vm2224_vm14, 1.0, %v12651_v56  ;;  %v12935_v5 = vld [vmem:[#allocation155_spill] sm:$0xff] }
 0x2ad   : > { %1347 = vperm.xlu1 %6915, %v8645_v34   ;;  %v12910_v34 = vld [vmem:[#allocation150_spill] sm:$0xff]  ;;  %v1137_v55 = vsel %vm1073_vm13, 1.0, %v12651_v56  ;;  %vm1459_vm13 = vcmp.eq.s32.totalorder %v12935_v5, %v8516_v6  ;;  %vm1843_vm14 = vcmp.eq.s32.totalorder %v9115_v4, %v8516_v6  ;;  %v12938_v5 = vunpack.c.h.bf16 %v8521_v31 }
 0x2ae   : > { %6307 = vmatmul.msk.f32.gmra.mxu1 %vm2960_vm10, %v2350_v0  ;;  %vm1456_vm11 = vcmp.eq.s32.totalorder %v12910_v34, %v8516_v6  ;;  %v2351_v34 = vadd.f32 %v2287_v54, %v1967_v63 }
 0x2af   : > { %6501 = vmatmul.msk.f32.gmra.mxu0 %vm2960_vm10, %v2350_v0  ;;  %v1520_v24 = vsel %vm1456_vm11, 1.0, %v12651_v56 }
 0x2b0   : > { %v9165_v45 = vpop.permute.xlu2 %1698  ;;  %v1584_v29 = vadd.f32 %v1520_v24, %v1200_v41  ;;  %v9208_v30 = vpop.permute.xlu0 %1707 }
 0x2b2   : > { %v1687_v0 = vpop.permute.xlu1 %1686  ;;  %2157 = vperm.xlu0 %6912, %v9170_v2   ;;  %1734 = vperm.xlu2 %6916, %v8682_v62   ;;  %v1968_v54 = vadd.f32 %v1904_v1, %v1584_v29  ;;  %v753_v29 = vsel %vm689_vm0, 1.0, %v12651_v56 }
 0x2b3   : > { %v3173_v58 = vpop.f32.mrf.mxu1  ;;  %vm1841_vm3 = vcmp.eq.s32.totalorder %v1687_v0, %v8516_v6 }
 0x2b4   : > { %v3174_v48 = vadd.f32 %v3173_v58, %v12912_v26  ;;  %v9184_v61 = vpop.f32.mrf.mxu0  ;;  %6471 = vmatmul.msk.f32.gmra.mxu3 %vm2554_vm1, %v12915_v57  ;;  %v9198_v57 = vpop.f32.mrf.mxu3  ;;  %v9212_v58 = vld [vmem:[%s7332_s24 + $0x180] sm:$0xff]  ;;  %v2352_v0 = vadd.f32 %v2288_v18, %v1968_v54 }
 0x2b5   : > { %12913 = vst [vmem:[#allocation154_spill] sm:$0xff] %v9184_v61  ;;  %1350 = vperm.xlu1 %6915, %v8682_v62   ;;  %v12919_v62 = vld [vmem:[#allocation158_spill] sm:$0xff]  ;;  %v12923_v61 = vunpack.c.h.bf16 %v12914_v25 }
 0x2b6   : > { %v3369_v26 = vadd.f32 %v9177_v13, %v3174_v48  ;;  %6308 = vmatmul.msk.f32.gmra.mxu1 %vm2960_vm10, %v2351_v34  ;;  %12917 = vst [vmem:[#allocation152_spill] sm:$0xff] %v9198_v57  ;;  %vm1457_vm2 = vcmp.eq.s32.totalorder %v12919_v62, %v8516_v6  ;;  %v9222_v57 = vpop.f32.mrf.mxu2 }
 0x2b7   : > { %6502 = vmatmul.msk.f32.gmra.mxu0 %vm2960_vm10, %v2351_v34  ;;  %v1521_v1 = vsel %vm1457_vm2, 1.0, %v12651_v56  ;;  %v1201_v34 = vadd.f32 %v1137_v55, %v753_v29  ;;  %12922 = vst [vmem:[#allocation27_spill] sm:$0xff] %v9222_v57  ;;  %v1138_v29 = vsel %vm1074_vm4, 1.0, %v12651_v56 }
 0x2b8   : > { %v3433_v63 = vmax.f32 %v3369_v26, 0.0  ;;  %v12920_v26 = vld [vmem:[#allocation103_spill] sm:$0xff] }
 0x2b9   : > { %v9206_v48 = vpop.permute.xlu2 %2085  ;;  %v1585_v55 = vadd.f32 %v1521_v1, %v1201_v34 }
 0x2ba   : > { %v1690_v24 = vpop.permute.xlu1 %1689  ;;  %2160 = vperm.xlu0 %6912, %v9212_v58   ;;  %6356 = vmatmul.msk.f32.vlgmr.msra.gmra.mxu2 %vm3505_vm15, %v3433_v63  ;;  %v1905_v63 = vsel %vm1841_vm3, 1.0, %v12651_v56 }
 0x2bb   : > { %1737 = vperm.xlu2 %6916, %v8717_v16   ;;  %v3176_v41 = vpop.f32.mrf.mxu1  ;;  %v1969_v18 = vadd.f32 %v1905_v63, %v1585_v55  ;;  %vm1842_vm8 = vcmp.eq.s32.totalorder %v1690_v24, %v8516_v6  ;;  %v9255_v55 = vpop.permute.xlu0 %2097 }
 0x2bc   : > { %v3177_v15 = vadd.f32 %v3176_v41, %v12920_v26  ;;  %v9220_v62 = vpop.f32.mrf.mxu0  ;;  %6472 = vmatmul.msk.f32.gmra.mxu3 %vm2554_vm1, %v12923_v61  ;;  %v9236_v25 = vpop.f32.mrf.mxu3  ;;  %v12926_v61 = vld [vmem:[#allocation32_spill] sm:$0xff] }
 0x2bd   : > { %12921 = vst [vmem:[#allocation25_spill] sm:$0xff] %v9220_v62  ;;  %1353 = vperm.xlu1 %6915, %v8717_v16   ;;  %vm690_vm6 = vcmp.eq.s32.totalorder %v12926_v61, %v8516_v6  ;;  %v12927_v16 = vld [vmem:[#allocation146_spill] sm:$0xff]  ;;  %v9248_v41 = vld [vmem:[%s7332_s24 + $0x188] sm:$0xff] }
 0x2be   : > { %v3370_v54 = vadd.f32 %v9177_v13, %v3177_v15  ;;  %6309 = vmatmul.msk.f32.gmra.mxu1 %vm2960_vm10, %v2352_v0  ;;  %12925 = vst [vmem:[#allocation144_spill] sm:$0xff] %v9236_v25  ;;  %vm1458_vm7 = vcmp.eq.s32.totalorder %v12927_v16, %v8516_v6  ;;  %v754_v34 = vsel %vm690_vm6, 1.0, %v12651_v56  ;;  %v2353_v16 = vadd.f32 %v2289_v42, %v1969_v18 }
 0x2bf   : > { %6503 = vmatmul.msk.f32.gmra.mxu0 %vm2960_vm10, %v2352_v0  ;;  %v1522_v26 = vsel %vm1458_vm7, 1.0, %v12651_v56  ;;  %v1202_v63 = vadd.f32 %v1138_v29, %v754_v34  ;;  %v12930_v25 = vunpack.c.l.bf16 %v8521_v31  ;;  %v9269_v34 = vpop.f32.mrf.mxu2  ;;  %v1907_v31 = vsel %vm1843_vm14, 1.0, %v12651_v56 }
 0x2c0   : > { %v3434_v50 = vmax.f32 %v3370_v54, 0.0  ;;  %v12928_v54 = vld [vmem:[#allocation108_spill] sm:$0xff]  ;;  %12931 = vst [vmem:[#allocation13_spill] sm:$0xff] %v9269_v34 }
 0x2c1   : > { %v9244_v1 = vpop.permute.xlu2 %2088  ;;  %v1586_v62 = vadd.f32 %v1522_v26, %v1202_v63  ;;  %v12934_v26 = vld [vmem:[#allocation16_spill] sm:$0xff]  ;;  %v9282_v63 = vld [vmem:[%s7332_s24 + $0x190] sm:$0xff] }
 0x2c2   : > { %2163 = vperm.xlu0 %6912, %v9248_v41   ;;  %6357 = vmatmul.msk.f32.gmra.mxu2 %vm3505_vm15, %v3434_v50  ;;  %v1906_v50 = vsel %vm1842_vm8, 1.0, %v12651_v56  ;;  %vm691_vm12 = vcmp.eq.s32.totalorder %v12934_v26, %v8516_v6 }
 0x2c3   : > { %1740 = vperm.xlu2 %6916, %v8754_v52   ;;  %v2077_v15 = vpop.permute.xlu1 %2076  ;;  %v3179_v0 = vpop.f32.mrf.mxu1  ;;  %v1970_v42 = vadd.f32 %v1906_v50, %v1586_v62  ;;  %v12936_v50 = vld [vmem:[#allocation112_spill] sm:$0xff] }
 0x2c4   : > { %v3180_v61 = vadd.f32 %v3179_v0, %v12928_v54  ;;  %v9258_v24 = vpop.f32.mrf.mxu0  ;;  %6473 = vmatmul.msk.f32.gmra.mxu3 %vm2554_vm1, %v12930_v25  ;;  %v9272_v18 = vpop.f32.mrf.mxu3  ;;  %v12933_v25 = vld [vmem:[#allocation83_spill] sm:$0xff]  ;;  %vm2227_vm0 = vcmp.eq.s32.totalorder %v2077_v15, %v8516_v6  ;;  %v12942_v15 = vld [vmem:[#allocation36_spill] sm:$0xff] }
 0x2c5   : > { %12929 = vst [vmem:[#allocation30_spill] sm:$0xff] %v9258_v24  ;;  %1356 = vperm.xlu1 %6915, %v8754_v52   ;;  %vm1075_vm11 = vcmp.eq.s32.totalorder %v12933_v25, %v8516_v6  ;;  %v2290_v52 = vsel %vm2226_vm9, 1.0, %v12651_v56  ;;  %v9301_v34 = vpop.permute.xlu0 %2103  ;;  %vm692_vm3 = vcmp.eq.s32.totalorder %v12942_v15, %v8516_v6  ;;  %v1908_v15 = vsel %vm1844_vm5, 1.0, %v12651_v56 }
 0x2c6   : > { %v3371_v29 = vadd.f32 %v9177_v13, %v3180_v61  ;;  %6310 = vmatmul.msk.f32.gmra.mxu1 %vm2960_vm10, %v2353_v16  ;;  %12932 = vst [vmem:[#allocation150_spill] sm:$0xff] %v9272_v18  ;;  %v1139_v61 = vsel %vm1075_vm11, 1.0, %v12651_v56  ;;  %v2354_v26 = vadd.f32 %v2290_v52, %v1970_v42  ;;  %v1523_v18 = vsel %vm1459_vm13, 1.0, %v12651_v56  ;;  %v12940_v52 = vld [vmem:[#allocation20_spill] sm:$0xff] }
 0x2c7   : > { %6504 = vmatmul.msk.f32.gmra.mxu0 %vm2960_vm10, %v2353_v16  ;;  %vm1076_vm2 = vcmp.eq.s32.totalorder %v12940_v52, %v8516_v6  ;;  %v12944_v52 = vld [vmem:[#allocation116_spill] sm:$0xff]  ;;  %vm1845_vm11 = vcmp.eq.s32.totalorder %v9165_v45, %v8516_v6  ;;  %vm2229_vm13 = vcmp.eq.s32.totalorder %v9161_v3, %v8516_v6  ;;  %v12957_v45 = vld [vmem:[#allocation21_spill] sm:$0xff] }
 0x2c8   : > { %v3435_v0 = vmax.f32 %v3371_v29, 0.0  ;;  %vm694_vm14 = vcmp.eq.s32.totalorder %v12957_v45, %v8516_v6  ;;  %v2293_v3 = vsel %vm2229_vm13, 1.0, %v12651_v56  ;;  %vm1848_vm13 = vcmp.eq.s32.totalorder %v9208_v30, %v8516_v6 }
 0x2ca   : > { %2166 = vperm.xlu0 %6912, %v9282_v63   ;;  %6358 = vmatmul.msk.f32.gmra.mxu2 %vm3505_vm15, %v3435_v0  ;;  %v9286_v54 = vpop.permute.xlu2 %1710  ;;  %v755_v0 = vsel %vm691_vm12, 1.0, %v12651_v56 }
 0x2cb   : > { %1743 = vperm.xlu2 %6916, %v8791_v19   ;;  %v2080_v62 = vpop.permute.xlu1 %2079  ;;  %v3182_v16 = vpop.f32.mrf.mxu1  ;;  %v1203_v24 = vadd.f32 %v1139_v61, %v755_v0  ;;  %v9320_v0 = vld [vmem:[%s7332_s24 + $0x198] sm:$0xff] }
 0x2cc   : > { %v3183_v29 = vadd.f32 %v3182_v16, %v12936_v50  ;;  %v9293_v25 = vpop.f32.mrf.mxu0  ;;  %6474 = vmatmul.msk.f32.gmra.mxu3 %vm2554_vm1, %v12938_v5  ;;  %v9308_v42 = vpop.f32.mrf.mxu3  ;;  %v2291_v50 = vsel %vm2227_vm0, 1.0, %v12651_v56  ;;  %vm2228_vm7 = vcmp.eq.s32.totalorder %v2080_v62, %v8516_v6 }
 0x2cd   : > { %12937 = vst [vmem:[#allocation99_spill] sm:$0xff] %v9293_v25  ;;  %1359 = vperm.xlu1 %6915, %v8791_v19   ;;  %v1587_v19 = vadd.f32 %v1523_v18, %v1203_v24  ;;  %v9312_v16 = vpop.f32.mrf.mxu2  ;;  %v1140_v24 = vsel %vm1076_vm2, 1.0, %v12651_v56  ;;  %v12946_v25 = vunpack.c.l.bf16 %v8587_v35 }
 0x2ce   : > { %v3372_v4 = vadd.f32 %v9177_v13, %v3183_v29  ;;  %6311 = vmatmul.msk.f32.gmra.mxu1 %vm2960_vm10, %v2354_v26  ;;  %12939 = vst [vmem:[#allocation162_spill] sm:$0xff] %v9308_v42  ;;  %v12943_v29 = vld [vmem:[#allocation163_spill] sm:$0xff] }
 0x2cf   : > { %6505 = vmatmul.msk.f32.gmra.mxu0 %vm2960_vm10, %v2354_v26  ;;  %12941 = vst [vmem:[#allocation79_spill] sm:$0xff] %v9312_v16  ;;  %vm1460_vm4 = vcmp.eq.s32.totalorder %v12943_v29, %v8516_v6  ;;  %v1971_v5 = vadd.f32 %v1907_v31, %v1587_v19  ;;  %v12949_v29 = vld [vmem:[#allocation35_spill] sm:$0xff] }
 0x2d0   : > { %v3436_v61 = vmax.f32 %v3372_v4, 0.0  ;;  %v1524_v44 = vsel %vm1460_vm4, 1.0, %v12651_v56  ;;  %vm693_vm8 = vcmp.eq.s32.totalorder %v12949_v29, %v8516_v6  ;;  %vm2230_vm4 = vcmp.eq.s32.totalorder %v9206_v48, %v8516_v6 }
 0x2d1   : > { %v2355_v4 = vadd.f32 %v2291_v50, %v1971_v5  ;;  %v12947_v5 = vld [vmem:[#allocation84_spill] sm:$0xff] }
 0x2d2   : > { %2169 = vperm.xlu0 %6912, %v9320_v0   ;;  %6359 = vmatmul.msk.f32.gmra.mxu2 %vm3505_vm15, %v3436_v61  ;;  %v9326_v18 = vpop.permute.xlu2 %1713  ;;  %v756_v61 = vsel %vm692_vm3, 1.0, %v12651_v56  ;;  %vm1077_vm6 = vcmp.eq.s32.totalorder %v12947_v5, %v8516_v6 }
 0x2d3   : > { %1746 = vperm.xlu2 %6916, %v8827_v36   ;;  %v3185_v26 = vpop.f32.mrf.mxu1  ;;  %v1204_v50 = vadd.f32 %v1140_v24, %v756_v61  ;;  %v2292_v61 = vsel %vm2228_vm7, 1.0, %v12651_v56 }
 0x2d4   : > { %v3186_v42 = vadd.f32 %v3185_v26, %v12944_v52  ;;  %v9331_v31 = vpop.f32.mrf.mxu0  ;;  %v9333_v19 = vpop.permute.xlu1 %1701  ;;  %6475 = vmatmul.msk.f32.gmra.mxu3 %vm2554_vm1, %v12946_v25 }
 0x2d5   : > { %12945 = vst [vmem:[#allocation33_spill] sm:$0xff] %v9331_v31  ;;  %1362 = vperm.xlu1 %6915, %v8827_v36   ;;  %v9354_v26 = vpop.f32.mrf.mxu3  ;;  %v12950_v36 = vld [vmem:[#allocation149_spill] sm:$0xff]  ;;  %v1588_v24 = vadd.f32 %v1524_v44, %v1204_v50  ;;  %v9360_v52 = vpop.permute.xlu0 %2106  ;;  %v757_v44 = vsel %vm693_vm8, 1.0, %v12651_v56  ;;  %vm1846_vm2 = vcmp.eq.s32.totalorder %v9333_v19, %v8516_v6  ;;  %vm2231_vm8 = vcmp.eq.s32.totalorder %v9244_v1, %v8516_v6  ;;  %v12973_v1 = vld [vmem:[#allocation38_spill] sm:$0xff] }
 0x2d6   : > { %v3373_v25 = vadd.f32 %v9177_v13, %v3186_v42  ;;  %6312 = vmatmul.msk.f32.gmra.mxu1 %vm2960_vm10, %v2355_v4  ;;  %12948 = vst [vmem:[#allocation158_spill] sm:$0xff] %v9354_v26  ;;  %vm1461_vm9 = vcmp.eq.s32.totalorder %v12950_v36, %v8516_v6  ;;  %v1141_v42 = vsel %vm1077_vm6, 1.0, %v12651_v56  ;;  %v9371_v29 = vpop.f32.mrf.mxu2  ;;  %v12952_v31 = vld [vmem:[#allocation121_spill] sm:$0xff] }
 0x2d7   : > { %6506 = vmatmul.msk.f32.gmra.mxu0 %vm2960_vm10, %v2355_v4  ;;  %v1972_v5 = vadd.f32 %v1908_v15, %v1588_v24  ;;  %v9367_v4 = vld [vmem:[%s7332_s24 + $0x1a0] sm:$0xff]  ;;  %12951 = vst [vmem:[#allocation103_spill] sm:$0xff] %v9371_v29  ;;  %v1525_v50 = vsel %vm1461_vm9, 1.0, %v12651_v56  ;;  %v1205_v15 = vadd.f32 %v1141_v42, %v757_v44  ;;  %v1909_v29 = vsel %vm1845_vm11, 1.0, %v12651_v56  ;;  %v12955_v42 = vld [vmem:[#allocation86_spill] sm:$0xff] }
 0x2d8   : > { %v3437_v62 = vmax.f32 %v3373_v25, 0.0  ;;  %vm1078_vm12 = vcmp.eq.s32.totalorder %v12955_v42, %v8516_v6  ;;  %v12959_v42 = vld [vmem:[#allocation125_spill] sm:$0xff]  ;;  %vm696_vm11 = vcmp.eq.s32.totalorder %v12973_v1, %v8516_v6 }
 0x2d9   : > { %v2356_v24 = vadd.f32 %v2292_v61, %v1972_v5  ;;  %v760_v1 = vsel %vm696_vm11, 1.0, %v12651_v56 }
 0x2da   : > { %2172 = vperm.xlu0 %6912, %v9367_v4   ;;  %6360 = vmatmul.msk.f32.gmra.mxu2 %vm3505_vm15, %v3437_v62  ;;  %v12954_v62 = vunpack.c.h.bf16 %v8587_v35 }
 0x2db   : > { %1749 = vperm.xlu2 %6916, %v8863_v11   ;;  %v3188_v25 = vpop.f32.mrf.mxu1  ;;  %v9376_v36 = vpop.permute.xlu2 %2100 }
 0x2dc   : > { %v3189_v26 = vadd.f32 %v3188_v25, %v12952_v31  ;;  %v9379_v16 = vpop.f32.mrf.mxu0  ;;  %v9381_v57 = vpop.permute.xlu1 %1704  ;;  %6476 = vmatmul.msk.f32.gmra.mxu3 %vm2554_vm1, %v12954_v62  ;;  %v1589_v31 = vadd.f32 %v1525_v50, %v1205_v15  ;;  %v1142_v50 = vsel %vm1078_vm12, 1.0, %v12651_v56  ;;  %v758_v15 = vsel %vm694_vm14, 1.0, %v12651_v56 }
 0x2dd   : > { %12953 = vst [vmem:[#allocation82_spill] sm:$0xff] %v9379_v16  ;;  %1365 = vperm.xlu1 %6915, %v8863_v11   ;;  %v9398_v35 = vpop.f32.mrf.mxu3  ;;  %v12958_v11 = vld [vmem:[#allocation161_spill] sm:$0xff]  ;;  %v9406_v25 = vpop.permute.xlu0 %2109  ;;  %v1206_v62 = vadd.f32 %v1142_v50, %v758_v15  ;;  %vm1847_vm7 = vcmp.eq.s32.totalorder %v9381_v57, %v8516_v6 }
 0x2de   : > { %v3374_v61 = vadd.f32 %v9177_v13, %v3189_v26  ;;  %6313 = vmatmul.msk.f32.gmra.mxu1 %vm2960_vm10, %v2356_v24  ;;  %12956 = vst [vmem:[#allocation32_spill] sm:$0xff] %v9398_v35  ;;  %vm1462_vm0 = vcmp.eq.s32.totalorder %v12958_v11, %v8516_v6  ;;  %v1973_v5 = vadd.f32 %v1909_v29, %v1589_v31  ;;  %v9411_v26 = vld [vmem:[%s7332_s24 + $0x1a8] sm:$0xff]  ;;  %v12961_v11 = vunpack.c.l.bf16 %v8671_v40  ;;  %v12962_v35 = vld [vmem:[#allocation19_spill] sm:$0xff] }
 0x2df   : > { %6507 = vmatmul.msk.f32.gmra.mxu0 %vm2960_vm10, %v2356_v24  ;;  %v1526_v29 = vsel %vm1462_vm0, 1.0, %v12651_v56  ;;  %vm1079_vm3 = vcmp.eq.s32.totalorder %v12962_v35, %v8516_v6 }
 0x2e0   : > { %v3438_v44 = vmax.f32 %v3374_v61, 0.0  ;;  %v2357_v19 = vadd.f32 %v2293_v3, %v1973_v5  ;;  %v1590_v50 = vadd.f32 %v1526_v29, %v1206_v62  ;;  %v9436_v3 = vpop.f32.mrf.mxu2  ;;  %v1143_v48 = vsel %vm1079_vm3, 1.0, %v12651_v56 }
 0x2e1   : > { %12963 = vst [vmem:[#allocation108_spill] sm:$0xff] %v9436_v3  ;;  %v2294_v62 = vsel %vm2230_vm4, 1.0, %v12651_v56  ;;  %vm1849_vm4 = vcmp.eq.s32.totalorder %v9286_v54, %v8516_v6 }
 0x2e2   : > { %2175 = vperm.xlu0 %6912, %v9411_v26   ;;  %6361 = vmatmul.msk.f32.gmra.mxu2 %vm3505_vm15, %v3438_v44  ;;  %v1910_v44 = vsel %vm1846_vm2, 1.0, %v12651_v56 }
 0x2e3   : > { %1752 = vperm.xlu2 %6916, %v8899_v21   ;;  %v3191_v24 = vpop.f32.mrf.mxu1  ;;  %v1974_v35 = vadd.f32 %v1910_v44, %v1590_v50 }
 0x2e4   : > { %v3192_v31 = vadd.f32 %v3191_v24, %v12959_v42  ;;  %v9419_v61 = vpop.f32.mrf.mxu0  ;;  %v9421_v45 = vpop.permute.xlu2 %1719  ;;  %6477 = vmatmul.msk.f32.gmra.mxu3 %vm2554_vm1, %v12961_v11  ;;  %v12966_v24 = vld [vmem:[#allocation167_spill] sm:$0xff]  ;;  %v9450_v42 = vld [vmem:[%s7332_s24 + $0x1b0] sm:$0xff] }
 0x2e5   : > { %12960 = vst [vmem:[#allocation146_spill] sm:$0xff] %v9419_v61  ;;  %1368 = vperm.xlu1 %6915, %v8899_v21   ;;  %v9428_v16 = vpop.permute.xlu1 %2091  ;;  %v9439_v15 = vpop.f32.mrf.mxu3  ;;  %v12965_v21 = vld [vmem:[#allocation39_spill] sm:$0xff]  ;;  %vm1463_vm6 = vcmp.eq.s32.totalorder %v12966_v24, %v8516_v6  ;;  %v2358_v57 = vadd.f32 %v2294_v62, %v1974_v35  ;;  %v12968_v61 = vunpack.c.h.bf16 %v8671_v40 }
 0x2e6   : > { %v3375_v5 = vadd.f32 %v9177_v13, %v3192_v31  ;;  %6314 = vmatmul.msk.f32.gmra.mxu1 %vm2960_vm10, %v2357_v19  ;;  %12964 = vst [vmem:[#allocation83_spill] sm:$0xff] %v9439_v15  ;;  %vm695_vm5 = vcmp.eq.s32.totalorder %v12965_v21, %v8516_v6  ;;  %v9457_v50 = vpop.permute.xlu0 %2112  ;;  %vm2232_vm14 = vcmp.eq.s32.totalorder %v9428_v16, %v8516_v6 }
 0x2e7   : > { %6508 = vmatmul.msk.f32.gmra.mxu0 %vm2960_vm10, %v2357_v19  ;;  %v759_v31 = vsel %vm695_vm5, 1.0, %v12651_v56  ;;  %v1527_v19 = vsel %vm1463_vm6, 1.0, %v12651_v56  ;;  %v2296_v16 = vsel %vm2232_vm14, 1.0, %v12651_v56 }
 0x2e8   : > { %v3439_v29 = vmax.f32 %v3375_v5, 0.0  ;;  %v1207_v44 = vadd.f32 %v1143_v48, %v759_v31  ;;  %v12967_v5 = vld [vmem:[#allocation130_spill] sm:$0xff]  ;;  %v9480_v62 = vpop.f32.mrf.mxu2 }
 0x2e9   : > { %12972 = vst [vmem:[#allocation112_spill] sm:$0xff] %v9480_v62 }
 0x2ea   : > { %2178 = vperm.xlu0 %6912, %v9450_v42   ;;  %6362 = vmatmul.msk.f32.gmra.mxu2 %vm3505_vm15, %v3439_v29  ;;  %v1911_v29 = vsel %vm1847_vm7, 1.0, %v12651_v56  ;;  %v1591_v3 = vadd.f32 %v1527_v19, %v1207_v44  ;;  %v2295_v19 = vsel %vm2231_vm8, 1.0, %v12651_v56  ;;  %v9488_v44 = vld [vmem:[%s7332_s24 + $0x1b8] sm:$0xff] }
 0x2eb   : > { %1755 = vperm.xlu2 %6916, %v8931_v60   ;;  %v3194_v11 = vpop.f32.mrf.mxu1 }
 0x2ec   : > { %v3195_v21 = vadd.f32 %v3194_v11, %v12967_v5  ;;  %v9460_v24 = vpop.permute.xlu2 %1722  ;;  %6478 = vmatmul.msk.f32.gmra.mxu3 %vm2554_vm1, %v12968_v61  ;;  %v9472_v31 = vpop.f32.mrf.mxu0  ;;  %v12971_v61 = vld [vmem:[#allocation87_spill] sm:$0xff]  ;;  %v12974_v11 = vld [vmem:[#allocation153_spill] sm:$0xff] }
 0x2ed   : > { %1371 = vperm.xlu1 %6915, %v8931_v60   ;;  %v9467_v15 = vpop.permute.xlu1 %2094  ;;  %12969 = vst [vmem:[#allocation16_spill] sm:$0xff] %v9472_v31  ;;  %v9476_v40 = vpop.f32.mrf.mxu3  ;;  %vm1080_vm9 = vcmp.eq.s32.totalorder %v12971_v61, %v8516_v6  ;;  %v1975_v60 = vadd.f32 %v1911_v29, %v1591_v3  ;;  %vm1464_vm12 = vcmp.eq.s32.totalorder %v12974_v11, %v8516_v6  ;;  %v12976_v61 = vunpack.c.l.bf16 %v8739_v20 }
 0x2ee   : > { %v3376_v48 = vadd.f32 %v9177_v13, %v3195_v21  ;;  %6315 = vmatmul.msk.f32.gmra.mxu1 %vm2960_vm10, %v2358_v57  ;;  %12970 = vst [vmem:[#allocation155_spill] sm:$0xff] %v9476_v40  ;;  %v1144_v5 = vsel %vm1080_vm9, 1.0, %v12651_v56  ;;  %v9505_v40 = vpop.permute.xlu0 %2115  ;;  %vm2233_vm6 = vcmp.eq.s32.totalorder %v9467_v15, %v8516_v6  ;;  %vm1850_vm9 = vcmp.eq.s32.totalorder %v9326_v18, %v8516_v6  ;;  %v12991_v18 = vld [vmem:[#allocation139_spill] sm:$0xff] }
 0x2ef   : > { %6509 = vmatmul.msk.f32.gmra.mxu0 %vm2960_vm10, %v2358_v57  ;;  %v2359_v21 = vadd.f32 %v2295_v19, %v1975_v60  ;;  %v12975_v57 = vld [vmem:[#allocation133_spill] sm:$0xff]  ;;  %v1208_v11 = vadd.f32 %v1144_v5, %v760_v1  ;;  %v1912_v19 = vsel %vm1848_vm13, 1.0, %v12651_v56  ;;  %v12981_v1 = vld [vmem:[#allocation166_spill] sm:$0xff] }
 0x2f0   : > { %v3440_v35 = vmax.f32 %v3376_v48, 0.0  ;;  %vm1465_vm3 = vcmp.eq.s32.totalorder %v12981_v1, %v8516_v6  ;;  %v9526_v62 = vpop.f32.mrf.mxu2 }
 0x2f1   : > { %12982 = vst [vmem:[#allocation163_spill] sm:$0xff] %v9526_v62  ;;  %v12993_v62 = vld [vmem:[#allocation90_spill] sm:$0xff] }
 0x2f2   : > { %2181 = vperm.xlu0 %6912, %v9488_v44   ;;  %6363 = vmatmul.msk.f32.gmra.mxu2 %vm3505_vm15, %v3440_v35  ;;  %v1528_v35 = vsel %vm1464_vm12, 1.0, %v12651_v56  ;;  %vm1083_vm11 = vcmp.eq.s32.totalorder %v12993_v62, %v8516_v6  ;;  %vm2234_vm12 = vcmp.eq.s32.totalorder %v9255_v55, %v8516_v6  ;;  %v12996_v62 = vld [vmem:[#allocation157_spill] sm:$0xff] }
 0x2f3   : > { %1758 = vperm.xlu2 %6916, %v8966_v37   ;;  %v3197_v3 = vpop.f32.mrf.mxu1  ;;  %v1592_v5 = vadd.f32 %v1528_v35, %v1208_v11  ;;  %vm1467_vm14 = vcmp.eq.s32.totalorder %v12996_v62, %v8516_v6  ;;  %v1147_v55 = vsel %vm1083_vm11, 1.0, %v12651_v56 }
 0x2f4   : > { %v3198_v29 = vadd.f32 %v3197_v3, %v12975_v57  ;;  %v9497_v48 = vpop.permute.xlu2 %1725  ;;  %6479 = vmatmul.msk.f32.gmra.mxu3 %vm2554_vm1, %v12976_v61  ;;  %v9519_v61 = vpop.f32.mrf.mxu0 }
 0x2f5   : > { %1374 = vperm.xlu1 %6915, %v8966_v37   ;;  %v9515_v3 = vpop.f32.mrf.mxu3  ;;  %v12978_v37 = vld [vmem:[#allocation89_spill] sm:$0xff]  ;;  %12979 = vst [vmem:[#allocation36_spill] sm:$0xff] %v9519_v61  ;;  %v1976_v31 = vadd.f32 %v1912_v19, %v1592_v5  ;;  %v12984_v5 = vunpack.c.h.bf16 %v8739_v20  ;;  %v1913_v20 = vsel %vm1849_vm4, 1.0, %v12651_v56  ;;  %vm2235_vm4 = vcmp.eq.s32.totalorder %v9376_v36, %v8516_v6 }
 0x2f6   : > { %v3377_v30 = vadd.f32 %v9177_v13, %v3198_v29  ;;  %v9510_v60 = vpop.permute.xlu1 %1716  ;;  %6316 = vmatmul.msk.f32.gmra.mxu1 %vm2960_vm10, %v2359_v21  ;;  %12977 = vst [vmem:[#allocation20_spill] sm:$0xff] %v9515_v3  ;;  %vm1081_vm0 = vcmp.eq.s32.totalorder %v12978_v37, %v8516_v6  ;;  %v12980_v29 = vld [vmem:[#allocation26_spill] sm:$0xff]  ;;  %v12983_v37 = vld [vmem:[#allocation137_spill] sm:$0xff]  ;;  %v12985_v3 = vld [vmem:[#allocation24_spill] sm:$0xff]  ;;  %v9562_v15 = vpop.permute.xlu0 %2118 }
 0x2f7   : > { %6510 = vmatmul.msk.f32.gmra.mxu0 %vm2960_vm10, %v2359_v21  ;;  %vm697_vm2 = vcmp.eq.s32.totalorder %v12980_v29, %v8516_v6  ;;  %v9529_v21 = vld [vmem:[%s7332_s24 + $0x1c0] sm:$0xff]  ;;  %v1145_v35 = vsel %vm1081_vm0, 1.0, %v12651_v56  ;;  %vm1082_vm5 = vcmp.eq.s32.totalorder %v12985_v3, %v8516_v6  ;;  %vm1851_vm0 = vcmp.eq.s32.totalorder %v9510_v60, %v8516_v6 }
 0x2f8   : > { %v3441_v57 = vmax.f32 %v3377_v30, 0.0  ;;  %v2360_v30 = vadd.f32 %v2296_v16, %v1976_v31  ;;  %v761_v1 = vsel %vm697_vm2, 1.0, %v12651_v56 }
 0x2f9   : > { %v1209_v61 = vadd.f32 %v1145_v35, %v761_v1  ;;  %v12988_v35 = vld [vmem:[#allocation170_spill] sm:$0xff]  ;;  %v9571_v1 = vld [vmem:[%s7332_s24 + $0x1c8] sm:$0xff] }
 0x2fa   : > { %2184 = vperm.xlu0 %6912, %v9529_v21   ;;  %6364 = vmatmul.msk.f32.gmra.mxu2 %vm3505_vm15, %v3441_v57  ;;  %v1529_v57 = vsel %vm1465_vm3, 1.0, %v12651_v56  ;;  %vm1466_vm8 = vcmp.eq.s32.totalorder %v12988_v35, %v8516_v6 }
 0x2fb   : > { %1761 = vperm.xlu2 %6916, %v8999_v53   ;;  %v3200_v11 = vpop.f32.mrf.mxu1  ;;  %v1593_v3 = vadd.f32 %v1529_v57, %v1209_v61  ;;  %v1530_v57 = vsel %vm1466_vm8, 1.0, %v12651_v56 }
 0x2fc   : > { %v3201_v29 = vadd.f32 %v3200_v11, %v12983_v37  ;;  %v9538_v19 = vpop.permute.xlu2 %1728  ;;  %6480 = vmatmul.msk.f32.gmra.mxu3 %vm2554_vm1, %v12984_v5  ;;  %v1146_v37 = vsel %vm1082_vm5, 1.0, %v12651_v56 }
 0x2fd   : > { %1377 = vperm.xlu1 %6915, %v8999_v53   ;;  %v9556_v16 = vpop.f32.mrf.mxu3  ;;  %v12987_v53 = vld [vmem:[#allocation42_spill] sm:$0xff]  ;;  %v1977_v5 = vadd.f32 %v1913_v20, %v1593_v3  ;;  %v9578_v3 = vpop.f32.mrf.mxu2 }
 0x2fe   : > { %v3378_v54 = vadd.f32 %v9177_v13, %v3201_v29  ;;  %6317 = vmatmul.msk.f32.gmra.mxu1 %vm2960_vm10, %v2360_v30  ;;  %12986 = vst [vmem:[#allocation116_spill] sm:$0xff] %v9556_v16  ;;  %vm698_vm7 = vcmp.eq.s32.totalorder %v12987_v53, %v8516_v6  ;;  %v2297_v29 = vsel %vm2233_vm6, 1.0, %v12651_v56  ;;  %vm1852_vm6 = vcmp.eq.s32.totalorder %v9421_v45, %v8516_v6 }
 0x2ff   : > { %6511 = vmatmul.msk.f32.gmra.mxu0 %vm2960_vm10, %v2360_v30  ;;  %v9554_v31 = vpop.permute.xlu1 %1335  ;;  %v9568_v30 = vpop.f32.mrf.mxu0  ;;  %v762_v61 = vsel %vm698_vm7, 1.0, %v12651_v56  ;;  %v2361_v20 = vadd.f32 %v2297_v29, %v1977_v5  ;;  %12990 = vst [vmem:[#allocation35_spill] sm:$0xff] %v9578_v3  ;;  %v13005_v45 = vunpack.c.l.bf16 %v8884_v43 }
 0x300   : > { %v3442_v11 = vmax.f32 %v3378_v54, 0.0  ;;  %12989 = vst [vmem:[#allocation84_spill] sm:$0xff] %v9568_v30  ;;  %v1210_v53 = vadd.f32 %v1146_v37, %v762_v61  ;;  %v12992_v30 = vunpack.c.l.bf16 %v8814_v33  ;;  %vm1468_vm5 = vcmp.eq.s32.totalorder %v9554_v31, %v8516_v6 }
 0x301   : > { %v2299_v31 = vsel %vm2235_vm4, 1.0, %v13001_v47 }
 0x302   : > { %2187 = vperm.xlu0 %6912, %v9571_v1   ;;  %6365 = vmatmul.msk.f32.gmra.mxu2 %vm3505_vm15, %v3442_v11  ;;  %v1914_v11 = vsel %vm1850_vm9, 1.0, %v12651_v56  ;;  %v1594_v37 = vadd.f32 %v1530_v57, %v1210_v53  ;;  %v9605_v53 = vpop.permute.xlu0 %2121  ;;  %vm2236_vm9 = vcmp.eq.s32.totalorder %v9301_v34, %v8516_v6 }
 0x303   : > { %1764 = vperm.xlu2 %6916, %v9046_v9   ;;  %v3203_v54 = vpop.f32.mrf.mxu1 }
 0x304   : > { %v3204_v35 = vadd.f32 %v3203_v54, %v12991_v18  ;;  %v9581_v16 = vpop.permute.xlu2 %1731  ;;  %6481 = vmatmul.msk.f32.gmra.mxu3 %vm2554_vm1, %v12992_v30  ;;  %v1978_v61 = vadd.f32 %v1914_v11, %v1594_v37  ;;  %v2298_v54 = vsel %vm2234_vm12, 1.0, %v12651_v56  ;;  %vm1853_vm12 = vcmp.eq.s32.totalorder %v9460_v24, %v8516_v6 }
 0x305   : > { %1380 = vperm.xlu1 %6915, %v9046_v9   ;;  %v9597_v30 = vpop.f32.mrf.mxu3  ;;  %v12995_v9 = vld [vmem:[#allocation41_spill] sm:$0xff]  ;;  %v1917_v24 = vsel %vm1853_vm12, 1.0, %v13001_v47 }
 0x306   : > { %v3379_v29 = vadd.f32 %v9177_v13, %v3204_v35  ;;  %6318 = vmatmul.msk.f32.gmra.mxu1 %vm2960_vm10, %v2361_v20  ;;  %12994 = vst [vmem:[#allocation149_spill] sm:$0xff] %v9597_v30  ;;  %vm699_vm13 = vcmp.eq.s32.totalorder %v12995_v9, %v8516_v6  ;;  %v1531_v35 = vsel %vm1467_vm14, 1.0, %v12651_v56  ;;  %v2362_v9 = vadd.f32 %v2298_v54, %v1978_v61  ;;  %v12998_v30 = vld [vmem:[#allocation141_spill] sm:$0xff] }
 0x307   : > { %6512 = vmatmul.msk.f32.gmra.mxu0 %vm2960_vm10, %v2361_v20  ;;  %v9595_v5 = vpop.permute.xlu1 %1338  ;;  %v9610_v20 = vld [vmem:[%s7332_s24 + $0x1d0] sm:$0xff]  ;;  %v763_v18 = vsel %vm699_vm13, 1.0, %v12651_v56  ;;  %v9619_v62 = vpop.f32.mrf.mxu0  ;;  %v13000_v56 = vld [vmem:[#allocation31_spill] sm:$0xff] }
 0x308   : > { %v3443_v57 = vmax.f32 %v3379_v29, 0.0  ;;  %v1211_v37 = vadd.f32 %v1147_v55, %v763_v18  ;;  %v12997_v29 = vld [vmem:[#allocation93_spill] sm:$0xff]  ;;  %vm700_vm3 = vcmp.eq.s32.totalorder %v13000_v56, %v8516_v6  ;;  %v1915_v55 = vsel %vm1851_vm0, 1.0, %v13001_v47 }
 0x309   : > { %vm1084_vm2 = vcmp.eq.s32.totalorder %v12997_v29, %v8516_v6  ;;  %v764_v18 = vsel %vm700_vm3, 1.0, %v13001_v47  ;;  %v13003_v29 = vld [vmem:[#allocation29_spill] sm:$0xff]  ;;  %vm1469_vm11 = vcmp.eq.s32.totalorder %v9595_v5, %v8516_v6  ;;  %vm1854_vm3 = vcmp.eq.s32.totalorder %v9497_v48, %v8516_v6 }
 0x30a   : > { %2190 = vperm.xlu0 %6912, %v9610_v20   ;;  %6366 = vmatmul.msk.f32.gmra.mxu2 %vm3505_vm15, %v3443_v57  ;;  %v12999_v57 = vunpack.c.h.bf16 %v8814_v33  ;;  %v1595_v61 = vadd.f32 %v1531_v35, %v1211_v37  ;;  %v9638_v33 = vpop.f32.mrf.mxu2  ;;  %v1148_v56 = vsel %vm1084_vm2, 1.0, %v13001_v47  ;;  %v1532_v35 = vsel %vm1468_vm5, 1.0, %v13001_v47 }
 0x30b   : > { %1767 = vperm.xlu2 %6916, %v9092_v32   ;;  %v3206_v11 = vpop.f32.mrf.mxu1  ;;  %vm1085_vm7 = vcmp.eq.s32.totalorder %v13003_v29, %v8516_v6  ;;  %vm2237_vm2 = vcmp.eq.s32.totalorder %v9360_v52, %v8516_v6 }
 0x30c   : > { %v3207_v3 = vadd.f32 %v3206_v11, %v12998_v30  ;;  %v9622_v49 = vpop.permute.xlu2 %1734  ;;  %6482 = vmatmul.msk.f32.gmra.mxu3 %vm2554_vm1, %v12999_v57  ;;  %v1979_v54 = vadd.f32 %v1915_v55, %v1595_v61  ;;  %v1212_v11 = vadd.f32 %v1148_v56, %v764_v18  ;;  %v13004_v61 = vld [vmem:[#allocation142_spill] sm:$0xff]  ;;  %v1916_v56 = vsel %vm1852_vm6, 1.0, %v13001_v47 }
 0x30d   : > { %1383 = vperm.xlu1 %6915, %v9092_v32   ;;  %v9646_v32 = vpop.f32.mrf.mxu3  ;;  %v2301_v52 = vsel %vm2237_vm2, 1.0, %v13001_v47 }
 0x30e   : > { %v3380_v30 = vadd.f32 %v9177_v13, %v3207_v3  ;;  %6319 = vmatmul.msk.f32.gmra.mxu1 %vm2960_vm10, %v2362_v9  ;;  %13002 = vst [vmem:[#allocation121_spill] sm:$0xff] %v9646_v32  ;;  %v9654_v3 = vld [vmem:[%s7332_s24 + $0x1d8] sm:$0xff]  ;;  %v2363_v57 = vadd.f32 %v2299_v31, %v1979_v54  ;;  %v1596_v55 = vadd.f32 %v1532_v35, %v1212_v11  ;;  %v1149_v35 = vsel %vm1085_vm7, 1.0, %v13001_v47 }
 0x30f   : > { %6513 = vmatmul.msk.f32.gmra.mxu0 %vm2960_vm10, %v2362_v9  ;;  %v9644_v60 = vpop.permute.xlu1 %1341  ;;  %v9661_v9 = vpop.permute.xlu0 %2124  ;;  %vm2238_vm7 = vcmp.eq.s32.totalorder %v9406_v25, %v8516_v6 }
 0x310   : > { %v3444_v36 = vmax.f32 %v3380_v30, 0.0  ;;  %v9677_v54 = vpop.f32.mrf.mxu0  ;;  %vm1470_vm0 = vcmp.eq.s32.totalorder %v9644_v60, %v8516_v6  ;;  %v2302_v25 = vsel %vm2238_vm7, 1.0, %v13001_v47 }
 0x311   : > { %13007 = vst [vmem:[#allocation86_spill] sm:$0xff] %v9677_v54 }
 0x312   : > { %2193 = vperm.xlu0 %6912, %v9654_v3   ;;  %6367 = vmatmul.msk.f32.gmra.mxu2 %vm3505_vm15, %v3444_v36  ;;  %v13006_v36 = vld [vmem:[#allocation45_spill] sm:$0xff]  ;;  %v9687_v34 = vpop.f32.mrf.mxu2 }
 0x313   : > { %1770 = vperm.xlu2 %6916, %v9134_v59   ;;  %v3209_v37 = vpop.f32.mrf.mxu1  ;;  %vm701_vm8 = vcmp.eq.s32.totalorder %v13006_v36, %v8516_v6  ;;  %v9695_v36 = vld [vmem:[%s7332_s24 + $0x1e0] sm:$0xff] }
 0x314   : > { %v3210_v30 = vadd.f32 %v3209_v37, %v13004_v61  ;;  %6483 = vmatmul.msk.f32.gmra.mxu3 %vm2554_vm1, %v13005_v45  ;;  %v1980_v37 = vadd.f32 %v1916_v56, %v1596_v55  ;;  %v765_v5 = vsel %vm701_vm8, 1.0, %v13001_v47  ;;  %v2300_v61 = vsel %vm2236_vm9, 1.0, %v13001_v47  ;;  %v13009_v55 = vld [vmem:[#allocation94_spill] sm:$0xff] }
 0x315   : > { %v9668_v18 = vpop.permute.xlu2 %1737  ;;  %1386 = vperm.xlu1 %6915, %v9134_v59   ;;  %v9685_v11 = vpop.f32.mrf.mxu3  ;;  %v1213_v45 = vadd.f32 %v1149_v35, %v765_v5  ;;  %vm1086_vm13 = vcmp.eq.s32.totalorder %v13009_v55, %v8516_v6  ;;  %v13011_v35 = vunpack.c.h.bf16 %v8884_v43  ;;  %vm1855_vm9 = vcmp.eq.s32.totalorder %v9538_v19, %v8516_v6 }
 0x316   : > { %v3381_v31 = vadd.f32 %v9177_v13, %v3210_v30  ;;  %6320 = vmatmul.msk.f32.gmra.mxu1 %vm2960_vm10, %v2363_v57  ;;  %13008 = vst [vmem:[#allocation21_spill] sm:$0xff] %v9685_v11  ;;  %v1533_v30 = vsel %vm1469_vm11, 1.0, %v13001_v47  ;;  %v2364_v56 = vadd.f32 %v2300_v61, %v1980_v37  ;;  %v13010_v11 = vld [vmem:[#allocation145_spill] sm:$0xff]  ;;  %v1150_v43 = vsel %vm1086_vm13, 1.0, %v13001_v47 }
 0x317   : > { %6514 = vmatmul.msk.f32.gmra.mxu0 %vm2960_vm10, %v2363_v57  ;;  %v9683_v59 = vpop.permute.xlu1 %1344  ;;  %v9712_v32 = vpop.permute.xlu0 %2127  ;;  %vm2239_vm13 = vcmp.eq.s32.totalorder %v9457_v50, %v8516_v6 }
 0x318   : > { %v3445_v29 = vmax.f32 %v3381_v31, 0.0  ;;  %v1597_v31 = vadd.f32 %v1533_v30, %v1213_v45  ;;  %v1534_v45 = vsel %vm1470_vm0, 1.0, %v13001_v47  ;;  %vm1471_vm6 = vcmp.eq.s32.totalorder %v9683_v59, %v8516_v6 }
 0x319   : > { %vm1856_vm0 = vcmp.eq.s32.totalorder %v9581_v16, %v8516_v6 }
 0x31a   : > { %2196 = vperm.xlu0 %6912, %v9695_v36   ;;  %6368 = vmatmul.msk.f32.gmra.mxu2 %vm3505_vm15, %v3445_v29  ;;  %v13012_v29 = vld [vmem:[#allocation44_spill] sm:$0xff]  ;;  %v1981_v61 = vadd.f32 %v1917_v24, %v1597_v31  ;;  %v9732_v55 = vpop.f32.mrf.mxu2 }
 0x31b   : > { %1773 = vperm.xlu2 %6916, %v9170_v2   ;;  %v3212_v57 = vpop.f32.mrf.mxu1  ;;  %vm702_vm14 = vcmp.eq.s32.totalorder %v13012_v29, %v8516_v6 }
 0x31c   : > { %v3213_v54 = vadd.f32 %v3212_v57, %v13010_v11  ;;  %6484 = vmatmul.msk.f32.gmra.mxu3 %vm2554_vm1, %v13011_v35  ;;  %v766_v60 = vsel %vm702_vm14, 1.0, %v13001_v47  ;;  %v13015_v35 = vld [vmem:[#allocation96_spill] sm:$0xff]  ;;  %v2365_v24 = vadd.f32 %v2301_v52, %v1981_v61 }
 0x31d   : > { %v9707_v5 = vpop.permute.xlu2 %1740  ;;  %1389 = vperm.xlu1 %6915, %v9170_v2   ;;  %v9722_v2 = vpop.f32.mrf.mxu3  ;;  %v1214_v57 = vadd.f32 %v1150_v43, %v766_v60  ;;  %vm1087_vm4 = vcmp.eq.s32.totalorder %v13015_v35, %v8516_v6  ;;  %v1918_v43 = vsel %vm1854_vm3, 1.0, %v13001_v47  ;;  %v1535_v35 = vsel %vm1471_vm6, 1.0, %v13001_v47 }
 0x31e   : > { %v3382_v11 = vadd.f32 %v9177_v13, %v3213_v54  ;;  %6321 = vmatmul.msk.f32.gmra.mxu1 %vm2960_vm10, %v2364_v56  ;;  %13013 = vst [vmem:[#allocation161_spill] sm:$0xff] %v9722_v2  ;;  %v9728_v54 = vpop.f32.mrf.mxu0  ;;  %v1151_v61 = vsel %vm1087_vm4, 1.0, %v13001_v47  ;;  %v13022_v2 = vld [vmem:[#allocation48_spill] sm:$0xff]  ;;  %vm2240_vm4 = vcmp.eq.s32.totalorder %v9505_v40, %v8516_v6  ;;  %v9850_v40 = vld [vmem:[%s12517_s7] ss:$0 sm:$0xff]  ;;  %vm1857_vm6 = vcmp.eq.s32.totalorder %v9622_v49, %v8516_v6 }
 0x31f   : > { %6515 = vmatmul.msk.f32.gmra.mxu0 %vm2960_vm10, %v2364_v56  ;;  %v9720_v37 = vpop.permute.xlu1 %1347  ;;  %13014 = vst [vmem:[#allocation125_spill] sm:$0xff] %v9728_v54  ;;  %v9735_v56 = vld [vmem:[%s7332_s24 + $0x1e8] sm:$0xff]  ;;  %v1598_v29 = vadd.f32 %v1534_v45, %v1214_v57  ;;  %vm704_vm11 = vcmp.eq.s32.totalorder %v13022_v2, %v8516_v6 }
 0x320   : > { %v3446_v30 = vmax.f32 %v3382_v11, 0.0  ;;  %v13016_v11 = vld [vmem:[#allocation147_spill] sm:$0xff]  ;;  %vm1472_vm12 = vcmp.eq.s32.totalorder %v9720_v37, %v8516_v6 }
 0x321   : > { %v1982_v52 = vadd.f32 %v1918_v43, %v1598_v29 }
 0x322   : > { %2199 = vperm.xlu0 %6912, %v9735_v56   ;;  %6369 = vmatmul.msk.f32.gmra.mxu2 %vm3505_vm15, %v3446_v30  ;;  %v13017_v30 = vld [vmem:[#allocation34_spill] sm:$0xff] }
 0x323   : > { %1776 = vperm.xlu2 %6916, %v9212_v58   ;;  %v3215_v31 = vpop.f32.mrf.mxu1  ;;  %vm703_vm5 = vcmp.eq.s32.totalorder %v13017_v30, %v8516_v6  ;;  %v2366_v29 = vadd.f32 %v2302_v25, %v1982_v52  ;;  %v1919_v52 = vsel %vm1855_vm9, 1.0, %v13001_v47  ;;  %vm2241_vm9 = vcmp.eq.s32.totalorder %v9562_v15, %v8516_v6 }
 0x324   : > { %v3216_v48 = vadd.f32 %v3215_v31, %v13016_v11  ;;  %v767_v59 = vsel %vm703_vm5, 1.0, %v13001_v47  ;;  %v2305_v15 = vsel %vm2241_vm9, 1.0, %v13001_v47 }
 0x325   : > { %v9745_v60 = vpop.permute.xlu2 %1743  ;;  %1392 = vperm.xlu1 %6915, %v9212_v58   ;;  %v9762_v58 = vpop.permute.xlu0 %2130  ;;  %v1215_v11 = vadd.f32 %v1151_v61, %v767_v59  ;;  %v13021_v59 = vld [vmem:[#allocation151_spill] sm:$0xff] }
 0x326   : > { %v3383_v54 = vadd.f32 %v9177_v13, %v3216_v48  ;;  %6322 = vmatmul.msk.f32.gmra.mxu1 %vm2960_vm10, %v2365_v24  ;;  %v9767_v48 = vld [vmem:[%s7332_s24 + $0x1f0] sm:$0xff]  ;;  %v9774_v30 = vpop.f32.mrf.mxu0  ;;  %v9779_v61 = vpop.f32.mrf.mxu2  ;;  %vm1860_vm9 = vcmp.eq.s32.totalorder %v9745_v60, %v8516_v6 }
 0x327   : > { %6516 = vmatmul.msk.f32.gmra.mxu0 %vm2960_vm10, %v2365_v24  ;;  %v9756_v45 = vpop.permute.xlu1 %1350  ;;  %v9758_v57 = vpop.f32.mrf.mxu3  ;;  %v13019_v24 = vld [vmem:[#allocation3_spill] sm:$0xff]  ;;  %13020 = vst [vmem:[#allocation39_spill] sm:$0xff] %v9774_v30  ;;  %v1599_v43 = vadd.f32 %v1535_v35, %v1215_v11  ;;  %v1536_v11 = vsel %vm1472_vm12, 1.0, %v13001_v47 }
 0x328   : > { %13018 = vst [vmem:[#allocation19_spill] sm:$0xff] %v9758_v57  ;;  %v3447_v31 = vmax.f32 %v3383_v54, 0.0  ;;  %vm1088_vm8 = vcmp.eq.s32.totalorder %v13019_v24, %v8516_v6  ;;  %vm1473_vm3 = vcmp.eq.s32.totalorder %v9756_v45, %v8516_v6 }
 0x329   : > { %v1152_v19 = vsel %vm1088_vm8, 1.0, %v13001_v47  ;;  %v1983_v2 = vadd.f32 %v1919_v52, %v1599_v43 }
 0x32a   : > { %2202 = vperm.xlu0 %6912, %v9767_v48   ;;  %6370 = vmatmul.msk.f32.gmra.mxu2 %vm3505_vm15, %v3447_v31 }
 0x32b   : > { %1779 = vperm.xlu2 %6916, %v9248_v41   ;;  %v3218_v54 = vpop.f32.mrf.mxu1 }
 0x32c   : > { %v3219_v57 = vadd.f32 %v3218_v54, %v13021_v59  ;;  %v13024_v54 = vld [vmem:[#allocation97_spill] sm:$0xff]  ;;  %v13025_v59 = vld [vmem:[#allocation156_spill] sm:$0xff] }
 0x32d   : > { %v9782_v31 = vpop.permute.xlu2 %1746  ;;  %1395 = vperm.xlu1 %6915, %v9248_v41   ;;  %v9805_v24 = vpop.permute.xlu0 %2133  ;;  %vm1089_vm14 = vcmp.eq.s32.totalorder %v13024_v54, %v8516_v6 }
 0x32e   : > { %v3384_v30 = vadd.f32 %v9177_v13, %v3219_v57  ;;  %6323 = vmatmul.msk.f32.gmra.mxu1 %vm2960_vm10, %v2366_v29  ;;  %v768_v57 = vsel %vm704_vm11, 1.0, %v13001_v47  ;;  %vm4398_vm11 = vcmask 130048  }
 0x32f   : > { %6517 = vmatmul.msk.f32.gmra.mxu0 %vm2960_vm10, %v2366_v29  ;;  %v9797_v41 = vpop.permute.xlu1 %1353  ;;  %v9801_v35 = vpop.f32.mrf.mxu3  ;;  %v1216_v25 = vadd.f32 %v1152_v19, %v768_v57  ;;  %v2303_v29 = vsel %vm2239_vm13, 1.0, %v13001_v47  ;;  %vm1858_vm13 = vcmp.eq.s32.totalorder %v9668_v18, %v8516_v6 }
 0x330   : > { %v3448_v37 = vmax.f32 %v3384_v30, 0.0  ;;  %13023 = vst [vmem:[#allocation167_spill] sm:$0xff] %v9801_v35  ;;  %v2367_v30 = vadd.f32 %v2303_v29, %v1983_v2  ;;  %v9815_v19 = vpop.f32.mrf.mxu0  ;;  %v9824_v35 = vpop.f32.mrf.mxu2  ;;  %v1153_v2 = vsel %vm1089_vm14, 1.0, %v13001_v47  ;;  %v1537_v29 = vsel %vm1473_vm3, 1.0, %v13001_v47 }
 0x331   : > { %v1600_v43 = vadd.f32 %v1536_v11, %v1216_v25  ;;  %13026 = vst [vmem:[#allocation130_spill] sm:$0xff] %v9815_v19  ;;  %v1920_v11 = vsel %vm1856_vm0, 1.0, %v13001_v47  ;;  %vm1474_vm8 = vcmp.eq.s32.totalorder %v9797_v41, %v8516_v6  ;;  %v13033_v19 = vld [vmem:[#allocation88_spill] sm:$0xff] }
 0x332   : > { %6371 = vmatmul.msk.f32.gmra.mxu2 %vm3505_vm15, %v3448_v37  ;;  %v13027_v37 = vld [vmem:[#allocation47_spill] sm:$0xff]  ;;  %vm1091_vm12 = vcmp.eq.s32.totalorder %v13033_v19, %v8516_v6 }
 0x333   : > { %1782 = vperm.xlu2 %6916, %v9282_v63   ;;  %v3221_v50 = vpop.f32.mrf.mxu1  ;;  %vm705_vm2 = vcmp.eq.s32.totalorder %v13027_v37, %v8516_v6  ;;  %v1984_v45 = vadd.f32 %v1920_v11, %v1600_v43  ;;  %v1155_v18 = vsel %vm1091_vm12, 1.0, %v13001_v47 }
 0x334   : > { %v3222_v52 = vadd.f32 %v3221_v50, %v13025_v59  ;;  %v13029_v59 = vld [vmem:[#allocation101_spill] sm:$0xff] }
 0x335   : > { %v9817_v57 = vpop.permute.xlu2 %1749  ;;  %1398 = vperm.xlu1 %6915, %v9282_v63   ;;  %vm1090_vm5 = vcmp.eq.s32.totalorder %v13029_v59, %v8516_v6  ;;  %v9852_v43 = vpop.permute.xlu0 %2136 }
 0x336   : > { %v3385_v16 = vadd.f32 %v9177_v13, %v3222_v52  ;;  %6324 = vmatmul.msk.f32.gmra.mxu1 %vm2960_vm10, %v2367_v30  ;;  %v769_v13 = vsel %vm705_vm2, 1.0, %v13001_v47  ;;  %vm2242_vm2 = vcmp.eq.s32.totalorder %v9605_v53, %v8516_v6 }
 0x337   : > { %6518 = vmatmul.msk.f32.gmra.mxu0 %vm2960_vm10, %v2367_v30  ;;  %v9834_v63 = vpop.permute.xlu1 %1356  ;;  %v1217_v50 = vadd.f32 %v1153_v2, %v769_v13  ;;  %v9841_v54 = vpop.f32.mrf.mxu3  ;;  %v2304_v30 = vsel %vm2240_vm4, 1.0, %v13001_v47  ;;  %v13030_v2 = vld [vmem:[#allocation160_spill] sm:$0xff]  ;;  %v13031_v13 = vld [vmem:[#allocation37_spill] sm:$0xff]  ;;  %vm1859_vm4 = vcmp.eq.s32.totalorder %v9707_v5, %v8516_v6 }
 0x338   : > { %v3449_v25 = vmax.f32 %v3385_v16, 0.0  ;;  %13028 = vst [vmem:[#allocation87_spill] sm:$0xff] %v9841_v54  ;;  %v2368_v37 = vadd.f32 %v2304_v30, %v1984_v45  ;;  %vm706_vm7 = vcmp.eq.s32.totalorder %v13031_v13, %v8516_v6  ;;  %v9867_v54 = vld [vmem:[%s12515_s5] ss:$0 sm:$0xff]  ;;  %vm1475_vm0 = vcmp.eq.s32.totalorder %v9834_v63, %v8516_v6 }
 0x339   : > { %v1601_v16 = vadd.f32 %v1537_v29, %v1217_v50  ;;  %v1921_v29 = vsel %vm1857_vm6, 1.0, %v13001_v47  ;;  %v9876_v50 = vpop.f32.mrf.mxu0  ;;  %v770_v59 = vsel %vm706_vm7, 1.0, %v13001_v47  ;;  %v1539_v19 = vsel %vm1475_vm0, 1.0, %v13001_v47 }
 0x33a   : > { %6372 = vmatmul.msk.f32.gmra.mxu2 %vm3505_vm15, %v3449_v25  ;;  %13032 = vst [vmem:[#allocation38_spill] sm:$0xff] %v9876_v50  ;;  %vm2243_vm7 = vcmp.eq.s32.totalorder %v9661_v9, %v8516_v6 }
 0x33b   : > { %1785 = vperm.xlu2 %6916, %v9320_v0   ;;  %v3224_v52 = vpop.f32.mrf.mxu1 }
 0x33c   : > { %v3225_v11 = vadd.f32 %v3224_v52, %v13030_v2  ;;  %v1985_v2 = vadd.f32 %v1921_v29, %v1601_v16 }
 0x33d   : > { %v9857_v25 = vpop.permute.xlu2 %1752  ;;  %1401 = vperm.xlu1 %6915, %v9320_v0   ;;  %v3715_v45 = vpop.f32.mrf.mxu2  ;;  %v1154_v0 = vsel %vm1090_vm5, 1.0, %v13001_v47 }
 0x33e   : > { %v3386_v49 = vadd.f32 %v9867_v54, %v3225_v11  ;;  %6325 = vmatmul.msk.f32.gmra.mxu1 %vm2960_vm10, %v2368_v37  ;;  %v3716_v30 = vadd.f32 %v9850_v40, %v3715_v45  ;;  %v1538_v45 = vsel %vm1474_vm8, 1.0, %v13001_v47  ;;  %v2369_v13 = vadd.f32 %v2305_v15, %v1985_v2 }
 0x33f   : > { %6519 = vmatmul.msk.f32.gmra.mxu0 %vm2960_vm10, %v2368_v37  ;;  %v9880_v52 = vpop.permute.xlu1 %1359  ;;  %v1218_v37 = vadd.f32 %v1154_v0, %v770_v59  ;;  %v9901_v0 = vpop.f32.mrf.mxu3 }
 0x340   : > { %v3450_v11 = vmax.f32 %v3386_v49, 0.0  ;;  %v3907_v50 = vmax.f32 %v3716_v30, 0.0  ;;  %v13034_v49 = vld [vmem:[#allocation165_spill] sm:$0xff]  ;;  %13035 = vst [vmem:[#allocation153_spill] sm:$0xff] %v9901_v0  ;;  %v13036_v30 = vld [vmem:[#allocation51_spill] sm:$0xff]  ;;  %vm1476_vm6 = vcmp.eq.s32.totalorder %v9880_v52, %v8516_v6 }
 0x341   : > { %v1602_v41 = vadd.f32 %v1538_v45, %v1218_v37  ;;  %vm707_vm14 = vcmp.eq.s32.totalorder %v13036_v30, %v8516_v6 }
 0x342   : > { %6373 = vmatmul.msk.f32.gmra.mxu2 %vm3505_vm15, %v3450_v11  ;;  %6550 = vmatmul.msk.f32.vlgmr.msrb.gmra.mxu3 %vm4398_vm11, %v3907_v50  ;;  %v9906_v11 = vpop.permute.xlu0 %2139 }
 0x343   : > { %1788 = vperm.xlu2 %6916, %v9367_v4   ;;  %v3227_v16 = vpop.f32.mrf.mxu1 }
 0x344   : > { %v3228_v29 = vadd.f32 %v3227_v16, %v13034_v49  ;;  %v771_v16 = vsel %vm707_vm14, 1.0, %v13001_v47  ;;  %v9926_v49 = vpop.f32.mrf.mxu0  ;;  %vm2244_vm14 = vcmp.eq.s32.totalorder %v9712_v32, %v8516_v6 }
 0x345   : > { %1404 = vperm.xlu1 %6915, %v9367_v4   ;;  %v3718_v59 = vpop.f32.mrf.mxu2  ;;  %v1922_v4 = vsel %vm1858_vm13, 1.0, %v13001_v47  ;;  %v9917_v2 = vpop.permute.xlu2 %1755  ;;  %v1219_v30 = vadd.f32 %v1155_v18, %v771_v16  ;;  %v13039_v18 = vld [vmem:[#allocation50_spill] sm:$0xff] }
 0x346   : > { %v3387_v50 = vadd.f32 %v9867_v54, %v3228_v29  ;;  %6326 = vmatmul.msk.f32.gmra.mxu1 %vm2960_vm10, %v2369_v13  ;;  %v3719_v45 = vadd.f32 %v9850_v40, %v3718_v59  ;;  %v1986_v63 = vadd.f32 %v1922_v4, %v1602_v41  ;;  %v13037_v59 = vld [vmem:[#allocation102_spill] sm:$0xff]  ;;  %v13038_v4 = vld [vmem:[#allocation169_spill] sm:$0xff]  ;;  %vm708_vm5 = vcmp.eq.s32.totalorder %v13039_v18, %v8516_v6 }
 0x347   : > { %6520 = vmatmul.msk.f32.gmra.mxu0 %vm2960_vm10, %v2369_v13  ;;  %v9921_v37 = vpop.permute.xlu1 %1362  ;;  %vm1092_vm3 = vcmp.eq.s32.totalorder %v13037_v59, %v8516_v6  ;;  %v2306_v13 = vsel %vm2242_vm2, 1.0, %v13001_v47  ;;  %v1540_v59 = vsel %vm1476_vm6, 1.0, %v13001_v47  ;;  %vm1861_vm2 = vcmp.eq.s32.totalorder %v9782_v31, %v8516_v6 }
 0x348   : > { %v3451_v15 = vmax.f32 %v3387_v50, 0.0  ;;  %v3908_v29 = vmax.f32 %v3719_v45, 0.0  ;;  %v2370_v41 = vadd.f32 %v2306_v13, %v1986_v63  ;;  %v1603_v50 = vadd.f32 %v1539_v19, %v1219_v30 }
 0x349   : > { %v1156_v5 = vsel %vm1092_vm3, 1.0, %v13001_v47  ;;  %vm1477_vm13 = vcmp.eq.s32.totalorder %v9921_v37, %v8516_v6  ;;  %v1925_v31 = vsel %vm1861_vm2, 1.0, %v13001_v47 }
 0x34a   : > { %6374 = vmatmul.msk.f32.gmra.mxu2 %vm3505_vm15, %v3451_v15  ;;  %6551 = vmatmul.msk.f32.gmra.mxu3 %vm4398_vm11, %v3908_v29  ;;  %v9945_v29 = vpop.f32.mrf.mxu3  ;;  %v9958_v52 = vpop.permute.xlu0 %2142 }
 0x34b   : > { %1791 = vperm.xlu2 %6916, %v9411_v26   ;;  %v3230_v53 = vpop.f32.mrf.mxu1  ;;  %13040 = vst [vmem:[#allocation133_spill] sm:$0xff] %v9945_v29 }
 0x34c   : > { %v3231_v45 = vadd.f32 %v3230_v53, %v13038_v4  ;;  %v772_v53 = vsel %vm708_vm5, 1.0, %v13001_v47  ;;  %v9968_v9 = vpop.f32.mrf.mxu0  ;;  %vm2245_vm5 = vcmp.eq.s32.totalorder %v9762_v58, %v8516_v6 }
 0x34d   : > { %1407 = vperm.xlu1 %6915, %v9411_v26   ;;  %v3721_v16 = vpop.f32.mrf.mxu2  ;;  %v1923_v26 = vsel %vm1859_vm4, 1.0, %v13001_v47  ;;  %v9962_v4 = vpop.permute.xlu2 %1758  ;;  %v1220_v18 = vadd.f32 %v1156_v5, %v772_v53 }
 0x34e   : > { %v3388_v15 = vadd.f32 %v9867_v54, %v3231_v45  ;;  %6327 = vmatmul.msk.f32.gmra.mxu1 %vm2960_vm10, %v2370_v41  ;;  %v3722_v63 = vadd.f32 %v9850_v40, %v3721_v16  ;;  %v1987_v30 = vadd.f32 %v1923_v26, %v1603_v50  ;;  %v2307_v16 = vsel %vm2243_vm7, 1.0, %v13001_v47 }
 0x34f   : > { %6521 = vmatmul.msk.f32.gmra.mxu0 %vm2960_vm10, %v2370_v41  ;;  %v9954_v19 = vpop.permute.xlu1 %1365  ;;  %v13041_v41 = vld [vmem:[#allocation105_spill] sm:$0xff]  ;;  %v1604_v26 = vadd.f32 %v1540_v59, %v1220_v18  ;;  %vm1862_vm7 = vcmp.eq.s32.totalorder %v9817_v57, %v8516_v6 }
 0x350   : > { %v3452_v13 = vmax.f32 %v3388_v15, 0.0  ;;  %v3909_v45 = vmax.f32 %v3722_v63, 0.0  ;;  %vm1093_vm8 = vcmp.eq.s32.totalorder %v13041_v41, %v8516_v6  ;;  %v2371_v15 = vadd.f32 %v2307_v16, %v1987_v30  ;;  %v13042_v63 = vld [vmem:[#allocation40_spill] sm:$0xff] }
 0x351   : > { %vm709_vm12 = vcmp.eq.s32.totalorder %v13042_v63, %v8516_v6  ;;  %v1157_v60 = vsel %vm1093_vm8, 1.0, %v13001_v47  ;;  %v1541_v41 = vsel %vm1477_vm13, 1.0, %v13001_v47  ;;  %v2308_v63 = vsel %vm2244_vm14, 1.0, %v13001_v47 }
 0x352   : > { %6375 = vmatmul.msk.f32.gmra.mxu2 %vm3505_vm15, %v3452_v13  ;;  %6552 = vmatmul.msk.f32.gmra.mxu3 %vm4398_vm11, %v3909_v45  ;;  %v9993_v45 = vpop.f32.mrf.mxu3  ;;  %v773_v18 = vsel %vm709_vm12, 1.0, %v13001_v47  ;;  %vm1478_vm4 = vcmp.eq.s32.totalorder %v9954_v19, %v8516_v6  ;;  %v1926_v57 = vsel %vm1862_vm7, 1.0, %v13001_v47  ;;  %vm2246_vm12 = vcmp.eq.s32.totalorder %v9805_v24, %v8516_v6 }
 0x353   : > { %1794 = vperm.xlu2 %6916, %v9450_v42   ;;  %v3233_v50 = vpop.f32.mrf.mxu1  ;;  %13043 = vst [vmem:[#allocation89_spill] sm:$0xff] %v9993_v45  ;;  %vm1863_vm14 = vcmp.eq.s32.totalorder %v9857_v25, %v8516_v6  ;;  %v13158_v45 = vld [vmem:[#allocation81_spill] sm:$0xff] }
 0x354   : > { %v3234_v5 = vadd.f32 %v3233_v50, %v8554_v39  ;;  %v1924_v39 = vsel %vm1860_vm9, 1.0, %v13001_v47  ;;  %v1221_v50 = vadd.f32 %v1157_v60, %v773_v18 }
 0x355   : > { %1410 = vperm.xlu1 %6915, %v9450_v42   ;;  %v3724_v53 = vpop.f32.mrf.mxu2  ;;  %v1988_v37 = vadd.f32 %v1924_v39, %v1604_v26  ;;  %v10003_v32 = vpop.permute.xlu2 %1761 }
 0x356   : > { %v3389_v13 = vadd.f32 %v9867_v54, %v3234_v5  ;;  %6328 = vmatmul.msk.f32.gmra.mxu1 %vm2960_vm10, %v2371_v15  ;;  %v3725_v42 = vadd.f32 %v9850_v40, %v3724_v53  ;;  %v9997_v5 = vpop.permute.xlu0 %2145  ;;  %v1605_v53 = vadd.f32 %v1541_v41, %v1221_v50  ;;  %v10010_v39 = vpop.f32.mrf.mxu0  ;;  %v1542_v50 = vsel %vm1478_vm4, 1.0, %v13001_v47 }
 0x357   : > { %6522 = vmatmul.msk.f32.gmra.mxu0 %vm2960_vm10, %v2371_v15  ;;  %v9989_v30 = vpop.permute.xlu1 %1368  ;;  %v13044_v15 = vld [vmem:[#allocation92_spill] sm:$0xff] }
 0x358   : > { %v3453_v59 = vmax.f32 %v3389_v13, 0.0  ;;  %v3910_v16 = vmax.f32 %v3725_v42, 0.0  ;;  %vm1094_vm0 = vcmp.eq.s32.totalorder %v13044_v15, %v8516_v6  ;;  %v2372_v13 = vadd.f32 %v2308_v63, %v1988_v37  ;;  %v13045_v42 = vld [vmem:[#allocation54_spill] sm:$0xff] }
 0x359   : > { %vm710_vm3 = vcmp.eq.s32.totalorder %v13045_v42, %v8516_v6  ;;  %v1989_v19 = vadd.f32 %v1925_v31, %v1605_v53  ;;  %v13048_v31 = vld [vmem:[#allocation53_spill] sm:$0xff]  ;;  %vm1479_vm9 = vcmp.eq.s32.totalorder %v9989_v30, %v8516_v6 }
 0x35a   : > { %6376 = vmatmul.msk.f32.gmra.mxu2 %vm3505_vm15, %v3453_v59  ;;  %6553 = vmatmul.msk.f32.gmra.mxu3 %vm4398_vm11, %v3910_v16  ;;  %v774_v16 = vsel %vm710_vm3, 1.0, %v13001_v47  ;;  %vm711_vm8 = vcmp.eq.s32.totalorder %v13048_v31, %v8516_v6  ;;  %vm2247_vm3 = vcmp.eq.s32.totalorder %v9852_v43, %v8516_v6 }
 0x35b   : > { %1797 = vperm.xlu2 %6916, %v9488_v44   ;;  %v3236_v26 = vpop.f32.mrf.mxu1 }
 0x35c   : > { %v3237_v60 = vadd.f32 %v3236_v26, %v8608_v12  ;;  %v1158_v12 = vsel %vm1094_vm0, 1.0, %v13001_v47  ;;  %v10033_v26 = vpop.f32.mrf.mxu3 }
 0x35d   : > { %1413 = vperm.xlu1 %6915, %v9488_v44   ;;  %v3727_v18 = vpop.f32.mrf.mxu2  ;;  %v1222_v15 = vadd.f32 %v1158_v12, %v774_v16  ;;  %13046 = vst [vmem:[#allocation26_spill] sm:$0xff] %v10033_v26  ;;  %v10045_v12 = vpop.permute.xlu2 %1764 }
 0x35e   : > { %v3390_v59 = vadd.f32 %v9867_v54, %v3237_v60  ;;  %6329 = vmatmul.msk.f32.gmra.mxu1 %vm2960_vm10, %v2372_v13  ;;  %v3728_v44 = vadd.f32 %v9850_v40, %v3727_v18  ;;  %v13047_v60 = vld [vmem:[#allocation106_spill] sm:$0xff]  ;;  %v10040_v53 = vpop.permute.xlu0 %2148 }
 0x35f   : > { %6523 = vmatmul.msk.f32.gmra.mxu0 %vm2960_vm10, %v2372_v13  ;;  %v10026_v37 = vpop.permute.xlu1 %1371  ;;  %vm1095_vm6 = vcmp.eq.s32.totalorder %v13047_v60, %v8516_v6  ;;  %v2309_v13 = vsel %vm2245_vm5, 1.0, %v13001_v47  ;;  %vm1864_vm5 = vcmp.eq.s32.totalorder %v9917_v2, %v8516_v6 }
 0x360   : > { %v3454_v41 = vmax.f32 %v3390_v59, 0.0  ;;  %v3911_v63 = vmax.f32 %v3728_v44, 0.0  ;;  %v2373_v42 = vadd.f32 %v2309_v13, %v1989_v19  ;;  %v1606_v59 = vadd.f32 %v1542_v50, %v1222_v15  ;;  %v10059_v19 = vpop.f32.mrf.mxu0 }
 0x361   : > { %v1543_v15 = vsel %vm1479_vm9, 1.0, %v13001_v47  ;;  %vm1480_vm2 = vcmp.eq.s32.totalorder %v10026_v37, %v8516_v6 }
 0x362   : > { %6377 = vmatmul.msk.f32.gmra.mxu2 %vm3505_vm15, %v3454_v41  ;;  %6554 = vmatmul.msk.f32.gmra.mxu3 %vm4398_vm11, %v3911_v63  ;;  %v1990_v30 = vadd.f32 %v1926_v57, %v1606_v59  ;;  %v775_v63 = vsel %vm711_vm8, 1.0, %v13001_v47  ;;  %vm2248_vm8 = vcmp.eq.s32.totalorder %v9906_v11, %v8516_v6 }
 0x363   : > { %1800 = vperm.xlu2 %6916, %v9529_v21   ;;  %v3239_v58 = vpop.f32.mrf.mxu1 }
 0x364   : > { %v3240_v18 = vadd.f32 %v3239_v58, %v8660_v28  ;;  %v1159_v28 = vsel %vm1095_vm6, 1.0, %v13001_v47  ;;  %v13049_v58 = vld [vmem:[#allocation110_spill] sm:$0xff] }
 0x365   : > { %1416 = vperm.xlu1 %6915, %v9529_v21   ;;  %v3730_v41 = vpop.f32.mrf.mxu2  ;;  %v1223_v13 = vadd.f32 %v1159_v28, %v775_v63  ;;  %vm1096_vm13 = vcmp.eq.s32.totalorder %v13049_v58, %v8516_v6  ;;  %v10094_v25 = vpop.permute.xlu2 %1767 }
 0x366   : > { %v3391_v44 = vadd.f32 %v9867_v54, %v3240_v18  ;;  %6330 = vmatmul.msk.f32.gmra.mxu1 %vm2960_vm10, %v2373_v42  ;;  %v3731_v21 = vadd.f32 %v9850_v40, %v3730_v41  ;;  %v13051_v41 = vld [vmem:[#allocation43_spill] sm:$0xff]  ;;  %v10083_v28 = vpop.permute.xlu0 %2151 }
 0x367   : > { %6524 = vmatmul.msk.f32.gmra.mxu0 %vm2960_vm10, %v2373_v42  ;;  %v10063_v16 = vpop.permute.xlu1 %1374  ;;  %v2310_v42 = vsel %vm2246_vm12, 1.0, %v13001_v47  ;;  %v1607_v18 = vadd.f32 %v1543_v15, %v1223_v13  ;;  %vm712_vm0 = vcmp.eq.s32.totalorder %v13051_v41, %v8516_v6  ;;  %v1544_v13 = vsel %vm1480_vm2, 1.0, %v13001_v47 }
 0x368   : > { %v3455_v50 = vmax.f32 %v3391_v44, 0.0  ;;  %v3912_v60 = vmax.f32 %v3731_v21, 0.0  ;;  %v2374_v59 = vadd.f32 %v2310_v42, %v1990_v30  ;;  %v10078_v44 = vpop.f32.mrf.mxu3  ;;  %v776_v15 = vsel %vm712_vm0, 1.0, %v13001_v47 }
 0x369   : > { %13050 = vst [vmem:[#allocation166_spill] sm:$0xff] %v10078_v44  ;;  %vm1481_vm7 = vcmp.eq.s32.totalorder %v10063_v16, %v8516_v6  ;;  %vm1865_vm12 = vcmp.eq.s32.totalorder %v9962_v4, %v8516_v6  ;;  %vm2249_vm0 = vcmp.eq.s32.totalorder %v9958_v52, %v8516_v6  ;;  %v13151_v44 = vld [vmem:[#allocation80_spill] sm:$0xff] }
 0x36a   : > { %6378 = vmatmul.msk.f32.gmra.mxu2 %vm3505_vm15, %v3455_v50  ;;  %6555 = vmatmul.msk.f32.gmra.mxu3 %vm4398_vm11, %v3912_v60  ;;  %v10103_v60 = vpop.f32.mrf.mxu0  ;;  %v13155_v26 = vunpack.c.h.bf16 %v13151_v44 }
 0x36b   : > { %1803 = vperm.xlu2 %6916, %v9571_v1   ;;  %v3242_v24 = vpop.f32.mrf.mxu1  ;;  %13052 = vst [vmem:[#allocation137_spill] sm:$0xff] %v10103_v60 }
 0x36c   : > { %v3243_v31 = vadd.f32 %v3242_v24, %v8703_v27  ;;  %v1160_v27 = vsel %vm1096_vm13, 1.0, %v13001_v47  ;;  %v13053_v24 = vld [vmem:[#allocation95_spill] sm:$0xff] }
 0x36d   : > { %1419 = vperm.xlu1 %6915, %v9571_v1   ;;  %v3733_v21 = vpop.f32.mrf.mxu2  ;;  %v1927_v1 = vsel %vm1863_vm14, 1.0, %v13001_v47  ;;  %v1224_v42 = vadd.f32 %v1160_v27, %v776_v15  ;;  %vm1097_vm4 = vcmp.eq.s32.totalorder %v13053_v24, %v8516_v6 }
 0x36e   : > { %v3392_v57 = vadd.f32 %v9867_v54, %v3243_v31  ;;  %6331 = vmatmul.msk.f32.gmra.mxu1 %vm2960_vm10, %v2374_v59  ;;  %v3734_v30 = vadd.f32 %v9850_v40, %v3733_v21  ;;  %v1991_v37 = vadd.f32 %v1927_v1, %v1607_v18  ;;  %v10135_v16 = vpop.permute.xlu0 %2154 }
 0x36f   : > { %6525 = vmatmul.msk.f32.gmra.mxu0 %vm2960_vm10, %v2374_v59  ;;  %v10098_v50 = vpop.permute.xlu1 %1377  ;;  %v2311_v59 = vsel %vm2247_vm3, 1.0, %v13001_v47  ;;  %v1608_v31 = vadd.f32 %v1544_v13, %v1224_v42  ;;  %v1545_v13 = vsel %vm1481_vm7, 1.0, %v13001_v47  ;;  %vm1866_vm3 = vcmp.eq.s32.totalorder %v10003_v32, %v8516_v6 }
 0x370   : > { %v3456_v63 = vmax.f32 %v3392_v57, 0.0  ;;  %v3913_v58 = vmax.f32 %v3734_v30, 0.0  ;;  %v2375_v18 = vadd.f32 %v2311_v59, %v1991_v37  ;;  %v13054_v57 = vld [vmem:[#allocation57_spill] sm:$0xff]  ;;  %v10122_v1 = vpop.f32.mrf.mxu3  ;;  %v13056_v59 = vld [vmem:[#allocation111_spill] sm:$0xff]  ;;  %vm1482_vm14 = vcmp.eq.s32.totalorder %v10098_v50, %v8516_v6 }
 0x371   : > { %vm713_vm6 = vcmp.eq.s32.totalorder %v13054_v57, %v8516_v6  ;;  %13055 = vst [vmem:[#allocation24_spill] sm:$0xff] %v10122_v1  ;;  %vm1098_vm9 = vcmp.eq.s32.totalorder %v13056_v59, %v8516_v6  ;;  %v13060_v59 = vld [vmem:[#allocation114_spill] sm:$0xff]  ;;  %v1930_v32 = vsel %vm1866_vm3, 1.0, %v13001_v47 }
 0x372   : > { %6379 = vmatmul.msk.f32.gmra.mxu2 %vm3505_vm15, %v3456_v63  ;;  %6556 = vmatmul.msk.f32.gmra.mxu3 %vm4398_vm11, %v3913_v58  ;;  %v777_v15 = vsel %vm713_vm6, 1.0, %v13001_v47  ;;  %v10139_v58 = vpop.permute.xlu2 %1770  ;;  %v10145_v11 = vpop.f32.mrf.mxu0  ;;  %v1162_v4 = vsel %vm1098_vm9, 1.0, %v13001_v47  ;;  %vm1099_vm2 = vcmp.eq.s32.totalorder %v13060_v59, %v8516_v6  ;;  %vm2250_vm6 = vcmp.eq.s32.totalorder %v9997_v5, %v8516_v6 }
 0x373   : > { %1806 = vperm.xlu2 %6916, %v9610_v20   ;;  %v3245_v43 = vpop.f32.mrf.mxu1  ;;  %13057 = vst [vmem:[#allocation42_spill] sm:$0xff] %v10145_v11  ;;  %v2314_v59 = vsel %vm2250_vm6, 1.0, %v13001_v47  ;;  %vm1869_vm6 = vcmp.eq.s32.totalorder %v10139_v58, %v8516_v6 }
 0x374   : > { %v3246_v41 = vadd.f32 %v3245_v43, %v8746_v46  ;;  %v1161_v46 = vsel %vm1097_vm4, 1.0, %v13001_v47  ;;  %v2312_v43 = vsel %vm2248_vm8, 1.0, %v13001_v47  ;;  %vm1867_vm8 = vcmp.eq.s32.totalorder %v10045_v12, %v8516_v6 }
 0x375   : > { %1422 = vperm.xlu1 %6915, %v9610_v20   ;;  %v3736_v27 = vpop.f32.mrf.mxu2  ;;  %v1928_v20 = vsel %vm1864_vm5, 1.0, %v13001_v47  ;;  %v1225_v24 = vadd.f32 %v1161_v46, %v777_v15  ;;  %v1546_v15 = vsel %vm1482_vm14, 1.0, %v13001_v47  ;;  %v1931_v12 = vsel %vm1867_vm8, 1.0, %v13001_v47 }
 0x376   : > { %v3393_v21 = vadd.f32 %v9867_v54, %v3246_v41  ;;  %6332 = vmatmul.msk.f32.gmra.mxu1 %vm2960_vm10, %v2375_v18  ;;  %v3737_v2 = vadd.f32 %v9850_v40, %v3736_v27  ;;  %v1992_v37 = vadd.f32 %v1928_v20, %v1608_v31  ;;  %v1933_v58 = vsel %vm1869_vm6, 1.0, %v13001_v47 }
 0x377   : > { %6526 = vmatmul.msk.f32.gmra.mxu0 %vm2960_vm10, %v2375_v18  ;;  %v10131_v30 = vpop.permute.xlu1 %1380  ;;  %v1609_v41 = vadd.f32 %v1545_v13, %v1225_v24  ;;  %v10174_v24 = vpop.permute.xlu0 %2157 }
 0x378   : > { %v3457_v63 = vmax.f32 %v3393_v21, 0.0  ;;  %v3914_v42 = vmax.f32 %v3737_v2, 0.0  ;;  %v2376_v31 = vadd.f32 %v2312_v43, %v1992_v37  ;;  %v13058_v21 = vld [vmem:[#allocation56_spill] sm:$0xff]  ;;  %v10170_v37 = vpop.f32.mrf.mxu3  ;;  %v2313_v43 = vsel %vm2249_vm0, 1.0, %v13001_v47 }
 0x379   : > { %vm714_vm13 = vcmp.eq.s32.totalorder %v13058_v21, %v8516_v6  ;;  %13059 = vst [vmem:[#allocation170_spill] sm:$0xff] %v10170_v37  ;;  %vm1483_vm5 = vcmp.eq.s32.totalorder %v10131_v30, %v8516_v6  ;;  %vm1868_vm0 = vcmp.eq.s32.totalorder %v10094_v25, %v8516_v6  ;;  %v13144_v37 = vld [vmem:[#allocation77_spill] sm:$0xff] }
 0x37a   : > { %6380 = vmatmul.msk.f32.gmra.mxu2 %vm3505_vm15, %v3457_v63  ;;  %6557 = vmatmul.msk.f32.gmra.mxu3 %vm4398_vm11, %v3914_v42  ;;  %v778_v63 = vsel %vm714_vm13, 1.0, %v13001_v47  ;;  %v10180_v52 = vpop.permute.xlu2 %1773  ;;  %v10187_v21 = vpop.f32.mrf.mxu0  ;;  %vm2251_vm13 = vcmp.eq.s32.totalorder %v10040_v53, %v8516_v6  ;;  %v13148_v1 = vunpack.c.h.bf16 %v13144_v37 }
 0x37b   : > { %1809 = vperm.xlu2 %6916, %v9654_v3   ;;  %v3248_v18 = vpop.f32.mrf.mxu1  ;;  %v1226_v42 = vadd.f32 %v1162_v4, %v778_v63  ;;  %13061 = vst [vmem:[#allocation139_spill] sm:$0xff] %v10187_v21 }
 0x37c   : > { %v3249_v57 = vadd.f32 %v3248_v18, %v8796_v51  ;;  %v1929_v51 = vsel %vm1865_vm12, 1.0, %v13001_v47 }
 0x37d   : > { %1425 = vperm.xlu1 %6915, %v9654_v3   ;;  %v3739_v46 = vpop.f32.mrf.mxu2  ;;  %v1993_v50 = vadd.f32 %v1929_v51, %v1609_v41  ;;  %v1610_v41 = vadd.f32 %v1546_v15, %v1226_v42  ;;  %v13064_v42 = vld [vmem:[#allocation100_spill] sm:$0xff] }
 0x37e   : > { %v3394_v27 = vadd.f32 %v9867_v54, %v3249_v57  ;;  %6333 = vmatmul.msk.f32.gmra.mxu1 %vm2960_vm10, %v2376_v31  ;;  %v3740_v3 = vadd.f32 %v9850_v40, %v3739_v46  ;;  %vm1100_vm7 = vcmp.eq.s32.totalorder %v13064_v42, %v8516_v6 }
 0x37f   : > { %6527 = vmatmul.msk.f32.gmra.mxu0 %vm2960_vm10, %v2376_v31  ;;  %v10166_v20 = vpop.permute.xlu1 %1383  ;;  %v2377_v31 = vadd.f32 %v2313_v43, %v1993_v50  ;;  %v1994_v30 = vadd.f32 %v1930_v32, %v1610_v41  ;;  %v10217_v43 = vpop.permute.xlu0 %2160 }
 0x380   : > { %v3458_v2 = vmax.f32 %v3394_v27, 0.0  ;;  %v3915_v13 = vmax.f32 %v3740_v3, 0.0  ;;  %v13062_v27 = vld [vmem:[#allocation46_spill] sm:$0xff]  ;;  %vm1484_vm12 = vcmp.eq.s32.totalorder %v10166_v20, %v8516_v6 }
 0x381   : > { %vm715_vm4 = vcmp.eq.s32.totalorder %v13062_v27, %v8516_v6  ;;  %v13065_v27 = vld [vmem:[#allocation60_spill] sm:$0xff] }
 0x382   : > { %6381 = vmatmul.msk.f32.gmra.mxu2 %vm3505_vm15, %v3458_v2  ;;  %6558 = vmatmul.msk.f32.gmra.mxu3 %vm4398_vm11, %v3915_v13  ;;  %v779_v50 = vsel %vm715_vm4, 1.0, %v13001_v47  ;;  %v1547_v2 = vsel %vm1483_vm5, 1.0, %v13001_v47  ;;  %v10210_v13 = vpop.f32.mrf.mxu3  ;;  %vm716_vm9 = vcmp.eq.s32.totalorder %v13065_v27, %v8516_v6  ;;  %vm2252_vm4 = vcmp.eq.s32.totalorder %v10083_v28, %v8516_v6 }
 0x383   : > { %1812 = vperm.xlu2 %6916, %v9695_v36   ;;  %v3251_v18 = vpop.f32.mrf.mxu1  ;;  %13063 = vst [vmem:[#allocation90_spill] sm:$0xff] %v10210_v13 }
 0x384   : > { %v3252_v57 = vadd.f32 %v3251_v18, %v8848_v22  ;;  %v1163_v22 = vsel %vm1099_vm2, 1.0, %v13001_v47  ;;  %v2378_v18 = vadd.f32 %v2314_v59, %v1994_v30  ;;  %v780_v30 = vsel %vm716_vm9, 1.0, %v13001_v47 }
 0x385   : > { %1428 = vperm.xlu1 %6915, %v9695_v36   ;;  %v3742_v4 = vpop.f32.mrf.mxu2  ;;  %v1227_v15 = vadd.f32 %v1163_v22, %v779_v50  ;;  %v10236_v22 = vpop.f32.mrf.mxu0  ;;  %vm2253_vm9 = vcmp.eq.s32.totalorder %v10135_v16, %v8516_v6 }
 0x386   : > { %v3395_v46 = vadd.f32 %v9867_v54, %v3252_v57  ;;  %6334 = vmatmul.msk.f32.gmra.mxu1 %vm2960_vm10, %v2377_v31  ;;  %v3743_v36 = vadd.f32 %v9850_v40, %v3742_v4  ;;  %v10222_v57 = vpop.permute.xlu2 %1776  ;;  %13066 = vst [vmem:[#allocation41_spill] sm:$0xff] %v10236_v22  ;;  %v2317_v16 = vsel %vm2253_vm9, 1.0, %v13001_v47 }
 0x387   : > { %6528 = vmatmul.msk.f32.gmra.mxu0 %vm2960_vm10, %v2377_v31  ;;  %v10203_v51 = vpop.permute.xlu1 %1386  ;;  %v1611_v31 = vadd.f32 %v1547_v2, %v1227_v15  ;;  %v2315_v15 = vsel %vm2251_vm13, 1.0, %v13001_v47  ;;  %vm1870_vm13 = vcmp.eq.s32.totalorder %v10180_v52, %v8516_v6 }
 0x388   : > { %v3459_v3 = vmax.f32 %v3395_v46, 0.0  ;;  %v3916_v63 = vmax.f32 %v3743_v36, 0.0  ;;  %vm1485_vm3 = vcmp.eq.s32.totalorder %v10203_v51, %v8516_v6 }
 0x389   : > { %v1995_v20 = vadd.f32 %v1931_v12, %v1611_v31  ;;  %v13069_v31 = vld [vmem:[#allocation59_spill] sm:$0xff] }
 0x38a   : > { %6382 = vmatmul.msk.f32.gmra.mxu2 %vm3505_vm15, %v3459_v3  ;;  %6559 = vmatmul.msk.f32.gmra.mxu3 %vm4398_vm11, %v3916_v63  ;;  %v1548_v3 = vsel %vm1484_vm12, 1.0, %v13001_v47  ;;  %v13067_v63 = vld [vmem:[#allocation115_spill] sm:$0xff]  ;;  %vm717_vm2 = vcmp.eq.s32.totalorder %v13069_v31, %v8516_v6 }
 0x38b   : > { %1815 = vperm.xlu2 %6916, %v9735_v56   ;;  %v3254_v5 = vpop.f32.mrf.mxu1  ;;  %vm1101_vm14 = vcmp.eq.s32.totalorder %v13067_v63, %v8516_v6  ;;  %v2379_v42 = vadd.f32 %v2315_v15, %v1995_v20 }
 0x38c   : > { %v3255_v41 = vadd.f32 %v3254_v5, %v8890_v8  ;;  %v1164_v8 = vsel %vm1100_vm7, 1.0, %v13001_v47 }
 0x38d   : > { %1431 = vperm.xlu1 %6915, %v9735_v56   ;;  %v3745_v4 = vpop.f32.mrf.mxu2  ;;  %v1228_v2 = vadd.f32 %v1164_v8, %v780_v30  ;;  %v10280_v20 = vpop.f32.mrf.mxu0 }
 0x38e   : > { %v3396_v46 = vadd.f32 %v9867_v54, %v3255_v41  ;;  %6335 = vmatmul.msk.f32.gmra.mxu1 %vm2960_vm10, %v2378_v18  ;;  %v3746_v56 = vadd.f32 %v9850_v40, %v3745_v4  ;;  %v10260_v41 = vpop.permute.xlu0 %2163  ;;  %v10271_v25 = vpop.permute.xlu2 %1779  ;;  %13070 = vst [vmem:[#allocation93_spill] sm:$0xff] %v10280_v20  ;;  %v13138_v20 = vld [vmem:[#allocation75_spill] sm:$0xff] }
 0x38f   : > { %6529 = vmatmul.msk.f32.gmra.mxu0 %vm2960_vm10, %v2378_v18  ;;  %v10240_v32 = vpop.permute.xlu1 %1389  ;;  %v1612_v59 = vadd.f32 %v1548_v3, %v1228_v2  ;;  %v10255_v18 = vpop.f32.mrf.mxu3  ;;  %v2316_v2 = vsel %vm2252_vm4, 1.0, %v13001_v47  ;;  %vm1871_vm4 = vcmp.eq.s32.totalorder %v10222_v57, %v8516_v6  ;;  %vm1872_vm9 = vcmp.eq.s32.totalorder %v10271_v25, %v8516_v6 }
 0x390   : > { %v3460_v36 = vmax.f32 %v3396_v46, 0.0  ;;  %v3917_v50 = vmax.f32 %v3746_v56, 0.0  ;;  %13068 = vst [vmem:[#allocation157_spill] sm:$0xff] %v10255_v18  ;;  %v781_v56 = vsel %vm717_vm2, 1.0, %v13001_v47  ;;  %vm1486_vm8 = vcmp.eq.s32.totalorder %v10240_v32, %v8516_v6 }
 0x391   : > { %vm2254_vm2 = vcmp.eq.s32.totalorder %v10174_v24, %v8516_v6  ;;  %v1935_v57 = vsel %vm1871_vm4, 1.0, %v13001_v47  ;;  %v1936_v25 = vsel %vm1872_vm9, 1.0, %v13001_v47  ;;  %v13141_v13 = vunpack.c.h.bf16 %v13138_v20 }
 0x392   : > { %6383 = vmatmul.msk.f32.gmra.mxu2 %vm3505_vm15, %v3460_v36  ;;  %6560 = vmatmul.msk.f32.gmra.mxu3 %vm4398_vm11, %v3917_v50  ;;  %v1549_v36 = vsel %vm1485_vm3, 1.0, %v13001_v47  ;;  %v13071_v50 = vld [vmem:[#allocation119_spill] sm:$0xff] }
 0x393   : > { %1818 = vperm.xlu2 %6916, %v9767_v48   ;;  %v3257_v53 = vpop.f32.mrf.mxu1  ;;  %vm1102_vm5 = vcmp.eq.s32.totalorder %v13071_v50, %v8516_v6 }
 0x394   : > { %v3258_v5 = vadd.f32 %v3257_v53, %v8934_v23  ;;  %v1165_v23 = vsel %vm1101_vm14, 1.0, %v13001_v47 }
 0x395   : > { %1434 = vperm.xlu1 %6915, %v9767_v48   ;;  %v3748_v46 = vpop.f32.mrf.mxu2  ;;  %v1932_v48 = vsel %vm1868_vm0, 1.0, %v13001_v47  ;;  %v1229_v3 = vadd.f32 %v1165_v23, %v781_v56  ;;  %v1550_v56 = vsel %vm1486_vm8, 1.0, %v13001_v47  ;;  %v10320_v50 = vpop.f32.mrf.mxu0 }
 0x396   : > { %v3397_v27 = vadd.f32 %v9867_v54, %v3258_v5  ;;  %6336 = vmatmul.msk.f32.gmra.mxu1 %vm2960_vm10, %v2379_v42  ;;  %v3749_v4 = vadd.f32 %v9850_v40, %v3748_v46  ;;  %v1996_v51 = vadd.f32 %v1932_v48, %v1612_v59  ;;  %v10307_v23 = vpop.permute.xlu0 %2166  ;;  %13075 = vst [vmem:[#allocation31_spill] sm:$0xff] %v10320_v50 }
 0x397   : > { %6530 = vmatmul.msk.f32.gmra.mxu0 %vm2960_vm10, %v2379_v42  ;;  %v10275_v8 = vpop.permute.xlu1 %1392  ;;  %v1613_v15 = vadd.f32 %v1549_v36, %v1229_v3  ;;  %v13072_v42 = vld [vmem:[#allocation49_spill] sm:$0xff]  ;;  %v10297_v31 = vpop.f32.mrf.mxu3  ;;  %v13074_v3 = vld [vmem:[#allocation104_spill] sm:$0xff] }
 0x398   : > { %v3461_v12 = vmax.f32 %v3397_v27, 0.0  ;;  %v3918_v30 = vmax.f32 %v3749_v4, 0.0  ;;  %v2380_v63 = vadd.f32 %v2316_v2, %v1996_v51  ;;  %vm718_vm7 = vcmp.eq.s32.totalorder %v13072_v42, %v8516_v6  ;;  %13073 = vst [vmem:[#allocation141_spill] sm:$0xff] %v10297_v31  ;;  %v13120_v31 = vld [vmem:[#allocation73_spill] sm:$0xff] }
 0x399   : > { %v1166_v27 = vsel %vm1102_vm5, 1.0, %v13001_v47  ;;  %v1997_v48 = vadd.f32 %v1933_v58, %v1613_v15  ;;  %v782_v51 = vsel %vm718_vm7, 1.0, %v13001_v47  ;;  %vm1103_vm12 = vcmp.eq.s32.totalorder %v13074_v3, %v8516_v6  ;;  %v13076_v15 = vld [vmem:[#allocation63_spill] sm:$0xff] }
 0x39a   : > { %6384 = vmatmul.msk.f32.gmra.mxu2 %vm3505_vm15, %v3461_v12  ;;  %6561 = vmatmul.msk.f32.gmra.mxu3 %vm4398_vm11, %v3918_v30  ;;  %v10310_v12 = vpop.permute.xlu2 %1782  ;;  %v1230_v30 = vadd.f32 %v1166_v27, %v782_v51  ;;  %vm719_vm14 = vcmp.eq.s32.totalorder %v13076_v15, %v8516_v6  ;;  %vm1487_vm0 = vcmp.eq.s32.totalorder %v10275_v8, %v8516_v6 }
 0x39b   : > { %v3260_v28 = vpop.f32.mrf.mxu1  ;;  %vm2255_vm7 = vcmp.eq.s32.totalorder %v10217_v43, %v8516_v6 }
 0x39c   : > { %v3261_v53 = vadd.f32 %v3260_v28, %v8977_v14  ;;  %v2381_v28 = vadd.f32 %v2317_v16, %v1997_v48  ;;  %v1614_v32 = vadd.f32 %v1550_v56, %v1230_v30  ;;  %v1551_v48 = vsel %vm1487_vm0, 1.0, %v13001_v47 }
 0x39d   : > { %v3751_v5 = vpop.f32.mrf.mxu2  ;;  %v2318_v30 = vsel %vm2254_vm2, 1.0, %v13001_v47  ;;  %vm1873_vm2 = vcmp.eq.s32.totalorder %v10310_v12, %v8516_v6 }
 0x39e   : > { %v3398_v59 = vadd.f32 %v9867_v54, %v3261_v53  ;;  %6337 = vmatmul.msk.f32.gmra.mxu1 %vm2960_vm10, %v2380_v63  ;;  %v3752_v46 = vadd.f32 %v9850_v40, %v3751_v5  ;;  %v1934_v5 = vsel %vm1870_vm13, 1.0, %v13001_v47  ;;  %v10344_v56 = vpop.permute.xlu0 %2169 }
 0x39f   : > { %6531 = vmatmul.msk.f32.gmra.mxu0 %vm2960_vm10, %v2380_v63  ;;  %v10303_v14 = vpop.permute.xlu1 %1395  ;;  %v1998_v27 = vadd.f32 %v1934_v5, %v1614_v32  ;;  %v10340_v58 = vpop.f32.mrf.mxu3 }
 0x3a0   : > { %v3462_v4 = vmax.f32 %v3398_v59, 0.0  ;;  %v3919_v36 = vmax.f32 %v3752_v46, 0.0  ;;  %v1167_v59 = vsel %vm1103_vm12, 1.0, %v13001_v47  ;;  %13077 = vst [vmem:[#allocation29_spill] sm:$0xff] %v10340_v58  ;;  %v783_v46 = vsel %vm719_vm14, 1.0, %v13001_v47  ;;  %v10356_v32 = vpop.f32.mrf.mxu0  ;;  %v13118_v58 = vld [vmem:[#allocation136_spill] sm:$0xff] }
 0x3a1   : > { %v1231_v51 = vadd.f32 %v1167_v59, %v783_v46  ;;  %v2382_v16 = vadd.f32 %v2318_v30, %v1998_v27  ;;  %13079 = vst [vmem:[#allocation142_spill] sm:$0xff] %v10356_v32  ;;  %vm1488_vm6 = vcmp.eq.s32.totalorder %v10303_v14, %v8516_v6  ;;  %vm2256_vm14 = vcmp.eq.s32.totalorder %v10260_v41, %v8516_v6 }
 0x3a2   : > { %6385 = vmatmul.msk.f32.gmra.mxu2 %vm3505_vm15, %v3462_v4  ;;  %6562 = vmatmul.msk.f32.gmra.mxu3 %vm4398_vm11, %v3919_v36  ;;  %v13078_v36 = vld [vmem:[#allocation120_spill] sm:$0xff]  ;;  %v10350_v24 = vpop.permute.xlu2 %1785  ;;  %v1552_v27 = vsel %vm1488_vm6, 1.0, %v13001_v47 }
 0x3a3   : > { %v3263_v2 = vpop.f32.mrf.mxu1  ;;  %vm1104_vm3 = vcmp.eq.s32.totalorder %v13078_v36, %v8516_v6 }
 0x3a4   : > { %v3264_v63 = vadd.f32 %v3263_v2, %v9025_v10  ;;  %v1615_v2 = vadd.f32 %v1551_v48, %v1231_v51  ;;  %v2319_v51 = vsel %vm2255_vm7, 1.0, %v13001_v47  ;;  %vm1874_vm7 = vcmp.eq.s32.totalorder %v10350_v24, %v8516_v6 }
 0x3a5   : > { %v3754_v42 = vpop.f32.mrf.mxu2 }
 0x3a6   : > { %v3399_v53 = vadd.f32 %v9867_v54, %v3264_v63  ;;  %6338 = vmatmul.msk.f32.gmra.mxu1 %vm2960_vm10, %v2381_v28  ;;  %v3755_v52 = vadd.f32 %v9850_v40, %v3754_v42  ;;  %v13080_v63 = vld [vmem:[#allocation62_spill] sm:$0xff]  ;;  %v1168_v42 = vsel %vm1104_vm3, 1.0, %v13001_v47  ;;  %v1999_v5 = vadd.f32 %v1935_v57, %v1615_v2  ;;  %v10381_v36 = vpop.permute.xlu0 %2172 }
 0x3a7   : > { %6532 = vmatmul.msk.f32.gmra.mxu0 %vm2960_vm10, %v2381_v28  ;;  %v10336_v10 = vpop.permute.xlu1 %1398  ;;  %vm720_vm5 = vcmp.eq.s32.totalorder %v13080_v63, %v8516_v6  ;;  %v10375_v48 = vpop.f32.mrf.mxu3 }
 0x3a8   : > { %v3463_v8 = vmax.f32 %v3399_v53, 0.0  ;;  %v3920_v4 = vmax.f32 %v3755_v52, 0.0  ;;  %v784_v52 = vsel %vm720_vm5, 1.0, %v13001_v47  ;;  %13081 = vst [vmem:[#allocation45_spill] sm:$0xff] %v10375_v48  ;;  %v2383_v30 = vadd.f32 %v2319_v51, %v1999_v5 }
 0x3a9   : > { %v1232_v46 = vadd.f32 %v1168_v42, %v784_v52  ;;  %vm1489_vm13 = vcmp.eq.s32.totalorder %v10336_v10, %v8516_v6  ;;  %v10396_v42 = vpop.f32.mrf.mxu0  ;;  %vm2257_vm5 = vcmp.eq.s32.totalorder %v10307_v23, %v8516_v6 }
 0x3aa   : > { %6386 = vmatmul.msk.f32.gmra.mxu2 %vm3505_vm15, %v3463_v8  ;;  %6563 = vmatmul.msk.f32.gmra.mxu3 %vm4398_vm11, %v3920_v4  ;;  %v13082_v4 = vld [vmem:[#allocation123_spill] sm:$0xff]  ;;  %v10386_v2 = vpop.permute.xlu2 %1788  ;;  %13084 = vst [vmem:[#allocation94_spill] sm:$0xff] %v10396_v42 }
 0x3ab   : > { %v3266_v3 = vpop.f32.mrf.mxu1  ;;  %vm1105_vm8 = vcmp.eq.s32.totalorder %v13082_v4, %v8516_v6 }
 0x3ac   : > { %v3267_v28 = vadd.f32 %v3266_v3, %v9077_v38  ;;  %v1616_v3 = vadd.f32 %v1552_v27, %v1232_v46  ;;  %v2320_v46 = vsel %vm2256_vm14, 1.0, %v13001_v47  ;;  %vm1875_vm14 = vcmp.eq.s32.totalorder %v10386_v2, %v8516_v6 }
 0x3ad   : > { %v3757_v53 = vpop.f32.mrf.mxu2  ;;  %v1939_v2 = vsel %vm1875_vm14, 1.0, %v13001_v47 }
 0x3ae   : > { %v3400_v15 = vadd.f32 %v9867_v54, %v3267_v28  ;;  %6339 = vmatmul.msk.f32.gmra.mxu1 %vm2960_vm10, %v2382_v16  ;;  %v3758_v59 = vadd.f32 %v9850_v40, %v3757_v53  ;;  %v13083_v28 = vld [vmem:[#allocation52_spill] sm:$0xff]  ;;  %v1169_v53 = vsel %vm1105_vm8, 1.0, %v13001_v47  ;;  %v2000_v10 = vadd.f32 %v1936_v25, %v1616_v3 }
 0x3af   : > { %6533 = vmatmul.msk.f32.gmra.mxu0 %vm2960_vm10, %v2382_v16  ;;  %v10368_v38 = vpop.permute.xlu1 %1401  ;;  %vm721_vm12 = vcmp.eq.s32.totalorder %v13083_v28, %v8516_v6  ;;  %v10414_v3 = vpop.f32.mrf.mxu3 }
 0x3b0   : > { %v3464_v14 = vmax.f32 %v3400_v15, 0.0  ;;  %v3921_v8 = vmax.f32 %v3758_v59, 0.0  ;;  %v785_v5 = vsel %vm721_vm12, 1.0, %v13001_v47  ;;  %v2384_v41 = vadd.f32 %v2320_v46, %v2000_v10  ;;  %13087 = vst [vmem:[#allocation145_spill] sm:$0xff] %v10414_v3  ;;  %v10418_v28 = vpop.permute.xlu0 %2175  ;;  %v13104_v3 = vld [vmem:[#allocation131_spill] sm:$0xff] }
 0x3b1   : > { %v1233_v27 = vadd.f32 %v1169_v53, %v785_v5  ;;  %vm1490_vm4 = vcmp.eq.s32.totalorder %v10368_v38, %v8516_v6  ;;  %v1937_v53 = vsel %vm1873_vm2, 1.0, %v13001_v47  ;;  %v10435_v5 = vpop.f32.mrf.mxu0  ;;  %vm2258_vm12 = vcmp.eq.s32.totalorder %v10344_v56, %v8516_v6  ;;  %v13093_v56 = vld [vmem:[#allocation128_spill] sm:$0xff] }
 0x3b2   : > { %6387 = vmatmul.msk.f32.gmra.mxu2 %vm3505_vm15, %v3464_v14  ;;  %6564 = vmatmul.msk.f32.gmra.mxu3 %vm4398_vm11, %v3921_v8  ;;  %v1553_v14 = vsel %vm1489_vm13, 1.0, %v13001_v47  ;;  %v13085_v8 = vld [vmem:[#allocation109_spill] sm:$0xff]  ;;  %v10426_v25 = vpop.permute.xlu2 %1791  ;;  %13089 = vst [vmem:[#allocation44_spill] sm:$0xff] %v10435_v5  ;;  %vm1108_vm13 = vcmp.eq.s32.totalorder %v13093_v56, %v8516_v6 }
 0x3b3   : > { %v3269_v43 = vpop.f32.mrf.mxu1  ;;  %vm1106_vm0 = vcmp.eq.s32.totalorder %v13085_v8, %v8516_v6  ;;  %v1617_v51 = vadd.f32 %v1553_v14, %v1233_v27  ;;  %v1554_v14 = vsel %vm1490_vm4, 1.0, %v13001_v47  ;;  %v2321_v8 = vsel %vm2257_vm5, 1.0, %v13001_v47 }
 0x3b4   : > { %v3270_v16 = vadd.f32 %v3269_v43, %v9137_v7  ;;  %v13086_v43 = vld [vmem:[#allocation159_spill] sm:$0xff]  ;;  %v1170_v12 = vsel %vm1106_vm0, 1.0, %v13001_v47  ;;  %vm1876_vm5 = vcmp.eq.s32.totalorder %v10426_v25, %v8516_v6 }
 0x3b5   : > { %v3760_v15 = vpop.f32.mrf.mxu2  ;;  %v2001_v38 = vadd.f32 %v1937_v53, %v1617_v51  ;;  %v10464_v53 = vld [vmem:[%s12517_s7] ss:$0 sm:$0xff] }
 0x3b6   : > { %v3401_v63 = vadd.f32 %v9867_v54, %v3270_v16  ;;  %6340 = vmatmul.msk.f32.gmra.mxu1 %vm2960_vm10, %v2383_v30  ;;  %v3761_v7 = vadd.f32 %v9850_v40, %v3760_v15  ;;  %v13088_v16 = vld [vmem:[#allocation67_spill] sm:$0xff] }
 0x3b7   : > { %6534 = vmatmul.msk.f32.gmra.mxu0 %vm2960_vm10, %v2383_v30  ;;  %v10400_v57 = vpop.permute.xlu1 %1404  ;;  %vm722_vm3 = vcmp.eq.s32.totalorder %v13088_v16, %v8516_v6  ;;  %v2385_v46 = vadd.f32 %v2321_v8, %v2001_v38 }
 0x3b8   : > { %v3465_v59 = vmax.f32 %v3401_v63, 0.0  ;;  %v3922_v52 = vmax.f32 %v3761_v7, 0.0  ;;  %vm1491_vm9 = vcmp.eq.s32.totalorder %v10400_v57, %v8516_v6 }
 0x3ba   : > { %6388 = vmatmul.msk.f32.gmra.mxu2 %vm3505_vm15, %v3465_v59  ;;  %6565 = vmatmul.msk.f32.gmra.mxu3 %vm4398_vm11, %v3922_v52  ;;  %v786_v59 = vsel %vm722_vm3, 1.0, %v13001_v47  ;;  %vm2259_vm3 = vcmp.eq.s32.totalorder %v10381_v36, %v8516_v6 }
 0x3bb   : > { %v3272_v4 = vpop.f32.mrf.mxu1  ;;  %v1234_v27 = vadd.f32 %v1170_v12, %v786_v59  ;;  %v1938_v12 = vsel %vm1874_vm7, 1.0, %v13001_v47 }
 0x3bc   : > { %v3273_v30 = vadd.f32 %v3272_v4, %v13086_v43  ;;  %v13092_v43 = vld [vmem:[#allocation66_spill] sm:$0xff] }
 0x3bd   : > { %v3763_v15 = vpop.f32.mrf.mxu2  ;;  %v1618_v4 = vadd.f32 %v1554_v14, %v1234_v27  ;;  %vm723_vm8 = vcmp.eq.s32.totalorder %v13092_v43, %v8516_v6  ;;  %v10478_v27 = vpop.permute.xlu2 %1794  ;;  %v13095_v43 = vld [vmem:[#allocation168_spill] sm:$0xff] }
 0x3be   : > { %v3402_v63 = vadd.f32 %v9867_v54, %v3273_v30  ;;  %6341 = vmatmul.msk.f32.gmra.mxu1 %vm2960_vm10, %v2384_v41  ;;  %v3764_v7 = vadd.f32 %v9850_v40, %v3763_v15  ;;  %v13090_v40 = vld [vmem:[#allocation124_spill] sm:$0xff]  ;;  %v10453_v30 = vld [vmem:[%s12515_s5] ss:$0 sm:$0xff] }
 0x3bf   : > { %6535 = vmatmul.msk.f32.gmra.mxu0 %vm2960_vm10, %v2384_v41  ;;  %v10430_v10 = vpop.permute.xlu1 %1407  ;;  %vm1107_vm6 = vcmp.eq.s32.totalorder %v13090_v40, %v8516_v6  ;;  %v13091_v41 = vld [vmem:[#allocation164_spill] sm:$0xff]  ;;  %v2002_v59 = vadd.f32 %v1938_v12, %v1618_v4  ;;  %v1555_v40 = vsel %vm1491_vm9, 1.0, %v13001_v47  ;;  %v10488_v4 = vpop.f32.mrf.mxu0 }
 0x3c0   : > { %v3466_v54 = vmax.f32 %v3402_v63, 0.0  ;;  %v3923_v52 = vmax.f32 %v3764_v7, 0.0  ;;  %v1171_v24 = vsel %vm1107_vm6, 1.0, %v13001_v47  ;;  %13094 = vst [vmem:[#allocation96_spill] sm:$0xff] %v10488_v4  ;;  %vm1492_vm2 = vcmp.eq.s32.totalorder %v10430_v10, %v8516_v6 }
 0x3c2   : > { %6389 = vmatmul.msk.f32.gmra.mxu2 %vm3505_vm15, %v3466_v54  ;;  %6566 = vmatmul.msk.f32.gmra.mxu3 %vm4398_vm11, %v3923_v52  ;;  %v10472_v54 = vpop.permute.xlu0 %2178  ;;  %v787_v52 = vsel %vm723_vm8, 1.0, %v13001_v47  ;;  %vm2260_vm8 = vcmp.eq.s32.totalorder %v10418_v28, %v8516_v6 }
 0x3c3   : > { %v3275_v23 = vpop.f32.mrf.mxu1 }
 0x3c4   : > { %v3276_v51 = vadd.f32 %v3275_v23, %v13091_v41  ;;  %v1235_v23 = vadd.f32 %v1171_v24, %v787_v52 }
 0x3c5   : > { %v3766_v63 = vpop.f32.mrf.mxu2  ;;  %v10456_v15 = vpop.f32.mrf.mxu3 }
 0x3c6   : > { %v3403_v16 = vadd.f32 %v10453_v30, %v3276_v51  ;;  %6342 = vmatmul.msk.f32.gmra.mxu1 %vm2960_vm10, %v2385_v46  ;;  %v3767_v7 = vadd.f32 %v10464_v53, %v3766_v63  ;;  %v1619_v57 = vadd.f32 %v1555_v40, %v1235_v23  ;;  %v13096_v63 = vld [vmem:[#allocation55_spill] sm:$0xff]  ;;  %v1556_v23 = vsel %vm1492_vm2, 1.0, %v13001_v47 }
 0x3c7   : > { %6536 = vmatmul.msk.f32.gmra.mxu0 %vm2960_vm10, %v2385_v46  ;;  %v10468_v38 = vpop.permute.xlu1 %1410  ;;  %v2322_v46 = vsel %vm2258_vm12, 1.0, %v13001_v47  ;;  %vm724_vm0 = vcmp.eq.s32.totalorder %v13096_v63, %v8516_v6  ;;  %vm1877_vm12 = vcmp.eq.s32.totalorder %v10478_v27, %v8516_v6  ;;  %vm1111_vm2 = vcmp.eq.s32.totalorder %v13104_v3, %v8516_v6 }
 0x3c8   : > { %v3467_v14 = vmax.f32 %v3403_v16, 0.0  ;;  %v3924_v8 = vmax.f32 %v3767_v7, 0.0  ;;  %v2386_v51 = vadd.f32 %v2322_v46, %v2002_v59  ;;  %v2003_v10 = vadd.f32 %v1939_v2, %v1619_v57  ;;  %v13100_v2 = vld [vmem:[#allocation69_spill] sm:$0xff] }
 0x3c9   : > { %vm725_vm6 = vcmp.eq.s32.totalorder %v13100_v2, %v8516_v6  ;;  %vm1493_vm7 = vcmp.eq.s32.totalorder %v10468_v38, %v8516_v6 }
 0x3ca   : > { %6390 = vmatmul.msk.f32.gmra.mxu2 %vm3505_vm15, %v3467_v14  ;;  %6567 = vmatmul.msk.f32.gmra.mxu3 %vm4398_vm11, %v3924_v8  ;;  %v1172_v14 = vsel %vm1108_vm13, 1.0, %v13001_v47  ;;  %v788_v8 = vsel %vm724_vm0, 1.0, %v13001_v47  ;;  %vm2261_vm0 = vcmp.eq.s32.totalorder %v10472_v54, %v8516_v6 }
 0x3cb   : > { %v3278_v41 = vpop.f32.mrf.mxu1  ;;  %v1236_v46 = vadd.f32 %v1172_v14, %v788_v8  ;;  %v10524_v14 = vpop.f32.mrf.mxu0 }
 0x3cc   : > { %v3279_v16 = vadd.f32 %v3278_v41, %v13095_v43  ;;  %v10512_v41 = vpop.permute.xlu0 %2181  ;;  %v13097_v43 = vld [vmem:[#allocation113_spill] sm:$0xff]  ;;  %13099 = vst [vmem:[#allocation147_spill] sm:$0xff] %v10524_v14 }
 0x3cd   : > { %v3769_v12 = vpop.f32.mrf.mxu2  ;;  %v10499_v7 = vpop.f32.mrf.mxu3  ;;  %vm1109_vm4 = vcmp.eq.s32.totalorder %v13097_v43, %v8516_v6  ;;  %v1620_v63 = vadd.f32 %v1556_v23, %v1236_v46 }
 0x3ce   : > { %v3404_v24 = vadd.f32 %v10453_v30, %v3279_v16  ;;  %6343 = vmatmul.msk.f32.gmra.mxu1 %vm2960_vm10, %v2386_v51  ;;  %v3770_v59 = vadd.f32 %v10464_v53, %v3769_v12  ;;  %v10518_v16 = vpop.permute.xlu2 %1797  ;;  %v1173_v25 = vsel %vm1109_vm4, 1.0, %v13001_v47 }
 0x3cf   : > { %6537 = vmatmul.msk.f32.gmra.mxu0 %vm2960_vm10, %v2386_v51  ;;  %v10506_v52 = vpop.permute.xlu1 %1413  ;;  %v2323_v51 = vsel %vm2259_vm3, 1.0, %v13001_v47  ;;  %vm1878_vm3 = vcmp.eq.s32.totalorder %v10518_v16, %v8516_v6 }
 0x3d0   : > { %v3468_v40 = vmax.f32 %v3404_v24, 0.0  ;;  %v3925_v56 = vmax.f32 %v3770_v59, 0.0  ;;  %v2387_v57 = vadd.f32 %v2323_v51, %v2003_v10  ;;  %v13098_v24 = vld [vmem:[#allocation9_spill] sm:$0xff]  ;;  %v1940_v10 = vsel %vm1876_vm5, 1.0, %v13001_v47 }
 0x3d1   : > { %v2004_v38 = vadd.f32 %v1940_v10, %v1620_v63  ;;  %v789_v51 = vsel %vm725_vm6, 1.0, %v13001_v47  ;;  %vm1494_vm14 = vcmp.eq.s32.totalorder %v10506_v52, %v8516_v6  ;;  %v1942_v16 = vsel %vm1878_vm3, 1.0, %v13001_v47 }
 0x3d2   : > { %6391 = vmatmul.msk.f32.gmra.mxu2 %vm3505_vm15, %v3468_v40  ;;  %6568 = vmatmul.msk.f32.gmra.mxu3 %vm4398_vm11, %v3925_v56  ;;  %v1237_v43 = vadd.f32 %v1173_v25, %v789_v51  ;;  %vm2262_vm6 = vcmp.eq.s32.totalorder %v10512_v41, %v8516_v6 }
 0x3d3   : > { %v3281_v36 = vpop.f32.mrf.mxu1  ;;  %v2326_v41 = vsel %vm2262_vm6, 1.0, %v13001_v47 }
 0x3d4   : > { %v3282_v12 = vadd.f32 %v3281_v36, %v13098_v24  ;;  %v1557_v36 = vsel %vm1493_vm7, 1.0, %v13001_v47  ;;  %v10555_v10 = vpop.permute.xlu0 %2184 }
 0x3d5   : > { %v3772_v40 = vpop.f32.mrf.mxu2  ;;  %v10531_v8 = vpop.f32.mrf.mxu3  ;;  %v1621_v63 = vadd.f32 %v1557_v36, %v1237_v43  ;;  %v1941_v36 = vsel %vm1877_vm12, 1.0, %v13001_v47 }
 0x3d6   : > { %v3405_v59 = vadd.f32 %v10453_v30, %v3282_v12  ;;  %6344 = vmatmul.msk.f32.gmra.mxu1 %vm2960_vm10, %v2387_v57  ;;  %v3773_v23 = vadd.f32 %v10464_v53, %v3772_v40  ;;  %v13101_v12 = vld [vmem:[#allocation129_spill] sm:$0xff]  ;;  %v10557_v25 = vpop.permute.xlu2 %1800 }
 0x3d7   : > { %6538 = vmatmul.msk.f32.gmra.mxu0 %vm2960_vm10, %v2387_v57  ;;  %v10541_v56 = vpop.permute.xlu1 %1416  ;;  %vm1110_vm9 = vcmp.eq.s32.totalorder %v13101_v12, %v8516_v6  ;;  %v2324_v57 = vsel %vm2260_vm8, 1.0, %v13001_v47  ;;  %v2005_v52 = vadd.f32 %v1941_v36, %v1621_v63  ;;  %vm1879_vm8 = vcmp.eq.s32.totalorder %v10557_v25, %v8516_v6 }
 0x3d8   : > { %v3469_v46 = vmax.f32 %v3405_v59, 0.0  ;;  %v3926_v24 = vmax.f32 %v3773_v23, 0.0  ;;  %v2388_v28 = vadd.f32 %v2324_v57, %v2004_v38  ;;  %v13102_v59 = vld [vmem:[#allocation12_spill] sm:$0xff]  ;;  %v1174_v27 = vsel %vm1110_vm9, 1.0, %v13001_v47  ;;  %v10571_v38 = vpop.f32.mrf.mxu0 }
 0x3d9   : > { %v13103_v23 = vld [vmem:[#allocation68_spill] sm:$0xff]  ;;  %vm1495_vm5 = vcmp.eq.s32.totalorder %v10541_v56, %v8516_v6  ;;  %v13108_v56 = vld [vmem:[#allocation11_spill] sm:$0xff]  ;;  %v1943_v25 = vsel %vm1879_vm8, 1.0, %v13001_v47 }
 0x3da   : > { %6392 = vmatmul.msk.f32.gmra.mxu2 %vm3505_vm15, %v3469_v46  ;;  %6569 = vmatmul.msk.f32.gmra.mxu3 %vm4398_vm11, %v3926_v24  ;;  %vm726_vm13 = vcmp.eq.s32.totalorder %v13103_v23, %v8516_v6 }
 0x3db   : > { %v3284_v2 = vpop.f32.mrf.mxu1 }
 0x3dc   : > { %v3285_v40 = vadd.f32 %v3284_v2, %v13102_v59  ;;  %v790_v2 = vsel %vm726_vm13, 1.0, %v13001_v47  ;;  %v1558_v59 = vsel %vm1494_vm14, 1.0, %v13001_v47  ;;  %vm2263_vm13 = vcmp.eq.s32.totalorder %v10555_v10, %v8516_v6 }
 0x3dd   : > { %v3775_v51 = vpop.f32.mrf.mxu2  ;;  %v10564_v24 = vpop.f32.mrf.mxu3  ;;  %v1238_v23 = vadd.f32 %v1174_v27, %v790_v2  ;;  %v1175_v2 = vsel %vm1111_vm2, 1.0, %v13001_v47 }
 0x3de   : > { %v3406_v46 = vadd.f32 %v10453_v30, %v3285_v40  ;;  %6345 = vmatmul.msk.f32.gmra.mxu1 %vm2960_vm10, %v2388_v28  ;;  %v3776_v43 = vadd.f32 %v10464_v53, %v3775_v51  ;;  %v2325_v51 = vsel %vm2261_vm0, 1.0, %v13001_v47 }
 0x3df   : > { %6539 = vmatmul.msk.f32.gmra.mxu0 %vm2960_vm10, %v2388_v28  ;;  %v1420_v12 = vpop.permute.xlu1 %1419  ;;  %v2389_v54 = vadd.f32 %v2325_v51, %v2005_v52  ;;  %v1622_v63 = vadd.f32 %v1558_v59, %v1238_v23  ;;  %v1804_v52 = vpop.permute.xlu2 %1803 }
 0x3e0   : > { %v3470_v57 = vmax.f32 %v3406_v46, 0.0  ;;  %v3927_v40 = vmax.f32 %v3776_v43, 0.0  ;;  %v13105_v46 = vld [vmem:[#allocation8_spill] sm:$0xff]  ;;  %v13106_v43 = vld [vmem:[#allocation58_spill] sm:$0xff]  ;;  %vm1496_vm12 = vcmp.eq.s32.totalorder %v1420_v12, %v8516_v6  ;;  %vm1880_vm0 = vcmp.eq.s32.totalorder %v1804_v52, %v8516_v6 }
 0x3e1   : > { %vm727_vm4 = vcmp.eq.s32.totalorder %v13106_v43, %v8516_v6  ;;  %v2006_v23 = vadd.f32 %v1942_v16, %v1622_v63 }
 0x3e2   : > { %6393 = vmatmul.msk.f32.gmra.mxu2 %vm3505_vm15, %v3470_v57  ;;  %6570 = vmatmul.msk.f32.gmra.mxu3 %vm4398_vm11, %v3927_v40  ;;  %v10602_v40 = vpop.permute.xlu0 %2187 }
 0x3e3   : > { %v3287_v28 = vpop.f32.mrf.mxu1  ;;  %v2390_v16 = vadd.f32 %v2326_v41, %v2006_v23 }
 0x3e4   : > { %v3288_v36 = vadd.f32 %v3287_v28, %v13105_v46  ;;  %v791_v28 = vsel %vm727_vm4, 1.0, %v13001_v47  ;;  %v10605_v46 = vpop.f32.mrf.mxu0  ;;  %vm2264_vm4 = vcmp.eq.s32.totalorder %v10602_v40, %v8516_v6 }
 0x3e5   : > { %v3778_v27 = vpop.f32.mrf.mxu2  ;;  %v10593_v57 = vpop.f32.mrf.mxu3 }
 0x3e6   : > { %v3407_v3 = vadd.f32 %v10453_v30, %v3288_v36  ;;  %6346 = vmatmul.msk.f32.gmra.mxu1 %vm2960_vm10, %v2389_v54  ;;  %v3779_v59 = vadd.f32 %v10464_v53, %v3778_v27  ;;  %v1559_v36 = vsel %vm1495_vm5, 1.0, %v13001_v47  ;;  %v1239_v27 = vadd.f32 %v1175_v2, %v791_v28  ;;  %v13109_v2 = vld [vmem:[#allocation72_spill] sm:$0xff] }
 0x3e7   : > { %6540 = vmatmul.msk.f32.gmra.mxu0 %vm2960_vm10, %v2389_v54  ;;  %v13107_v54 = vld [vmem:[#allocation118_spill] sm:$0xff]  ;;  %v1423_v63 = vpop.permute.xlu1 %1422  ;;  %vm728_vm9 = vcmp.eq.s32.totalorder %v13109_v2, %v8516_v6  ;;  %v13110_v2 = vld [vmem:[#allocation132_spill] sm:$0xff] }
 0x3e8   : > { %v3471_v51 = vmax.f32 %v3407_v3, 0.0  ;;  %v3928_v43 = vmax.f32 %v3779_v59, 0.0  ;;  %vm1112_vm7 = vcmp.eq.s32.totalorder %v13107_v54, %v8516_v6  ;;  %v1623_v48 = vadd.f32 %v1559_v36, %v1239_v27  ;;  %v1807_v27 = vpop.permute.xlu2 %1806 }
 0x3e9   : > { %v1560_v54 = vsel %vm1496_vm12, 1.0, %v13001_v47  ;;  %vm1113_vm14 = vcmp.eq.s32.totalorder %v13110_v2, %v8516_v6  ;;  %vm1497_vm3 = vcmp.eq.s32.totalorder %v1423_v63, %v8516_v6  ;;  %v13112_v2 = vld [vmem:[#allocation135_spill] sm:$0xff]  ;;  %vm1881_vm6 = vcmp.eq.s32.totalorder %v1807_v27, %v8516_v6 }
 0x3ea   : > { %6394 = vmatmul.msk.f32.gmra.mxu2 %vm3505_vm15, %v3471_v51  ;;  %6571 = vmatmul.msk.f32.gmra.mxu3 %vm4398_vm11, %v3928_v43  ;;  %v1176_v43 = vsel %vm1112_vm7, 1.0, %v13001_v47  ;;  %v2007_v36 = vadd.f32 %v1943_v25, %v1623_v48  ;;  %v1177_v52 = vsel %vm1113_vm14, 1.0, %v13001_v47  ;;  %vm1114_vm5 = vcmp.eq.s32.totalorder %v13112_v2, %v8516_v6  ;;  %v13115_v2 = vld [vmem:[#allocation122_spill] sm:$0xff] }
 0x3eb   : > { %v3290_v3 = vpop.f32.mrf.mxu1  ;;  %v1178_v27 = vsel %vm1114_vm5, 1.0, %v13001_v47  ;;  %vm1115_vm12 = vcmp.eq.s32.totalorder %v13115_v2, %v8516_v6  ;;  %vm732_vm5 = vcmp.eq.s32.totalorder %v13120_v31, %v8516_v6 }
 0x3ec   : > { %v3291_v14 = vadd.f32 %v3290_v3, %v13108_v56  ;;  %v2191_v56 = vpop.permute.xlu0 %2190 }
 0x3ed   : > { %v3781_v51 = vpop.f32.mrf.mxu2  ;;  %v10623_v28 = vpop.f32.mrf.mxu3 }
 0x3ee   : > { %v3408_v59 = vadd.f32 %v10453_v30, %v3291_v14  ;;  %6347 = vmatmul.msk.f32.gmra.mxu1 %vm2960_vm10, %v2390_v16  ;;  %v3782_v23 = vadd.f32 %v10464_v53, %v3781_v51  ;;  %v792_v14 = vsel %vm728_vm9, 1.0, %v13001_v47  ;;  %v10638_v51 = vpop.f32.mrf.mxu0  ;;  %vm2265_vm9 = vcmp.eq.s32.totalorder %v2191_v56, %v8516_v6 }
 0x3ef   : > { %6541 = vmatmul.msk.f32.gmra.mxu0 %vm2960_vm10, %v2390_v16  ;;  %v1240_v3 = vadd.f32 %v1176_v43, %v792_v14  ;;  %v2327_v16 = vsel %vm2263_vm13, 1.0, %v13001_v47  ;;  %v1426_v43 = vpop.permute.xlu1 %1425 }
 0x3f0   : > { %v3472_v12 = vmax.f32 %v3408_v59, 0.0  ;;  %v3929_v41 = vmax.f32 %v3782_v23, 0.0  ;;  %v2391_v10 = vadd.f32 %v2327_v16, %v2007_v36  ;;  %v13111_v23 = vld [vmem:[#allocation71_spill] sm:$0xff]  ;;  %vm1498_vm8 = vcmp.eq.s32.totalorder %v1426_v43, %v8516_v6 }
 0x3f1   : > { %v1624_v59 = vadd.f32 %v1560_v54, %v1240_v3  ;;  %vm729_vm2 = vcmp.eq.s32.totalorder %v13111_v23, %v8516_v6  ;;  %v1561_v3 = vsel %vm1497_vm3, 1.0, %v13001_v47  ;;  %v1810_v23 = vpop.permute.xlu2 %1809  ;;  %vm1116_vm3 = vcmp.eq.s32.totalorder %v13118_v58, %v8516_v6 }
 0x3f2   : > { %6395 = vmatmul.msk.f32.gmra.mxu2 %vm3505_vm15, %v3472_v12  ;;  %6572 = vmatmul.msk.f32.gmra.mxu3 %vm4398_vm11, %v3929_v41  ;;  %v793_v41 = vsel %vm729_vm2, 1.0, %v13001_v47  ;;  %vm1882_vm13 = vcmp.eq.s32.totalorder %v1810_v23, %v8516_v6 }
 0x3f3   : > { %v3293_v48 = vpop.f32.mrf.mxu1 }
 0x3f4   : > { %v3294_v25 = vadd.f32 %v3293_v48, %v8690_v17  ;;  %v1944_v17 = vsel %vm1880_vm0, 1.0, %v13001_v47  ;;  %v1241_v48 = vadd.f32 %v1177_v52, %v793_v41  ;;  %v13114_v52 = vld [vmem:[#allocation61_spill] sm:$0xff] }
 0x3f5   : > { %v3784_v14 = vpop.f32.mrf.mxu2  ;;  %v10647_v4 = vpop.f32.mrf.mxu3  ;;  %v2008_v63 = vadd.f32 %v1944_v17, %v1624_v59  ;;  %vm730_vm7 = vcmp.eq.s32.totalorder %v13114_v52, %v8516_v6  ;;  %v2329_v52 = vsel %vm2265_vm9, 1.0, %v13001_v47 }
 0x3f6   : > { %v3409_v12 = vadd.f32 %v10453_v30, %v3294_v25  ;;  %6348 = vmatmul.msk.f32.gmra.mxu1 %vm2960_vm10, %v2391_v10  ;;  %v3785_v36 = vadd.f32 %v10464_v53, %v3784_v14  ;;  %v2328_v25 = vsel %vm2264_vm4, 1.0, %v13001_v47  ;;  %v1625_v59 = vadd.f32 %v1561_v3, %v1241_v48  ;;  %v2194_v17 = vpop.permute.xlu0 %2193 }
 0x3f7   : > { %6542 = vmatmul.msk.f32.gmra.mxu0 %vm2960_vm10, %v2391_v10  ;;  %v2392_v40 = vadd.f32 %v2328_v25, %v2008_v63  ;;  %v1945_v63 = vsel %vm1881_vm6, 1.0, %v13001_v47  ;;  %v1429_v3 = vpop.permute.xlu1 %1428  ;;  %v794_v25 = vsel %vm730_vm7, 1.0, %v13001_v47  ;;  %vm2266_vm2 = vcmp.eq.s32.totalorder %v2194_v17, %v8516_v6 }
 0x3f8   : > { %v3473_v54 = vmax.f32 %v3409_v12, 0.0  ;;  %v3930_v16 = vmax.f32 %v3785_v36, 0.0  ;;  %v13113_v12 = vld [vmem:[#allocation4_spill] sm:$0xff]  ;;  %v10668_v36 = vpop.f32.mrf.mxu0  ;;  %v2009_v43 = vadd.f32 %v1945_v63, %v1625_v59  ;;  %vm1499_vm0 = vcmp.eq.s32.totalorder %v1429_v3, %v8516_v6 }
 0x3f9   : > { %v1813_v63 = vpop.permute.xlu2 %1812 }
 0x3fa   : > { %6396 = vmatmul.msk.f32.gmra.mxu2 %vm3505_vm15, %v3473_v54  ;;  %6573 = vmatmul.msk.f32.gmra.mxu3 %vm4398_vm11, %v3930_v16  ;;  %v2393_v56 = vadd.f32 %v2329_v52, %v2009_v43  ;;  %v1946_v43 = vsel %vm1882_vm13, 1.0, %v13001_v47  ;;  %vm1883_vm4 = vcmp.eq.s32.totalorder %v1813_v63, %v8516_v6 }
 0x3fb   : > { %v3296_v10 = vpop.f32.mrf.mxu1  ;;  %v1947_v63 = vsel %vm1883_vm4, 1.0, %v13001_v47  ;;  %vm6082_vm4 = vcmask 7168  }
 0x3fc   : > { %v3297_v14 = vadd.f32 %v3296_v10, %v13113_v12  ;;  %v1562_v10 = vsel %vm1498_vm8, 1.0, %v13001_v47 }
 0x3fd   : > { %v3787_v41 = vpop.f32.mrf.mxu2  ;;  %v10674_v5 = vpop.f32.mrf.mxu3 }
 0x3fe   : > { %v3410_v54 = vadd.f32 %v10453_v30, %v3297_v14  ;;  %6349 = vmatmul.msk.f32.gmra.mxu1 %vm2960_vm10, %v2392_v40  ;;  %v3788_v16 = vadd.f32 %v10464_v53, %v3787_v41  ;;  %v1242_v14 = vadd.f32 %v1178_v27, %v794_v25  ;;  %v2197_v3 = vpop.permute.xlu0 %2196 }
 0x3ff   : > { %6543 = vmatmul.msk.f32.gmra.mxu0 %vm2960_vm10, %v2392_v40  ;;  %vm2267_vm7 = vcmp.eq.s32.totalorder %v2197_v3, %v8516_v6 }
 0x400   : > { %v3474_v48 = vmax.f32 %v3410_v54, 0.0  ;;  %v3931_v12 = vmax.f32 %v3788_v16, 0.0  ;;  %v1626_v59 = vadd.f32 %v1562_v10, %v1242_v14  ;;  %v13116_v54 = vld [vmem:[#allocation5_spill] sm:$0xff]  ;;  %v13117_v16 = vld [vmem:[#allocation74_spill] sm:$0xff]  ;;  %v10702_v23 = vpop.f32.mrf.mxu0 }
 0x401   : > { %vm731_vm14 = vcmp.eq.s32.totalorder %v13117_v16, %v8516_v6 }
 0x402   : > { %6397 = vmatmul.msk.f32.gmra.mxu2 %vm3505_vm15, %v3474_v48  ;;  %6574 = vmatmul.msk.f32.gmra.mxu3 %vm4398_vm11, %v3931_v12  ;;  %v1179_v12 = vsel %vm1115_vm12, 1.0, %v13001_v47  ;;  %v2010_v14 = vadd.f32 %v1946_v43, %v1626_v59  ;;  %v795_v52 = vsel %vm731_vm14, 1.0, %v13001_v47 }
 0x403   : > { %v3299_v40 = vpop.f32.mrf.mxu1  ;;  %v1243_v16 = vadd.f32 %v1179_v12, %v795_v52 }
 0x404   : > { %v3300_v41 = vadd.f32 %v3299_v40, %v13116_v54  ;;  %v1563_v40 = vsel %vm1499_vm0, 1.0, %v13001_v47  ;;  %v1432_v54 = vpop.permute.xlu1 %1431 }
 0x405   : > { %v3790_v48 = vpop.f32.mrf.mxu2  ;;  %v10698_v25 = vpop.f32.mrf.mxu3  ;;  %v1627_v59 = vadd.f32 %v1563_v40, %v1243_v16  ;;  %vm1500_vm6 = vcmp.eq.s32.totalorder %v1432_v54, %v8516_v6  ;;  %v796_v54 = vsel %vm732_vm5, 1.0, %v13001_v47 }
 0x406   : > { %v3411_v27 = vadd.f32 %v10453_v30, %v3300_v41  ;;  %6350 = vmatmul.msk.f32.gmra.mxu1 %vm2960_vm10, %v2393_v56  ;;  %v3791_v10 = vadd.f32 %v10464_v53, %v3790_v48  ;;  %v2330_v48 = vsel %vm2266_vm2, 1.0, %v13001_v47  ;;  %v1564_v16 = vsel %vm1500_vm6, 1.0, %v13001_v47 }
 0x407   : > { %6544 = vmatmul.msk.f32.gmra.mxu0 %vm2960_vm10, %v2393_v56  ;;  %v2394_v56 = vadd.f32 %v2330_v48, %v2010_v14  ;;  %v1816_v14 = vpop.permute.xlu2 %1815  ;;  %v2011_v31 = vadd.f32 %v1947_v63, %v1627_v59  ;;  %v13122_v63 = vld [vmem:[#allocation14_spill] sm:$0xff] }
 0x408   : > { %v3475_v2 = vmax.f32 %v3411_v27, 0.0  ;;  %v3932_v41 = vmax.f32 %v3791_v10, 0.0  ;;  %v13119_v27 = vld [vmem:[#allocation15_spill] sm:$0xff]  ;;  %vm1884_vm9 = vcmp.eq.s32.totalorder %v1816_v14, %v8516_v6 }
 0x409   : > { %v1948_v14 = vsel %vm1884_vm9, 1.0, %v13001_v47 }
 0x40a   : > { %6398 = vmatmul.msk.f32.gmra.mxu2 %vm3505_vm15, %v3475_v2  ;;  %6575 = vmatmul.msk.f32.gmra.mxu3 %vm4398_vm11, %v3932_v41  ;;  %v1180_v2 = vsel %vm1116_vm3, 1.0, %v13001_v47  ;;  %v10730_v41 = vpop.f32.mrf.mxu0 }
 0x40b   : > { %v3302_v17 = vpop.f32.mrf.mxu1 }
 0x40c   : > { %v3303_v43 = vadd.f32 %v3302_v17, %v13119_v27  ;;  %v1244_v17 = vadd.f32 %v1180_v2, %v796_v54  ;;  %v2200_v27 = vpop.permute.xlu0 %2199  ;;  %v13123_v2 = vld [vmem:[#allocation65_spill] sm:$0xff] }
 0x40d   : > { %v3793_v10 = vpop.f32.mrf.mxu2  ;;  %v10721_v58 = vpop.f32.mrf.mxu3  ;;  %vm733_vm12 = vcmp.eq.s32.totalorder %v13123_v2, %v8516_v6  ;;  %vm2268_vm14 = vcmp.eq.s32.totalorder %v2200_v27, %v8516_v6 }
 0x40e   : > { %v3412_v12 = vadd.f32 %v10453_v30, %v3303_v43  ;;  %6351 = vmatmul.msk.f32.gmra.mxu1 %vm2960_vm10, %v2394_v56  ;;  %v3794_v52 = vadd.f32 %v10464_v53, %v3793_v10  ;;  %v13121_v43 = vld [vmem:[#allocation138_spill] sm:$0xff]  ;;  %v1435_v10 = vpop.permute.xlu1 %1434 }
 0x40f   : > { %6545 = vmatmul.msk.f32.gmra.mxu0 %vm2960_vm10, %v2394_v56  ;;  %vm1117_vm8 = vcmp.eq.s32.totalorder %v13121_v43, %v8516_v6  ;;  %v2331_v56 = vsel %vm2267_vm7, 1.0, %v13001_v47  ;;  %vm1501_vm13 = vcmp.eq.s32.totalorder %v1435_v10, %v8516_v6  ;;  %v797_v43 = vsel %vm733_vm12, 1.0, %v13001_v47 }
 0x410   : > { %v3476_v40 = vmax.f32 %v3412_v12, 0.0  ;;  %v3933_v48 = vmax.f32 %v3794_v52, 0.0  ;;  %v2395_v59 = vadd.f32 %v2331_v56, %v2011_v31  ;;  %v1628_v12 = vadd.f32 %v1564_v16, %v1244_v17 }
 0x411   : > { %v1565_v56 = vsel %vm1501_vm13, 1.0, %v13001_v47 }
 0x412   : > { %6399 = vmatmul.msk.f32.gmra.mxu2 %vm3505_vm15, %v3476_v40  ;;  %6576 = vmatmul.msk.f32.gmra.mxu3 %vm4398_vm11, %v3933_v48  ;;  %v1181_v48 = vsel %vm1117_vm8, 1.0, %v13001_v47  ;;  %v2012_v16 = vadd.f32 %v1948_v14, %v1628_v12  ;;  %v10756_v2 = vpop.f32.mrf.mxu0 }
 0x413   : > { %v3305_v3 = vpop.f32.mrf.mxu1 }
 0x414   : > { %v3306_v42 = vadd.f32 %v3305_v3, %v13122_v63  ;;  %v1245_v3 = vadd.f32 %v1181_v48, %v797_v43  ;;  %v2332_v63 = vsel %vm2268_vm14, 1.0, %v13001_v47  ;;  %v2203_v14 = vpop.permute.xlu0 %2202 }
 0x415   : > { %v3796_v40 = vpop.f32.mrf.mxu2  ;;  %v10744_v54 = vpop.f32.mrf.mxu3  ;;  %v2396_v27 = vadd.f32 %v2332_v63, %v2012_v16  ;;  %vm2269_vm2 = vcmp.eq.s32.totalorder %v2203_v14, %v8516_v6  ;;  %v13126_v14 = vld [vmem:[#allocation17_spill] sm:$0xff] }
 0x416   : > { %v3413_v52 = vadd.f32 %v10453_v30, %v3306_v42  ;;  %6352 = vmatmul.msk.f32.gmra.mxu1 %vm2960_vm10, %v2395_v59  ;;  %v3797_v31 = vadd.f32 %v10464_v53, %v3796_v40  ;;  %v1819_v42 = vpop.permute.xlu2 %1818  ;;  %v1629_v12 = vadd.f32 %v1565_v56, %v1245_v3 }
 0x417   : > { %6546 = vmatmul.msk.f32.gmra.mxu0 %vm2960_vm10, %v2395_v59  ;;  %vm1885_vm0 = vcmp.eq.s32.totalorder %v1819_v42, %v8516_v6 }
 0x418   : > { %v3477_v17 = vmax.f32 %v3413_v52, 0.0  ;;  %v3934_v10 = vmax.f32 %v3797_v31, 0.0  ;;  %v13124_v52 = vld [vmem:[#allocation6_spill] sm:$0xff] }
 0x41a   : > { %6400 = vmatmul.msk.f32.gmra.mxu2 %vm3505_vm15, %v3477_v17  ;;  %6577 = vmatmul.msk.f32.gmra.mxu3 %vm4398_vm11, %v3934_v10  ;;  %v1949_v17 = vsel %vm1885_vm0, 1.0, %v13001_v47  ;;  %v2333_v10 = vsel %vm2269_vm2, 1.0, %v13001_v47 }
 0x41b   : > { %v3308_v59 = vpop.f32.mrf.mxu1  ;;  %v2013_v16 = vadd.f32 %v1949_v17, %v1629_v12 }
 0x41c   : > { %v3309_v40 = vadd.f32 %v3308_v59, %v13124_v52  ;;  %v13125_v59 = vld [vmem:[#allocation18_spill] sm:$0xff] }
 0x41d   : > { %v3799_v31 = vpop.f32.mrf.mxu2  ;;  %v10762_v48 = vpop.f32.mrf.mxu3  ;;  %v2397_v63 = vadd.f32 %v2333_v10, %v2013_v16 }
 0x41e   : > { %v3414_v32 = vadd.f32 %v10453_v30, %v3309_v40  ;;  %6353 = vmatmul.msk.f32.gmra.mxu1 %vm2960_vm10, %v2396_v27  ;;  %v3800_v43 = vadd.f32 %v10464_v53, %v3799_v31  ;;  %v10773_v40 = vpop.f32.mrf.mxu0 }
 0x41f   : > { %6547 = vmatmul.msk.f32.gmra.mxu0 %vm2960_vm10, %v2396_v27 }
 0x420   : > { %v3478_v42 = vmax.f32 %v3414_v32, 0.0  ;;  %v3935_v56 = vmax.f32 %v3800_v43, 0.0 }
 0x422   : > { %6401 = vmatmul.msk.f32.gmra.mxu2 %vm3505_vm15, %v3478_v42  ;;  %6578 = vmatmul.msk.f32.gmra.mxu3 %vm4398_vm11, %v3935_v56  ;;  %v13127_v56 = vld [vmem:[#allocation64_spill] sm:$0xff] }
 0x423   : > { %v3311_v3 = vpop.f32.mrf.mxu1  ;;  %v13128_v10 = vunpack.c.l.bf16 %v13127_v56 }
 0x424   : > { %v3312_v52 = vadd.f32 %v3311_v3, %v13125_v59  ;;  %v13129_v59 = vld [vmem:[#allocation10_spill] sm:$0xff] }
 0x425   : > { %v3802_v27 = vpop.f32.mrf.mxu2  ;;  %v10776_v50 = vpop.f32.mrf.mxu3 }
 0x426   : > { %v3415_v31 = vadd.f32 %v10453_v30, %v3312_v52  ;;  %6354 = vmatmul.msk.f32.gmra.mxu1 %vm2960_vm10, %v2397_v63  ;;  %v3803_v6 = vadd.f32 %v10464_v53, %v3802_v27  ;;  %v10790_v3 = vpop.f32.mrf.mxu0 }
 0x427   : > { %6548 = vmatmul.msk.f32.gmra.mxu0 %vm2960_vm10, %v2397_v63 }
 0x428   : > { %v3479_v47 = vmax.f32 %v3415_v31, 0.0  ;;  %v3936_v32 = vmax.f32 %v3803_v6, 0.0  ;;  %v13130_v6 = vld [vmem:[#allocation7_spill] sm:$0xff] }
 0x42a   : > { %6402 = vmatmul.msk.f32.gmra.mxu2 %vm3505_vm15, %v3479_v47  ;;  %6579 = vmatmul.msk.f32.gmra.mxu3 %vm4398_vm11, %v3936_v32 }
 0x42b   : > { %v3314_v12 = vpop.f32.mrf.mxu1 }
 0x42c   : > { %v3315_v17 = vadd.f32 %v3314_v12, %v13126_v14 }
 0x42d   : > { %v3805_v16 = vpop.f32.mrf.mxu2  ;;  %v10785_v42 = vpop.f32.mrf.mxu3 }
 0x42e   : > { %v3416_v43 = vadd.f32 %v10453_v30, %v3315_v17  ;;  %6421 = vmatmul.msk.f32.vlgmr.msrb.gmra.mxu1 %vm2554_vm1, %v13128_v10  ;;  %v3806_v63 = vadd.f32 %v10464_v53, %v3805_v16  ;;  %v13131_v17 = vunpack.c.h.bf16 %v13127_v56 }
 0x42f   : > { %6549 = vmatmul.msk.f32.gmra.mxu0 %vm2960_vm10, %v13129_v59  ;;  %v13132_v59 = vld [vmem:[#allocation23_spill] sm:$0xff] }
 0x430   : > { %v3480_v52 = vmax.f32 %v3416_v43, 0.0  ;;  %v3937_v31 = vmax.f32 %v3806_v63, 0.0 }
 0x432   : > { %6403 = vmatmul.msk.f32.gmra.mxu2 %vm3505_vm15, %v3480_v52  ;;  %6580 = vmatmul.msk.f32.gmra.mxu3 %vm4398_vm11, %v3937_v31 }
 0x433   : > { %v3317_v27 = vpop.f32.mrf.mxu1 }
 0x434   : > { %v3318_v47 = vadd.f32 %v3317_v27, %v13130_v6 }
 0x435   : > { %v3808_v12 = vpop.f32.mrf.mxu2  ;;  %v10799_v14 = vpop.f32.mrf.mxu3 }
 0x436   : > { %v3417_v32 = vadd.f32 %v10453_v30, %v3318_v47  ;;  %6422 = vmatmul.msk.f32.gmra.mxu1 %vm2554_vm1, %v13131_v17  ;;  %v3809_v16 = vadd.f32 %v10464_v53, %v3808_v12  ;;  %v13133_v47 = vld [vmem:[#allocation70_spill] sm:$0xff] }
 0x437   : > { %v13134_v56 = vunpack.c.l.bf16 %v13133_v47  ;;  %v13136_v18 = vunpack.c.h.bf16 %v13133_v47  ;;  %v13139_v47 = vunpack.c.l.bf16 %v13138_v20  ;;  %v13145_v20 = vunpack.c.l.bf16 %v13144_v37 }
 0x438   : > { %v3481_v43 = vmax.f32 %v3417_v32, 0.0  ;;  %v3938_v10 = vmax.f32 %v3809_v16, 0.0  ;;  %v13152_v37 = vunpack.c.l.bf16 %v13151_v44  ;;  %v13159_v44 = vunpack.c.l.bf16 %v13158_v45 }
 0x43a   : > { %6404 = vmatmul.msk.f32.gmra.mxu2 %vm3505_vm15, %v3481_v43  ;;  %6581 = vmatmul.msk.f32.gmra.mxu3 %vm4398_vm11, %v3938_v10  ;;  %v13135_v43 = vld [vmem:[#allocation76_spill] sm:$0xff] }
 0x43b   : > { %v3320_v63 = vpop.f32.mrf.mxu1 }
 0x43c   : > { %v3321_v52 = vadd.f32 %v3320_v63, %v13132_v59 }
 0x43d   : > { %v3811_v27 = vpop.f32.mrf.mxu2  ;;  %v10809_v6 = vpop.f32.mrf.mxu3 }
 0x43e   : > { %v3418_v31 = vadd.f32 %v10453_v30, %v3321_v52  ;;  %6423 = vmatmul.msk.f32.gmra.mxu1 %vm2554_vm1, %v13134_v56  ;;  %v3812_v12 = vadd.f32 %v10464_v53, %v3811_v27 }
 0x440   : > { %v3482_v32 = vmax.f32 %v3418_v31, 0.0  ;;  %v3939_v17 = vmax.f32 %v3812_v12, 0.0 }
 0x442   : > { %6405 = vmatmul.msk.f32.gmra.mxu2 %vm3505_vm15, %v3482_v32  ;;  %6582 = vmatmul.msk.f32.gmra.mxu3 %vm4398_vm11, %v3939_v17  ;;  %v13137_v32 = vld [vmem:[#allocation28_spill] sm:$0xff] }
 0x443   : > { %v3323_v16 = vpop.f32.mrf.mxu1 }
 0x444   : > { %v3324_v10 = vadd.f32 %v3323_v16, %v13135_v43 }
 0x445   : > { %v3814_v59 = vpop.f32.mrf.mxu2  ;;  %v10819_v52 = vpop.f32.mrf.mxu3 }
 0x446   : > { %v3419_v63 = vadd.f32 %v10453_v30, %v3324_v10  ;;  %6424 = vmatmul.msk.f32.gmra.mxu1 %vm2554_vm1, %v13136_v18  ;;  %v3815_v27 = vadd.f32 %v10464_v53, %v3814_v59 }
 0x448   : > { %v3483_v31 = vmax.f32 %v3419_v63, 0.0  ;;  %v3940_v56 = vmax.f32 %v3815_v27, 0.0 }
 0x44a   : > { %6406 = vmatmul.msk.f32.gmra.mxu2 %vm3505_vm15, %v3483_v31  ;;  %6583 = vmatmul.msk.f32.gmra.mxu3 %vm4398_vm11, %v3940_v56  ;;  %v13140_v31 = vld [vmem:[#allocation27_spill] sm:$0xff] }
 0x44b   : > { %v3326_v12 = vpop.f32.mrf.mxu1 }
 0x44c   : > { %v3327_v17 = vadd.f32 %v3326_v12, %v13137_v32 }
 0x44d   : > { %v3817_v43 = vpop.f32.mrf.mxu2  ;;  %v10829_v10 = vpop.f32.mrf.mxu3 }
 0x44e   : > { %v3420_v16 = vadd.f32 %v10453_v30, %v3327_v17  ;;  %6425 = vmatmul.msk.f32.gmra.mxu1 %vm2554_vm1, %v13139_v47  ;;  %v3818_v18 = vadd.f32 %v10464_v53, %v3817_v43 }
 0x450   : > { %v3484_v63 = vmax.f32 %v3420_v16, 0.0  ;;  %v3941_v59 = vmax.f32 %v3818_v18, 0.0 }
 0x452   : > { %6407 = vmatmul.msk.f32.gmra.mxu2 %vm3505_vm15, %v3484_v63  ;;  %6584 = vmatmul.msk.f32.gmra.mxu3 %vm4398_vm11, %v3941_v59  ;;  %v13142_v63 = vld [vmem:[#allocation13_spill] sm:$0xff] }
 0x453   : > { %v3329_v27 = vpop.f32.mrf.mxu1 }
 0x454   : > { %v3330_v56 = vadd.f32 %v3329_v27, %v13140_v31 }
 0x455   : > { %v3820_v32 = vpop.f32.mrf.mxu2  ;;  %v10839_v17 = vpop.f32.mrf.mxu3 }
 0x456   : > { %v3421_v12 = vadd.f32 %v10453_v30, %v3330_v56  ;;  %6426 = vmatmul.msk.f32.gmra.mxu1 %vm2554_vm1, %v13141_v13  ;;  %v3821_v43 = vadd.f32 %v10464_v53, %v3820_v32 }
 0x458   : > { %v3485_v16 = vmax.f32 %v3421_v12, 0.0  ;;  %v3942_v47 = vmax.f32 %v3821_v43, 0.0 }
 0x45a   : > { %6408 = vmatmul.msk.f32.gmra.mxu2 %vm3505_vm15, %v3485_v16  ;;  %6585 = vmatmul.msk.f32.gmra.mxu3 %vm4398_vm11, %v3942_v47  ;;  %v13146_v16 = vld [vmem:[#allocation79_spill] sm:$0xff] }
 0x45b   : > { %v3332_v18 = vpop.f32.mrf.mxu1 }
 0x45c   : > { %v3333_v59 = vadd.f32 %v3332_v18, %v13142_v63 }
 0x45d   : > { %v3823_v31 = vpop.f32.mrf.mxu2  ;;  %v10849_v56 = vpop.f32.mrf.mxu3 }
 0x45e   : > { %v3422_v27 = vadd.f32 %v10453_v30, %v3333_v59  ;;  %13143 = vst [vmem:[#allocation34_spill] sm:$0xff] %v10849_v56  ;;  %6427 = vmatmul.msk.f32.gmra.mxu1 %vm2554_vm1, %v13145_v20  ;;  %v3824_v13 = vadd.f32 %v10464_v53, %v3823_v31  ;;  %v13230_v56 = vld [vmem:[#allocation140_spill] sm:$0xff] }
 0x460   : > { %v3486_v12 = vmax.f32 %v3422_v27, 0.0  ;;  %v3943_v32 = vmax.f32 %v3824_v13, 0.0 }
 0x462   : > { %6409 = vmatmul.msk.f32.gmra.mxu2 %vm3505_vm15, %v3486_v12  ;;  %6586 = vmatmul.msk.f32.gmra.mxu3 %vm4398_vm11, %v3943_v32  ;;  %v13149_v12 = vld [vmem:[#allocation103_spill] sm:$0xff] }
 0x463   : > { %v3335_v43 = vpop.f32.mrf.mxu1 }
 0x464   : > { %v3336_v47 = vadd.f32 %v3335_v43, %v13146_v16 }
 0x465   : > { %v3826_v63 = vpop.f32.mrf.mxu2  ;;  %v10859_v59 = vpop.f32.mrf.mxu3 }
 0x466   : > { %v3423_v18 = vadd.f32 %v10453_v30, %v3336_v47  ;;  %13147 = vst [vmem:[#allocation3_spill] sm:$0xff] %v10859_v59  ;;  %6428 = vmatmul.msk.f32.gmra.mxu1 %vm2554_vm1, %v13148_v1  ;;  %v3827_v31 = vadd.f32 %v10464_v53, %v3826_v63 }
 0x468   : > { %v3487_v27 = vmax.f32 %v3423_v18, 0.0  ;;  %v3944_v20 = vmax.f32 %v3827_v31, 0.0 }
 0x46a   : > { %6410 = vmatmul.msk.f32.gmra.mxu2 %vm3505_vm15, %v3487_v27  ;;  %6587 = vmatmul.msk.f32.gmra.mxu3 %vm4398_vm11, %v3944_v20  ;;  %v13153_v27 = vld [vmem:[#allocation108_spill] sm:$0xff] }
 0x46b   : > { %v3338_v13 = vpop.f32.mrf.mxu1 }
 0x46c   : > { %v3339_v32 = vadd.f32 %v3338_v13, %v13149_v12 }
 0x46d   : > { %v3829_v16 = vpop.f32.mrf.mxu2  ;;  %v10869_v47 = vpop.f32.mrf.mxu3 }
 0x46e   : > { %v3424_v43 = vadd.f32 %v10453_v30, %v3339_v32  ;;  %13150 = vst [vmem:[#allocation151_spill] sm:$0xff] %v10869_v47  ;;  %6429 = vmatmul.msk.f32.gmra.mxu1 %vm2554_vm1, %v13152_v37  ;;  %v3830_v1 = vadd.f32 %v10464_v53, %v3829_v16 }
 0x470   : > { %v3488_v18 = vmax.f32 %v3424_v43, 0.0  ;;  %v3945_v63 = vmax.f32 %v3830_v1, 0.0 }
 0x472   : > { %6411 = vmatmul.msk.f32.gmra.mxu2 %vm3505_vm15, %v3488_v18  ;;  %6588 = vmatmul.msk.f32.gmra.mxu3 %vm4398_vm11, %v3945_v63  ;;  %v13156_v18 = vld [vmem:[#allocation112_spill] sm:$0xff] }
 0x473   : > { %v3341_v31 = vpop.f32.mrf.mxu1 }
 0x474   : > { %v3342_v20 = vadd.f32 %v3341_v31, %v13153_v27 }
 0x475   : > { %v3832_v12 = vpop.f32.mrf.mxu2  ;;  %v10879_v32 = vpop.f32.mrf.mxu3 }
 0x476   : > { %v3425_v13 = vadd.f32 %v10453_v30, %v3342_v20  ;;  %13154 = vst [vmem:[#allocation48_spill] sm:$0xff] %v10879_v32  ;;  %6430 = vmatmul.msk.f32.gmra.mxu1 %vm2554_vm1, %v13155_v26  ;;  %v3833_v16 = vadd.f32 %v10464_v53, %v3832_v12 }
 0x478   : > { %v3489_v43 = vmax.f32 %v3425_v13, 0.0  ;;  %v3946_v37 = vmax.f32 %v3833_v16, 0.0 }
 0x47a   : > { %6412 = vmatmul.msk.f32.gmra.mxu2 %vm3505_vm15, %v3489_v43  ;;  %6589 = vmatmul.msk.f32.gmra.mxu3 %vm4398_vm11, %v3946_v37  ;;  %v13160_v43 = vld [vmem:[#allocation163_spill] sm:$0xff] }
 0x47b   : > { %v3344_v1 = vpop.f32.mrf.mxu1 }
 0x47c   : > { %v3345_v63 = vadd.f32 %v3344_v1, %v13156_v18 }
 0x47d   : > { %v3835_v27 = vpop.f32.mrf.mxu2  ;;  %v10889_v20 = vpop.f32.mrf.mxu3 }
 0x47e   : > { %v3426_v31 = vadd.f32 %v10453_v30, %v3345_v63  ;;  %13157 = vst [vmem:[#allocation97_spill] sm:$0xff] %v10889_v20  ;;  %6431 = vmatmul.msk.f32.gmra.mxu1 %vm2554_vm1, %v13159_v44  ;;  %v3836_v26 = vadd.f32 %v10464_v53, %v3835_v27  ;;  %v13162_v20 = vunpack.c.h.bf16 %v13158_v45 }
 0x480   : > { %v3490_v13 = vmax.f32 %v3426_v31, 0.0  ;;  %v3947_v12 = vmax.f32 %v3836_v26, 0.0 }
 0x482   : > { %6413 = vmatmul.msk.f32.gmra.mxu2 %vm3505_vm15, %v3490_v13  ;;  %6590 = vmatmul.msk.f32.gmra.mxu3 %vm4398_vm11, %v3947_v12  ;;  %v13163_v13 = vld [vmem:[#allocation35_spill] sm:$0xff] }
 0x483   : > { %v3347_v16 = vpop.f32.mrf.mxu1 }
 0x484   : > { %v3348_v37 = vadd.f32 %v3347_v16, %v13160_v43 }
 0x485   : > { %v3838_v18 = vpop.f32.mrf.mxu2  ;;  %v10899_v63 = vpop.f32.mrf.mxu3 }
 0x486   : > { %v3427_v1 = vadd.f32 %v10453_v30, %v3348_v37  ;;  %13161 = vst [vmem:[#allocation156_spill] sm:$0xff] %v10899_v63  ;;  %6432 = vmatmul.msk.f32.gmra.mxu1 %vm2554_vm1, %v13162_v20  ;;  %v3839_v27 = vadd.f32 %v10464_v53, %v3838_v18  ;;  %v13165_v63 = vld [vmem:[#allocation85_spill] sm:$0xff] }
 0x487   : > { %v13166_v45 = vunpack.c.l.bf16 %v13165_v63 }
 0x488   : > { %v3491_v31 = vmax.f32 %v3427_v1, 0.0  ;;  %v3948_v44 = vmax.f32 %v3839_v27, 0.0 }
 0x48a   : > { %6414 = vmatmul.msk.f32.gmra.mxu2 %vm3505_vm15, %v3491_v31  ;;  %6591 = vmatmul.msk.f32.gmra.mxu3 %vm4398_vm11, %v3948_v44 }
 0x48b   : > { %v3350_v26 = vpop.f32.mrf.mxu1 }
 0x48c   : > { %v3351_v12 = vadd.f32 %v3350_v26, %v13163_v13 }
 0x48d   : > { %v3841_v43 = vpop.f32.mrf.mxu2  ;;  %v10909_v37 = vpop.f32.mrf.mxu3 }
 0x48e   : > { %v3428_v16 = vadd.f32 %v10453_v30, %v3351_v12  ;;  %13164 = vst [vmem:[#allocation47_spill] sm:$0xff] %v10909_v37  ;;  %6433 = vmatmul.msk.f32.gmra.mxu1 %vm2554_vm1, %v13166_v45  ;;  %v3842_v20 = vadd.f32 %v10464_v53, %v3841_v43  ;;  %v13168_v12 = vunpack.c.h.bf16 %v13165_v63 }
 0x490   : > { %v3492_v1 = vmax.f32 %v3428_v16, 0.0  ;;  %v3949_v18 = vmax.f32 %v3842_v20, 0.0 }
 0x492   : > { %6415 = vmatmul.msk.f32.gmra.mxu2 %vm3505_vm15, %v3492_v1  ;;  %6592 = vmatmul.msk.f32.gmra.mxu3 %vm4398_vm11, %v3949_v18 }
 0x493   : > { %v3353_v27 = vpop.f32.mrf.mxu1 }
 0x494   : > { %v3354_v31 = vadd.f32 %v3353_v27, %v9638_v33 }
 0x495   : > { %v3844_v26 = vpop.f32.mrf.mxu2  ;;  %v10919_v13 = vpop.f32.mrf.mxu3 }
 0x496   : > { %v3429_v44 = vadd.f32 %v10453_v30, %v3354_v31  ;;  %13167 = vst [vmem:[#allocation101_spill] sm:$0xff] %v10919_v13  ;;  %6434 = vmatmul.msk.f32.gmra.mxu1 %vm2554_vm1, %v13168_v12  ;;  %v3845_v43 = vadd.f32 %v10464_v53, %v3844_v26  ;;  %v13170_v31 = vld [vmem:[#allocation91_spill] sm:$0xff] }
 0x497   : > { %v13171_v63 = vunpack.c.l.bf16 %v13170_v31 }
 0x498   : > { %v3493_v16 = vmax.f32 %v3429_v44, 0.0  ;;  %v3950_v45 = vmax.f32 %v3845_v43, 0.0 }
 0x49a   : > { %6416 = vmatmul.msk.f32.gmra.mxu2 %vm3505_vm15, %v3493_v16  ;;  %6593 = vmatmul.msk.f32.gmra.mxu3 %vm4398_vm11, %v3950_v45 }
 0x49b   : > { %v3356_v20 = vpop.f32.mrf.mxu1 }
 0x49c   : > { %v3357_v33 = vadd.f32 %v3356_v20, %v9687_v34 }
 0x49d   : > { %v3847_v18 = vpop.f32.mrf.mxu2  ;;  %v10929_v27 = vpop.f32.mrf.mxu3 }
 0x49e   : > { %v3430_v1 = vadd.f32 %v10453_v30, %v3357_v33  ;;  %13169 = vst [vmem:[#allocation160_spill] sm:$0xff] %v10929_v27  ;;  %6435 = vmatmul.msk.f32.gmra.mxu1 %vm2554_vm1, %v13171_v63  ;;  %v3848_v26 = vadd.f32 %v10464_v53, %v3847_v18  ;;  %v7236_v30 = vld [vmem:[%s12515_s5] ss:$0 sm:$0xff]  ;;  %v13173_v53 = vunpack.c.h.bf16 %v13170_v31 }
 0x49f   : > { %v10949_v33 = vld [vmem:[%s12517_s7] ss:$0 sm:$0xff] }
 0x4a0   : > { %v3494_v44 = vmax.f32 %v3430_v1, 0.0  ;;  %v3951_v12 = vmax.f32 %v3848_v26, 0.0  ;;  %v3363_v1 = vadd.f32 %v9824_v35, %v9779_v61 }
 0x4a2   : > { %6417 = vmatmul.msk.f32.gmra.mxu2 %vm3505_vm15, %v3494_v44  ;;  %6594 = vmatmul.msk.f32.gmra.mxu3 %vm4398_vm11, %v3951_v12  ;;  %v3432_v31 = vadd.f32 %v7236_v30, %v3363_v1  ;;  %v13174_v44 = vld [vmem:[#allocation154_spill] sm:$0xff]  ;;  %v10968_v1 = vpop.f32.mrf.mxu0 }
 0x4a3   : > { %v3359_v43 = vpop.f32.mrf.mxu1 }
 0x4a4   : > { %v3360_v34 = vadd.f32 %v3359_v43, %v9732_v55  ;;  %v10957_v43 = vstv %s4800_s29  ;;  %v3496_v35 = vmax.f32 %v3432_v31, 0.0 }
 0x4a5   : > { %v3850_v45 = vpop.f32.mrf.mxu2  ;;  %v10941_v20 = vpop.f32.mrf.mxu3 }
 0x4a6   : > { %v3431_v16 = vadd.f32 %v7236_v30, %v3360_v34  ;;  %13172 = vst [vmem:[#allocation37_spill] sm:$0xff] %v10941_v20  ;;  %6436 = vmatmul.msk.f32.gmra.mxu1 %vm2554_vm1, %v13173_v53  ;;  %v3851_v55 = vadd.f32 %v10949_v33, %v3850_v45  ;;  %v13176_v45 = vld [vmem:[#allocation98_spill] sm:$0xff] }
 0x4a7   : > { %v13177_v27 = vunpack.c.l.bf16 %v13176_v45  ;;  %v13180_v31 = vunpack.c.h.bf16 %v13176_v45 }
 0x4a8   : > { %v3495_v18 = vmax.f32 %v3431_v16, 0.0  ;;  %v3952_v63 = vmax.f32 %v3851_v55, 0.0 }
 0x4aa   : > { %6418 = vmatmul.msk.f32.gmra.mxu2 %vm3505_vm15, %v3495_v18  ;;  %6595 = vmatmul.msk.f32.gmra.mxu3 %vm4398_vm11, %v3952_v63  ;;  %v13178_v18 = vld [vmem:[#allocation25_spill] sm:$0xff] }
 0x4ab   : > { %v3994_v26 = vpop.f32.mrf.mxu1 }
 0x4ac   : > { %v4207_v12 = vadd.f32 %v13174_v44, %v3994_v26 }
 0x4ad   : > { %v3853_v53 = vpop.f32.mrf.mxu2  ;;  %v10960_v20 = vpop.f32.mrf.mxu3 }
 0x4ae   : > { %v4609_v34 = vadd.f32 %v10456_v15, %v4207_v12  ;;  %13175 = vst [vmem:[#allocation88_spill] sm:$0xff] %v10960_v20  ;;  %6437 = vmatmul.msk.f32.gmra.mxu1 %vm2554_vm1, %v13177_v27  ;;  %v3854_v61 = vadd.f32 %v10949_v33, %v3853_v53 }
 0x4b0   : > { %v4802_v16 = vadd.f32 %v10957_v43, %v4609_v34  ;;  %v3953_v55 = vmax.f32 %v3854_v61, 0.0 }
 0x4b2   : > { %v6614_v30 = vmul.f32 -1.442695, %v4802_v16  ;;  %6419 = vmatmul.msk.f32.gmra.mxu2 %vm3505_vm15, %v3496_v35  ;;  %6596 = vmatmul.msk.f32.gmra.mxu3 %vm4398_vm11, %v3953_v55 }
 0x4b3   : > { %v3997_v15 = vpop.f32.mrf.mxu1 }
 0x4b4   : > { %6919 = vpow2.f32 %v6614_v30  ;;  %v4210_v63 = vadd.f32 %v13178_v18, %v3997_v15  ;;  %v13182_v15 = vld [vmem:[#allocation22_spill] sm:$0xff]  ;;  %v10986_v18 = vpop.f32.mrf.mxu0 }
 0x4b5   : > { %v3856_v27 = vpop.f32.mrf.mxu2  ;;  %v10973_v44 = vpop.f32.mrf.mxu3  ;;  %v4300_v45 = vadd.f32 %v10571_v38, %v13182_v15 }
 0x4b6   : > { %v4612_v26 = vadd.f32 %v10499_v7, %v4210_v63  ;;  %13179 = vst [vmem:[#allocation165_spill] sm:$0xff] %v10973_v44  ;;  %6438 = vmatmul.msk.f32.gmra.mxu1 %vm2554_vm1, %v13180_v31  ;;  %v3857_v12 = vadd.f32 %v10949_v33, %v3856_v27  ;;  %v13181_v7 = vld [vmem:[#allocation30_spill] sm:$0xff]  ;;  %v13183_v31 = vld [vmem:[#allocation107_spill] sm:$0xff] }
 0x4b8   : > { %v4803_v34 = vadd.f32 %v10957_v43, %v4612_v26  ;;  %v3954_v53 = vmax.f32 %v3857_v12, 0.0  ;;  %v13184_v12 = vunpack.c.l.bf16 %v13183_v31 }
 0x4ba   : > { %v6920_v61 = vpop.eup %6919  ;;  %v6615_v35 = vmul.f32 -1.442695, %v4803_v34  ;;  %6597 = vmatmul.msk.f32.gmra.mxu3 %vm4398_vm11, %v3954_v53 }
 0x4bb   : > { %v10980_v16 = vadd.f32 1.0, %v6920_v61  ;;  %v4000_v55 = vpop.f32.mrf.mxu1 }
 0x4bc   : > { %6921 = vpow2.f32 %v6615_v35  ;;  %v4213_v30 = vadd.f32 %v13181_v7, %v4000_v55 }
 0x4bd   : > { %6923 = vrcp.f32 %v10980_v16  ;;  %v3859_v26 = vpop.f32.mrf.mxu2  ;;  %v4701_v27 = vpop.f32.mrf.mxu3  ;;  %vm5127_vm15 = vweird.f32 %v10980_v16 }
 0x4be   : > { %v4615_v63 = vadd.f32 %v10531_v8, %v4213_v30  ;;  %6439 = vmatmul.msk.f32.gmra.mxu1 %vm2554_vm1, %v13184_v12  ;;  %v3860_v34 = vadd.f32 %v10949_v33, %v3859_v26  ;;  %v4702_v53 = vadd.f32 %v4701_v27, %v4300_v45  ;;  %v13185_v12 = vld [vmem:[#allocation99_spill] sm:$0xff] }
 0x4bf   : > { %v13186_v45 = vld [vmem:[#allocation127_spill] sm:$0xff] }
 0x4c0   : > { %v4804_v61 = vadd.f32 %v10957_v43, %v4615_v63  ;;  %v3955_v35 = vmax.f32 %v3860_v34, 0.0  ;;  %v4833_v38 = vadd.f32 %v10957_v43, %v4702_v53  ;;  %v4303_v63 = vadd.f32 %v10605_v46, %v13186_v45 }
 0x4c2   : > { %v6922_v55 = vpop.eup %6921  ;;  %v6616_v7 = vmul.f32 -1.442695, %v4804_v61  ;;  %v6645_v8 = vmul.f32 -1.442695, %v4833_v38  ;;  %6598 = vmatmul.msk.f32.gmra.mxu3 %vm4398_vm11, %v3955_v35  ;;  %v13187_v38 = vunpack.c.h.bf16 %v13183_v31  ;;  %v11008_v35 = vpop.f32.mrf.mxu0  ;;  %v13189_v31 = vld [vmem:[#allocation152_spill] sm:$0xff] }
 0x4c3   : > { %v6924_v15 = vpop.eup %6923  ;;  %v10996_v44 = vadd.f32 1.0, %v6922_v55  ;;  %v4003_v30 = vpop.f32.mrf.mxu1  ;;  %v5133_v55 = vand.u32 2147483648, %v10980_v16 }
 0x4c4   : > { %v5123_v20 = vmul.f32 %v6924_v15, %v10980_v16  ;;  %6925 = vpow2.f32 %v6616_v7  ;;  %v4216_v26 = vadd.f32 %v13185_v12, %v4003_v30  ;;  %vm5128_vm10 = vweird.f32 %v6924_v15 }
 0x4c5   : > { %6927 = vrcp.f32 %v10996_v44  ;;  %v3862_v53 = vpop.f32.mrf.mxu2  ;;  %v4704_v61 = vpop.f32.mrf.mxu3  ;;  %vm5129_vm3 = vmor %vm5127_vm15, %vm5128_vm10  ;;  %vm5142_vm7 = vweird.f32 %v10996_v44 }
 0x4c6   : > { %v5124_v27 = vsub.f32 1.0, %v5123_v20  ;;  %6929 = vpow2.f32 %v6645_v8  ;;  %v4618_v34 = vadd.f32 %v10564_v24, %v4216_v26  ;;  %6440 = vmatmul.msk.f32.gmra.mxu1 %vm2554_vm1, %v13187_v38  ;;  %v3863_v7 = vadd.f32 %v10949_v33, %v3862_v53  ;;  %v13188_v8 = vld [vmem:[#allocation78_spill] sm:$0xff]  ;;  %v13190_v53 = vld [vmem:[#allocation144_spill] sm:$0xff] }
 0x4c7   : > { %v4705_v46 = vadd.f32 %v4704_v61, %v4303_v63  ;;  %v5131_v20 = vand.u32 2147483647, %v10980_v16  ;;  %v4306_v12 = vadd.f32 %v10638_v51, %v13188_v8  ;;  %v11018_v26 = vadd.f32 %v10668_v36, %v13189_v31  ;;  %v13192_v31 = vld [vmem:[#allocation162_spill] sm:$0xff] }
 0x4c8   : > { %v5125_v30 = vmul.f32 %v6924_v15, %v5124_v27  ;;  %v4805_v24 = vadd.f32 %v10957_v43, %v4618_v34  ;;  %v3956_v45 = vmax.f32 %v3863_v7, 0.0  ;;  %v11023_v63 = vadd.f32 %v10702_v23, %v13190_v53 }
 0x4c9   : > { %v4834_v38 = vadd.f32 %v10957_v43, %v4705_v46  ;;  %v5134_v51 = vor.u32 1.1754944e-38, %v5133_v55  ;;  %vm5132_vm5 = vcmp.eq.f32.partialorder %v5131_v20, 8.507059e+37  ;;  %v11043_v55 = vadd.f32 %v10756_v2, %v13192_v31 }
 0x4ca   : > { %v6926_v13 = vpop.eup %6925  ;;  %v5126_v27 = vadd.f32 %v6924_v15, %v5125_v30  ;;  %v6617_v61 = vmul.f32 -1.442695, %v4805_v24  ;;  %6599 = vmatmul.msk.f32.gmra.mxu3 %vm4398_vm11, %v3956_v45  ;;  %v13191_v24 = vld [vmem:[#allocation150_spill] sm:$0xff] }
 0x4cb   : > { %v6928_v34 = vpop.eup %6927  ;;  %v11033_v36 = vadd.f32 1.0, %v6926_v13  ;;  %v6646_v7 = vmul.f32 -1.442695, %v4834_v38  ;;  %v4006_v23 = vpop.f32.mrf.mxu1  ;;  %v11039_v8 = vadd.f32 %v10730_v41, %v13191_v24 }
 0x4cc   : > { %v6930_v46 = vpop.eup %6929  ;;  %v5130_v16 = vsel %vm5129_vm3, %v6924_v15, %v5126_v27  ;;  %v5138_v30 = vmul.f32 %v6928_v34, %v10996_v44  ;;  %6931 = vpow2.f32 %v6617_v61  ;;  %v5148_v15 = vand.u32 2147483648, %v10996_v44  ;;  %v13193_v27 = vld [vmem:[#allocation117_spill] sm:$0xff]  ;;  %v13195_v61 = vld [vmem:[#allocation158_spill] sm:$0xff] }
 0x4cd   : > { %v5135_v13 = vsel %vm5132_vm5, %v5134_v51, %v5130_v16  ;;  %6933 = vrcp.f32 %v11033_v36  ;;  %v11049_v20 = vadd.f32 1.0, %v6930_v46  ;;  %v3865_v38 = vpop.f32.mrf.mxu2  ;;  %v4707_v53 = vpop.f32.mrf.mxu3  ;;  %v13194_v41 = vunpack.c.l.bf16 %v13193_v27  ;;  %v13196_v51 = vld [vmem:[#allocation33_spill] sm:$0xff] }
 0x4ce   : > { %6083 = vst.msk [vmem:[%s11031_s17] sm:$0xff] %vm6082_vm4, %v5135_v13  ;;  %v5139_v45 = vsub.f32 1.0, %v5138_v30  ;;  %6935 = vpow2.f32 %v6646_v7  ;;  %v11056_v2 = vadd.f32 %v10773_v40, %v13195_v61  ;;  %v4219_v16 = vadd.f32 %v13196_v51, %v4006_v23  ;;  %v13197_v7 = vld [vmem:[#allocation32_spill] sm:$0xff]  ;;  %v11070_v40 = vpop.f32.mrf.mxu0 }
 0x4cf   : > { %6441 = vmatmul.msk.f32.gmra.mxu1 %vm2554_vm1, %v13194_v41  ;;  %v3866_v24 = vadd.f32 %v10949_v33, %v3865_v38  ;;  %v4708_v30 = vadd.f32 %v4707_v53, %v4306_v12  ;;  %vm5143_vm6 = vweird.f32 %v6928_v34  ;;  %v5146_v46 = vand.u32 2147483647, %v10996_v44  ;;  %v13198_v41 = vld [vmem:[#allocation83_spill] sm:$0xff] }
 0x4d0   : > { %v5140_v31 = vmul.f32 %v6928_v34, %v5139_v45  ;;  %6937 = vrcp.f32 %v11049_v20  ;;  %v11064_v13 = vadd.f32 %v10790_v3, %v13197_v7  ;;  %v11068_v37 = vadd.f32 %v10968_v1, %v13198_v41  ;;  %vm5144_vm8 = vmor %vm5142_vm7, %vm5143_vm6 }
 0x4d1   : > { %v4621_v23 = vadd.f32 %v10593_v57, %v4219_v16  ;;  %v3957_v38 = vmax.f32 %v3866_v24, 0.0  ;;  %v5149_v53 = vor.u32 1.1754944e-38, %v5148_v15  ;;  %v4835_v61 = vadd.f32 %v10957_v43, %v4708_v30 }
 0x4d2   : > { %v6932_v12 = vpop.eup %6931  ;;  %v5141_v45 = vadd.f32 %v6928_v34, %v5140_v31  ;;  %v5161_v3 = vand.u32 2147483647, %v11033_v36  ;;  %v5163_v1 = vand.u32 2147483648, %v11033_v36  ;;  %vm5147_vm9 = vcmp.eq.f32.partialorder %v5146_v46, 8.507059e+37 }
 0x4d3   : > { %v6934_v51 = vpop.eup %6933  ;;  %v11077_v7 = vadd.f32 1.0, %v6932_v12  ;;  %v4806_v41 = vadd.f32 %v10957_v43, %v4621_v23  ;;  %6600 = vmatmul.msk.f32.gmra.mxu3 %vm4398_vm11, %v3957_v38  ;;  %v4009_v57 = vpop.f32.mrf.mxu1  ;;  %v6647_v15 = vmul.f32 -1.442695, %v4835_v61  ;;  %v5596_v31 = vand.u32 2147483647, %v11049_v20 }
 0x4d4   : > { %v6936_v16 = vpop.eup %6935  ;;  %v5145_v24 = vsel %vm5144_vm8, %v6928_v34, %v5141_v45  ;;  %v5153_v44 = vmul.f32 %v6934_v51, %v11033_v36  ;;  %v5598_v32 = vand.u32 2147483648, %v11049_v20  ;;  %vm5157_vm12 = vweird.f32 %v11033_v36 }
 0x4d5   : > { %v5150_v30 = vsel %vm5147_vm9, %v5149_v53, %v5145_v24  ;;  %6939 = vrcp.f32 %v11077_v7  ;;  %v11088_v38 = vadd.f32 1.0, %v6936_v16  ;;  %v6618_v34 = vmul.f32 -1.442695, %v4806_v41  ;;  %v3868_v46 = vpop.f32.mrf.mxu2  ;;  %v4710_v45 = vpop.f32.mrf.mxu3 }
 0x4d6   : > { %v6938_v12 = vpop.eup %6937  ;;  %6084 = vst.msk [vmem:[%s11031_s17 + $0x8] sm:$0xff] %vm6082_vm4, %v5150_v30  ;;  %v5154_v23 = vsub.f32 1.0, %v5153_v44  ;;  %v13199_v61 = vunpack.c.h.bf16 %v13193_v27  ;;  %vm11093_vm13 = vcmp.eq.f32.partialorder %v5161_v3, 8.507059e+37  ;;  %v5164_v24 = vor.u32 1.1754944e-38, %v5163_v1  ;;  %v13204_v1 = vld [vmem:[#allocation82_spill] sm:$0xff]  ;;  %v11108_v21 = vpop.f32.mrf.mxu0 }
 0x4d7   : > { %v5588_v22 = vmul.f32 %v6938_v12, %v11049_v20  ;;  %6941 = vpow2.f32 %v6647_v15  ;;  %vm5158_vm14 = vweird.f32 %v6934_v51  ;;  %vm5592_vm0 = vweird.f32 %v11049_v20 }
 0x4d8   : > { %6442 = vmatmul.msk.f32.gmra.mxu1 %vm2554_vm1, %v13199_v61  ;;  %v5155_v44 = vmul.f32 %v6934_v51, %v5154_v23  ;;  %6943 = vrcp.f32 %v11088_v38  ;;  %vm11100_vm2 = vcmp.eq.f32.partialorder %v5596_v31, 8.507059e+37  ;;  %v5599_v27 = vor.u32 1.1754944e-38, %v5598_v32  ;;  %vm5159_vm15 = vmor %vm5157_vm12, %vm5158_vm14 }
 0x4d9   : > { %v5589_v41 = vsub.f32 1.0, %v5588_v22  ;;  %6945 = vpow2.f32 %v6618_v34  ;;  %vm5172_vm10 = vweird.f32 %v11077_v7  ;;  %v4222_v30 = vadd.f32 %v13204_v1, %v4009_v57 }
 0x4da   : > { %v5156_v3 = vadd.f32 %v6934_v51, %v5155_v44  ;;  %v3869_v15 = vadd.f32 %v10949_v33, %v3868_v46  ;;  %v4711_v23 = vadd.f32 %v4710_v45, %v11018_v26  ;;  %vm5593_vm3 = vweird.f32 %v6938_v12 }
 0x4db   : > { %v6940_v61 = vpop.eup %6939  ;;  %v5590_v22 = vmul.f32 %v6938_v12, %v5589_v41  ;;  %v5176_v32 = vand.u32 2147483647, %v11077_v7  ;;  %v5178_v31 = vand.u32 2147483648, %v11077_v7  ;;  %v4012_v34 = vpop.f32.mrf.mxu1  ;;  %v5611_v46 = vand.u32 2147483647, %v11088_v38  ;;  %vm5594_vm5 = vmor %vm5592_vm0, %vm5593_vm3 }
 0x4dc   : > { %v5160_v44 = vsel %vm5159_vm15, %v6934_v51, %v5156_v3  ;;  %v5168_v57 = vmul.f32 %v6940_v61, %v11077_v7  ;;  %v4624_v26 = vadd.f32 %v10623_v28, %v4222_v30  ;;  %v3958_v47 = vmax.f32 %v3869_v15, 0.0  ;;  %v13205_v30 = vld [vmem:[#allocation126_spill] sm:$0xff] }
 0x4dd   : > { %v6942_v45 = vpop.eup %6941  ;;  %v5165_v36 = vsel %vm11093_vm13, %v5164_v24, %v5160_v44  ;;  %v5591_v1 = vadd.f32 %v6938_v12, %v5590_v22  ;;  %v4836_v41 = vadd.f32 %v10957_v43, %v4711_v23  ;;  %vm5173_vm6 = vweird.f32 %v6940_v61  ;;  %v3871_v53 = vpop.f32.mrf.mxu2 }
 0x4de   : > { %v6944_v11 = vpop.eup %6943  ;;  %6085 = vst.msk [vmem:[%s11031_s17 + $0x10] sm:$0xff] %vm6082_vm4, %v5165_v36  ;;  %v5169_v51 = vsub.f32 1.0, %v5168_v57  ;;  %v5613_v28 = vand.u32 2147483648, %v11088_v38  ;;  %v11126_v3 = vadd.f32 1.0, %v6942_v45  ;;  %v4713_v24 = vpop.f32.mrf.mxu3  ;;  %v13206_v15 = vunpack.c.l.bf16 %v13205_v30  ;;  %6601 = vmatmul.msk.f32.gmra.mxu3 %vm4398_vm11, %v3958_v47  ;;  %vm5174_vm12 = vmor %vm5172_vm10, %vm5173_vm6 }
 0x4df   : > { %v6946_v23 = vpop.eup %6945  ;;  %v5595_v22 = vsel %vm5594_vm5, %v6938_v12, %v5591_v1  ;;  %v5603_v44 = vmul.f32 %v6944_v11, %v11088_v38  ;;  %v4807_v20 = vadd.f32 %v10957_v43, %v4624_v26  ;;  %v6648_v36 = vmul.f32 -1.442695, %v4836_v41  ;;  %v13209_v26 = vld [vmem:[#allocation146_spill] sm:$0xff] }
 0x4e0   : > { %6443 = vmatmul.msk.f32.gmra.mxu1 %vm2554_vm1, %v13206_v15  ;;  %v5600_v57 = vsel %vm11100_vm2, %v5599_v27, %v5595_v22  ;;  %v5170_v45 = vmul.f32 %v6940_v61, %v5169_v51  ;;  %v11136_v59 = vadd.f32 1.0, %v6946_v23  ;;  %6947 = vrcp.f32 %v11126_v3  ;;  %v11157_v23 = vpop.f32.mrf.mxu0 }
 0x4e1   : > { %6114 = vst.msk [vmem:[%s11031_s17 + $0xf8] sm:$0xff] %vm6082_vm4, %v5600_v57  ;;  %vm11141_vm7 = vcmp.eq.f32.partialorder %v5176_v32, 8.507059e+37  ;;  %v5179_v12 = vor.u32 1.1754944e-38, %v5178_v31  ;;  %v5604_v1 = vsub.f32 1.0, %v5603_v44  ;;  %v4225_v41 = vadd.f32 %v13209_v26, %v4012_v34 }
 0x4e2   : > { %v5171_v60 = vadd.f32 %v6940_v61, %v5170_v45  ;;  %vm5607_vm8 = vweird.f32 %v11088_v38  ;;  %vm11147_vm9 = vcmp.eq.f32.partialorder %v5611_v46, 8.507059e+37  ;;  %6949 = vrcp.f32 %v11136_v59 }
 0x4e3   : > { %v5605_v16 = vmul.f32 %v6944_v11, %v5604_v1  ;;  %vm5608_vm13 = vweird.f32 %v6944_v11  ;;  %v5614_v27 = vor.u32 1.1754944e-38, %v5613_v28  ;;  %v5626_v32 = vand.u32 2147483647, %v11126_v3  ;;  %v4015_v31 = vpop.f32.mrf.mxu1 }
 0x4e4   : > { %v5175_v34 = vsel %vm5174_vm12, %v6940_v61, %v5171_v60  ;;  %v5628_v51 = vand.u32 2147483648, %v11126_v3  ;;  %v6619_v46 = vmul.f32 -1.442695, %v4807_v20  ;;  %6951 = vpow2.f32 %v6648_v36  ;;  %vm5609_vm0 = vmor %vm5607_vm8, %vm5608_vm13  ;;  %v13212_v20 = vld [vmem:[#allocation16_spill] sm:$0xff] }
 0x4e5   : > { %v5180_v22 = vsel %vm11141_vm7, %v5179_v12, %v5175_v34  ;;  %v5606_v44 = vadd.f32 %v6944_v11, %v5605_v16  ;;  %v5191_v7 = vand.u32 2147483647, %v11136_v59  ;;  %vm5622_vm14 = vweird.f32 %v11126_v3  ;;  %v3874_v45 = vpop.f32.mrf.mxu2 }
 0x4e6   : > { %v4627_v28 = vadd.f32 %v10647_v4, %v4225_v41  ;;  %v6948_v57 = vpop.eup %6947  ;;  %6086 = vst.msk [vmem:[%s11031_s17 + $0x18] sm:$0xff] %vm6082_vm4, %v5180_v22  ;;  %6953 = vpow2.f32 %v6619_v46  ;;  %v3872_v60 = vadd.f32 %v10949_v33, %v3871_v53  ;;  %v4714_v61 = vadd.f32 %v4713_v24, %v11023_v63  ;;  %v4716_v15 = vpop.f32.mrf.mxu3 }
 0x4e7   : > { %v4228_v36 = vadd.f32 %v13212_v20, %v4015_v31  ;;  %v13213_v12 = vunpack.c.h.bf16 %v13205_v30  ;;  %v5610_v4 = vsel %vm5609_vm0, %v6944_v11, %v5606_v44  ;;  %v5193_v1 = vand.u32 2147483648, %v11136_v59 }
 0x4e8   : > { %v5618_v38 = vmul.f32 %v6948_v57, %v11126_v3  ;;  %v4808_v26 = vadd.f32 %v10957_v43, %v4627_v28  ;;  %v6950_v41 = vpop.eup %6949  ;;  %v5615_v53 = vsel %vm11147_vm9, %v5614_v27, %v5610_v4  ;;  %v3959_v63 = vmax.f32 %v3872_v60, 0.0 }
 0x4e9   : > { %6444 = vmatmul.msk.f32.gmra.mxu1 %vm2554_vm1, %v13213_v12  ;;  %v4837_v24 = vadd.f32 %v10957_v43, %v4714_v61  ;;  %v4630_v16 = vadd.f32 %v10674_v5, %v4228_v36  ;;  %6115 = vst.msk [vmem:[%s11031_s17 + $0x100] sm:$0xff] %vm6082_vm4, %v5615_v53  ;;  %v5183_v30 = vmul.f32 %v6950_v41, %v11136_v59  ;;  %vm5623_vm2 = vweird.f32 %v6948_v57 }
 0x4ea   : > { %v5619_v11 = vsub.f32 1.0, %v5618_v38  ;;  %v6620_v31 = vmul.f32 -1.442695, %v4808_v26  ;;  %v6952_v34 = vpop.eup %6951  ;;  %6602 = vmatmul.msk.f32.gmra.mxu3 %vm4398_vm11, %v3959_v63  ;;  %v3875_v47 = vadd.f32 %v10949_v33, %v3874_v45  ;;  %v4717_v27 = vadd.f32 %v4716_v15, %v11039_v8  ;;  %vm11199_vm3 = vmor %vm5622_vm14, %vm5623_vm2  ;;  %v13216_v63 = vld [vmem:[#allocation134_spill] sm:$0xff] }
 0x4eb   : > { %v6649_v46 = vmul.f32 -1.442695, %v4837_v24  ;;  %v4809_v22 = vadd.f32 %v10957_v43, %v4630_v16  ;;  %v5184_v44 = vsub.f32 1.0, %v5183_v30  ;;  %v11189_v5 = vadd.f32 1.0, %v6952_v34  ;;  %v4018_v60 = vpop.f32.mrf.mxu1 }
 0x4ec   : > { %v5620_v28 = vmul.f32 %v6948_v57, %v5619_v11  ;;  %6955 = vpow2.f32 %v6620_v31  ;;  %v6954_v61 = vpop.eup %6953  ;;  %vm5188_vm10 = vweird.f32 %v6950_v41  ;;  %v4838_v36 = vadd.f32 %v10957_v43, %v4717_v27 }
 0x4ed   : > { %6957 = vpow2.f32 %v6649_v46  ;;  %v6621_v20 = vmul.f32 -1.442695, %v4809_v22  ;;  %v5185_v12 = vmul.f32 %v6950_v41, %v5184_v44  ;;  %v11192_v38 = vadd.f32 1.0, %v6954_v61  ;;  %v3877_v26 = vpop.f32.mrf.mxu2  ;;  %v13219_v61 = vld [vmem:[#allocation155_spill] sm:$0xff] }
 0x4ee   : > { %v5621_v4 = vadd.f32 %v6948_v57, %v5620_v28  ;;  %6959 = vrcp.f32 %v11189_v5  ;;  %vm5187_vm15 = vweird.f32 %v11136_v59  ;;  %v5629_v45 = vor.u32 1.1754944e-38, %v5628_v51  ;;  %v11203_v53 = vpop.f32.mrf.mxu3  ;;  %v11213_v51 = vpop.f32.mrf.mxu0 }
 0x4ef   : > { %6961 = vpow2.f32 %v6621_v20  ;;  %v3960_v15 = vmax.f32 %v3875_v47, 0.0  ;;  %v13217_v24 = vunpack.c.l.bf16 %v13216_v63  ;;  %v5186_v16 = vadd.f32 %v6950_v41, %v5185_v12  ;;  %vm5189_vm6 = vmor %vm5187_vm15, %vm5188_vm10  ;;  %v13220_v20 = vld [vmem:[#allocation20_spill] sm:$0xff] }
 0x4f0   : > { %v5625_v59 = vsel %vm11199_vm3, %v6948_v57, %v5621_v4  ;;  %vm5627_vm5 = vcmp.eq.f32.partialorder %v5626_v32, 8.507059e+37  ;;  %6963 = vrcp.f32 %v11192_v38  ;;  %vm5192_vm7 = vcmp.eq.f32.partialorder %v5191_v7, 8.507059e+37  ;;  %v13218_v32 = vld [vmem:[#allocation36_spill] sm:$0xff] }
 0x4f1   : > { %6445 = vmatmul.msk.f32.gmra.mxu1 %vm2554_vm1, %v13217_v24  ;;  %v5194_v30 = vor.u32 1.1754944e-38, %v5193_v1  ;;  %v5630_v11 = vsel %vm5627_vm5, %v5629_v45, %v5625_v59  ;;  %v5641_v31 = vand.u32 2147483647, %v11189_v5  ;;  %v5190_v46 = vsel %vm5189_vm6, %v6950_v41, %v5186_v16 }
 0x4f2   : > { %v6956_v34 = vpop.eup %6955  ;;  %6116 = vst.msk [vmem:[%s11031_s17 + $0x108] sm:$0xff] %vm6082_vm4, %v5630_v11  ;;  %v5643_v57 = vand.u32 2147483648, %v11189_v5  ;;  %v6650_v3 = vmul.f32 -1.442695, %v4838_v36  ;;  %v4231_v22 = vadd.f32 %v13218_v32, %v4018_v60  ;;  %v5206_v44 = vand.u32 2147483647, %v11192_v38  ;;  %6603 = vmatmul.msk.f32.gmra.mxu3 %vm4398_vm11, %v3960_v15 }
 0x4f3   : > { %v6958_v47 = vpop.eup %6957  ;;  %v5195_v27 = vsel %vm5192_vm7, %v5194_v30, %v5190_v46  ;;  %v5208_v7 = vand.u32 2147483648, %v11192_v38  ;;  %v11223_v1 = vadd.f32 1.0, %v6956_v34  ;;  %v11228_v41 = vadd.f32 %v10986_v18, %v13219_v61  ;;  %v11238_v12 = vpop.f32.mrf.mxu1 }
 0x4f4   : > { %v6960_v28 = vpop.eup %6959  ;;  %v11232_v36 = vadd.f32 %v11008_v35, %v13220_v20  ;;  %6087 = vst.msk [vmem:[%s11031_s17 + $0x20] sm:$0xff] %vm6082_vm4, %v5195_v27  ;;  %v11236_v60 = vadd.f32 1.0, %v6958_v47  ;;  %6965 = vpow2.f32 %v6650_v3  ;;  %vm5637_vm8 = vweird.f32 %v11189_v5 }
 0x4f5   : > { %v6962_v4 = vpop.eup %6961  ;;  %v5633_v8 = vmul.f32 %v6960_v28, %v11189_v5  ;;  %6967 = vrcp.f32 %v11223_v1  ;;  %v4633_v18 = vadd.f32 %v10698_v25, %v4231_v22  ;;  %vm5202_vm9 = vweird.f32 %v11192_v38  ;;  %v11255_v11 = vpop.f32.mrf.mxu2 }
 0x4f6   : > { %v6964_v45 = vpop.eup %6963  ;;  %vm11245_vm12 = vcmp.eq.f32.partialorder %v5641_v31, 8.507059e+37  ;;  %v5644_v15 = vor.u32 1.1754944e-38, %v5643_v57  ;;  %6969 = vrcp.f32 %v11236_v60  ;;  %vm11251_vm13 = vcmp.eq.f32.partialorder %v5206_v44, 8.507059e+37  ;;  %v11257_v25 = vpop.f32.mrf.mxu3 }
 0x4f7   : > { %v5198_v24 = vmul.f32 %v6964_v45, %v11192_v38  ;;  %v5209_v59 = vor.u32 1.1754944e-38, %v5208_v7  ;;  %v5634_v30 = vsub.f32 1.0, %v5633_v8  ;;  %v13225_v31 = vunpack.c.h.bf16 %v13216_v63  ;;  %v11274_v61 = vpop.f32.mrf.mxu0 }
 0x4f8   : > { %vm5638_vm14 = vweird.f32 %v6960_v28  ;;  %v5221_v34 = vand.u32 2147483647, %v11223_v1  ;;  %v5223_v46 = vand.u32 2147483648, %v11223_v1  ;;  %v11264_v57 = vadd.f32 1.0, %v6962_v4 }
 0x4f9   : > { %6446 = vmatmul.msk.f32.gmra.mxu1 %vm2554_vm1, %v13225_v31  ;;  %v5199_v3 = vsub.f32 1.0, %v5198_v24  ;;  %v5635_v32 = vmul.f32 %v6960_v28, %v5634_v30  ;;  %v5656_v22 = vand.u32 2147483647, %v11236_v60  ;;  %v4810_v47 = vadd.f32 %v10957_v43, %v4633_v18  ;;  %vm5639_vm15 = vmor %vm5637_vm8, %vm5638_vm14 }
 0x4fa   : > { %v6966_v27 = vpop.eup %6965  ;;  %vm5217_vm0 = vweird.f32 %v11223_v1  ;;  %v5658_v63 = vand.u32 2147483648, %v11236_v60  ;;  %6971 = vrcp.f32 %v11264_v57  ;;  %v3878_v44 = vadd.f32 %v10949_v33, %v3877_v26 }
 0x4fb   : > { %v11272_v7 = vpop.eup %6967  ;;  %v5200_v20 = vmul.f32 %v6964_v45, %v5199_v3  ;;  %vm5203_vm2 = vweird.f32 %v6964_v45  ;;  %v5636_v4 = vadd.f32 %v6960_v28, %v5635_v32  ;;  %vm5652_vm10 = vweird.f32 %v11236_v60  ;;  %v4024_v32 = vpop.f32.mrf.mxu1 }
 0x4fc   : > { %v11277_v8 = vadd.f32 1.0, %v6966_v27  ;;  %v11279_v18 = vpop.eup %6969  ;;  %v5213_v26 = vmul.f32 %v11272_v7, %v11223_v1  ;;  %vm11286_vm3 = vcmp.eq.f32.partialorder %v5221_v34, 8.507059e+37  ;;  %v5224_v30 = vor.u32 1.1754944e-38, %v5223_v46  ;;  %vm5204_vm6 = vmor %vm5202_vm9, %vm5203_vm2 }
 0x4fd   : > { %v5236_v31 = vand.u32 2147483647, %v11264_v57  ;;  %v6622_v3 = vmul.f32 -1.442695, %v4810_v47  ;;  %v5201_v27 = vadd.f32 %v6964_v45, %v5200_v20  ;;  %v5640_v29 = vsel %vm5639_vm15, %v6960_v28, %v5636_v4  ;;  %v11308_v4 = vpop.f32.mrf.mxu2 }
 0x4fe   : > { %v5648_v0 = vmul.f32 %v11279_v18, %v11236_v60  ;;  %vm11293_vm5 = vcmp.eq.f32.partialorder %v5656_v22, 8.507059e+37  ;;  %v5238_v34 = vand.u32 2147483648, %v11264_v57  ;;  %v5645_v46 = vsel %vm11245_vm12, %v5644_v15, %v5640_v29  ;;  %v11310_v38 = vpop.f32.mrf.mxu3 }
 0x4ff   : > { %v5214_v47 = vsub.f32 1.0, %v5213_v26  ;;  %v5659_v20 = vor.u32 1.1754944e-38, %v5658_v63  ;;  %6973 = vrcp.f32 %v11277_v8  ;;  %v5205_v28 = vsel %vm5204_vm6, %v6964_v45, %v5201_v27  ;;  %6117 = vst.msk [vmem:[%s11031_s17 + $0x110] sm:$0xff] %vm6082_vm4, %v5645_v46 }
 0x500   : > { %vm5218_vm7 = vweird.f32 %v11272_v7  ;;  %v5649_v22 = vsub.f32 1.0, %v5648_v0  ;;  %vm5232_vm8 = vweird.f32 %v11264_v57  ;;  %v13231_v35 = vunpack.c.l.bf16 %v13230_v56  ;;  %v6972_v29 = vpop.eup %6971 }
 0x501   : > { %v5210_v15 = vsel %vm11251_vm13, %v5209_v59, %v5205_v28  ;;  %v5215_v45 = vmul.f32 %v11272_v7, %v5214_v47  ;;  %vm5653_vm9 = vweird.f32 %v11279_v18  ;;  %6975 = vpow2.f32 %v6622_v3  ;;  %vm5219_vm14 = vmor %vm5217_vm0, %vm5218_vm7  ;;  %v13234_v28 = vld [vmem:[#allocation84_spill] sm:$0xff] }
 0x502   : > { %6447 = vmatmul.msk.f32.gmra.mxu1 %vm2554_vm1, %v13231_v35  ;;  %6088 = vst.msk [vmem:[%s11031_s17 + $0x28] sm:$0xff] %vm6082_vm4, %v5210_v15  ;;  %v5650_v0 = vmul.f32 %v11279_v18, %v5649_v22  ;;  %v5228_v63 = vmul.f32 %v6972_v29, %v11264_v57  ;;  %vm11323_vm12 = vcmp.eq.f32.partialorder %v5236_v31, 8.507059e+37  ;;  %v5239_v27 = vor.u32 1.1754944e-38, %v5238_v34  ;;  %vm5654_vm2 = vmor %vm5652_vm10, %vm5653_vm9 }
 0x503   : > { %v5671_v46 = vand.u32 2147483647, %v11277_v8  ;;  %v5216_v16 = vadd.f32 %v11272_v7, %v5215_v45  ;;  %vm5233_vm13 = vweird.f32 %v6972_v29  ;;  %v3961_v59 = vmax.f32 %v3878_v44, 0.0 }
 0x504   : > { %v4720_v3 = vadd.f32 %v11203_v53, %v11043_v55  ;;  %v5651_v31 = vadd.f32 %v11279_v18, %v5650_v0  ;;  %v5229_v47 = vsub.f32 1.0, %v5228_v63  ;;  %v4234_v34 = vadd.f32 %v13234_v28, %v11238_v12  ;;  %v4027_v12 = vpop.f32.mrf.mxu1  ;;  %vm5234_vm0 = vmor %vm5232_vm8, %vm5233_vm13 }
 0x505   : > { %v3881_v22 = vadd.f32 %v10949_v33, %v11255_v11  ;;  %v6974_v35 = vpop.eup %6973  ;;  %v5220_v44 = vsel %vm5219_vm14, %v11272_v7, %v5216_v16  ;;  %6604 = vmatmul.msk.f32.gmra.mxu3 %vm4398_vm11, %v3961_v59  ;;  %v4723_v53 = vadd.f32 %v11257_v25, %v11056_v2  ;;  %v4237_v1 = vadd.f32 %v9619_v62, %v4024_v32  ;;  %v11350_v11 = vpop.f32.mrf.mxu0 }
 0x506   : > { %v4839_v55 = vadd.f32 %v10957_v43, %v4720_v3  ;;  %v5225_v7 = vsel %vm11286_vm3, %v5224_v30, %v5220_v44  ;;  %v5655_v15 = vsel %vm5654_vm2, %v11279_v18, %v5651_v31  ;;  %v5230_v60 = vmul.f32 %v6972_v29, %v5229_v47  ;;  %v4728_v16 = vpop.f32.mrf.mxu3  ;;  %v13236_v47 = vld [vmem:[#allocation116_spill] sm:$0xff] }
 0x507   : > { %v5663_v45 = vmul.f32 %v6974_v35, %v11277_v8  ;;  %v6976_v0 = vpop.eup %6975  ;;  %6089 = vst.msk [vmem:[%s11031_s17 + $0x30] sm:$0xff] %vm6082_vm4, %v5225_v7  ;;  %v5660_v63 = vsel %vm11293_vm5, %v5659_v20, %v5655_v15  ;;  %v5673_v2 = vand.u32 2147483648, %v11277_v8  ;;  %v4636_v25 = vadd.f32 %v10721_v58, %v4234_v34  ;;  %v13237_v34 = vld [vmem:[#allocation149_spill] sm:$0xff] }
 0x508   : > { %v6651_v62 = vmul.f32 -1.442695, %v4839_v55  ;;  %6118 = vst.msk [vmem:[%s11031_s17 + $0x118] sm:$0xff] %vm6082_vm4, %v5660_v63  ;;  %v5231_v24 = vadd.f32 %v6972_v29, %v5230_v60  ;;  %v11364_v32 = vadd.f32 1.0, %v6976_v0  ;;  %v3962_v18 = vmax.f32 %v3881_v22, 0.0  ;;  %v13238_v15 = vld [vmem:[#allocation121_spill] sm:$0xff] }
 0x509   : > { %v5664_v30 = vsub.f32 1.0, %v5663_v45  ;;  %v13235_v59 = vunpack.c.h.bf16 %v13230_v56  ;;  %v4811_v58 = vadd.f32 %v10957_v43, %v4636_v25  ;;  %v4840_v5 = vadd.f32 %v10957_v43, %v4723_v53  ;;  %v3886_v56 = vpop.f32.mrf.mxu2  ;;  %v13242_v25 = vld [vmem:[#allocation143_spill] sm:$0xff] }
 0x50a   : > { %6977 = vpow2.f32 %v6651_v62  ;;  %v4639_v20 = vadd.f32 %v10744_v54, %v4237_v1  ;;  %v5235_v3 = vsel %vm5234_vm0, %v6972_v29, %v5231_v24  ;;  %vm5668_vm10 = vweird.f32 %v6974_v35  ;;  %v13240_v62 = vld [vmem:[#allocation21_spill] sm:$0xff] }
 0x50b   : > { %6448 = vmatmul.msk.f32.gmra.mxu1 %vm2554_vm1, %v13235_v59  ;;  %v5665_v31 = vmul.f32 %v6974_v35, %v5664_v30  ;;  %6979 = vrcp.f32 %v11364_v32  ;;  %v11378_v28 = vadd.f32 %v11070_v40, %v13236_v47  ;;  %v11382_v57 = vadd.f32 %v11108_v21, %v13237_v34 }
 0x50c   : > { %v5240_v22 = vsel %vm11323_vm12, %v5239_v27, %v5235_v3  ;;  %v6623_v44 = vmul.f32 -1.442695, %v4811_v58  ;;  %vm5667_vm15 = vweird.f32 %v11277_v8  ;;  %v6652_v29 = vmul.f32 -1.442695, %v4840_v5  ;;  %v4030_v26 = vpop.f32.mrf.mxu1  ;;  %v13245_v3 = vld [vmem:[#allocation167_spill] sm:$0xff] }
 0x50d   : > { %6090 = vst.msk [vmem:[%s11031_s17 + $0x38] sm:$0xff] %vm6082_vm4, %v5240_v22  ;;  %v5666_v54 = vadd.f32 %v6974_v35, %v5665_v31  ;;  %v4812_v55 = vadd.f32 %v10957_v43, %v4639_v20  ;;  %vm5669_vm3 = vmor %vm5667_vm15, %vm5668_vm10  ;;  %v5674_v53 = vor.u32 1.1754944e-38, %v5673_v2  ;;  %6605 = vmatmul.msk.f32.gmra.mxu3 %vm4398_vm11, %v3962_v18  ;;  %v3884_v21 = vadd.f32 %v10949_v33, %v11308_v4  ;;  %v13239_v4 = vld [vmem:[#allocation86_spill] sm:$0xff] }
 0x50e   : > { %6981 = vpow2.f32 %v6623_v44  ;;  %v4726_v40 = vadd.f32 %v11310_v38, %v11064_v13  ;;  %vm5672_vm5 = vcmp.eq.f32.partialorder %v5671_v46, 8.507059e+37  ;;  %v11399_v60 = vadd.f32 %v11157_v23, %v13238_v15  ;;  %v13241_v38 = vld [vmem:[#allocation161_spill] sm:$0xff]  ;;  %v4353_v46 = vpop.f32.mrf.mxu0  ;;  %v11415_v23 = vpop.f32.mrf.mxu3 }
 0x50f   : > { %v5670_v27 = vsel %vm5669_vm3, %v6974_v35, %v5666_v54  ;;  %6983 = vpow2.f32 %v6652_v29  ;;  %v6624_v1 = vmul.f32 -1.442695, %v4812_v55  ;;  %v4240_v63 = vadd.f32 %v13239_v4, %v4027_v12  ;;  %v13246_v54 = vld [vmem:[#allocation125_spill] sm:$0xff] }
 0x510   : > { %v6978_v7 = vpop.eup %6977  ;;  %v5675_v45 = vsel %vm5672_vm5, %v5674_v53, %v5670_v27  ;;  %v4841_v0 = vadd.f32 %v10957_v43, %v4726_v40  ;;  %v11405_v13 = vadd.f32 %v11213_v51, %v13240_v62  ;;  %v11409_v8 = vadd.f32 %v11274_v61, %v13241_v38  ;;  %v13244_v61 = vld [vmem:[#allocation19_spill] sm:$0xff] }
 0x511   : > { %v6980_v2 = vpop.eup %6979  ;;  %6119 = vst.msk [vmem:[%s11031_s17 + $0x120] sm:$0xff] %vm6082_vm4, %v5675_v45  ;;  %v11413_v35 = vadd.f32 1.0, %v6978_v7  ;;  %6985 = vpow2.f32 %v6624_v1  ;;  %v13243_v24 = vunpack.c.l.bf16 %v13242_v25  ;;  %v3963_v51 = vmax.f32 %v3884_v21, 0.0  ;;  %v11438_v55 = vpop.f32.mrf.mxu2 }
 0x512   : > { %v5243_v12 = vmul.f32 %v6980_v2, %v11364_v32  ;;  %v6653_v30 = vmul.f32 -1.442695, %v4841_v0  ;;  %v4642_v18 = vadd.f32 %v10762_v48, %v4240_v63  ;;  %v11424_v59 = vadd.f32 %v11350_v11, %v13244_v61 }
 0x513   : > { %6449 = vmatmul.msk.f32.gmra.mxu1 %vm2554_vm1, %v13243_v24  ;;  %v5251_v58 = vand.u32 2147483647, %v11364_v32  ;;  %v5253_v5 = vand.u32 2147483648, %v11364_v32  ;;  %6987 = vrcp.f32 %v11413_v35  ;;  %v11430_v31 = vadd.f32 %v4353_v46, %v13245_v3 }
 0x514   : > { %v6982_v20 = vpop.eup %6981  ;;  %v5244_v47 = vsub.f32 1.0, %v5243_v12  ;;  %6989 = vpow2.f32 %v6653_v30  ;;  %v3887_v34 = vadd.f32 %v10949_v33, %v3886_v56  ;;  %v4813_v11 = vadd.f32 %v10957_v43, %v4642_v18  ;;  %v11444_v33 = vpop.f32.mrf.mxu1 }
 0x515   : > { %v6984_v22 = vpop.eup %6983  ;;  %v11433_v48 = vadd.f32 1.0, %v6982_v20  ;;  %v4729_v44 = vadd.f32 %v4728_v16, %v11068_v37  ;;  %v4243_v29 = vadd.f32 %v13246_v54, %v4030_v26  ;;  %vm5248_vm6 = vweird.f32 %v6980_v2  ;;  %6606 = vmatmul.msk.f32.gmra.mxu3 %vm4398_vm11, %v3963_v51 }
 0x516   : > { %v5245_v53 = vmul.f32 %v6980_v2, %v5244_v47  ;;  %v5686_v21 = vand.u32 2147483647, %v11413_v35  ;;  %v11441_v40 = vadd.f32 1.0, %v6984_v22  ;;  %vm5247_vm7 = vweird.f32 %v11364_v32  ;;  %v11460_v4 = vpop.f32.mrf.mxu3 }
 0x517   : > { %v6986_v56 = vpop.eup %6985  ;;  %vm11447_vm8 = vcmp.eq.f32.partialorder %v5251_v58, 8.507059e+37  ;;  %v5254_v37 = vor.u32 1.1754944e-38, %v5253_v5  ;;  %6991 = vrcp.f32 %v11433_v48  ;;  %vm5682_vm9 = vweird.f32 %v11413_v35  ;;  %vm5249_vm12 = vmor %vm5247_vm7, %vm5248_vm6 }
 0x518   : > { %v5246_v16 = vadd.f32 %v6980_v2, %v5245_v53  ;;  %v5688_v26 = vand.u32 2147483648, %v11413_v35  ;;  %6993 = vrcp.f32 %v11441_v40  ;;  %v3964_v1 = vmax.f32 %v3887_v34, 0.0 }
 0x519   : > { %v6988_v7 = vpop.eup %6987  ;;  %v11456_v15 = vadd.f32 1.0, %v6986_v56  ;;  %v6625_v32 = vmul.f32 -1.442695, %v4813_v11  ;;  %v4842_v45 = vadd.f32 %v10957_v43, %v4729_v44  ;;  %v4645_v0 = vadd.f32 %v10776_v50, %v4243_v29  ;;  %v11499_v56 = vpop.f32.mrf.mxu2 }
 0x51a   : > { %v13249_v63 = vunpack.c.h.bf16 %v13242_v25  ;;  %v6990_v62 = vpop.eup %6989  ;;  %v5250_v38 = vsel %vm5249_vm12, %v6980_v2, %v5246_v16  ;;  %v5678_v46 = vmul.f32 %v6988_v7, %v11413_v35  ;;  %vm11466_vm13 = vcmp.eq.f32.partialorder %v5686_v21, 8.507059e+37 }
 0x51b   : > { %v5266_v12 = vand.u32 2147483647, %v11433_v48  ;;  %v5268_v51 = vand.u32 2147483648, %v11433_v48  ;;  %v5255_v50 = vsel %vm11447_vm8, %v5254_v37, %v5250_v38  ;;  %v5701_v30 = vand.u32 2147483647, %v11441_v40 }
 0x51c   : > { %6450 = vmatmul.msk.f32.gmra.mxu1 %vm2554_vm1, %v13249_v63  ;;  %v5703_v25 = vand.u32 2147483648, %v11441_v40  ;;  %6995 = vrcp.f32 %v11456_v15  ;;  %6091 = vst.msk [vmem:[%s11031_s17 + $0x40] sm:$0xff] %vm6082_vm4, %v5255_v50  ;;  %v5679_v2 = vsub.f32 1.0, %v5678_v46  ;;  %v5689_v18 = vor.u32 1.1754944e-38, %v5688_v26  ;;  %v11490_v44 = vpop.f32.mrf.mxu1 }
 0x51d   : > { %vm5262_vm14 = vweird.f32 %v11433_v48  ;;  %v11480_v61 = vadd.f32 1.0, %v6990_v62  ;;  %v6992_v58 = vpop.eup %6991  ;;  %vm5697_vm2 = vweird.f32 %v11441_v40  ;;  %6997 = vpow2.f32 %v6625_v32  ;;  %6607 = vmatmul.msk.f32.gmra.mxu3 %vm4398_vm11, %v3964_v1  ;;  %v13256_v62 = vld [vmem:[#allocation148_spill] sm:$0xff] }
 0x51e   : > { %v6654_v5 = vmul.f32 -1.442695, %v4842_v45  ;;  %v4814_v20 = vadd.f32 %v10957_v43, %v4645_v0  ;;  %v6994_v3 = vpop.eup %6993  ;;  %v5680_v47 = vmul.f32 %v6988_v7, %v5679_v2  ;;  %vm5683_vm0 = vweird.f32 %v6988_v7  ;;  %v11509_v45 = vld [vmem:[%s12517_s7] ss:$0 sm:$0xff]  ;;  %v11513_v63 = vpop.f32.mrf.mxu3 }
 0x51f   : > { %v5258_v34 = vmul.f32 %v6992_v58, %v11433_v48  ;;  %vm11485_vm10 = vcmp.eq.f32.partialorder %v5266_v12, 8.507059e+37  ;;  %v5269_v11 = vor.u32 1.1754944e-38, %v5268_v51  ;;  %v5693_v54 = vmul.f32 %v6994_v3, %v11441_v40  ;;  %vm5684_vm5 = vmor %vm5682_vm9, %vm5683_vm0 }
 0x520   : > { %vm11493_vm15 = vcmp.eq.f32.partialorder %v5701_v30, 8.507059e+37  ;;  %v5704_v53 = vor.u32 1.1754944e-38, %v5703_v25  ;;  %v5281_v21 = vand.u32 2147483647, %v11456_v15  ;;  %6999 = vrcp.f32 %v11480_v61 }
 0x521   : > { %v5681_v27 = vadd.f32 %v6988_v7, %v5680_v47  ;;  %v5259_v37 = vsub.f32 1.0, %v5258_v34  ;;  %vm5277_vm3 = vweird.f32 %v11456_v15  ;;  %v5283_v16 = vand.u32 2147483648, %v11456_v15  ;;  %v13260_v47 = vld [vmem:[#allocation39_spill] sm:$0xff] }
 0x522   : > { %v6996_v26 = vpop.eup %6995  ;;  %v5694_v1 = vsub.f32 1.0, %v5693_v54  ;;  %7001 = vpow2.f32 %v6654_v5  ;;  %v6626_v32 = vmul.f32 -1.442695, %v4814_v20  ;;  %v3890_v0 = vadd.f32 %v11509_v45, %v11438_v55 }
 0x523   : > { %v13257_v38 = vunpack.c.l.bf16 %v13256_v62  ;;  %v5685_v35 = vsel %vm5684_vm5, %v6988_v7, %v5681_v27  ;;  %v5260_v46 = vmul.f32 %v6992_v58, %v5259_v37  ;;  %vm5263_vm6 = vweird.f32 %v6992_v58  ;;  %v6998_v51 = vpop.eup %6997 }
 0x524   : > { %v5273_v12 = vmul.f32 %v6996_v26, %v11456_v15  ;;  %v5690_v50 = vsel %vm11466_vm13, %v5689_v18, %v5685_v35  ;;  %v5695_v30 = vmul.f32 %v6994_v3, %v5694_v1  ;;  %vm5698_vm7 = vweird.f32 %v6994_v3  ;;  %v11538_v48 = vpop.f32.mrf.mxu1  ;;  %v11563_v35 = vpop.f32.mrf.mxu0 }
 0x525   : > { %6451 = vmatmul.msk.f32.gmra.mxu1 %vm2554_vm1, %v13257_v38  ;;  %vm11521_vm8 = vcmp.eq.f32.partialorder %v5281_v21, 8.507059e+37  ;;  %6120 = vst.msk [vmem:[%s11031_s17 + $0x128] sm:$0xff] %vm6082_vm4, %v5690_v50  ;;  %v5261_v55 = vadd.f32 %v6992_v58, %v5260_v46  ;;  %v11527_v5 = vadd.f32 1.0, %v6998_v51  ;;  %7003 = vpow2.f32 %v6626_v32  ;;  %vm5264_vm1 = vmor %vm5262_vm14, %vm5263_vm6 }
 0x526   : > { %v5274_v2 = vsub.f32 1.0, %v5273_v12  ;;  %v7000_v7 = vpop.eup %6999  ;;  %v5696_v20 = vadd.f32 %v6994_v3, %v5695_v30  ;;  %v3965_v24 = vmax.f32 %v3890_v0, 0.0  ;;  %v4732_v18 = vadd.f32 %v11415_v23, %v11228_v41  ;;  %vm5699_vm9 = vmor %vm5697_vm2, %vm5698_vm7 }
 0x527   : > { %v4246_v34 = vadd.f32 %v13260_v47, %v11444_v33  ;;  %v5265_v54 = vsel %vm5264_vm1, %v6992_v58, %v5261_v55  ;;  %vm5278_vm12 = vweird.f32 %v6996_v26  ;;  %v5708_v27 = vmul.f32 %v7000_v7, %v11480_v61 }
 0x528   : > { %v5275_v21 = vmul.f32 %v6996_v26, %v5274_v2  ;;  %v7002_v37 = vpop.eup %7001  ;;  %v5270_v1 = vsel %vm11485_vm10, %v5269_v11, %v5265_v54  ;;  %v5700_v32 = vsel %vm5699_vm9, %v6994_v3, %v5696_v20  ;;  %v5284_v41 = vor.u32 1.1754944e-38, %v5283_v16  ;;  %6608 = vmatmul.msk.f32.gmra.mxu3 %vm4398_vm11, %v3965_v24  ;;  %vm5279_vm13 = vmor %vm5277_vm3, %vm5278_vm12  ;;  %v11559_v16 = vpop.f32.mrf.mxu3 }
 0x529   : > { %7005 = vrcp.f32 %v11527_v5  ;;  %6092 = vst.msk [vmem:[%s11031_s17 + $0x48] sm:$0xff] %vm6082_vm4, %v5270_v1  ;;  %v5705_v23 = vsel %vm11493_vm15, %v5704_v53, %v5700_v32  ;;  %v5709_v33 = vsub.f32 1.0, %v5708_v27  ;;  %v5718_v58 = vand.u32 2147483648, %v11480_v61  ;;  %v3895_v53 = vpop.f32.mrf.mxu2  ;;  %v13263_v27 = vld [vmem:[#allocation130_spill] sm:$0xff] }
 0x52a   : > { %v5276_v40 = vadd.f32 %v6996_v26, %v5275_v21  ;;  %6121 = vst.msk [vmem:[%s11031_s17 + $0x130] sm:$0xff] %vm6082_vm4, %v5705_v23  ;;  %v5716_v3 = vand.u32 2147483647, %v11480_v61  ;;  %v11555_v22 = vadd.f32 1.0, %v7002_v37  ;;  %v4843_v11 = vadd.f32 %v10957_v43, %v4732_v18 }
 0x52b   : > { %v4648_v29 = vadd.f32 %v10785_v42, %v4246_v34  ;;  %v7004_v0 = vpop.eup %7003  ;;  %v5710_v38 = vmul.f32 %v7000_v7, %v5709_v33  ;;  %vm5713_vm14 = vweird.f32 %v7000_v7  ;;  %v3893_v15 = vadd.f32 %v11509_v45, %v11499_v56 }
 0x52c   : > { %v5280_v62 = vsel %vm5279_vm13, %v6996_v26, %v5276_v40  ;;  %vm5712_vm2 = vweird.f32 %v11480_v61  ;;  %v5296_v12 = vand.u32 2147483647, %v11527_v5  ;;  %7007 = vrcp.f32 %v11555_v22  ;;  %v11580_v24 = vpop.f32.mrf.mxu1 }
 0x52d   : > { %v5285_v46 = vsel %vm11521_vm8, %v5284_v41, %v5280_v62  ;;  %v5711_v42 = vadd.f32 %v7000_v7, %v5710_v38  ;;  %v5719_v26 = vor.u32 1.1754944e-38, %v5718_v58  ;;  %v5298_v51 = vand.u32 2147483648, %v11527_v5  ;;  %vm5714_vm0 = vmor %vm5712_vm2, %vm5713_vm14  ;;  %v11607_v38 = vpop.f32.mrf.mxu0 }
 0x52e   : > { %6093 = vst.msk [vmem:[%s11031_s17 + $0x50] sm:$0xff] %vm6082_vm4, %v5285_v46  ;;  %v11573_v50 = vadd.f32 1.0, %v7004_v0  ;;  %v6655_v30 = vmul.f32 -1.442695, %v4843_v11  ;;  %v4815_v25 = vadd.f32 %v10957_v43, %v4648_v29  ;;  %v3966_v55 = vmax.f32 %v3893_v15, 0.0 }
 0x52f   : > { %v7006_v56 = vpop.eup %7005  ;;  %v4735_v61 = vadd.f32 %v11460_v4, %v11232_v36  ;;  %v5715_v2 = vsel %vm5714_vm0, %v7000_v7, %v5711_v42  ;;  %vm5717_vm10 = vcmp.eq.f32.partialorder %v5716_v3, 8.507059e+37  ;;  %vm5292_vm15 = vweird.f32 %v11527_v5 }
 0x530   : > { %v5288_v20 = vmul.f32 %v7006_v56, %v11527_v5  ;;  %v5720_v18 = vsel %vm5717_vm10, %v5719_v26, %v5715_v2  ;;  %vm11582_vm3 = vcmp.eq.f32.partialorder %v5296_v12, 8.507059e+37  ;;  %v5731_v34 = vand.u32 2147483647, %v11555_v22  ;;  %6609 = vmatmul.msk.f32.gmra.mxu3 %vm4398_vm11, %v3966_v55  ;;  %v11596_v32 = vpop.f32.mrf.mxu3 }
 0x531   : > { %7009 = vrcp.f32 %v11573_v50  ;;  %6122 = vst.msk [vmem:[%s11031_s17 + $0x138] sm:$0xff] %vm6082_vm4, %v5720_v18  ;;  %v5299_v4 = vor.u32 1.1754944e-38, %v5298_v51  ;;  %vm5727_vm5 = vweird.f32 %v11555_v22  ;;  %v6627_v54 = vmul.f32 -1.442695, %v4815_v25  ;;  %v3898_v11 = vpop.f32.mrf.mxu2 }
 0x532   : > { %v5289_v36 = vsub.f32 1.0, %v5288_v20  ;;  %7011 = vpow2.f32 %v6655_v30  ;;  %v7008_v7 = vpop.eup %7007  ;;  %v4844_v21 = vadd.f32 %v10957_v43, %v4735_v61  ;;  %v4249_v37 = vadd.f32 %v13263_v27, %v11490_v44 }
 0x533   : > { %v3896_v1 = vadd.f32 %v11509_v45, %v3895_v53  ;;  %vm5293_vm6 = vweird.f32 %v7006_v56  ;;  %v5723_v23 = vmul.f32 %v7008_v7, %v11555_v22  ;;  %v5733_v40 = vand.u32 2147483648, %v11555_v22 }
 0x534   : > { %v5290_v41 = vmul.f32 %v7006_v56, %v5289_v36  ;;  %vm11600_vm7 = vcmp.eq.f32.partialorder %v5731_v34, 8.507059e+37  ;;  %7013 = vpow2.f32 %v6627_v54  ;;  %v6656_v58 = vmul.f32 -1.442695, %v4844_v21  ;;  %vm5294_vm8 = vmor %vm5292_vm15, %vm5293_vm6  ;;  %v11625_v2 = vpop.f32.mrf.mxu1 }
 0x535   : > { %v4651_v3 = vadd.f32 %v10799_v14, %v4249_v37  ;;  %v5724_v29 = vsub.f32 1.0, %v5723_v23  ;;  %v3967_v53 = vmax.f32 %v3896_v1, 0.0  ;;  %v4738_v0 = vadd.f32 %v11513_v63, %v11378_v28  ;;  %v13266_v14 = vld [vmem:[#allocation38_spill] sm:$0xff] }
 0x536   : > { %v5291_v44 = vadd.f32 %v7006_v56, %v5290_v41  ;;  %vm5728_vm1 = vweird.f32 %v7008_v7  ;;  %7015 = vpow2.f32 %v6656_v58  ;;  %v4252_v46 = vadd.f32 %v13266_v14, %v11538_v48 }
 0x537   : > { %v7010_v62 = vpop.eup %7009  ;;  %v4816_v15 = vadd.f32 %v10957_v43, %v4651_v3  ;;  %v5725_v26 = vmul.f32 %v7008_v7, %v5724_v29  ;;  %v3899_v28 = vadd.f32 %v11509_v45, %v3898_v11  ;;  %v4845_v25 = vadd.f32 %v10957_v43, %v4738_v0  ;;  %vm5729_vm9 = vmor %vm5727_vm5, %vm5728_vm1  ;;  %v11653_v11 = vpop.f32.mrf.mxu0 }
 0x538   : > { %v7012_v12 = vpop.eup %7011  ;;  %v5295_v42 = vsel %vm5294_vm8, %v7006_v56, %v5291_v44  ;;  %v5303_v51 = vmul.f32 %v7010_v62, %v11573_v50  ;;  %6610 = vmatmul.msk.f32.gmra.mxu3 %vm4398_vm11, %v3967_v53  ;;  %v5734_v55 = vor.u32 1.1754944e-38, %v5733_v40  ;;  %v5311_v61 = vand.u32 2147483647, %v11573_v50  ;;  %v11635_v54 = vpop.f32.mrf.mxu3 }
 0x539   : > { %v5300_v63 = vsel %vm11582_vm3, %v5299_v4, %v5295_v42  ;;  %v11618_v5 = vadd.f32 1.0, %v7012_v12  ;;  %v6628_v30 = vmul.f32 -1.442695, %v4816_v15  ;;  %v5726_v48 = vadd.f32 %v7008_v7, %v5725_v26 }
 0x53a   : > { %6094 = vst.msk [vmem:[%s11031_s17 + $0x58] sm:$0xff] %vm6082_vm4, %v5300_v63  ;;  %v5304_v56 = vsub.f32 1.0, %v5303_v51  ;;  %v7014_v20 = vpop.eup %7013  ;;  %vm5308_vm12 = vweird.f32 %v7010_v62  ;;  %v5313_v18 = vand.u32 2147483648, %v11573_v50  ;;  %v4654_v47 = vadd.f32 %v10809_v6, %v4252_v46 }
 0x53b   : > { %7017 = vrcp.f32 %v11618_v5  ;;  %v5730_v34 = vsel %vm5729_vm9, %v7008_v7, %v5726_v48  ;;  %v11633_v4 = vadd.f32 1.0, %v7014_v20  ;;  %vm5307_vm13 = vweird.f32 %v11573_v50 }
 0x53c   : > { %v5305_v36 = vmul.f32 %v7010_v62, %v5304_v56  ;;  %7019 = vpow2.f32 %v6628_v30  ;;  %v7016_v21 = vpop.eup %7015  ;;  %v5735_v22 = vsel %vm11600_vm7, %v5734_v55, %v5730_v34  ;;  %v6657_v27 = vmul.f32 -1.442695, %v4845_v25  ;;  %vm5309_vm2 = vmor %vm5307_vm13, %vm5308_vm12 }
 0x53d   : > { %v3968_v37 = vmax.f32 %v3899_v28, 0.0  ;;  %6123 = vst.msk [vmem:[%s11031_s17 + $0x140] sm:$0xff] %vm6082_vm4, %v5735_v22  ;;  %vm5312_vm14 = vcmp.eq.f32.partialorder %v5311_v61, 8.507059e+37  ;;  %v5746_v6 = vand.u32 2147483647, %v11618_v5  ;;  %7021 = vrcp.f32 %v11633_v4 }
 0x53e   : > { %v5306_v1 = vadd.f32 %v7010_v62, %v5305_v36  ;;  %v5314_v7 = vor.u32 1.1754944e-38, %v5313_v18  ;;  %v11645_v41 = vadd.f32 1.0, %v7016_v21  ;;  %7023 = vpow2.f32 %v6657_v27 }
 0x53f   : > { %v4817_v23 = vadd.f32 %v10957_v43, %v4654_v47  ;;  %v5748_v40 = vand.u32 2147483648, %v11618_v5  ;;  %v4741_v33 = vadd.f32 %v11559_v16, %v11382_v57  ;;  %v4255_v58 = vadd.f32 %v9926_v49, %v11580_v24  ;;  %v3901_v16 = vpop.f32.mrf.mxu2  ;;  %v11671_v24 = vpop.f32.mrf.mxu1 }
 0x540   : > { %v5310_v50 = vsel %vm5309_vm2, %v7010_v62, %v5306_v1  ;;  %v5326_v29 = vand.u32 2147483647, %v11633_v4  ;;  %v5328_v53 = vand.u32 2147483648, %v11633_v4  ;;  %7025 = vrcp.f32 %v11645_v41  ;;  %6611 = vmatmul.msk.f32.gmra.mxu3 %vm4398_vm11, %v3968_v37  ;;  %v13267_v62 = vld [vmem:[#allocation87_spill] sm:$0xff]  ;;  %v11685_v55 = vpop.f32.mrf.mxu3 }
 0x541   : > { %v7018_v3 = vpop.eup %7017  ;;  %v5315_v44 = vsel %vm5312_vm14, %v5314_v7, %v5310_v50  ;;  %v11661_v15 = vadd.f32 %v11563_v35, %v13267_v62  ;;  %vm5742_vm0 = vweird.f32 %v11618_v5  ;;  %vm11667_vm10 = vcmp.eq.f32.partialorder %v5746_v6, 8.507059e+37 }
 0x542   : > { %v7020_v0 = vpop.eup %7019  ;;  %6095 = vst.msk [vmem:[%s11031_s17 + $0x60] sm:$0xff] %vm6082_vm4, %v5315_v44  ;;  %v5738_v49 = vmul.f32 %v7018_v3, %v11618_v5  ;;  %v6629_v46 = vmul.f32 -1.442695, %v4817_v23  ;;  %v4846_v12 = vadd.f32 %v10957_v43, %v4741_v33  ;;  %v4657_v35 = vadd.f32 %v10819_v52, %v4255_v58  ;;  %v11704_v33 = vpop.f32.mrf.mxu0 }
 0x543   : > { %v11673_v14 = vadd.f32 1.0, %v7020_v0  ;;  %v7022_v42 = vpop.eup %7021  ;;  %v5749_v51 = vor.u32 1.1754944e-38, %v5748_v40  ;;  %vm5322_vm15 = vweird.f32 %v11633_v4  ;;  %v5761_v28 = vand.u32 2147483647, %v11645_v41 }
 0x544   : > { %v5739_v26 = vsub.f32 1.0, %v5738_v49  ;;  %v7024_v63 = vpop.eup %7023  ;;  %v5318_v30 = vmul.f32 %v7022_v42, %v11633_v4  ;;  %vm11680_vm3 = vcmp.eq.f32.partialorder %v5326_v29, 8.507059e+37  ;;  %v5329_v48 = vor.u32 1.1754944e-38, %v5328_v53 }
 0x545   : > { %7027 = vrcp.f32 %v11673_v14  ;;  %vm5743_vm5 = vweird.f32 %v7018_v3  ;;  %v5763_v56 = vand.u32 2147483648, %v11645_v41  ;;  %v11688_v61 = vadd.f32 1.0, %v7024_v63 }
 0x546   : > { %v5740_v52 = vmul.f32 %v7018_v3, %v5739_v26  ;;  %v7026_v20 = vpop.eup %7025  ;;  %v5319_v18 = vsub.f32 1.0, %v5318_v30  ;;  %7029 = vpow2.f32 %v6629_v46  ;;  %v6658_v47 = vmul.f32 -1.442695, %v4846_v12  ;;  %vm5744_vm8 = vmor %vm5742_vm0, %vm5743_vm5 }
 0x547   : > { %v4818_v34 = vadd.f32 %v10957_v43, %v4657_v35  ;;  %v5753_v21 = vmul.f32 %v7026_v20, %v11645_v41  ;;  %vm5757_vm6 = vweird.f32 %v11645_v41  ;;  %vm11693_vm7 = vcmp.eq.f32.partialorder %v5761_v28, 8.507059e+37  ;;  %v11702_v50 = vpop.f32.mrf.mxu1  ;;  %v3904_v53 = vpop.f32.mrf.mxu2 }
 0x548   : > { %v5741_v36 = vadd.f32 %v7018_v3, %v5740_v52  ;;  %v5320_v27 = vmul.f32 %v7022_v42, %v5319_v18  ;;  %vm5323_vm1 = vweird.f32 %v7022_v42  ;;  %7031 = vrcp.f32 %v11688_v61  ;;  %v11735_v63 = vpop.f32.mrf.mxu3 }
 0x549   : > { %v3902_v37 = vadd.f32 %v11509_v45, %v3901_v16  ;;  %v5754_v6 = vsub.f32 1.0, %v5753_v21  ;;  %v5764_v7 = vor.u32 1.1754944e-38, %v5763_v56  ;;  %v5341_v23 = vand.u32 2147483647, %v11673_v14  ;;  %vm5324_vm9 = vmor %vm5322_vm15, %vm5323_vm1 }
 0x54a   : > { %v5745_v1 = vsel %vm5744_vm8, %v7018_v3, %v5741_v36  ;;  %v5321_v58 = vadd.f32 %v7022_v42, %v5320_v27  ;;  %7033 = vpow2.f32 %v6658_v47  ;;  %v6630_v44 = vmul.f32 -1.442695, %v4818_v34  ;;  %v11755_v27 = vpop.f32.mrf.mxu0 }
 0x54b   : > { %v7028_v40 = vpop.eup %7027  ;;  %v5750_v5 = vsel %vm11667_vm10, %v5749_v51, %v5745_v1  ;;  %v5755_v3 = vmul.f32 %v7026_v20, %v5754_v6  ;;  %vm5758_vm12 = vweird.f32 %v7026_v20  ;;  %vm5337_vm13 = vweird.f32 %v11673_v14 }
 0x54c   : > { %6124 = vst.msk [vmem:[%s11031_s17 + $0x148] sm:$0xff] %vm6082_vm4, %v5750_v5  ;;  %v5333_v29 = vmul.f32 %v7028_v40, %v11673_v14  ;;  %v7030_v0 = vpop.eup %7029  ;;  %v5325_v62 = vsel %vm5324_vm9, %v7022_v42, %v5321_v58  ;;  %v5343_v49 = vand.u32 2147483648, %v11673_v14  ;;  %7035 = vpow2.f32 %v6630_v44  ;;  %vm5759_vm14 = vmor %vm5757_vm6, %vm5758_vm12 }
 0x54d   : > { %v3969_v57 = vmax.f32 %v3902_v37, 0.0  ;;  %v5330_v16 = vsel %vm11680_vm3, %v5329_v48, %v5325_v62  ;;  %v5756_v46 = vadd.f32 %v7026_v20, %v5755_v3  ;;  %v11718_v12 = vadd.f32 1.0, %v7030_v0 }
 0x54e   : > { %v5334_v4 = vsub.f32 1.0, %v5333_v29  ;;  %v7032_v35 = vpop.eup %7031  ;;  %6096 = vst.msk [vmem:[%s11031_s17 + $0x68] sm:$0xff] %vm6082_vm4, %v5330_v16  ;;  %vm11725_vm2 = vcmp.eq.f32.partialorder %v5341_v23, 8.507059e+37  ;;  %v4744_v26 = vadd.f32 %v11596_v32, %v11399_v60  ;;  %v4258_v51 = vadd.f32 %v9968_v9, %v11625_v2 }
 0x54f   : > { %6612 = vmatmul.msk.f32.gmra.mxu3 %vm4398_vm11, %v3969_v57  ;;  %v3905_v28 = vadd.f32 %v11509_v45, %v3904_v53  ;;  %v5760_v30 = vsel %vm5759_vm14, %v7026_v20, %v5756_v46  ;;  %vm5338_vm0 = vweird.f32 %v7028_v40  ;;  %v5768_v25 = vmul.f32 %v7032_v35, %v11688_v61  ;;  %v11753_v22 = vpop.f32.mrf.mxu1 }
 0x550   : > { %v5335_v41 = vmul.f32 %v7028_v40, %v5334_v4  ;;  %v7034_v48 = vpop.eup %7033  ;;  %v5765_v52 = vsel %vm11693_vm7, %v5764_v7, %v5760_v30  ;;  %v5344_v56 = vor.u32 1.1754944e-38, %v5343_v49  ;;  %v5776_v60 = vand.u32 2147483647, %v11688_v61  ;;  %vm5339_vm15 = vmor %vm5337_vm13, %vm5338_vm0 }
 0x551   : > { %7037 = vrcp.f32 %v11718_v12  ;;  %6125 = vst.msk [vmem:[%s11031_s17 + $0x150] sm:$0xff] %vm6082_vm4, %v5765_v52  ;;  %v5769_v45 = vsub.f32 1.0, %v5768_v25  ;;  %vm5772_vm10 = vweird.f32 %v11688_v61  ;;  %v11745_v32 = vadd.f32 1.0, %v7034_v48 }
 0x552   : > { %v5336_v9 = vadd.f32 %v7028_v40, %v5335_v41  ;;  %v7036_v2 = vpop.eup %7035  ;;  %v5778_v20 = vand.u32 2147483648, %v11688_v61  ;;  %v4847_v18 = vadd.f32 %v10957_v43, %v4744_v26  ;;  %v4660_v47 = vadd.f32 %v10829_v10, %v4258_v51 }
 0x553   : > { %v3970_v34 = vmax.f32 %v3905_v28, 0.0  ;;  %v5770_v21 = vmul.f32 %v7032_v35, %v5769_v45  ;;  %vm5773_vm3 = vweird.f32 %v7032_v35  ;;  %7039 = vrcp.f32 %v11745_v32 }
 0x554   : > { %v5340_v36 = vsel %vm5339_vm15, %v7028_v40, %v5336_v9  ;;  %vm11759_vm5 = vcmp.eq.f32.partialorder %v5776_v60, 8.507059e+37  ;;  %v5356_v1 = vand.u32 2147483647, %v11718_v12  ;;  %v5358_v10 = vand.u32 2147483648, %v11718_v12  ;;  %vm5774_vm6 = vmor %vm5772_vm10, %vm5773_vm3  ;;  %v11808_v9 = vpop.f32.mrf.mxu0 }
 0x555   : > { %v5345_v14 = vsel %vm11725_vm2, %v5344_v56, %v5340_v36  ;;  %v5771_v6 = vadd.f32 %v7032_v35, %v5770_v21  ;;  %v11767_v7 = vadd.f32 1.0, %v7036_v2  ;;  %v6659_v23 = vmul.f32 -1.442695, %v4847_v18  ;;  %v13282_v2 = vld [vmem:[#allocation34_spill] sm:$0xff] }
 0x556   : > { %6097 = vst.msk [vmem:[%s11031_s17 + $0x70] sm:$0xff] %vm6082_vm4, %v5345_v14  ;;  %v4819_v40 = vadd.f32 %v10957_v43, %v4660_v47  ;;  %v5779_v58 = vor.u32 1.1754944e-38, %v5778_v20  ;;  %vm5352_vm7 = vweird.f32 %v11718_v12  ;;  %v5791_v44 = vand.u32 2147483647, %v11745_v32 }
 0x557   : > { %v7038_v5 = vpop.eup %7037  ;;  %v4747_v3 = vadd.f32 %v11635_v54, %v11405_v13  ;;  %6613 = vmatmul.msk.f32.gmra.mxu3 %vm4398_vm11, %v3970_v34  ;;  %v5775_v29 = vsel %vm5774_vm6, %v7032_v35, %v5771_v6  ;;  %7041 = vrcp.f32 %v11767_v7  ;;  %v4261_v61 = vadd.f32 %v10010_v39, %v11671_v24  ;;  %v11788_v54 = vpop.f32.mrf.mxu3 }
 0x558   : > { %v5348_v53 = vmul.f32 %v7038_v5, %v11718_v12  ;;  %v5780_v0 = vsel %vm11759_vm5, %v5779_v58, %v5775_v29  ;;  %vm11783_vm8 = vcmp.eq.f32.partialorder %v5356_v1, 8.507059e+37  ;;  %v5359_v49 = vor.u32 1.1754944e-38, %v5358_v10  ;;  %v11806_v60 = vpop.f32.mrf.mxu1 }
 0x559   : > { %v5793_v13 = vand.u32 2147483648, %v11745_v32  ;;  %v7040_v57 = vpop.eup %7039  ;;  %6126 = vst.msk [vmem:[%s11031_s17 + $0x158] sm:$0xff] %vm6082_vm4, %v5780_v0  ;;  %7043 = vpow2.f32 %v6659_v23  ;;  %v6631_v46 = vmul.f32 -1.442695, %v4819_v40  ;;  %v4848_v39 = vadd.f32 %v10957_v43, %v4747_v3 }
 0x55a   : > { %v5349_v16 = vsub.f32 1.0, %v5348_v53  ;;  %vm5353_vm11 = vweird.f32 %v7038_v5  ;;  %v5783_v24 = vmul.f32 %v7040_v57, %v11745_v32  ;;  %vm5787_vm1 = vweird.f32 %v11745_v32 }
 0x55b   : > { %vm11795_vm9 = vcmp.eq.f32.partialorder %v5791_v44, 8.507059e+37  ;;  %7045 = vpow2.f32 %v6631_v46  ;;  %v6660_v42 = vmul.f32 -1.442695, %v4848_v39  ;;  %v4663_v26 = vadd.f32 %v10839_v17, %v4261_v61  ;;  %vm5354_vm12 = vmor %vm5352_vm7, %vm5353_vm11  ;;  %v13285_v46 = vld [vmem:[#allocation137_spill] sm:$0xff] }
 0x55c   : > { %v5350_v35 = vmul.f32 %v7038_v5, %v5349_v16  ;;  %v5784_v51 = vsub.f32 1.0, %v5783_v24  ;;  %v5794_v28 = vor.u32 1.1754944e-38, %v5793_v13  ;;  %v4750_v30 = vadd.f32 %v11685_v55, %v11409_v8 }
 0x55d   : > { %v4264_v41 = vadd.f32 %v10059_v19, %v11702_v50  ;;  %v7042_v25 = vpop.eup %7041  ;;  %v5371_v52 = vand.u32 2147483647, %v11767_v7  ;;  %7047 = vpow2.f32 %v6660_v42  ;;  %v4820_v56 = vadd.f32 %v10957_v43, %v4663_v26 }
 0x55e   : > { %v5351_v48 = vadd.f32 %v7038_v5, %v5350_v35  ;;  %v5785_v17 = vmul.f32 %v7040_v57, %v5784_v51  ;;  %vm5788_vm13 = vweird.f32 %v7040_v57  ;;  %v5363_v19 = vmul.f32 %v7042_v25, %v11767_v7  ;;  %v11857_v35 = vpop.f32.mrf.mxu0 }
 0x55f   : > { %v4849_v8 = vadd.f32 %v10957_v43, %v4750_v30  ;;  %v7044_v55 = vpop.eup %7043  ;;  %v6632_v45 = vmul.f32 -1.442695, %v4820_v56  ;;  %v4666_v20 = vadd.f32 %v13282_v2, %v4264_v41  ;;  %v4753_v18 = vadd.f32 %v11735_v63, %v11424_v59  ;;  %vm5789_vm14 = vmor %vm5787_vm1, %vm5788_vm13  ;;  %v11829_v10 = vpop.f32.mrf.mxu3 }
 0x560   : > { %v5355_v50 = vsel %vm5354_vm12, %v7038_v5, %v5351_v48  ;;  %v5786_v12 = vadd.f32 %v7040_v57, %v5785_v17  ;;  %v5364_v34 = vsub.f32 1.0, %v5363_v19  ;;  %v11820_v36 = vadd.f32 1.0, %v7044_v55  ;;  %v11855_v24 = vpop.f32.mrf.mxu1 }
 0x561   : > { %v5360_v47 = vsel %vm11783_vm8, %v5359_v49, %v5355_v50  ;;  %v7046_v21 = vpop.eup %7045  ;;  %v5373_v14 = vand.u32 2147483648, %v11767_v7  ;;  %7049 = vpow2.f32 %v6632_v45  ;;  %v6661_v37 = vmul.f32 -1.442695, %v4849_v8  ;;  %v13284_v49 = vld [vmem:[#allocation133_spill] sm:$0xff] }
 0x562   : > { %6098 = vst.msk [vmem:[%s11031_s17 + $0x78] sm:$0xff] %vm6082_vm4, %v5360_v47  ;;  %v4821_v59 = vadd.f32 %v10957_v43, %v4666_v20  ;;  %v5790_v63 = vsel %vm5789_vm14, %v7040_v57, %v5786_v12  ;;  %v5365_v1 = vmul.f32 %v7042_v25, %v5364_v34  ;;  %vm5368_vm2 = vweird.f32 %v7042_v25 }
 0x563   : > { %7051 = vrcp.f32 %v11820_v36  ;;  %v7048_v6 = vpop.eup %7047  ;;  %v5795_v23 = vsel %vm11795_vm9, %v5794_v28, %v5790_v63  ;;  %vm5367_vm0 = vweird.f32 %v11767_v7  ;;  %v11834_v32 = vadd.f32 1.0, %v7046_v21  ;;  %v13283_v7 = vld [vmem:[#allocation153_spill] sm:$0xff]  ;;  %v13292_v21 = vld [vmem:[#allocation3_spill] sm:$0xff] }
 0x564   : > { %v4850_v40 = vadd.f32 %v10957_v43, %v4753_v18  ;;  %6127 = vst.msk [vmem:[%s11031_s17 + $0x160] sm:$0xff] %vm6082_vm4, %v5795_v23  ;;  %v5366_v5 = vadd.f32 %v7042_v25, %v5365_v1  ;;  %v11839_v58 = vadd.f32 1.0, %v7048_v6  ;;  %7053 = vpow2.f32 %v6661_v37  ;;  %vm5369_vm10 = vmor %vm5367_vm0, %vm5368_vm2 }
 0x565   : > { %v6633_v44 = vmul.f32 -1.442695, %v4821_v59  ;;  %v5374_v3 = vor.u32 1.1754944e-38, %v5373_v14  ;;  %v5806_v29 = vand.u32 2147483647, %v11820_v36  ;;  %v5808_v53 = vand.u32 2147483648, %v11820_v36 }
 0x566   : > { %7055 = vrcp.f32 %v11834_v32  ;;  %v11846_v61 = vadd.f32 %v11607_v38, %v13283_v7  ;;  %v5370_v0 = vsel %vm5369_vm10, %v7042_v25, %v5366_v5  ;;  %vm5372_vm15 = vcmp.eq.f32.partialorder %v5371_v52, 8.507059e+37 }
 0x567   : > { %7057 = vrcp.f32 %v11839_v58  ;;  %v7050_v62 = vpop.eup %7049  ;;  %v11851_v13 = vadd.f32 %v11653_v11, %v13284_v49  ;;  %v5375_v57 = vsel %vm5372_vm15, %v5374_v3, %v5370_v0  ;;  %v6662_v16 = vmul.f32 -1.442695, %v4850_v40  ;;  %v11884_v50 = vpop.f32.mrf.mxu3 }
 0x568   : > { %v4267_v39 = vadd.f32 %v13285_v46, %v11753_v22  ;;  %6099 = vst.msk [vmem:[%s11031_s17 + $0x80] sm:$0xff] %vm6082_vm4, %v5375_v57  ;;  %v5386_v38 = vand.u32 2147483647, %v11834_v32  ;;  %v5388_v42 = vand.u32 2147483648, %v11834_v32  ;;  %v11863_v26 = vadd.f32 1.0, %v7050_v62  ;;  %v4063_v0 = vpop.f32.mrf.mxu1 }
 0x569   : > { %v7052_v4 = vpop.eup %7051  ;;  %7059 = vpow2.f32 %v6633_v44  ;;  %vm5802_vm3 = vweird.f32 %v11820_v36  ;;  %vm11867_vm5 = vcmp.eq.f32.partialorder %v5806_v29, 8.507059e+37  ;;  %v5809_v51 = vor.u32 1.1754944e-38, %v5808_v53 }
 0x56a   : > { %v5798_v11 = vmul.f32 %v7052_v4, %v11820_v36  ;;  %v7054_v28 = vpop.eup %7053  ;;  %vm5382_vm6 = vweird.f32 %v11834_v32  ;;  %v5821_v30 = vand.u32 2147483647, %v11839_v58  ;;  %v5823_v41 = vand.u32 2147483648, %v11839_v58  ;;  %v11907_v36 = vpop.f32.mrf.mxu0 }
 0x56b   : > { %7061 = vrcp.f32 %v11863_v26  ;;  %vm5817_vm7 = vweird.f32 %v11839_v58  ;;  %v11876_v52 = vadd.f32 1.0, %v7054_v28  ;;  %vm5803_vm8 = vweird.f32 %v7052_v4 }
 0x56c   : > { %v7056_v25 = vpop.eup %7055  ;;  %v5799_v48 = vsub.f32 1.0, %v5798_v11  ;;  %7063 = vpow2.f32 %v6662_v16  ;;  %vm11879_vm11 = vcmp.eq.f32.partialorder %v5386_v38, 8.507059e+37  ;;  %v5389_v8 = vor.u32 1.1754944e-38, %v5388_v42  ;;  %vm5804_vm13 = vmor %vm5802_vm3, %vm5803_vm8 }
 0x56d   : > { %v7058_v56 = vpop.eup %7057  ;;  %v5378_v17 = vmul.f32 %v7056_v25, %v11834_v32  ;;  %v5403_v55 = vand.u32 2147483648, %v11863_v26  ;;  %v5401_v20 = vand.u32 2147483647, %v11863_v26  ;;  %7065 = vrcp.f32 %v11876_v52 }
 0x56e   : > { %v5800_v45 = vmul.f32 %v7052_v4, %v5799_v48  ;;  %v5813_v2 = vmul.f32 %v7058_v56, %v11839_v58  ;;  %vm11889_vm1 = vcmp.eq.f32.partialorder %v5821_v30, 8.507059e+37  ;;  %v5824_v34 = vor.u32 1.1754944e-38, %v5823_v41 }
 0x56f   : > { %v7060_v18 = vpop.eup %7059  ;;  %v5379_v47 = vsub.f32 1.0, %v5378_v17  ;;  %v4669_v14 = vadd.f32 %v13292_v21, %v4267_v39  ;;  %vm5383_vm9 = vweird.f32 %v7056_v25  ;;  %vm5397_vm12 = vweird.f32 %v11863_v26 }
 0x570   : > { %v5801_v37 = vadd.f32 %v7052_v4, %v5800_v45  ;;  %v5814_v59 = vsub.f32 1.0, %v5813_v2  ;;  %v11895_v63 = vadd.f32 1.0, %v7060_v18  ;;  %vm5818_vm14 = vweird.f32 %v7058_v56  ;;  %vm5384_vm10 = vmor %vm5382_vm6, %vm5383_vm9  ;;  %v13297_v45 = vld [vmem:[#allocation42_spill] sm:$0xff] }
 0x571   : > { %v7062_v1 = vpop.eup %7061  ;;  %v5380_v6 = vmul.f32 %v7056_v25, %v5379_v47  ;;  %v5404_v23 = vor.u32 1.1754944e-38, %v5403_v55  ;;  %v5836_v40 = vand.u32 2147483647, %v11876_v52  ;;  %vm11902_vm2 = vcmp.eq.f32.partialorder %v5401_v20, 8.507059e+37  ;;  %vm5819_vm15 = vmor %vm5817_vm7, %vm5818_vm14  ;;  %v13307_v47 = vld [vmem:[#allocation166_spill] sm:$0xff] }
 0x572   : > { %v7064_v5 = vpop.eup %7063  ;;  %v5805_v44 = vsel %vm5804_vm13, %v7052_v4, %v5801_v37  ;;  %v5815_v3 = vmul.f32 %v7058_v56, %v5814_v59  ;;  %v5393_v29 = vmul.f32 %v7062_v1, %v11863_v26  ;;  %v5838_v7 = vand.u32 2147483648, %v11876_v52  ;;  %v13300_v37 = vld [vmem:[#allocation151_spill] sm:$0xff] }
 0x573   : > { %v5810_v62 = vsel %vm11867_vm5, %v5809_v51, %v5805_v44  ;;  %v5381_v49 = vadd.f32 %v7056_v25, %v5380_v6  ;;  %vm5832_vm0 = vweird.f32 %v11876_v52  ;;  %7067 = vrcp.f32 %v11895_v63  ;;  %v7066_v16 = vpop.eup %7065  ;;  %v11966_v6 = vpop.f32.mrf.mxu1  ;;  %v13301_v44 = vld [vmem:[#allocation139_spill] sm:$0xff] }
 0x574   : > { %v4822_v57 = vadd.f32 %v10957_v43, %v4669_v14  ;;  %6128 = vst.msk [vmem:[%s11031_s17 + $0x168] sm:$0xff] %vm6082_vm4, %v5810_v62  ;;  %v5816_v46 = vadd.f32 %v7058_v56, %v5815_v3  ;;  %v5394_v39 = vsub.f32 1.0, %v5393_v29  ;;  %v5418_v4 = vand.u32 2147483648, %v11895_v63  ;;  %v13302_v29 = vld [vmem:[#allocation41_spill] sm:$0xff] }
 0x575   : > { %v4756_v38 = vadd.f32 %v11788_v54, %v11430_v31  ;;  %v5385_v42 = vsel %vm5384_vm10, %v7056_v25, %v5381_v49  ;;  %vm5398_vm3 = vweird.f32 %v7062_v1  ;;  %v5828_v11 = vmul.f32 %v7066_v16, %v11876_v52  ;;  %v4764_v25 = vpop.f32.mrf.mxu3 }
 0x576   : > { %vm11926_vm5 = vcmp.eq.f32.partialorder %v5836_v40, 8.507059e+37  ;;  %v11930_v22 = vadd.f32 1.0, %v7064_v5  ;;  %v5390_v51 = vsel %vm11879_vm11, %v5389_v8, %v5385_v42  ;;  %v5820_v28 = vsel %vm5819_vm15, %v7058_v56, %v5816_v46  ;;  %vm5399_vm8 = vmor %vm5397_vm12, %vm5398_vm3  ;;  %v4380_v40 = vpop.f32.mrf.mxu0 }
 0x577   : > { %v5395_v31 = vmul.f32 %v7062_v1, %v5394_v39  ;;  %v5416_v54 = vand.u32 2147483647, %v11895_v63  ;;  %6100 = vst.msk [vmem:[%s11031_s17 + $0x88] sm:$0xff] %vm6082_vm4, %v5390_v51  ;;  %v5825_v58 = vsel %vm11889_vm1, %v5824_v34, %v5820_v28  ;;  %v5829_v30 = vsub.f32 1.0, %v5828_v11 }
 0x578   : > { %v5839_v41 = vor.u32 1.1754944e-38, %v5838_v7  ;;  %7069 = vrcp.f32 %v11930_v22  ;;  %6129 = vst.msk [vmem:[%s11031_s17 + $0x170] sm:$0xff] %vm6082_vm4, %v5825_v58  ;;  %vm5833_vm6 = vweird.f32 %v7066_v16  ;;  %vm5412_vm7 = vweird.f32 %v11895_v63 }
 0x579   : > { %v5396_v48 = vadd.f32 %v7062_v1, %v5395_v31  ;;  %v5419_v56 = vor.u32 1.1754944e-38, %v5418_v4  ;;  %v7068_v17 = vpop.eup %7067  ;;  %v5830_v19 = vmul.f32 %v7066_v16, %v5829_v30  ;;  %v6634_v8 = vmul.f32 -1.442695, %v4822_v57  ;;  %vm5834_vm9 = vmor %vm5832_vm0, %vm5833_vm6 }
 0x57a   : > { %v4851_v55 = vadd.f32 %v10957_v43, %v4756_v38  ;;  %v4270_v2 = vadd.f32 %v13297_v45, %v11806_v60  ;;  %v5408_v18 = vmul.f32 %v7068_v17, %v11895_v63  ;;  %vm11950_vm11 = vcmp.eq.f32.partialorder %v5416_v54, 8.507059e+37 }
 0x57b   : > { %v5400_v20 = vsel %vm5399_vm8, %v7062_v1, %v5396_v48  ;;  %v5851_v12 = vand.u32 2147483647, %v11930_v22  ;;  %v5853_v34 = vand.u32 2147483648, %v11930_v22  ;;  %v5831_v21 = vadd.f32 %v7066_v16, %v5830_v19 }
 0x57c   : > { %v5405_v26 = vsel %vm11902_vm2, %v5404_v23, %v5400_v20  ;;  %vm5413_vm1 = vweird.f32 %v7068_v17  ;;  %7071 = vpow2.f32 %v6634_v8  ;;  %v5409_v60 = vsub.f32 1.0, %v5408_v18 }
 0x57d   : > { %6101 = vst.msk [vmem:[%s11031_s17 + $0x90] sm:$0xff] %vm6082_vm4, %v5405_v26  ;;  %v6663_v14 = vmul.f32 -1.442695, %v4851_v55  ;;  %v4672_v59 = vadd.f32 %v13300_v37, %v4270_v2  ;;  %v4759_v1 = vadd.f32 %v11829_v10, %v11661_v15  ;;  %v5835_v5 = vsel %vm5834_vm9, %v7066_v16, %v5831_v21  ;;  %vm5414_vm13 = vmor %vm5412_vm7, %vm5413_vm1  ;;  %v4767_v32 = vpop.f32.mrf.mxu3  ;;  %v4069_v55 = vpop.f32.mrf.mxu1  ;;  %v13308_v21 = vld [vmem:[#allocation24_spill] sm:$0xff] }
 0x57e   : > { %v7070_v23 = vpop.eup %7069  ;;  %v4273_v3 = vadd.f32 %v13301_v44, %v11855_v24  ;;  %v4762_v52 = vadd.f32 %v11884_v50, %v11846_v61  ;;  %v4276_v53 = vadd.f32 %v13302_v29, %v4063_v0  ;;  %v5840_v7 = vsel %vm11926_vm5, %v5839_v41, %v5835_v5  ;;  %v13303_v24 = vld [vmem:[#allocation48_spill] sm:$0xff]  ;;  %v13304_v0 = vld [vmem:[#allocation97_spill] sm:$0xff] }
 0x57f   : > { %v5410_v62 = vmul.f32 %v7068_v17, %v5409_v60  ;;  %v5843_v49 = vmul.f32 %v7070_v23, %v11930_v22  ;;  %vm5848_vm12 = vweird.f32 %v7070_v23  ;;  %6130 = vst.msk [vmem:[%s11031_s17 + $0x178] sm:$0xff] %vm6082_vm4, %v5840_v7  ;;  %7073 = vpow2.f32 %v6663_v14  ;;  %v13309_v14 = vld [vmem:[#allocation170_spill] sm:$0xff]  ;;  %v13312_v5 = vld [vmem:[#allocation157_spill] sm:$0xff] }
 0x580   : > { %v4823_v15 = vadd.f32 %v10957_v43, %v4672_v59  ;;  %v4852_v10 = vadd.f32 %v10957_v43, %v4759_v1  ;;  %v4675_v57 = vadd.f32 %v13303_v24, %v4273_v3  ;;  %v4853_v50 = vadd.f32 %v10957_v43, %v4762_v52 }
 0x581   : > { %v5411_v16 = vadd.f32 %v7068_v17, %v5410_v62  ;;  %v5844_v61 = vsub.f32 1.0, %v5843_v49  ;;  %v4678_v46 = vadd.f32 %v13304_v0, %v4276_v53  ;;  %v4765_v11 = vadd.f32 %v4764_v25, %v11851_v13  ;;  %v13305_v25 = vld [vmem:[#allocation89_spill] sm:$0xff] }
 0x582   : > { %v7072_v39 = vpop.eup %7071  ;;  %v6635_v4 = vmul.f32 -1.442695, %v4823_v15  ;;  %v6664_v38 = vmul.f32 -1.442695, %v4852_v10  ;;  %v4824_v42 = vadd.f32 %v10957_v43, %v4675_v57  ;;  %v6665_v54 = vmul.f32 -1.442695, %v4853_v50 }
 0x583   : > { %v5415_v51 = vsel %vm5414_vm13, %v7068_v17, %v5411_v16  ;;  %v5845_v28 = vmul.f32 %v7070_v23, %v5844_v61  ;;  %v11988_v31 = vadd.f32 1.0, %v7072_v39  ;;  %v4825_v63 = vadd.f32 %v10957_v43, %v4678_v46  ;;  %v13315_v16 = vld [vmem:[#allocation156_spill] sm:$0xff]  ;;  %v13316_v46 = vld [vmem:[#allocation31_spill] sm:$0xff] }
 0x584   : > { %v5420_v58 = vsel %vm11950_vm11, %v5419_v56, %v5415_v51  ;;  %7075 = vpow2.f32 %v6635_v4  ;;  %v6636_v30 = vmul.f32 -1.442695, %v4824_v42  ;;  %vm5847_vm14 = vweird.f32 %v11930_v22  ;;  %v4383_v22 = vpop.f32.mrf.mxu0 }
 0x585   : > { %6102 = vst.msk [vmem:[%s11031_s17 + $0x98] sm:$0xff] %vm6082_vm4, %v5420_v58  ;;  %v5846_v41 = vadd.f32 %v7070_v23, %v5845_v28  ;;  %7077 = vrcp.f32 %v11988_v31  ;;  %v7074_v13 = vpop.eup %7073  ;;  %v4366_v48 = vadd.f32 %v11704_v33, %v13305_v25  ;;  %vm5849_vm2 = vmor %vm5847_vm14, %vm5848_vm12  ;;  %vm5852_vm0 = vcmp.eq.f32.partialorder %v5851_v12, 8.507059e+37  ;;  %v13306_v33 = vld [vmem:[#allocation26_spill] sm:$0xff] }
 0x586   : > { %v5854_v56 = vor.u32 1.1754944e-38, %v5853_v34  ;;  %7079 = vpow2.f32 %v6664_v38  ;;  %v12000_v19 = vadd.f32 1.0, %v7074_v13  ;;  %v4854_v8 = vadd.f32 %v10957_v43, %v4765_v11 }
 0x587   : > { %v5850_v17 = vsel %vm5849_vm2, %v7070_v23, %v5846_v41  ;;  %7081 = vpow2.f32 %v6636_v30  ;;  %v5431_v2 = vand.u32 2147483647, %v11988_v31  ;;  %v6637_v20 = vmul.f32 -1.442695, %v4825_v63 }
 0x588   : > { %v5855_v45 = vsel %vm5852_vm0, %v5854_v56, %v5850_v17  ;;  %7083 = vpow2.f32 %v6665_v54  ;;  %v12006_v18 = vadd.f32 %v11755_v27, %v13306_v33  ;;  %v12010_v12 = vadd.f32 %v11808_v9, %v13307_v47  ;;  %v13310_v27 = vld [vmem:[#allocation90_spill] sm:$0xff]  ;;  %v13311_v9 = vld [vmem:[#allocation93_spill] sm:$0xff]  ;;  %v12066_v54 = vpop.f32.mrf.mxu1 }
 0x589   : > { %6131 = vst.msk [vmem:[%s11031_s17 + $0x180] sm:$0xff] %vm6082_vm4, %v5855_v45  ;;  %v5433_v34 = vand.u32 2147483648, %v11988_v31  ;;  %7085 = vrcp.f32 %v12000_v19  ;;  %v12018_v60 = vadd.f32 %v11857_v35, %v13308_v21  ;;  %v12022_v37 = vadd.f32 %v11907_v36, %v13309_v14 }
 0x58a   : > { %v7076_v26 = vpop.eup %7075  ;;  %v12025_v59 = vadd.f32 %v4380_v40, %v13310_v27  ;;  %v4279_v1 = vadd.f32 %v13311_v9, %v11966_v6  ;;  %v12030_v44 = vadd.f32 %v4383_v22, %v13312_v5  ;;  %vm5427_vm10 = vweird.f32 %v11988_v31  ;;  %v12041_v6 = vpop.f32.mrf.mxu3 }
 0x58b   : > { %v7078_v23 = vpop.eup %7077  ;;  %v12033_v3 = vadd.f32 1.0, %v7076_v26  ;;  %v6666_v35 = vmul.f32 -1.442695, %v4854_v8  ;;  %vm12036_vm15 = vcmp.eq.f32.partialorder %v5431_v2, 8.507059e+37  ;;  %v5866_v40 = vand.u32 2147483647, %v12000_v19 }
 0x58c   : > { %v7080_v52 = vpop.eup %7079  ;;  %v5423_v29 = vmul.f32 %v7078_v23, %v11988_v31  ;;  %7087 = vpow2.f32 %v6637_v20  ;;  %v5434_v7 = vor.u32 1.1754944e-38, %v5433_v34  ;;  %v5868_v62 = vand.u32 2147483648, %v12000_v19 }
 0x58d   : > { %v7082_v53 = vpop.eup %7081  ;;  %7089 = vrcp.f32 %v12033_v3  ;;  %v4768_v49 = vadd.f32 %v4767_v32, %v4366_v48  ;;  %vm5862_vm3 = vweird.f32 %v12000_v19  ;;  %v12046_v24 = vadd.f32 1.0, %v7080_v52 }
 0x58e   : > { %v7084_v15 = vpop.eup %7083  ;;  %v5424_v10 = vsub.f32 1.0, %v5423_v29  ;;  %v12048_v57 = vadd.f32 1.0, %v7082_v53  ;;  %v4681_v61 = vadd.f32 %v13315_v16, %v4279_v1  ;;  %vm5428_vm5 = vweird.f32 %v7078_v23 }
 0x58f   : > { %v7086_v50 = vpop.eup %7085  ;;  %v12051_v0 = vadd.f32 1.0, %v7084_v15  ;;  %7091 = vpow2.f32 %v6666_v35  ;;  %v12054_v39 = vadd.f32 %v13316_v46, %v4069_v55  ;;  %vm12057_vm6 = vcmp.eq.f32.partialorder %v5866_v40, 8.507059e+37  ;;  %vm5429_vm8 = vmor %vm5427_vm10, %vm5428_vm5 }
 0x590   : > { %v5425_v4 = vmul.f32 %v7078_v23, %v5424_v10  ;;  %v5858_v38 = vmul.f32 %v7086_v50, %v12000_v19  ;;  %v5446_v11 = vand.u32 2147483647, %v12033_v3  ;;  %7093 = vrcp.f32 %v12046_v24 }
 0x591   : > { %v5869_v32 = vor.u32 1.1754944e-38, %v5868_v62  ;;  %v5448_v51 = vand.u32 2147483648, %v12033_v3  ;;  %7095 = vrcp.f32 %v12048_v57  ;;  %v4855_v28 = vadd.f32 %v10957_v43, %v4768_v49 }
 0x592   : > { %v7088_v58 = vpop.eup %7087  ;;  %v5426_v30 = vadd.f32 %v7078_v23, %v5425_v4  ;;  %v5859_v63 = vsub.f32 1.0, %v5858_v38  ;;  %vm5442_vm7 = vweird.f32 %v12033_v3  ;;  %v12070_v41 = vadd.f32 %v10957_v43, %v4681_v61  ;;  %v12084_v31 = vpop.f32.mrf.mxu3 }
 0x593   : > { %v7090_v13 = vpop.eup %7089  ;;  %vm5863_vm11 = vweird.f32 %v7086_v50  ;;  %v5881_v25 = vand.u32 2147483647, %v12046_v24  ;;  %v5883_v48 = vand.u32 2147483648, %v12046_v24  ;;  %7097 = vrcp.f32 %v12051_v0 }
 0x594   : > { %v5430_v56 = vsel %vm5429_vm8, %v7078_v23, %v5426_v30  ;;  %v5860_v17 = vmul.f32 %v7086_v50, %v5859_v63  ;;  %v5438_v8 = vmul.f32 %v7090_v13, %v12033_v3  ;;  %vm12079_vm1 = vcmp.eq.f32.partialorder %v5446_v11, 8.507059e+37  ;;  %vm5864_vm13 = vmor %vm5862_vm3, %vm5863_vm11 }
 0x595   : > { %v5461_v22 = vand.u32 2147483647, %v12048_v57  ;;  %v7092_v45 = vpop.eup %7091  ;;  %v5435_v2 = vsel %vm12036_vm15, %v5434_v7, %v5430_v56  ;;  %v5449_v20 = vor.u32 1.1754944e-38, %v5448_v51  ;;  %v5463_v33 = vand.u32 2147483648, %v12048_v57 }
 0x596   : > { %v6667_v47 = vmul.f32 -1.442695, %v4855_v28  ;;  %v7094_v34 = vpop.eup %7093  ;;  %6103 = vst.msk [vmem:[%s11031_s17 + $0xa0] sm:$0xff] %vm6082_vm4, %v5435_v2  ;;  %v5861_v26 = vadd.f32 %v7086_v50, %v5860_v17  ;;  %v5439_v21 = vsub.f32 1.0, %v5438_v8  ;;  %vm5877_vm9 = vweird.f32 %v12046_v24  ;;  %v12144_v17 = vpop.f32.mrf.mxu0 }
 0x597   : > { %vm5457_vm12 = vweird.f32 %v12048_v57  ;;  %v7096_v14 = vpop.eup %7095  ;;  %vm5443_vm14 = vweird.f32 %v7090_v13  ;;  %v5873_v27 = vmul.f32 %v7094_v34, %v12046_v24  ;;  %vm12097_vm2 = vcmp.eq.f32.partialorder %v5881_v25, 8.507059e+37 }
 0x598   : > { %v5884_v1 = vor.u32 1.1754944e-38, %v5883_v48  ;;  %v12101_v23 = vadd.f32 1.0, %v7088_v58  ;;  %v5865_v5 = vsel %vm5864_vm13, %v7086_v50, %v5861_v26  ;;  %v5440_v35 = vmul.f32 %v7090_v13, %v5439_v21  ;;  %vm5444_vm10 = vmor %vm5442_vm7, %vm5443_vm14  ;;  %v12121_v50 = vpop.f32.mrf.mxu1 }
 0x599   : > { %v5453_v52 = vmul.f32 %v7096_v14, %v12048_v57  ;;  %vm12104_vm0 = vcmp.eq.f32.partialorder %v5461_v22, 8.507059e+37  ;;  %v7098_v19 = vpop.eup %7097  ;;  %v5870_v36 = vsel %vm12057_vm6, %v5869_v32, %v5865_v5  ;;  %v5874_v40 = vsub.f32 1.0, %v5873_v27 }
 0x59a   : > { %v5464_v53 = vor.u32 1.1754944e-38, %v5463_v33  ;;  %v12110_v7 = vadd.f32 1.0, %v7092_v45  ;;  %6132 = vst.msk [vmem:[%s11031_s17 + $0x188] sm:$0xff] %vm6082_vm4, %v5870_v36  ;;  %v5441_v62 = vadd.f32 %v7090_v13, %v5440_v35  ;;  %v5888_v15 = vmul.f32 %v7098_v19, %v12051_v0  ;;  %v12123_v42 = vpop.f32.mrf.mxu3  ;;  %v13329_v45 = vld [vmem:[#allocation47_spill] sm:$0xff] }
 0x59b   : > { %v5454_v49 = vsub.f32 1.0, %v5453_v52  ;;  %v5896_v10 = vand.u32 2147483647, %v12051_v0  ;;  %v5875_v16 = vmul.f32 %v7094_v34, %v5874_v40  ;;  %vm5878_vm15 = vweird.f32 %v7094_v34 }
 0x59c   : > { %v5898_v61 = vand.u32 2147483648, %v12051_v0  ;;  %7099 = vrcp.f32 %v12101_v23  ;;  %v5445_v46 = vsel %vm5444_vm10, %v7090_v13, %v5441_v62  ;;  %vm5458_vm3 = vweird.f32 %v7096_v14  ;;  %vm5879_vm6 = vmor %vm5877_vm9, %vm5878_vm15 }
 0x59d   : > { %v5455_v4 = vmul.f32 %v7096_v14, %v5454_v49  ;;  %v5889_v38 = vsub.f32 1.0, %v5888_v15  ;;  %v5450_v11 = vsel %vm12079_vm1, %v5449_v20, %v5445_v46  ;;  %v5876_v3 = vadd.f32 %v7094_v34, %v5875_v16  ;;  %vm5459_vm7 = vmor %vm5457_vm12, %vm5458_vm3 }
 0x59e   : > { %vm5893_vm5 = vweird.f32 %v7098_v19  ;;  %7101 = vrcp.f32 %v12110_v7  ;;  %6104 = vst.msk [vmem:[%s11031_s17 + $0xa8] sm:$0xff] %vm6082_vm4, %v5450_v11  ;;  %v5476_v28 = vand.u32 2147483647, %v12101_v23  ;;  %v5478_v58 = vand.u32 2147483648, %v12101_v23  ;;  %v4389_v11 = vpop.f32.mrf.mxu0 }
 0x59f   : > { %v5456_v32 = vadd.f32 %v7096_v14, %v5455_v4  ;;  %v5890_v51 = vmul.f32 %v7098_v19, %v5889_v38  ;;  %v5880_v30 = vsel %vm5879_vm6, %v7094_v34, %v5876_v3  ;;  %vm5892_vm8 = vweird.f32 %v12051_v0  ;;  %v13330_v34 = vld [vmem:[#allocation142_spill] sm:$0xff] }
 0x5a0   : > { %vm12137_vm11 = vcmp.eq.f32.partialorder %v5896_v10, 8.507059e+37  ;;  %v6638_v24 = vmul.f32 -1.442695, %v12070_v41  ;;  %v5885_v13 = vsel %vm12097_vm2, %v5884_v1, %v5880_v30  ;;  %7103 = vpow2.f32 %v6667_v47  ;;  %vm5894_vm1 = vmor %vm5892_vm8, %vm5893_vm5 }
 0x5a1   : > { %v5460_v25 = vsel %vm5459_vm7, %v7096_v14, %v5456_v32  ;;  %v5891_v48 = vadd.f32 %v7098_v19, %v5890_v51  ;;  %6133 = vst.msk [vmem:[%s11031_s17 + $0x190] sm:$0xff] %vm6082_vm4, %v5885_v13  ;;  %v5899_v0 = vor.u32 1.1754944e-38, %v5898_v61  ;;  %vm5472_vm9 = vweird.f32 %v12101_v23  ;;  %v13334_v32 = vld [vmem:[#allocation94_spill] sm:$0xff] }
 0x5a2   : > { %v7100_v56 = vpop.eup %7099  ;;  %v5465_v57 = vsel %vm12104_vm0, %v5464_v53, %v5460_v25  ;;  %7105 = vpow2.f32 %v6638_v24  ;;  %vm12155_vm12 = vcmp.eq.f32.partialorder %v5476_v28, 8.507059e+37  ;;  %v5479_v22 = vor.u32 1.1754944e-38, %v5478_v58  ;;  %v12174_v1 = vpop.f32.mrf.mxu3  ;;  %v13335_v25 = vld [vmem:[#allocation141_spill] sm:$0xff] }
 0x5a3   : > { %6105 = vst.msk [vmem:[%s11031_s17 + $0xb0] sm:$0xff] %vm6082_vm4, %v5465_v57  ;;  %v5895_v41 = vsel %vm5894_vm1, %v7098_v19, %v5891_v48  ;;  %v5468_v8 = vmul.f32 %v7100_v56, %v12101_v23  ;;  %v4684_v2 = vadd.f32 %v13329_v45, %v12054_v39  ;;  %v4771_v47 = vadd.f32 %v12041_v6, %v12006_v18  ;;  %v13331_v6 = vld [vmem:[#allocation101_spill] sm:$0xff] }
 0x5a4   : > { %v7102_v20 = vpop.eup %7101  ;;  %v5900_v33 = vsel %vm12137_vm11, %v5899_v0, %v5895_v41  ;;  %v4285_v26 = vadd.f32 %v13330_v34, %v12066_v54  ;;  %v4774_v21 = vadd.f32 %v12084_v31, %v12010_v12  ;;  %v5911_v39 = vand.u32 2147483647, %v12110_v7  ;;  %v12180_v12 = vpop.f32.mrf.mxu1  ;;  %v13336_v48 = vld [vmem:[#allocation29_spill] sm:$0xff] }
 0x5a5   : > { %6134 = vst.msk [vmem:[%s11031_s17 + $0x198] sm:$0xff] %vm6082_vm4, %v5900_v33  ;;  %v5469_v14 = vsub.f32 1.0, %v5468_v8  ;;  %v5903_v27 = vmul.f32 %v7102_v20, %v12110_v7  ;;  %v4827_v9 = vadd.f32 %v10957_v43, %v4684_v2  ;;  %v5913_v5 = vand.u32 2147483648, %v12110_v7  ;;  %v13337_v8 = vld [vmem:[#allocation160_spill] sm:$0xff] }
 0x5a6   : > { %v4856_v18 = vadd.f32 %v10957_v43, %v4771_v47  ;;  %v4687_v54 = vadd.f32 %v13331_v6, %v4285_v26  ;;  %v4857_v35 = vadd.f32 %v10957_v43, %v4774_v21  ;;  %v7104_v31 = vpop.eup %7103  ;;  %vm5473_vm13 = vweird.f32 %v7100_v56 }
 0x5a7   : > { %v5470_v52 = vmul.f32 %v7100_v56, %v5469_v14  ;;  %v5904_v29 = vsub.f32 1.0, %v5903_v27  ;;  %v6639_v19 = vmul.f32 -1.442695, %v4827_v9  ;;  %vm5908_vm14 = vweird.f32 %v7102_v20  ;;  %vm5474_vm2 = vmor %vm5472_vm9, %vm5473_vm13  ;;  %v13342_v27 = vld [vmem:[#allocation44_spill] sm:$0xff] }
 0x5a8   : > { %v7106_v36 = vpop.eup %7105  ;;  %v12182_v40 = vadd.f32 1.0, %v7104_v31  ;;  %v6668_v53 = vmul.f32 -1.442695, %v4856_v18  ;;  %v4828_v62 = vadd.f32 %v10957_v43, %v4687_v54  ;;  %vm5907_vm0 = vweird.f32 %v12110_v7 }
 0x5a9   : > { %v5471_v49 = vadd.f32 %v7100_v56, %v5470_v52  ;;  %v5905_v15 = vmul.f32 %v7102_v20, %v5904_v29  ;;  %v12185_v10 = vadd.f32 1.0, %v7106_v36  ;;  %7107 = vpow2.f32 %v6639_v19  ;;  %vm5909_vm15 = vmor %vm5907_vm0, %vm5908_vm14 }
 0x5aa   : > { %vm12190_vm10 = vcmp.eq.f32.partialorder %v5911_v39, 8.507059e+37  ;;  %7109 = vrcp.f32 %v12182_v40  ;;  %v6669_v61 = vmul.f32 -1.442695, %v4857_v35  ;;  %v4777_v38 = vadd.f32 %v12123_v42, %v12018_v60 }
 0x5ab   : > { %v5475_v46 = vsel %vm5474_vm2, %v7100_v56, %v5471_v49  ;;  %v5906_v4 = vadd.f32 %v7102_v20, %v5905_v15  ;;  %7111 = vrcp.f32 %v12185_v10  ;;  %v5914_v7 = vor.u32 1.1754944e-38, %v5913_v5  ;;  %v4782_v24 = vpop.f32.mrf.mxu3  ;;  %v13343_v5 = vld [vmem:[#allocation96_spill] sm:$0xff] }
 0x5ac   : > { %v5480_v23 = vsel %vm12155_vm12, %v5479_v22, %v5475_v46  ;;  %v5926_v3 = vand.u32 2147483647, %v12182_v40  ;;  %v4288_v51 = vadd.f32 %v13334_v32, %v12121_v50  ;;  %v5928_v58 = vand.u32 2147483648, %v12182_v40  ;;  %v4081_v22 = vpop.f32.mrf.mxu1 }
 0x5ad   : > { %6106 = vst.msk [vmem:[%s11031_s17 + $0xb8] sm:$0xff] %vm6082_vm4, %v5480_v23  ;;  %v5910_v28 = vsel %vm5909_vm15, %v7102_v20, %v5906_v4  ;;  %7113 = vpow2.f32 %v6668_v53  ;;  %v6640_v60 = vmul.f32 -1.442695, %v4828_v62  ;;  %v5491_v30 = vand.u32 2147483647, %v12185_v10 }
 0x5ae   : > { %v5915_v42 = vsel %vm12190_vm10, %v5914_v7, %v5910_v28  ;;  %v5493_v63 = vand.u32 2147483648, %v12185_v10  ;;  %7115 = vpow2.f32 %v6669_v61  ;;  %v12213_v50 = vadd.f32 %v12144_v17, %v13335_v25  ;;  %v13344_v61 = vld [vmem:[#allocation37_spill] sm:$0xff] }
 0x5af   : > { %v7108_v13 = vpop.eup %7107  ;;  %v12216_v56 = vadd.f32 %v4389_v11, %v13336_v48  ;;  %6135 = vst.msk [vmem:[%s11031_s17 + $0x1a0] sm:$0xff] %vm6082_vm4, %v5915_v42  ;;  %7117 = vpow2.f32 %v6640_v60  ;;  %v4858_v57 = vadd.f32 %v10957_v43, %v4777_v38  ;;  %vm5487_vm3 = vweird.f32 %v12185_v10 }
 0x5b0   : > { %v7110_v0 = vpop.eup %7109  ;;  %vm5922_vm5 = vweird.f32 %v12182_v40  ;;  %v12223_v41 = vadd.f32 1.0, %v7108_v13  ;;  %v4690_v55 = vadd.f32 %v13337_v8, %v4288_v51  ;;  %vm12227_vm6 = vcmp.eq.f32.partialorder %v5926_v3, 8.507059e+37 }
 0x5b1   : > { %v7112_v17 = vpop.eup %7111  ;;  %v5918_v45 = vmul.f32 %v7110_v0, %v12182_v40  ;;  %v5929_v20 = vor.u32 1.1754944e-38, %v5928_v58  ;;  %v6670_v33 = vmul.f32 -1.442695, %v4858_v57  ;;  %vm12232_vm7 = vcmp.eq.f32.partialorder %v5491_v30, 8.507059e+37 }
 0x5b2   : > { %v5483_v47 = vmul.f32 %v7112_v17, %v12185_v10  ;;  %v5494_v26 = vor.u32 1.1754944e-38, %v5493_v63  ;;  %7119 = vrcp.f32 %v12223_v41  ;;  %v4291_v39 = vadd.f32 %v13342_v27, %v12180_v12 }
 0x5b3   : > { %v7114_v21 = vpop.eup %7113  ;;  %v5919_v14 = vsub.f32 1.0, %v5918_v45  ;;  %v12241_v9 = vadd.f32 %v12174_v1, %v12022_v37  ;;  %v12244_v18 = vadd.f32 %v13343_v5, %v4081_v22  ;;  %v4829_v31 = vadd.f32 %v10957_v43, %v4690_v55 }
 0x5b4   : > { %v7116_v6 = vpop.eup %7115  ;;  %v5484_v54 = vsub.f32 1.0, %v5483_v47  ;;  %v12246_v35 = vadd.f32 1.0, %v7114_v21  ;;  %7121 = vpow2.f32 %v6670_v33  ;;  %vm5923_vm8 = vweird.f32 %v7110_v0 }
 0x5b5   : > { %v7118_v52 = vpop.eup %7117  ;;  %v5920_v29 = vmul.f32 %v7110_v0, %v5919_v14  ;;  %v5506_v19 = vand.u32 2147483647, %v12223_v41  ;;  %v12250_v12 = vadd.f32 1.0, %v7116_v6  ;;  %vm5488_vm11 = vweird.f32 %v7112_v17  ;;  %vm5924_vm1 = vmor %vm5922_vm5, %vm5923_vm8 }
 0x5b6   : > { %v5485_v36 = vmul.f32 %v7112_v17, %v5484_v54  ;;  %7123 = vrcp.f32 %v12246_v35  ;;  %v12254_v37 = vadd.f32 %v4782_v24, %v12025_v59  ;;  %v5508_v53 = vand.u32 2147483648, %v12223_v41  ;;  %v12264_v59 = vpop.f32.mrf.mxu3  ;;  %vm5489_vm12 = vmor %vm5487_vm3, %vm5488_vm11 }
 0x5b7   : > { %v5921_v1 = vadd.f32 %v7110_v0, %v5920_v29  ;;  %v12257_v62 = vadd.f32 1.0, %v7118_v52  ;;  %7125 = vrcp.f32 %v12250_v12  ;;  %vm5502_vm9 = vweird.f32 %v12223_v41 }
 0x5b8   : > { %v7120_v49 = vpop.eup %7119  ;;  %v5486_v15 = vadd.f32 %v7112_v17, %v5485_v36  ;;  %v6641_v16 = vmul.f32 -1.442695, %v4829_v31  ;;  %v4693_v46 = vadd.f32 %v13344_v61, %v4291_v39  ;;  %vm12269_vm13 = vcmp.eq.f32.partialorder %v5506_v19, 8.507059e+37 }
 0x5b9   : > { %v5925_v4 = vsel %vm5924_vm1, %v7110_v0, %v5921_v1  ;;  %v5498_v38 = vmul.f32 %v7120_v49, %v12223_v41  ;;  %v5941_v40 = vand.u32 2147483647, %v12246_v35  ;;  %v5943_v32 = vand.u32 2147483648, %v12246_v35  ;;  %v13353_v1 = vld [vmem:[#allocation88_spill] sm:$0xff] }
 0x5ba   : > { %v7122_v23 = vpop.eup %7121  ;;  %v5490_v7 = vsel %vm5489_vm12, %v7112_v17, %v5486_v15  ;;  %v5930_v3 = vsel %vm12227_vm6, %v5929_v20, %v5925_v4  ;;  %7127 = vrcp.f32 %v12257_v62  ;;  %v5509_v28 = vor.u32 1.1754944e-38, %v5508_v53 }
 0x5bb   : > { %v5495_v10 = vsel %vm12232_vm7, %v5494_v26, %v5490_v7  ;;  %6136 = vst.msk [vmem:[%s11031_s17 + $0x1a8] sm:$0xff] %vm6082_vm4, %v5930_v3  ;;  %v5499_v51 = vsub.f32 1.0, %v5498_v38  ;;  %v5956_v58 = vand.u32 2147483647, %v12250_v12  ;;  %vm5503_vm14 = vweird.f32 %v7120_v49 }
 0x5bc   : > { %v7124_v60 = vpop.eup %7123  ;;  %6107 = vst.msk [vmem:[%s11031_s17 + $0xc0] sm:$0xff] %vm6082_vm4, %v5495_v10  ;;  %vm5937_vm2 = vweird.f32 %v12246_v35  ;;  %7129 = vpow2.f32 %v6641_v16  ;;  %v12286_v42 = vadd.f32 1.0, %v7122_v23  ;;  %vm12289_vm0 = vcmp.eq.f32.partialorder %v5941_v40, 8.507059e+37  ;;  %vm5504_vm5 = vmor %vm5502_vm9, %vm5503_vm14  ;;  %v4392_v10 = vpop.f32.mrf.mxu0 }
 0x5bd   : > { %v7126_v30 = vpop.eup %7125  ;;  %v5500_v63 = vmul.f32 %v7120_v49, %v5499_v51  ;;  %v5933_v24 = vmul.f32 %v7124_v60, %v12246_v35  ;;  %v5521_v25 = vand.u32 2147483647, %v12257_v62  ;;  %v5958_v48 = vand.u32 2147483648, %v12250_v12 }
 0x5be   : > { %v5944_v57 = vor.u32 1.1754944e-38, %v5943_v32  ;;  %v5523_v0 = vand.u32 2147483648, %v12257_v62  ;;  %v5948_v8 = vmul.f32 %v7126_v30, %v12250_v12  ;;  %vm5952_vm10 = vweird.f32 %v12250_v12  ;;  %v4788_v6 = vpop.f32.mrf.mxu3 }
 0x5bf   : > { %v5501_v55 = vadd.f32 %v7120_v49, %v5500_v63  ;;  %v5934_v22 = vsub.f32 1.0, %v5933_v24  ;;  %vm5517_vm15 = vweird.f32 %v12257_v62  ;;  %vm12299_vm3 = vcmp.eq.f32.partialorder %v5956_v58, 8.507059e+37 }
 0x5c0   : > { %7131 = vrcp.f32 %v12286_v42  ;;  %v7128_v45 = vpop.eup %7127  ;;  %vm5938_vm6 = vweird.f32 %v7124_v60  ;;  %v5949_v2 = vsub.f32 1.0, %v5948_v8  ;;  %vm5953_vm7 = vweird.f32 %v7126_v30 }
 0x5c1   : > { %v4830_v20 = vadd.f32 %v10957_v43, %v4693_v46  ;;  %v5505_v33 = vsel %vm5504_vm5, %v7120_v49, %v5501_v55  ;;  %v5935_v47 = vmul.f32 %v7124_v60, %v5934_v22  ;;  %v5513_v34 = vmul.f32 %v7128_v45, %v12257_v62  ;;  %vm5939_vm1 = vmor %vm5937_vm2, %vm5938_vm6 }
 0x5c2   : > { %vm12309_vm8 = vcmp.eq.f32.partialorder %v5521_v25, 8.507059e+37  ;;  %v5959_v21 = vor.u32 1.1754944e-38, %v5958_v48  ;;  %v7130_v14 = vpop.eup %7129  ;;  %v5510_v41 = vsel %vm12269_vm13, %v5509_v28, %v5505_v33  ;;  %v5950_v27 = vmul.f32 %v7126_v30, %v5949_v2  ;;  %vm5954_vm9 = vmor %vm5952_vm10, %vm5953_vm7  ;;  %v13356_v28 = vld [vmem:[#allocation147_spill] sm:$0xff]  ;;  %v13357_v48 = vld [vmem:[#allocation165_spill] sm:$0xff] }
 0x5c3   : > { %v5971_v39 = vand.u32 2147483647, %v12286_v42  ;;  %v5973_v5 = vand.u32 2147483648, %v12286_v42  ;;  %6108 = vst.msk [vmem:[%s11031_s17 + $0xc8] sm:$0xff] %vm6082_vm4, %v5510_v41  ;;  %v5936_v54 = vadd.f32 %v7124_v60, %v5935_v47  ;;  %v5514_v31 = vsub.f32 1.0, %v5513_v34 }
 0x5c4   : > { %vm5518_vm11 = vweird.f32 %v7128_v45  ;;  %v12319_v52 = vadd.f32 1.0, %v7130_v14  ;;  %v5951_v29 = vadd.f32 %v7126_v30, %v5950_v27  ;;  %v6642_v19 = vmul.f32 -1.442695, %v4830_v20 }
 0x5c5   : > { %v4859_v36 = vadd.f32 %v10957_v43, %v12241_v9  ;;  %v4696_v53 = vadd.f32 %v13353_v1, %v12244_v18  ;;  %v5940_v15 = vsel %vm5939_vm1, %v7124_v60, %v5936_v54  ;;  %v5515_v16 = vmul.f32 %v7128_v45, %v5514_v31  ;;  %vm5519_vm14 = vmor %vm5517_vm15, %vm5518_vm11 }
 0x5c6   : > { %v7132_v49 = vpop.eup %7131  ;;  %7133 = vrcp.f32 %v12319_v52  ;;  %v4860_v35 = vadd.f32 %v10957_v43, %v12254_v37  ;;  %v5945_v61 = vsel %vm12289_vm0, %v5944_v57, %v5940_v15  ;;  %v5524_v9 = vor.u32 1.1754944e-38, %v5523_v0  ;;  %v4084_v37 = vpop.f32.mrf.mxu1 }
 0x5c7   : > { %v5955_v46 = vsel %vm5954_vm9, %v7126_v30, %v5951_v29  ;;  %vm5967_vm12 = vweird.f32 %v12286_v42  ;;  %6137 = vst.msk [vmem:[%s11031_s17 + $0x1b0] sm:$0xff] %vm6082_vm4, %v5945_v61  ;;  %v5516_v18 = vadd.f32 %v7128_v45, %v5515_v16  ;;  %v5963_v12 = vmul.f32 %v7132_v49, %v12286_v42  ;;  %v4791_v8 = vpop.f32.mrf.mxu3  ;;  %v13359_v16 = vld [vmem:[#allocation145_spill] sm:$0xff] }
 0x5c8   : > { %v5960_v4 = vsel %vm12299_vm3, %v5959_v21, %v5955_v46  ;;  %vm12342_vm13 = vcmp.eq.f32.partialorder %v5971_v39, 8.507059e+37  ;;  %vm5968_vm2 = vweird.f32 %v7132_v49  ;;  %v5974_v11 = vor.u32 1.1754944e-38, %v5973_v5 }
 0x5c9   : > { %6138 = vst.msk [vmem:[%s11031_s17 + $0x1b8] sm:$0xff] %vm6082_vm4, %v5960_v4  ;;  %7135 = vpow2.f32 %v6642_v19  ;;  %v6671_v40 = vmul.f32 -1.442695, %v4859_v36  ;;  %v5520_v23 = vsel %vm5519_vm14, %v7128_v45, %v5516_v18  ;;  %v5964_v7 = vsub.f32 1.0, %v5963_v12  ;;  %vm5969_vm10 = vmor %vm5967_vm12, %vm5968_vm2 }
 0x5ca   : > { %v4831_v3 = vadd.f32 %v10957_v43, %v4696_v53  ;;  %v6672_v32 = vmul.f32 -1.442695, %v4860_v35  ;;  %v5525_v51 = vsel %vm12309_vm8, %v5524_v9, %v5520_v23  ;;  %v4297_v62 = vadd.f32 %v13356_v28, %v4084_v37  ;;  %v13358_v53 = vld [vmem:[#allocation45_spill] sm:$0xff] }
 0x5cb   : > { %7137 = vpow2.f32 %v6671_v40  ;;  %v4786_v58 = vadd.f32 %v12264_v59, %v12030_v44  ;;  %6109 = vst.msk [vmem:[%s11031_s17 + $0xd0] sm:$0xff] %vm6082_vm4, %v5525_v51  ;;  %v5965_v30 = vmul.f32 %v7132_v49, %v5964_v7  ;;  %v4789_v24 = vadd.f32 %v4788_v6, %v12213_v50  ;;  %v4395_v6 = vpop.f32.mrf.mxu0 }
 0x5cc   : > { %v7134_v60 = vpop.eup %7133  ;;  %v6643_v63 = vmul.f32 -1.442695, %v4831_v3  ;;  %7139 = vpow2.f32 %v6672_v32  ;;  %v5536_v25 = vand.u32 2147483647, %v12319_v52  ;;  %v4699_v57 = vadd.f32 %v13357_v48, %v4297_v62 }
 0x5cd   : > { %v5528_v13 = vmul.f32 %v7134_v60, %v12319_v52  ;;  %v4861_v0 = vadd.f32 %v10957_v43, %v4786_v58  ;;  %v5538_v55 = vand.u32 2147483648, %v12319_v52  ;;  %v5966_v44 = vadd.f32 %v7132_v49, %v5965_v30 }
 0x5ce   : > { %7141 = vpow2.f32 %v6643_v63  ;;  %v4862_v59 = vadd.f32 %v10957_v43, %v4789_v24  ;;  %vm5533_vm0 = vweird.f32 %v7134_v60  ;;  %v4832_v50 = vadd.f32 %v10957_v43, %v4699_v57 }
 0x5cf   : > { %v7136_v22 = vpop.eup %7135  ;;  %v5529_v17 = vsub.f32 1.0, %v5528_v13  ;;  %v6673_v45 = vmul.f32 -1.442695, %v4861_v0  ;;  %v5970_v2 = vsel %vm5969_vm10, %v7132_v49, %v5966_v44  ;;  %v4792_v47 = vadd.f32 %v4791_v8, %v12216_v56 }
 0x5d0   : > { %v12370_v20 = vadd.f32 1.0, %v7136_v22  ;;  %v6674_v33 = vmul.f32 -1.442695, %v4862_v59  ;;  %v5975_v21 = vsel %vm12342_vm13, %v5974_v11, %v5970_v2  ;;  %v6644_v14 = vmul.f32 -1.442695, %v4832_v50 }
 0x5d1   : > { %v7138_v34 = vpop.eup %7137  ;;  %v5530_v26 = vmul.f32 %v7134_v60, %v5529_v17  ;;  %7143 = vpow2.f32 %v6673_v45  ;;  %vm5532_vm15 = vweird.f32 %v12319_v52  ;;  %6139 = vst.msk [vmem:[%s11031_s17 + $0x1c0] sm:$0xff] %vm6082_vm4, %v5975_v21  ;;  %vm5537_vm5 = vcmp.eq.f32.partialorder %v5536_v25, 8.507059e+37 }
 0x5d2   : > { %v7140_v41 = vpop.eup %7139  ;;  %7145 = vrcp.f32 %v12370_v20  ;;  %v12379_v27 = vadd.f32 1.0, %v7138_v34  ;;  %vm5534_vm3 = vmor %vm5532_vm15, %vm5533_vm0  ;;  %v5539_v5 = vor.u32 1.1754944e-38, %v5538_v55  ;;  %v5551_v31 = vand.u32 2147483647, %v12370_v20 }
 0x5d3   : > { %v5531_v42 = vadd.f32 %v7134_v60, %v5530_v26  ;;  %v12381_v39 = vadd.f32 1.0, %v7140_v41  ;;  %7147 = vpow2.f32 %v6644_v14  ;;  %v4863_v52 = vadd.f32 %v10957_v43, %v4792_v47 }
 0x5d4   : > { %v7142_v56 = vpop.eup %7141  ;;  %7149 = vpow2.f32 %v6674_v33  ;;  %v5553_v19 = vand.u32 2147483648, %v12370_v20  ;;  %v12392_v49 = vadd.f32 %v4392_v10, %v13358_v53  ;;  %v12397_v35 = vadd.f32 %v4395_v6, %v13359_v16  ;;  %v12416_v10 = vpop.f32.mrf.mxu3 }
 0x5d5   : > { %v5535_v54 = vsel %vm5534_vm3, %v7134_v60, %v5531_v42  ;;  %7151 = vrcp.f32 %v12379_v27  ;;  %v12388_v36 = vadd.f32 1.0, %v7142_v56  ;;  %v5986_v61 = vand.u32 2147483647, %v12379_v27 }
 0x5d6   : > { %v5540_v29 = vsel %vm5537_vm5, %v5539_v5, %v5535_v54  ;;  %7153 = vrcp.f32 %v12381_v39  ;;  %v5988_v9 = vand.u32 2147483648, %v12379_v27  ;;  %vm5547_vm6 = vweird.f32 %v12370_v20 }
 0x5d7   : > { %v7144_v1 = vpop.eup %7143  ;;  %6110 = vst.msk [vmem:[%s11031_s17 + $0xd8] sm:$0xff] %vm6082_vm4, %v5540_v29  ;;  %7155 = vrcp.f32 %v12388_v36  ;;  %vm12404_vm7 = vcmp.eq.f32.partialorder %v5551_v31, 8.507059e+37  ;;  %v6675_v12 = vmul.f32 -1.442695, %v4863_v52  ;;  %v5554_v37 = vor.u32 1.1754944e-38, %v5553_v19 }
 0x5d8   : > { %v7146_v15 = vpop.eup %7145  ;;  %vm5982_vm8 = vweird.f32 %v12379_v27  ;;  %v12411_v40 = vadd.f32 1.0, %v7144_v1  ;;  %vm5997_vm11 = vweird.f32 %v12381_v39  ;;  %v6001_v3 = vand.u32 2147483647, %v12381_v39 }
 0x5d9   : > { %v7148_v46 = vpop.eup %7147  ;;  %v5543_v18 = vmul.f32 %v7146_v15, %v12370_v20  ;;  %v6003_v32 = vand.u32 2147483648, %v12381_v39  ;;  %vm12419_vm1 = vcmp.eq.f32.partialorder %v5986_v61, 8.507059e+37  ;;  %v5989_v58 = vor.u32 1.1754944e-38, %v5988_v9 }
 0x5da   : > { %v7150_v38 = vpop.eup %7149  ;;  %v12409_v11 = vadd.f32 1.0, %v7148_v46  ;;  %v5566_v60 = vand.u32 2147483647, %v12388_v36  ;;  %vm5548_vm9 = vweird.f32 %v7146_v15  ;;  %vm5562_vm12 = vweird.f32 %v12388_v36 }
 0x5db   : > { %v7152_v23 = vpop.eup %7151  ;;  %v5544_v7 = vsub.f32 1.0, %v5543_v18  ;;  %v5568_v25 = vand.u32 2147483648, %v12388_v36  ;;  %v12429_v48 = vadd.f32 1.0, %v7150_v38  ;;  %vm12432_vm13 = vcmp.eq.f32.partialorder %v6001_v3, 8.507059e+37  ;;  %vm5549_vm14 = vmor %vm5547_vm6, %vm5548_vm9 }
 0x5dc   : > { %v7154_v51 = vpop.eup %7153  ;;  %v5978_v28 = vmul.f32 %v7152_v23, %v12379_v27  ;;  %7157 = vrcp.f32 %v12409_v11  ;;  %vm5983_vm2 = vweird.f32 %v7152_v23  ;;  %vm12438_vm0 = vcmp.eq.f32.partialorder %v5566_v60, 8.507059e+37  ;;  %v4797_v52 = vpop.f32.mrf.mxu3 }
 0x5dd   : > { %v5545_v30 = vmul.f32 %v7146_v15, %v5544_v7  ;;  %v5993_v63 = vmul.f32 %v7154_v51, %v12381_v39  ;;  %7159 = vpow2.f32 %v6675_v12  ;;  %v7156_v24 = vpop.eup %7155  ;;  %v6004_v22 = vor.u32 1.1754944e-38, %v6003_v32  ;;  %vm5984_vm15 = vmor %vm5982_vm8, %vm5983_vm2 }
 0x5de   : > { %v5979_v13 = vsub.f32 1.0, %v5978_v28  ;;  %7161 = vrcp.f32 %v12411_v40  ;;  %v5558_v0 = vmul.f32 %v7156_v24, %v12388_v36  ;;  %vm5998_vm10 = vweird.f32 %v7154_v51 }
 0x5df   : > { %v5546_v57 = vadd.f32 %v7146_v15, %v5545_v30  ;;  %v5994_v8 = vsub.f32 1.0, %v5993_v63  ;;  %v5569_v34 = vor.u32 1.1754944e-38, %v5568_v25  ;;  %7163 = vrcp.f32 %v12429_v48  ;;  %vm5999_vm5 = vmor %vm5997_vm11, %vm5998_vm10 }
 0x5e0   : > { %v5980_v44 = vmul.f32 %v7152_v23, %v5979_v13  ;;  %v5559_v50 = vsub.f32 1.0, %v5558_v0  ;;  %vm5563_vm3 = vweird.f32 %v7156_v24  ;;  %vm5577_vm6 = vweird.f32 %v12409_v11 }
 0x5e1   : > { %v5550_v17 = vsel %vm5549_vm14, %v7146_v15, %v5546_v57  ;;  %v5995_v45 = vmul.f32 %v7154_v51, %v5994_v8  ;;  %v5581_v56 = vand.u32 2147483647, %v12409_v11  ;;  %v5583_v27 = vand.u32 2147483648, %v12409_v11 }
 0x5e2   : > { %v7158_v2 = vpop.eup %7157  ;;  %v5555_v33 = vsel %vm12404_vm7, %v5554_v37, %v5550_v17  ;;  %v5981_v47 = vadd.f32 %v7152_v23, %v5980_v44  ;;  %v5560_v26 = vmul.f32 %v7156_v24, %v5559_v50  ;;  %vm5564_vm7 = vmor %vm5562_vm12, %vm5563_vm3  ;;  %vm6012_vm8 = vweird.f32 %v12411_v40 }
 0x5e3   : > { %v7160_v20 = vpop.eup %7159  ;;  %6111 = vst.msk [vmem:[%s11031_s17 + $0xe0] sm:$0xff] %vm6082_vm4, %v5555_v33  ;;  %v5996_v21 = vadd.f32 %v7154_v51, %v5995_v45  ;;  %v5573_v14 = vmul.f32 %v7158_v2, %v12409_v11  ;;  %v6018_v19 = vand.u32 2147483648, %v12411_v40  ;;  %vm5578_vm11 = vweird.f32 %v7158_v2 }
 0x5e4   : > { %v7162_v41 = vpop.eup %7161  ;;  %v5985_v42 = vsel %vm5984_vm15, %v7152_v23, %v5981_v47  ;;  %v5561_v6 = vadd.f32 %v7156_v24, %v5560_v26  ;;  %v12470_v15 = vadd.f32 1.0, %v7160_v20  ;;  %v4795_v9 = vadd.f32 %v12416_v10, %v12392_v49  ;;  %vm5579_vm9 = vmor %vm5577_vm6, %vm5578_vm11 }
 0x5e5   : > { %v5990_v5 = vsel %vm12419_vm1, %v5989_v58, %v5985_v42  ;;  %v6000_v54 = vsel %vm5999_vm5, %v7154_v51, %v5996_v21  ;;  %v5574_v31 = vsub.f32 1.0, %v5573_v14  ;;  %v6008_v29 = vmul.f32 %v7162_v41, %v12411_v40  ;;  %v7164_v16 = vpop.eup %7163 }
 0x5e6   : > { %6140 = vst.msk [vmem:[%s11031_s17 + $0x1c8] sm:$0xff] %vm6082_vm4, %v5990_v5  ;;  %v6005_v39 = vsel %vm12432_vm13, %v6004_v22, %v6000_v54  ;;  %v5565_v1 = vsel %vm5564_vm7, %v7156_v24, %v5561_v6  ;;  %v4798_v46 = vadd.f32 %v4797_v52, %v12397_v35  ;;  %vm5582_vm1 = vcmp.eq.f32.partialorder %v5581_v56, 8.507059e+37 }
 0x5e7   : > { %6141 = vst.msk [vmem:[%s11031_s17 + $0x1d0] sm:$0xff] %vm6082_vm4, %v6005_v39  ;;  %v5575_v53 = vmul.f32 %v7158_v2, %v5574_v31  ;;  %v5570_v36 = vsel %vm12438_vm0, %v5569_v34, %v5565_v1  ;;  %v6009_v61 = vsub.f32 1.0, %v6008_v29  ;;  %v5584_v4 = vor.u32 1.1754944e-38, %v5583_v27 }
 0x5e8   : > { %6112 = vst.msk [vmem:[%s11031_s17 + $0xe8] sm:$0xff] %vm6082_vm4, %v5570_v36  ;;  %v6023_v12 = vmul.f32 %v7164_v16, %v12429_v48  ;;  %vm6013_vm12 = vweird.f32 %v7162_v41  ;;  %v6016_v37 = vand.u32 2147483647, %v12411_v40  ;;  %7165 = vrcp.f32 %v12470_v15 }
 0x5e9   : > { %v5576_v18 = vadd.f32 %v7158_v2, %v5575_v53  ;;  %v6010_v38 = vmul.f32 %v7162_v41, %v6009_v61  ;;  %v6019_v23 = vor.u32 1.1754944e-38, %v6018_v19  ;;  %v4864_v7 = vadd.f32 %v10957_v43, %v4795_v9  ;;  %vm6014_vm13 = vmor %vm6012_vm8, %vm6013_vm12 }
 0x5ea   : > { %v6024_v35 = vsub.f32 1.0, %v6023_v12  ;;  %v6033_v10 = vand.u32 2147483648, %v12429_v48  ;;  %v4865_v51 = vadd.f32 %v10957_v43, %v4798_v46  ;;  %vm6028_vm14 = vweird.f32 %v7164_v16 }
 0x5eb   : > { %v5580_v49 = vsel %vm5579_vm9, %v7158_v2, %v5576_v18  ;;  %v6011_v32 = vadd.f32 %v7162_v41, %v6010_v38  ;;  %v6031_v28 = vand.u32 2147483647, %v12429_v48  ;;  %v6676_v62 = vmul.f32 -1.442695, %v4864_v7 }
 0x5ec   : > { %v5585_v3 = vsel %vm5582_vm1, %v5584_v4, %v5580_v49  ;;  %v6025_v11 = vmul.f32 %v7164_v16, %v6024_v35  ;;  %vm6017_vm2 = vcmp.eq.f32.partialorder %v6016_v37, 8.507059e+37  ;;  %v6677_v60 = vmul.f32 -1.442695, %v4865_v51 }
 0x5ed   : > { %6113 = vst.msk [vmem:[%s11031_s17 + $0xf0] sm:$0xff] %vm6082_vm4, %v5585_v3  ;;  %v6015_v58 = vsel %vm6014_vm13, %v7162_v41, %v6011_v32  ;;  %vm6027_vm0 = vweird.f32 %v12429_v48  ;;  %7167 = vpow2.f32 %v6676_v62  ;;  %v6034_v40 = vor.u32 1.1754944e-38, %v6033_v10 }
 0x5ee   : > { %v6020_v30 = vsel %vm6017_vm2, %v6019_v23, %v6015_v58  ;;  %v6026_v63 = vadd.f32 %v7164_v16, %v6025_v11  ;;  %v7166_v43 = vpop.eup %7165  ;;  %vm6029_vm10 = vmor %vm6027_vm0, %vm6028_vm14  ;;  %7169 = vpow2.f32 %v6677_v60  ;;  %vm6032_vm15 = vcmp.eq.f32.partialorder %v6031_v28, 8.507059e+37 }
 0x5ef   : > { %6142 = vst.msk [vmem:[%s11031_s17 + $0x1d8] sm:$0xff] %vm6082_vm4, %v6020_v30  ;;  %v6038_v13 = vmul.f32 %v7166_v43, %v12470_v15  ;;  %v6048_v0 = vand.u32 2147483648, %v12470_v15  ;;  %vm6043_vm3 = vweird.f32 %v7166_v43  ;;  %v6046_v55 = vand.u32 2147483647, %v12470_v15 }
 0x5f0   : > { %v6030_v24 = vsel %vm6029_vm10, %v7164_v16, %v6026_v63  ;;  %vm6042_vm5 = vweird.f32 %v12470_v15 }
 0x5f1   : > { %v6035_v25 = vsel %vm6032_vm15, %v6034_v40, %v6030_v24  ;;  %v6039_v57 = vsub.f32 1.0, %v6038_v13  ;;  %vm6044_vm6 = vmor %vm6042_vm5, %vm6043_vm3  ;;  %v6049_v50 = vor.u32 1.1754944e-38, %v6048_v0  ;;  %vm6047_vm7 = vcmp.eq.f32.partialorder %v6046_v55, 8.507059e+37 }
 0x5f2   : > { %6143 = vst.msk [vmem:[%s11031_s17 + $0x1e0] sm:$0xff] %vm6082_vm4, %v6035_v25 }
 0x5f3   : > { %v7168_v8 = vpop.eup %7167  ;;  %v6040_v48 = vmul.f32 %v7166_v43, %v6039_v57 }
 0x5f4   : > { %v7170_v44 = vpop.eup %7169  ;;  %v5120_v59 = vadd.f32 1.0, %v7168_v8 }
 0x5f5   : > { %v6041_v22 = vadd.f32 %v7166_v43, %v6040_v48  ;;  %v5121_v17 = vadd.f32 1.0, %v7170_v44 }
 0x5f6   : > { %7171 = vrcp.f32 %v5120_v59  ;;  %v6063_v21 = vand.u32 2147483648, %v5120_v59  ;;  %v6061_v42 = vand.u32 2147483647, %v5120_v59  ;;  %vm6057_vm1 = vweird.f32 %v5120_v59 }
 0x5f7   : > { %v6045_v45 = vsel %vm6044_vm6, %v7166_v43, %v6041_v22  ;;  %7173 = vrcp.f32 %v5121_v17  ;;  %v6078_v56 = vand.u32 2147483648, %v5121_v17  ;;  %v6076_v5 = vand.u32 2147483647, %v5121_v17 }
 0x5f8   : > { %v6050_v2 = vsel %vm6047_vm7, %v6049_v50, %v6045_v45  ;;  %v6064_v54 = vor.u32 1.1754944e-38, %v6063_v21  ;;  %vm6072_vm12 = vweird.f32 %v5121_v17  ;;  %vm6062_vm13 = vcmp.eq.f32.partialorder %v6061_v42, 8.507059e+37 }
 0x5f9   : > { %6144 = vst.msk [vmem:[%s11031_s17 + $0x1e8] sm:$0xff] %vm6082_vm4, %v6050_v2  ;;  %v6079_v39 = vor.u32 1.1754944e-38, %v6078_v56  ;;  %vm6077_vm2 = vcmp.eq.f32.partialorder %v6076_v5, 8.507059e+37 }
 0x5fc   : > { %v7172_v33 = vpop.eup %7171 }
 0x5fd   : > { %v7174_v47 = vpop.eup %7173  ;;  %v6053_v34 = vmul.f32 %v7172_v33, %v5120_v59  ;;  %vm6058_vm8 = vweird.f32 %v7172_v33 }
 0x5fe   : > { %v6068_v20 = vmul.f32 %v7174_v47, %v5121_v17  ;;  %vm6073_vm11 = vweird.f32 %v7174_v47  ;;  %vm6059_vm9 = vmor %vm6057_vm1, %vm6058_vm8 }
 0x5ff   : > { %v6054_v26 = vsub.f32 1.0, %v6053_v34  ;;  %vm6074_vm14 = vmor %vm6072_vm12, %vm6073_vm11 }
 0x600   : > { %v6069_v14 = vsub.f32 1.0, %v6068_v20 }
 0x601   : > { %v6055_v41 = vmul.f32 %v7172_v33, %v6054_v26 }
 0x602   : > { %v6070_v27 = vmul.f32 %v7174_v47, %v6069_v14 }
 0x603   : > { %v6056_v6 = vadd.f32 %v7172_v33, %v6055_v41 }
 0x604   : > { %v6071_v31 = vadd.f32 %v7174_v47, %v6070_v27 }
 0x605   : > { %v6060_v52 = vsel %vm6059_vm9, %v7172_v33, %v6056_v6 }
 0x606   : > { %v6065_v29 = vsel %vm6062_vm13, %v6064_v54, %v6060_v52  ;;  %v6075_v19 = vsel %vm6074_vm14, %v7174_v47, %v6071_v31 }
 0x607   : > { %6145 = vst.msk [vmem:[%s11031_s17 + $0x1f0] sm:$0xff] %vm6082_vm4, %v6065_v29  ;;  %v6080_v1 = vsel %vm6077_vm2, %v6079_v39, %v6075_v19 }
 0x608   : > { %6146 = vst.msk [vmem:[%s11031_s17 + $0x1f8] sm:$0xff] %vm6082_vm4, %v6080_v1 }
 0x609 PF: > { %s22_s19 = sadd.s32 1, %s7245_s19  }
 0x60a   : > { %p19_p4 = scmp.ge.s32.totalorder %s22_s19, 6  }
 0x60c   :  { %21 = sbr.rel (!%p19_p4) target bundleno = 2 (0x2), region = 97 }

</bundles_post_ra>
